<compile_context>
chip_gen: v5e
topology: v5e:2x2
jax: 0.10.0
libtpu: 0.0.40
codegen_flags: <defaults>
</compile_context>

<pallas_src>
import numpy as np

import jax
import jax.numpy as jnp
from jax import lax
from jax.experimental import pallas as pl
from jax.experimental.pallas import tpu as pltpu


# --------------------------------------------------------------------------
# Host-side (one-time) weight preprocessing: conv/deconv -> dense operator
# matrices acting on flattened per-batch (C, H, W) vectors (C-order flatten).
# --------------------------------------------------------------------------

def _ceil_to(n, m):
    return ((n + m - 1) // m) * m


def _pad_to(a, shape):
    out = np.zeros(shape, a.dtype)
    out[tuple(slice(0, s) for s in a.shape)] = a
    return out


def _conv_mat(w, in_chw, stride):
    """Conv2d (padding=0) as a dense matrix:  flat_out = flat_in @ A."""
    Cout, Cin, KH, KW = w.shape
    Ci, Hi, Wi = in_chw
    assert Ci == Cin
    SH, SW = stride
    Ho = (Hi - KH) // SH + 1
    Wo = (Wi - KW) // SW + 1
    A = np.zeros((Cin * Hi * Wi, Cout * Ho * Wo), np.float32)
    ho = np.arange(Ho)[:, None]
    wo = np.arange(Wo)[None, :]
    for co in range(Cout):
        for ci in range(Cin):
            for kh in range(KH):
                for kw in range(KW):
                    r = ci * Hi * Wi + (SH * ho + kh) * Wi + (SW * wo + kw)
                    c = co * Ho * Wo + ho * Wo + wo
                    A[r.ravel(), c.ravel()] = w[co, ci, kh, kw]
    return A, (Cout, Ho, Wo)


def _deconv_mat(w, in_chw, stride):
    """ConvTranspose2d (padding=0) as a dense matrix: flat_out = flat_in @ A."""
    Cin, Cout, KH, KW = w.shape
    Ci, Hi, Wi = in_chw
    assert Ci == Cin
    SH, SW = stride
    Ho = (Hi - 1) * SH + KH
    Wo = (Wi - 1) * SW + KW
    A = np.zeros((Cin * Hi * Wi, Cout * Ho * Wo), np.float32)
    hi = np.arange(Hi)[:, None]
    wi = np.arange(Wi)[None, :]
    for ci in range(Cin):
        for co in range(Cout):
            for kh in range(KH):
                for kw in range(KW):
                    r = ci * Hi * Wi + hi * Wi + wi
                    c = co * Ho * Wo + (SH * hi + kh) * Wo + (SW * wi + kw)
                    A[r.ravel(), c.ravel()] = w[ci, co, kh, kw]
    return A, (Cout, Ho, Wo)


def _pool_src_indices(in_chw, kernel, stride):
    """Flat source index (c*H*W + h*W + w) for each (window offset, pooled pos)."""
    C, H, W = in_chw
    KH, KW = kernel
    SH, SW = stride
    Ho = (H - KH) // SH + 1
    Wo = (W - KW) // SW + 1
    n = C * Ho * Wo
    idx = np.zeros((KH * KW, n), np.int64)
    hp = np.arange(Ho)[:, None]
    wp = np.arange(Wo)[None, :]
    for kh in range(KH):
        for kw in range(KW):
            k = kh * KW + kw
            for c in range(C):
                src = c * H * W + (SH * hp + kh) * W + (SW * wp + kw)
                dst = c * Ho * Wo + hp * Wo + wp
                idx[k, dst.ravel()] = src.ravel()
    return idx, (C, Ho, Wo)


def prepare_params(params, *, in_shape, pool_kernel, pool_stride, lane=128):
    """One-time transform of PyTorch-layout params into kernel-ready arrays.

    Produces 128-lane-padded, bf16 operator matrices:
      a1p : conv1 (+bias folded into b1p) with the pool-window gather folded
            in, laid out as n_off slabs of 128 pooled lanes.
      a2  : conv2 on the (padded) pooled vector.
      wd  : linear1..linear4 + deconv1 folded into one affine map (no
            nonlinearity between them in the reference model).
      su  : per-window-offset 0/1 scatter matrices for MaxUnpool2d.
      ad2 : deconv2.
    Biases stay f32 (tiny).
    """
    _, C1, H, W = in_shape
    p = {k: np.asarray(v, dtype=np.float32) for k, v in params.items()}

    # conv1 operator + pooling geometry
    A1, chw1 = _conv_mat(p["conv1_w"], (C1, H, W), (2, 2))       # (C1HW, P)
    C2_, H1, W1 = chw1
    P = C2_ * H1 * W1
    b1rep = np.repeat(p["conv1_b"], H1 * W1)                     # (P,)

    src_idx, chwp = _pool_src_indices(chw1, pool_kernel, pool_stride)
    n_off, npool = src_idx.shape
    NP = _ceil_to(npool, lane)     # pooled lanes, padded (120 -> 128)
    PP = _ceil_to(P, lane)         # unpool lanes, padded (372 -> 384)

    # conv1 + ReLU + window gather folded: n_off slabs of NP lanes (zero pad).
    A1p = np.zeros((A1.shape[0], n_off * NP), np.float32)
    b1p = np.zeros((n_off * NP,), np.float32)
    for k in range(n_off):
        A1p[:, k * NP:k * NP + npool] = A1[:, src_idx[k]]
        b1p[k * NP:k * NP + npool] = b1rep[src_idx[k]]

    # conv2 on the pooled vector.
    A2, chw2 = _conv_mat(p["conv2_w"], chwp, (2, 2))             # (npool, feat)
    C4_, H2, W2 = chw2
    feat = C4_ * H2 * W2
    F = _ceil_to(feat, lane)
    b2 = np.repeat(p["conv2_b"], H2 * W2)
    A2p = _pad_to(A2, (NP, F))
    b2p = _pad_to(b2, (F,))

    # linear1 -> linear2 -> linear3 -> linear4 -> deconv1: all affine, no
    # activations in between in the reference model -> fold into one map.
    Wc = p["l1_w"].T @ p["l2_w"].T @ p["l3_w"].T @ p["l4_w"].T   # (feat, feat)
    bc = (((p["l1_b"] @ p["l2_w"].T + p["l2_b"]) @ p["l3_w"].T + p["l3_b"])
          @ p["l4_w"].T + p["l4_b"])                             # (feat,)
    Ad1, chwd1 = _deconv_mat(p["deconv1_w"], chw2, (2, 2))       # (feat, npool)
    assert chwd1 == chwp, (chwd1, chwp)
    bd1 = np.repeat(p["deconv1_b"], chwd1[1] * chwd1[2])         # (npool,)
    Wd = Wc @ Ad1                                                # (feat, npool)
    bd = bc @ Ad1 + bd1
    Wdp = _pad_to(Wd, (F, NP))
    bdp = _pad_to(bd, (NP,))

    # Unpool: per-offset 0/1 scatter matrices (pooled lane -> unpooled lane).
    S = np.zeros((n_off, NP, PP), np.float32)
    for k in range(n_off):
        S[k, np.arange(npool), src_idx[k]] = 1.0

    # deconv2
    Ad2, chwd2 = _deconv_mat(p["deconv2_w"], chw1, (2, 2))       # (P, C1*H*W)
    assert chwd2 == (C1, H, W), (chwd2, (C1, H, W))
    bd2 = np.repeat(p["deconv2_b"], H * W)
    Ad2p = _pad_to(Ad2, (PP, Ad2.shape[1]))

    bf16 = jnp.bfloat16
    return dict(
        a1p=jnp.asarray(A1p, bf16), b1p=jnp.asarray(b1p.reshape(1, -1)),
        a2=jnp.asarray(A2p, bf16), b2=jnp.asarray(b2p.reshape(1, -1)),
        wd=jnp.asarray(Wdp, bf16), bd=jnp.asarray(bdp.reshape(1, -1)),
        su=jnp.asarray(S, bf16),
        ad2=jnp.asarray(Ad2p, bf16), bd2=jnp.asarray(bd2.reshape(1, -1)),
    )


# --------------------------------------------------------------------------
# Single fused Pallas kernel: whole forward pass, everything in VMEM.
# --------------------------------------------------------------------------

def _autoencoder_kernel(x_ref, a1_ref, b1_ref, a2_ref, b2_ref,
                        wd_ref, bd_ref, su_ref, ad2_ref, bd2_ref, o_ref):
    f32 = jnp.float32
    bf16 = jnp.bfloat16

    x = x_ref[...]                                   # (TB, Cin*H*W) bf16
    TB = x.shape[0]
    NOFF, NP, PP = su_ref.shape                      # (n_off, 128, 384)

    # conv1 + bias + ReLU + pool-window gather (selection folded into a1p),
    # laid out as NOFF lane-aligned slabs of NP lanes -> one MXU matmul.
    cand = jnp.dot(x, a1_ref[...], preferred_element_type=f32) + b1_ref[...]
    cand = jnp.maximum(cand, 0.0)                    # (TB, NOFF*NP)

    def slab(k):                                     # lane-aligned -> free select
        return lax.slice(cand, (0, k * NP), (TB, (k + 1) * NP))

    # MaxPool2d: running first-max-wins over window offsets, init from k=0.
    best_v = slab(0)
    best_k = jnp.zeros((TB, NP), dtype=jnp.int32)
    for k in range(1, NOFF):
        v = slab(k)
        take = v > best_v
        best_v = jnp.where(take, v, best_v)
        best_k = jnp.where(take, k, best_k)

    # conv2 + ReLU (dense GEMM on the padded pooled vector)
    h = jnp.dot(best_v.astype(bf16), a2_ref[...],
                preferred_element_type=f32) + b2_ref[...]
    h = jnp.maximum(h, 0.0)                          # (TB, F) == torch.flatten(x,1)

    # linear1..linear4 + deconv1, folded host-side into one affine map.
    d1 = jnp.dot(h.astype(bf16), wd_ref[...],
                 preferred_element_type=f32) + bd_ref[...]        # (TB, NP)

    # MaxUnpool2d: for each window offset k, gate d1 by "offset k won this
    # pooled position" and scatter through the 0/1 matrix su[k] on the MXU.
    # Offsets are combined with MAX over covered positions so duplicate
    # recorded indices keep the max of the colliding values (same semantics
    # as the previous kernel).
    # TODO(synk): PyTorch's MaxUnpool2d keeps an unspecified one of the
    # colliding values; we deterministically keep the max.
    neg = jnp.float32(-jnp.inf)
    best = jnp.full((TB, PP), neg, dtype=f32)
    for k in range(NOFF):
        sk = su_ref[k]                                            # (NP, PP) bf16
        mk = (best_k == k).astype(f32)                            # (TB, NP)
        vals = jnp.dot((mk * d1).astype(bf16), sk, preferred_element_type=f32)
        cover = jnp.dot(mk.astype(bf16), sk, preferred_element_type=f32)
        best = jnp.maximum(best, jnp.where(cover > 0.5, vals, neg))
    up = jnp.where(best > neg, best, 0.0)                         # (TB, PP)

    # deconv2 (dense GEMM) -> lane-dense (TB, Cin*H*W) output
    out = jnp.dot(up.astype(bf16), ad2_ref[...],
                  preferred_element_type=f32) + bd2_ref[...]
    o_ref[...] = out.astype(o_ref.dtype)


_WEIGHT_KEYS = ("a1p", "b1p", "a2", "b2", "wd", "bd", "su", "ad2", "bd2")


def autoencoder_forward(x, kp):
    B = x.shape[0]
    xf = x.reshape(B, -1).astype(jnp.bfloat16)       # halve input DMA bytes
    n_in = xf.shape[1]
    n_out = kp["ad2"].shape[1]

    # Batch grid: block of <=256 rows (sublane-friendly, fits v7x's 64 MiB VMEM
    # comfortably); "parallel" lets it shard across both v7x TensorCores.
    TB = B if B <= 256 else 256
    grid = (pl.cdiv(B, TB),)

    def row_spec(n):
        return pl.BlockSpec((TB, n), lambda i: (i, 0))

    def const_spec(shape):
        nd = len(shape)
        return pl.BlockSpec(shape, lambda i, _nd=nd: (0,) * _nd)

    in_specs = [row_spec(n_in)] + [const_spec(kp[k].shape) for k in _WEIGHT_KEYS]

    out_flat = pl.pallas_call(
        _autoencoder_kernel,
        out_shape=jax.ShapeDtypeStruct((B, n_out), jnp.float32),
        grid=grid,
        in_specs=in_specs,
        out_specs=row_spec(n_out),
        compiler_params=pltpu.CompilerParams(
            dimension_semantics=("parallel",),
            vmem_limit_bytes=32 * 1024 * 1024),
    )(xf, *[kp[k] for k in _WEIGHT_KEYS])
    return out_flat.reshape(x.shape)


# --------------------------------------------------------------------------
# Example run at small shapes consistent with the module arithmetic:
#   in_channels=2, xlen=64, H=8, h1=32, n_e=8, batch=2
#   k2 = int(64 % 8 / 2 + 3) = 3
#   conv1 (B,4,3,31) -> pool (B,4,2,15) -> conv2 (B,8,1,7) -> 56 -> 32 -> 8
#   -> 32 -> 56 -> deconv1 (B,4,2,15) -> unpool (B,4,3,31) -> deconv2 (B,2,8,64)
# --------------------------------------------------------------------------

if __name__ == "__main__":
    in_channels, n_e, xlen, h1 = 2, 8, 64, 32
    H_in = 8
    k2 = int(xlen % 8 / 2.0 + 3)                             # = 3
    C1, C2, C4 = in_channels, in_channels * 2, in_channels * 4
    feat = int((xlen / 8 - (1 + k2) / 4) * C4)               # = 56

    key = jax.random.PRNGKey(0)
    ks = jax.random.split(key, 20)

    def init(k, shape, scale=0.1):
        return (scale * jax.random.normal(k, shape)).astype(jnp.float32)

    params = {
        "conv1_w": init(ks[0], (C2, C1, 4, 4)),    "conv1_b": init(ks[1], (C2,)),
        "conv2_w": init(ks[2], (C4, C2, 2, 3)),    "conv2_b": init(ks[3], (C4,)),
        "l1_w": init(ks[4], (h1, feat)),           "l1_b": init(ks[5], (h1,)),
        "l2_w": init(ks[6], (n_e, h1)),            "l2_b": init(ks[7], (n_e,)),
        "l3_w": init(ks[8], (h1, n_e)),            "l3_b": init(ks[9], (h1,)),
        "l4_w": init(ks[10], (feat, h1)),          "l4_b": init(ks[11], (feat,)),
        "deconv1_w": init(ks[12], (C4, C2, 2, 3)), "deconv1_b": init(ks[13], (C2,)),
        "deconv2_w": init(ks[14], (C2, C1, 4, 4)), "deconv2_b": init(ks[15], (C1,)),
    }

    x = jax.random.normal(ks[16], (2, in_channels, H_in, xlen), dtype=jnp.float32)

    # One-time weight preprocessing (outside the per-forward path).
    kp = prepare_params(params, in_shape=x.shape,
                        pool_kernel=(2, k2), pool_stride=(1, 2))

    fwd = jax.jit(autoencoder_forward)
    out = jax.block_until_ready(fwd(x, kp))

    assert out.shape == x.shape, out.shape
    assert bool(jnp.all(jnp.isfinite(out)))
    assert float(jnp.max(jnp.abs(out))) > 0.0
    print("KERNEL_OK")
</pallas_src>

<mosaic_0001>
module attributes {stable_mosaic.version = 11 : i64} {
  func.func @_autoencoder_kernel(%arg0: i32, %arg1: memref<2x1024xbf16, #tpu.memory_space<vmem>>, %arg2: memref<1024x768xbf16, #tpu.memory_space<vmem>>, %arg3: memref<1x768xf32, #tpu.memory_space<vmem>>, %arg4: memref<128x128xbf16, #tpu.memory_space<vmem>>, %arg5: memref<1x128xf32, #tpu.memory_space<vmem>>, %arg6: memref<128x128xbf16, #tpu.memory_space<vmem>>, %arg7: memref<1x128xf32, #tpu.memory_space<vmem>>, %arg8: memref<6x128x384xbf16, #tpu.memory_space<vmem>>, %arg9: memref<384x1024xbf16, #tpu.memory_space<vmem>>, %arg10: memref<1x1024xf32, #tpu.memory_space<vmem>>, %arg11: memref<2x1024xf32, #tpu.memory_space<vmem>>) attributes {dimension_semantics = [#tpu.dimension_semantics<parallel>], iteration_bounds = array<i64: 1>, scalar_prefetch = 0 : i64, scratch_operands = 0 : i64, tpu.core_type = #tpu.core_type<tc>, window_params = [{transform_indices = @transform_0, window_bounds = array<i64: 2, 1024>}, {pipeline_mode = #tpu.pipeline_mode<synchronous>, transform_indices = @transform_1, window_bounds = array<i64: 1024, 768>}, {pipeline_mode = #tpu.pipeline_mode<synchronous>, transform_indices = @transform_2, window_bounds = array<i64: 1, 768>}, {pipeline_mode = #tpu.pipeline_mode<synchronous>, transform_indices = @transform_3, window_bounds = array<i64: 128, 128>}, {pipeline_mode = #tpu.pipeline_mode<synchronous>, transform_indices = @transform_4, window_bounds = array<i64: 1, 128>}, {pipeline_mode = #tpu.pipeline_mode<synchronous>, transform_indices = @transform_5, window_bounds = array<i64: 128, 128>}, {pipeline_mode = #tpu.pipeline_mode<synchronous>, transform_indices = @transform_6, window_bounds = array<i64: 1, 128>}, {pipeline_mode = #tpu.pipeline_mode<synchronous>, transform_indices = @transform_7, window_bounds = array<i64: 6, 128, 384>}, {pipeline_mode = #tpu.pipeline_mode<synchronous>, transform_indices = @transform_8, window_bounds = array<i64: 384, 1024>}, {pipeline_mode = #tpu.pipeline_mode<synchronous>, transform_indices = @transform_9, window_bounds = array<i64: 1, 1024>}, {transform_indices = @transform_10, window_bounds = array<i64: 2, 1024>}]} {
    %c0 = arith.constant 0 : index
    %c0_0 = arith.constant 0 : index
    %0 = vector.load %arg1[%c0, %c0_0] : memref<2x1024xbf16, #tpu.memory_space<vmem>>, vector<2x1024xbf16>
    %c0_1 = arith.constant 0 : index
    %c0_2 = arith.constant 0 : index
    %1 = vector.load %arg2[%c0_1, %c0_2] : memref<1024x768xbf16, #tpu.memory_space<vmem>>, vector<1024x768xbf16>
    %cst = arith.constant dense<0.000000e+00> : vector<2x768xf32>
    %2 = tpu.matmul %0, %1, %cst {dimension_numbers = #tpu.dot_dimension_numbers<[1], [0], [0], [1], [0, 0, 1, 1], [], []>} : vector<2x1024xbf16>, vector<1024x768xbf16>, vector<2x768xf32> -> vector<2x768xf32>
    %c0_3 = arith.constant 0 : index
    %c0_4 = arith.constant 0 : index
    %3 = vector.load %arg3[%c0_3, %c0_4] : memref<1x768xf32, #tpu.memory_space<vmem>>, vector<1x768xf32>
    %4 = vector.broadcast %3 : vector<1x768xf32> to vector<2x768xf32>
    %5 = arith.addf %2, %4 : vector<2x768xf32>
    %cst_5 = arith.constant 0.000000e+00 : f32
    %6 = vector.broadcast %cst_5 : f32 to vector<2x768xf32>
    %7 = arith.maximumf %5, %6 : vector<2x768xf32>
    %8 = vector.extract_strided_slice %7 {offsets = [0, 0], sizes = [2, 128], strides = [1, 1]} : vector<2x768xf32> to vector<2x128xf32>
    %c0_i32 = arith.constant 0 : i32
    %9 = vector.broadcast %c0_i32 : i32 to vector<2x128xi32>
    %10 = vector.extract_strided_slice %7 {offsets = [0, 128], sizes = [2, 128], strides = [1, 1]} : vector<2x768xf32> to vector<2x128xf32>
    %11 = arith.cmpf ogt, %10, %8 : vector<2x128xf32>
    %12 = arith.select %11, %10, %8 : vector<2x128xi1>, vector<2x128xf32>
    %c1_i32 = arith.constant 1 : i32
    %13 = vector.broadcast %c1_i32 : i32 to vector<2x128xi32>
    %14 = arith.select %11, %13, %9 : vector<2x128xi1>, vector<2x128xi32>
    %15 = vector.extract_strided_slice %7 {offsets = [0, 256], sizes = [2, 128], strides = [1, 1]} : vector<2x768xf32> to vector<2x128xf32>
    %16 = arith.cmpf ogt, %15, %12 : vector<2x128xf32>
    %17 = arith.select %16, %15, %12 : vector<2x128xi1>, vector<2x128xf32>
    %c2_i32 = arith.constant 2 : i32
    %18 = vector.broadcast %c2_i32 : i32 to vector<2x128xi32>
    %19 = arith.select %16, %18, %14 : vector<2x128xi1>, vector<2x128xi32>
    %20 = vector.extract_strided_slice %7 {offsets = [0, 384], sizes = [2, 128], strides = [1, 1]} : vector<2x768xf32> to vector<2x128xf32>
    %21 = arith.cmpf ogt, %20, %17 : vector<2x128xf32>
    %22 = arith.select %21, %20, %17 : vector<2x128xi1>, vector<2x128xf32>
    %c3_i32 = arith.constant 3 : i32
    %23 = vector.broadcast %c3_i32 : i32 to vector<2x128xi32>
    %24 = arith.select %21, %23, %19 : vector<2x128xi1>, vector<2x128xi32>
    %25 = vector.extract_strided_slice %7 {offsets = [0, 512], sizes = [2, 128], strides = [1, 1]} : vector<2x768xf32> to vector<2x128xf32>
    %26 = arith.cmpf ogt, %25, %22 : vector<2x128xf32>
    %27 = arith.select %26, %25, %22 : vector<2x128xi1>, vector<2x128xf32>
    %c4_i32 = arith.constant 4 : i32
    %28 = vector.broadcast %c4_i32 : i32 to vector<2x128xi32>
    %29 = arith.select %26, %28, %24 : vector<2x128xi1>, vector<2x128xi32>
    %30 = vector.extract_strided_slice %7 {offsets = [0, 640], sizes = [2, 128], strides = [1, 1]} : vector<2x768xf32> to vector<2x128xf32>
    %31 = arith.cmpf ogt, %30, %27 : vector<2x128xf32>
    %32 = arith.select %31, %30, %27 : vector<2x128xi1>, vector<2x128xf32>
    %c5_i32 = arith.constant 5 : i32
    %33 = vector.broadcast %c5_i32 : i32 to vector<2x128xi32>
    %34 = arith.select %31, %33, %29 : vector<2x128xi1>, vector<2x128xi32>
    %35 = arith.truncf %32 : vector<2x128xf32> to vector<2x128xbf16>
    %c0_6 = arith.constant 0 : index
    %c0_7 = arith.constant 0 : index
    %36 = vector.load %arg4[%c0_6, %c0_7] : memref<128x128xbf16, #tpu.memory_space<vmem>>, vector<128x128xbf16>
    %cst_8 = arith.constant dense<0.000000e+00> : vector<2x128xf32>
    %37 = tpu.matmul %35, %36, %cst_8 {dimension_numbers = #tpu.dot_dimension_numbers<[1], [0], [0], [1], [0, 0, 1, 1], [], []>} : vector<2x128xbf16>, vector<128x128xbf16>, vector<2x128xf32> -> vector<2x128xf32>
    %c0_9 = arith.constant 0 : index
    %c0_10 = arith.constant 0 : index
    %38 = vector.load %arg5[%c0_9, %c0_10] : memref<1x128xf32, #tpu.memory_space<vmem>>, vector<1x128xf32>
    %39 = vector.broadcast %38 : vector<1x128xf32> to vector<2x128xf32>
    %40 = arith.addf %37, %39 : vector<2x128xf32>
    %cst_11 = arith.constant 0.000000e+00 : f32
    %41 = vector.broadcast %cst_11 : f32 to vector<2x128xf32>
    %42 = arith.maximumf %40, %41 : vector<2x128xf32>
    %43 = arith.truncf %42 : vector<2x128xf32> to vector<2x128xbf16>
    %c0_12 = arith.constant 0 : index
    %c0_13 = arith.constant 0 : index
    %44 = vector.load %arg6[%c0_12, %c0_13] : memref<128x128xbf16, #tpu.memory_space<vmem>>, vector<128x128xbf16>
    %cst_14 = arith.constant dense<0.000000e+00> : vector<2x128xf32>
    %45 = tpu.matmul %43, %44, %cst_14 {dimension_numbers = #tpu.dot_dimension_numbers<[1], [0], [0], [1], [0, 0, 1, 1], [], []>} : vector<2x128xbf16>, vector<128x128xbf16>, vector<2x128xf32> -> vector<2x128xf32>
    %c0_15 = arith.constant 0 : index
    %c0_16 = arith.constant 0 : index
    %46 = vector.load %arg7[%c0_15, %c0_16] : memref<1x128xf32, #tpu.memory_space<vmem>>, vector<1x128xf32>
    %47 = vector.broadcast %46 : vector<1x128xf32> to vector<2x128xf32>
    %48 = arith.addf %45, %47 : vector<2x128xf32>
    %cst_17 = arith.constant 0xFF800000 : f32
    %49 = vector.broadcast %cst_17 : f32 to vector<2x384xf32>
    %c0_18 = arith.constant 0 : index
    %c0_19 = arith.constant 0 : index
    %c0_20 = arith.constant 0 : index
    %50 = vector.load %arg8[%c0_18, %c0_19, %c0_20] : memref<6x128x384xbf16, #tpu.memory_space<vmem>>, vector<1x128x384xbf16>
    %51 = vector.shape_cast %50 : vector<1x128x384xbf16> to vector<128x384xbf16>
    %c0_i32_21 = arith.constant 0 : i32
    %52 = vector.broadcast %c0_i32_21 : i32 to vector<2x128xi32>
    %53 = arith.cmpi eq, %34, %52 : vector<2x128xi32>
    %54 = arith.extui %53 : vector<2x128xi1> to vector<2x128xi32>
    %55 = arith.sitofp %54 : vector<2x128xi32> to vector<2x128xf32>
    %56 = arith.mulf %55, %48 : vector<2x128xf32>
    %57 = arith.truncf %56 : vector<2x128xf32> to vector<2x128xbf16>
    %cst_22 = arith.constant dense<0.000000e+00> : vector<2x384xf32>
    %58 = tpu.matmul %57, %51, %cst_22 {dimension_numbers = #tpu.dot_dimension_numbers<[1], [0], [0], [1], [0, 0, 1, 1], [], []>} : vector<2x128xbf16>, vector<128x384xbf16>, vector<2x384xf32> -> vector<2x384xf32>
    %59 = arith.truncf %55 : vector<2x128xf32> to vector<2x128xbf16>
    %cst_23 = arith.constant dense<0.000000e+00> : vector<2x384xf32>
    %60 = tpu.matmul %59, %51, %cst_23 {dimension_numbers = #tpu.dot_dimension_numbers<[1], [0], [0], [1], [0, 0, 1, 1], [], []>} : vector<2x128xbf16>, vector<128x384xbf16>, vector<2x384xf32> -> vector<2x384xf32>
    %cst_24 = arith.constant 5.000000e-01 : f32
    %61 = vector.broadcast %cst_24 : f32 to vector<2x384xf32>
    %62 = arith.cmpf ogt, %60, %61 : vector<2x384xf32>
    %cst_25 = arith.constant 0xFF800000 : f32
    %63 = vector.broadcast %cst_25 : f32 to vector<2x384xf32>
    %64 = arith.select %62, %58, %63 : vector<2x384xi1>, vector<2x384xf32>
    %65 = arith.maximumf %49, %64 : vector<2x384xf32>
    %c1 = arith.constant 1 : index
    %c0_26 = arith.constant 0 : index
    %c0_27 = arith.constant 0 : index
    %66 = vector.load %arg8[%c1, %c0_26, %c0_27] : memref<6x128x384xbf16, #tpu.memory_space<vmem>>, vector<1x128x384xbf16>
    %67 = vector.shape_cast %66 : vector<1x128x384xbf16> to vector<128x384xbf16>
    %c1_i32_28 = arith.constant 1 : i32
    %68 = vector.broadcast %c1_i32_28 : i32 to vector<2x128xi32>
    %69 = arith.cmpi eq, %34, %68 : vector<2x128xi32>
    %70 = arith.extui %69 : vector<2x128xi1> to vector<2x128xi32>
    %71 = arith.sitofp %70 : vector<2x128xi32> to vector<2x128xf32>
    %72 = arith.mulf %71, %48 : vector<2x128xf32>
    %73 = arith.truncf %72 : vector<2x128xf32> to vector<2x128xbf16>
    %cst_29 = arith.constant dense<0.000000e+00> : vector<2x384xf32>
    %74 = tpu.matmul %73, %67, %cst_29 {dimension_numbers = #tpu.dot_dimension_numbers<[1], [0], [0], [1], [0, 0, 1, 1], [], []>} : vector<2x128xbf16>, vector<128x384xbf16>, vector<2x384xf32> -> vector<2x384xf32>
    %75 = arith.truncf %71 : vector<2x128xf32> to vector<2x128xbf16>
    %cst_30 = arith.constant dense<0.000000e+00> : vector<2x384xf32>
    %76 = tpu.matmul %75, %67, %cst_30 {dimension_numbers = #tpu.dot_dimension_numbers<[1], [0], [0], [1], [0, 0, 1, 1], [], []>} : vector<2x128xbf16>, vector<128x384xbf16>, vector<2x384xf32> -> vector<2x384xf32>
    %cst_31 = arith.constant 5.000000e-01 : f32
    %77 = vector.broadcast %cst_31 : f32 to vector<2x384xf32>
    %78 = arith.cmpf ogt, %76, %77 : vector<2x384xf32>
    %cst_32 = arith.constant 0xFF800000 : f32
    %79 = vector.broadcast %cst_32 : f32 to vector<2x384xf32>
    %80 = arith.select %78, %74, %79 : vector<2x384xi1>, vector<2x384xf32>
    %81 = arith.maximumf %65, %80 : vector<2x384xf32>
    %c2 = arith.constant 2 : index
    %c0_33 = arith.constant 0 : index
    %c0_34 = arith.constant 0 : index
    %82 = vector.load %arg8[%c2, %c0_33, %c0_34] : memref<6x128x384xbf16, #tpu.memory_space<vmem>>, vector<1x128x384xbf16>
    %83 = vector.shape_cast %82 : vector<1x128x384xbf16> to vector<128x384xbf16>
    %c2_i32_35 = arith.constant 2 : i32
    %84 = vector.broadcast %c2_i32_35 : i32 to vector<2x128xi32>
    %85 = arith.cmpi eq, %34, %84 : vector<2x128xi32>
    %86 = arith.extui %85 : vector<2x128xi1> to vector<2x128xi32>
    %87 = arith.sitofp %86 : vector<2x128xi32> to vector<2x128xf32>
    %88 = arith.mulf %87, %48 : vector<2x128xf32>
    %89 = arith.truncf %88 : vector<2x128xf32> to vector<2x128xbf16>
    %cst_36 = arith.constant dense<0.000000e+00> : vector<2x384xf32>
    %90 = tpu.matmul %89, %83, %cst_36 {dimension_numbers = #tpu.dot_dimension_numbers<[1], [0], [0], [1], [0, 0, 1, 1], [], []>} : vector<2x128xbf16>, vector<128x384xbf16>, vector<2x384xf32> -> vector<2x384xf32>
    %91 = arith.truncf %87 : vector<2x128xf32> to vector<2x128xbf16>
    %cst_37 = arith.constant dense<0.000000e+00> : vector<2x384xf32>
    %92 = tpu.matmul %91, %83, %cst_37 {dimension_numbers = #tpu.dot_dimension_numbers<[1], [0], [0], [1], [0, 0, 1, 1], [], []>} : vector<2x128xbf16>, vector<128x384xbf16>, vector<2x384xf32> -> vector<2x384xf32>
    %cst_38 = arith.constant 5.000000e-01 : f32
    %93 = vector.broadcast %cst_38 : f32 to vector<2x384xf32>
    %94 = arith.cmpf ogt, %92, %93 : vector<2x384xf32>
    %cst_39 = arith.constant 0xFF800000 : f32
    %95 = vector.broadcast %cst_39 : f32 to vector<2x384xf32>
    %96 = arith.select %94, %90, %95 : vector<2x384xi1>, vector<2x384xf32>
    %97 = arith.maximumf %81, %96 : vector<2x384xf32>
    %c3 = arith.constant 3 : index
    %c0_40 = arith.constant 0 : index
    %c0_41 = arith.constant 0 : index
    %98 = vector.load %arg8[%c3, %c0_40, %c0_41] : memref<6x128x384xbf16, #tpu.memory_space<vmem>>, vector<1x128x384xbf16>
    %99 = vector.shape_cast %98 : vector<1x128x384xbf16> to vector<128x384xbf16>
    %c3_i32_42 = arith.constant 3 : i32
    %100 = vector.broadcast %c3_i32_42 : i32 to vector<2x128xi32>
    %101 = arith.cmpi eq, %34, %100 : vector<2x128xi32>
    %102 = arith.extui %101 : vector<2x128xi1> to vector<2x128xi32>
    %103 = arith.sitofp %102 : vector<2x128xi32> to vector<2x128xf32>
    %104 = arith.mulf %103, %48 : vector<2x128xf32>
    %105 = arith.truncf %104 : vector<2x128xf32> to vector<2x128xbf16>
    %cst_43 = arith.constant dense<0.000000e+00> : vector<2x384xf32>
    %106 = tpu.matmul %105, %99, %cst_43 {dimension_numbers = #tpu.dot_dimension_numbers<[1], [0], [0], [1], [0, 0, 1, 1], [], []>} : vector<2x128xbf16>, vector<128x384xbf16>, vector<2x384xf32> -> vector<2x384xf32>
    %107 = arith.truncf %103 : vector<2x128xf32> to vector<2x128xbf16>
    %cst_44 = arith.constant dense<0.000000e+00> : vector<2x384xf32>
    %108 = tpu.matmul %107, %99, %cst_44 {dimension_numbers = #tpu.dot_dimension_numbers<[1], [0], [0], [1], [0, 0, 1, 1], [], []>} : vector<2x128xbf16>, vector<128x384xbf16>, vector<2x384xf32> -> vector<2x384xf32>
    %cst_45 = arith.constant 5.000000e-01 : f32
    %109 = vector.broadcast %cst_45 : f32 to vector<2x384xf32>
    %110 = arith.cmpf ogt, %108, %109 : vector<2x384xf32>
    %cst_46 = arith.constant 0xFF800000 : f32
    %111 = vector.broadcast %cst_46 : f32 to vector<2x384xf32>
    %112 = arith.select %110, %106, %111 : vector<2x384xi1>, vector<2x384xf32>
    %113 = arith.maximumf %97, %112 : vector<2x384xf32>
    %c4 = arith.constant 4 : index
    %c0_47 = arith.constant 0 : index
    %c0_48 = arith.constant 0 : index
    %114 = vector.load %arg8[%c4, %c0_47, %c0_48] : memref<6x128x384xbf16, #tpu.memory_space<vmem>>, vector<1x128x384xbf16>
    %115 = vector.shape_cast %114 : vector<1x128x384xbf16> to vector<128x384xbf16>
    %c4_i32_49 = arith.constant 4 : i32
    %116 = vector.broadcast %c4_i32_49 : i32 to vector<2x128xi32>
    %117 = arith.cmpi eq, %34, %116 : vector<2x128xi32>
    %118 = arith.extui %117 : vector<2x128xi1> to vector<2x128xi32>
    %119 = arith.sitofp %118 : vector<2x128xi32> to vector<2x128xf32>
    %120 = arith.mulf %119, %48 : vector<2x128xf32>
    %121 = arith.truncf %120 : vector<2x128xf32> to vector<2x128xbf16>
    %cst_50 = arith.constant dense<0.000000e+00> : vector<2x384xf32>
    %122 = tpu.matmul %121, %115, %cst_50 {dimension_numbers = #tpu.dot_dimension_numbers<[1], [0], [0], [1], [0, 0, 1, 1], [], []>} : vector<2x128xbf16>, vector<128x384xbf16>, vector<2x384xf32> -> vector<2x384xf32>
    %123 = arith.truncf %119 : vector<2x128xf32> to vector<2x128xbf16>
    %cst_51 = arith.constant dense<0.000000e+00> : vector<2x384xf32>
    %124 = tpu.matmul %123, %115, %cst_51 {dimension_numbers = #tpu.dot_dimension_numbers<[1], [0], [0], [1], [0, 0, 1, 1], [], []>} : vector<2x128xbf16>, vector<128x384xbf16>, vector<2x384xf32> -> vector<2x384xf32>
    %cst_52 = arith.constant 5.000000e-01 : f32
    %125 = vector.broadcast %cst_52 : f32 to vector<2x384xf32>
    %126 = arith.cmpf ogt, %124, %125 : vector<2x384xf32>
    %cst_53 = arith.constant 0xFF800000 : f32
    %127 = vector.broadcast %cst_53 : f32 to vector<2x384xf32>
    %128 = arith.select %126, %122, %127 : vector<2x384xi1>, vector<2x384xf32>
    %129 = arith.maximumf %113, %128 : vector<2x384xf32>
    %c5 = arith.constant 5 : index
    %c0_54 = arith.constant 0 : index
    %c0_55 = arith.constant 0 : index
    %130 = vector.load %arg8[%c5, %c0_54, %c0_55] : memref<6x128x384xbf16, #tpu.memory_space<vmem>>, vector<1x128x384xbf16>
    %131 = vector.shape_cast %130 : vector<1x128x384xbf16> to vector<128x384xbf16>
    %c5_i32_56 = arith.constant 5 : i32
    %132 = vector.broadcast %c5_i32_56 : i32 to vector<2x128xi32>
    %133 = arith.cmpi eq, %34, %132 : vector<2x128xi32>
    %134 = arith.extui %133 : vector<2x128xi1> to vector<2x128xi32>
    %135 = arith.sitofp %134 : vector<2x128xi32> to vector<2x128xf32>
    %136 = arith.mulf %135, %48 : vector<2x128xf32>
    %137 = arith.truncf %136 : vector<2x128xf32> to vector<2x128xbf16>
    %cst_57 = arith.constant dense<0.000000e+00> : vector<2x384xf32>
    %138 = tpu.matmul %137, %131, %cst_57 {dimension_numbers = #tpu.dot_dimension_numbers<[1], [0], [0], [1], [0, 0, 1, 1], [], []>} : vector<2x128xbf16>, vector<128x384xbf16>, vector<2x384xf32> -> vector<2x384xf32>
    %139 = arith.truncf %135 : vector<2x128xf32> to vector<2x128xbf16>
    %cst_58 = arith.constant dense<0.000000e+00> : vector<2x384xf32>
    %140 = tpu.matmul %139, %131, %cst_58 {dimension_numbers = #tpu.dot_dimension_numbers<[1], [0], [0], [1], [0, 0, 1, 1], [], []>} : vector<2x128xbf16>, vector<128x384xbf16>, vector<2x384xf32> -> vector<2x384xf32>
    %cst_59 = arith.constant 5.000000e-01 : f32
    %141 = vector.broadcast %cst_59 : f32 to vector<2x384xf32>
    %142 = arith.cmpf ogt, %140, %141 : vector<2x384xf32>
    %cst_60 = arith.constant 0xFF800000 : f32
    %143 = vector.broadcast %cst_60 : f32 to vector<2x384xf32>
    %144 = arith.select %142, %138, %143 : vector<2x384xi1>, vector<2x384xf32>
    %145 = arith.maximumf %129, %144 : vector<2x384xf32>
    %cst_61 = arith.constant 0xFF800000 : f32
    %146 = vector.broadcast %cst_61 : f32 to vector<2x384xf32>
    %147 = arith.cmpf ogt, %145, %146 : vector<2x384xf32>
    %cst_62 = arith.constant 0.000000e+00 : f32
    %148 = vector.broadcast %cst_62 : f32 to vector<2x384xf32>
    %149 = arith.select %147, %145, %148 : vector<2x384xi1>, vector<2x384xf32>
    %150 = arith.truncf %149 : vector<2x384xf32> to vector<2x384xbf16>
    %c0_63 = arith.constant 0 : index
    %c0_64 = arith.constant 0 : index
    %151 = vector.load %arg9[%c0_63, %c0_64] : memref<384x1024xbf16, #tpu.memory_space<vmem>>, vector<384x1024xbf16>
    %cst_65 = arith.constant dense<0.000000e+00> : vector<2x1024xf32>
    %152 = tpu.matmul %150, %151, %cst_65 {dimension_numbers = #tpu.dot_dimension_numbers<[1], [0], [0], [1], [0, 0, 1, 1], [], []>} : vector<2x384xbf16>, vector<384x1024xbf16>, vector<2x1024xf32> -> vector<2x1024xf32>
    %c0_66 = arith.constant 0 : index
    %c0_67 = arith.constant 0 : index
    %153 = vector.load %arg10[%c0_66, %c0_67] : memref<1x1024xf32, #tpu.memory_space<vmem>>, vector<1x1024xf32>
    %154 = vector.broadcast %153 : vector<1x1024xf32> to vector<2x1024xf32>
    %155 = arith.addf %152, %154 : vector<2x1024xf32>
    %c0_68 = arith.constant 0 : index
    %c0_69 = arith.constant 0 : index
    %156 = vector.load %arg11[%c0_68, %c0_69] : memref<2x1024xf32, #tpu.memory_space<vmem>>, vector<2x1024xf32>
    tpu.vector_store %arg11[%c0_68, %c0_69], %155 {strides = array<i32>} : memref<2x1024xf32, #tpu.memory_space<vmem>>, vector<2x1024xf32>,
    return
  }
  func.func @transform_0(%arg0: i32) -> (i32, i32) {
    %c0_i32 = arith.constant 0 : i32
    %c0_i32_0 = arith.constant 0 : i32
    return %arg0, %c0_i32 : i32, i32
  }
  func.func @transform_1(%arg0: i32) -> (i32, i32) {
    %c0_i32 = arith.constant 0 : i32
    %c0_i32_0 = arith.constant 0 : i32
    %c0_i32_1 = arith.constant 0 : i32
    return %c0_i32, %c0_i32_0 : i32, i32
  }
  func.func @transform_2(%arg0: i32) -> (i32, i32) {
    %c0_i32 = arith.constant 0 : i32
    %c0_i32_0 = arith.constant 0 : i32
    %c0_i32_1 = arith.constant 0 : i32
    return %c0_i32, %c0_i32_0 : i32, i32
  }
  func.func @transform_3(%arg0: i32) -> (i32, i32) {
    %c0_i32 = arith.constant 0 : i32
    %c0_i32_0 = arith.constant 0 : i32
    %c0_i32_1 = arith.constant 0 : i32
    return %c0_i32, %c0_i32_0 : i32, i32
  }
  func.func @transform_4(%arg0: i32) -> (i32, i32) {
    %c0_i32 = arith.constant 0 : i32
    %c0_i32_0 = arith.constant 0 : i32
    %c0_i32_1 = arith.constant 0 : i32
    return %c0_i32, %c0_i32_0 : i32, i32
  }
  func.func @transform_5(%arg0: i32) -> (i32, i32) {
    %c0_i32 = arith.constant 0 : i32
    %c0_i32_0 = arith.constant 0 : i32
    %c0_i32_1 = arith.constant 0 : i32
    return %c0_i32, %c0_i32_0 : i32, i32
  }
  func.func @transform_6(%arg0: i32) -> (i32, i32) {
    %c0_i32 = arith.constant 0 : i32
    %c0_i32_0 = arith.constant 0 : i32
    %c0_i32_1 = arith.constant 0 : i32
    return %c0_i32, %c0_i32_0 : i32, i32
  }
  func.func @transform_7(%arg0: i32) -> (i32, i32, i32) {
    %c0_i32 = arith.constant 0 : i32
    %c0_i32_0 = arith.constant 0 : i32
    %c0_i32_1 = arith.constant 0 : i32
    %c0_i32_2 = arith.constant 0 : i32
    return %c0_i32, %c0_i32_0, %c0_i32_1 : i32, i32, i32
  }
  func.func @transform_8(%arg0: i32) -> (i32, i32) {
    %c0_i32 = arith.constant 0 : i32
    %c0_i32_0 = arith.constant 0 : i32
    %c0_i32_1 = arith.constant 0 : i32
    return %c0_i32, %c0_i32_0 : i32, i32
  }
  func.func @transform_9(%arg0: i32) -> (i32, i32) {
    %c0_i32 = arith.constant 0 : i32
    %c0_i32_0 = arith.constant 0 : i32
    %c0_i32_1 = arith.constant 0 : i32
    return %c0_i32, %c0_i32_0 : i32, i32
  }
  func.func @transform_10(%arg0: i32) -> (i32, i32) {
    %c0_i32 = arith.constant 0 : i32
    %c0_i32_0 = arith.constant 0 : i32
    return %arg0, %c0_i32 : i32, i32
  }
}

</mosaic_0001>

<bundles_post_ra>
// kernel: autoencoder_forward.1
= control target key start
LH: loop header
LB: loop body
LE: loop exit
PB: predicated region body
PF: predicated region fallthrough
CT: control target
= control target key end

     0   :  { %15 = vsyncpa [#allocation3], 0  ;;  %s11529_s0 = inlined_call_operand.vmem [shape: bf16[2,1024], index: 0, kind: input, shape index: {}]   ;;  %s11530_s1 = inlined_call_operand.hbm [shape: bf16[1024,768], index: 1, kind: input, shape index: {}]   ;;  %s11531_s2 = inlined_call_operand.hbm [shape: f32[1,768], index: 2, kind: input, shape index: {}]   ;;  %s11532_s3 = inlined_call_operand.hbm [shape: bf16[128,128], index: 3, kind: input, shape index: {}]   ;;  %s11533_s4 = inlined_call_operand.hbm [shape: f32[1,128], index: 4, kind: input, shape index: {}]   ;;  %s11534_s5 = inlined_call_operand.hbm [shape: bf16[128,128], index: 5, kind: input, shape index: {}]   ;;  %s11535_s6 = inlined_call_operand.hbm [shape: f32[1,128], index: 6, kind: input, shape index: {}]   ;;  %s11536_s7 = inlined_call_operand.hbm [shape: bf16[6,128,384], index: 7, kind: input, shape index: {}]   ;;  %s11537_s8 = inlined_call_operand.hbm [shape: bf16[384,1024], index: 8, kind: input, shape index: {}]   ;;  %s11538_s9 = inlined_call_operand.hbm [shape: f32[1,1024], index: 9, kind: input, shape index: {}]   ;;  %s11539_s10 = inlined_call_operand.vmem [shape: f32[2,1024], index: 10, kind: output, shape index: {}]  }
   0x1   :  { %16 = vsyncpa [#allocation5], 0 }
   0x2   :  { %17 = vsyncpa [#allocation8], 0 }
   0x3   :  { %18 = vsyncpa [#allocation11], 0  ;;  %s40_s15 = sshll.u32 %s11531_s2, 4  ;;  %s41_s15 = int_to_ptr.hbm [resolvable:$true] %s40_s15 }
   0x4   :  { %19 = vsyncpa [#allocation14], 0  ;;  %s10420_s16 = smov [#allocation4]   ;;  %s64_s20 = sshll.u32 %s11533_s4, 4  ;;  %s65_s20 = int_to_ptr.hbm [resolvable:$true] %s64_s20 }
   0x5   :  { %s42_s17 = sshll.u32 %s10420_s16, 4  ;;  %s10421_s21 = smov [#allocation7]   ;;  %s43_s17 = int_to_ptr.vmem [resolvable:$true] %s42_s17 }
   0x6   :  { %45 = dma.hbm_to_vmem [thread:$0]  %s41_s15, 96, %s43_s17, [#allocation5]  }
   0x7   :  { %s66_s22 = sshll.u32 %s10421_s21, 4  ;;  %s88_s25 = sshll.u32 %s11535_s6, 4  ;;  %s67_s22 = int_to_ptr.vmem [resolvable:$true] %s66_s22  ;;  %s89_s25 = int_to_ptr.hbm [resolvable:$true] %s88_s25 }
   0x8   :  { %69 = dma.hbm_to_vmem [thread:$0]  %s65_s20, 16, %s67_s22, [#allocation8]  }
   0x9   :  { %s111_s27 = sshll.u32 %s11537_s8, 4  ;;  %s10422_s28 = smov [#allocation10]   ;;  %s112_s27 = int_to_ptr.hbm [resolvable:$true] %s111_s27 }
   0xa   :  { %s90_s29 = sshll.u32 %s10422_s28, 4  ;;  %s10423_s4 = smov [#allocation13]   ;;  %s91_s29 = int_to_ptr.vmem [resolvable:$true] %s90_s29 }
   0xb   :  { %93 = dma.hbm_to_vmem [thread:$0]  %s89_s25, 16, %s91_s29, [#allocation11]  }
   0xc   :  { %s113_s30 = sshll.u32 %s10423_s4, 4  ;;  %s10424_s11 = smov 512   ;;  %s114_s30 = int_to_ptr.vmem [resolvable:$true] %s113_s30 }
   0xd   :  { %s10425_s12 = smov 32   ;;  %s26_s14 = sshll.u32 %s11530_s1, 4  ;;  %s27_s14 = int_to_ptr.hbm [resolvable:$true] %s26_s14 }
   0xe   :  { %119 = dma.hbm_to_vmem [thread:$0]  %s112_s27, 24576, %s114_s30, [#allocation14], %s10424_s11, %s10424_s11, %s10425_s12  }
   0xf   :  { %s10426_s15 = smov [#allocation2]   ;;  %s50_s18 = sshll.u32 %s11532_s3, 4  ;;  %s51_s18 = int_to_ptr.hbm [resolvable:$true] %s50_s18 }
  0x10   :  { %s28_s16 = sshll.u32 %s10426_s15, 4  ;;  %s10427_s19 = smov 384   ;;  %s29_s16 = int_to_ptr.vmem [resolvable:$true] %s28_s16 }
  0x11   :  { %s10428_s20 = smov 24   ;;  %s10429_s21 = smov [#allocation6]  }
  0x12   :  { %34 = dma.hbm_to_vmem [thread:$0]  %s27_s14, 49152, %s29_s16, [#allocation3], %s10427_s19, %s10427_s19, %s10428_s20  }
  0x13   :  { %s52_s22 = sshll.u32 %s10429_s21, 4  ;;  %s10430_s23 = smov 64   ;;  %s53_s22 = int_to_ptr.vmem [resolvable:$true] %s52_s22 }
  0x14   :  { %s10431_s24 = smov 4   ;;  %s74_s2 = sshll.u32 %s11534_s5, 4  ;;  %s75_s2 = int_to_ptr.hbm [resolvable:$true] %s74_s2 }
  0x15   :  { %58 = dma.hbm_to_vmem [thread:$0]  %s51_s18, 1024, %s53_s22, [#allocation5], %s10430_s23, %s10430_s23, %s10431_s24  }
  0x16   :  { %s10432_s26 = smov [#allocation9]   ;;  %s98_s29 = sshll.u32 %s11536_s7, 4  ;;  %s99_s29 = int_to_ptr.hbm [resolvable:$true] %s98_s29 }
  0x17   :  { %s76_s27 = sshll.u32 %s10432_s26, 4  ;;  %s10433_s4 = smov [#allocation12]   ;;  %s77_s27 = int_to_ptr.vmem [resolvable:$true] %s76_s27 }
  0x18   :  { %82 = dma.hbm_to_vmem [thread:$0]  %s75_s2, 1024, %s77_s27, [#allocation8], %s10430_s23, %s10430_s23, %s10431_s24  }
  0x19   :  { %s100_s30 = sshll.u32 %s10433_s4, 4  ;;  %s10434_s11 = smov 192   ;;  %s101_s30 = int_to_ptr.vmem [resolvable:$true] %s100_s30 }
  0x1a   :  { %s10435_s12 = smov 12   ;;  %s125_s5 = sshll.u32 %s11538_s9, 4  ;;  %s126_s5 = int_to_ptr.hbm [resolvable:$true] %s125_s5 }
  0x1b   :  { %106 = dma.hbm_to_vmem [thread:$0]  %s99_s29, 18432, %s101_s30, [#allocation11], %s10434_s11, %s10434_s11, %s10435_s12  }
  0x1c   :  { %s10436_s14 = smov [#allocation15]  }
  0x1d   :  { %s127_s15 = sshll.u32 %s10436_s14, 4  ;;  %s128_s15 = int_to_ptr.vmem [resolvable:$true] %s127_s15 }
  0x1e   :  { %130 = dma.hbm_to_vmem [thread:$0]  %s126_s5, 128, %s128_s15, [#allocation14]  }
  0x1f   :  { %10410 = dma.done.wait [#allocation3], 49152  }
  0x20   :  { %10411 = vsyncadd [#allocation3], 4294918144 }
  0x21   :  { %10412 = dma.done.wait [#allocation5], 1120  }
  0x22   :  { %10413 = vsyncadd [#allocation5], 4294966176 }
  0x23   :  { %10414 = dma.done.wait [#allocation8], 1040  }
  0x24   :  { %10415 = vsyncadd [#allocation8], 4294966256 }
  0x25   :  { %10416 = dma.done.wait [#allocation11], 18448  }
  0x26   :  { %10417 = vsyncadd [#allocation11], 4294948848 }
  0x27   :  { %10418 = dma.done.wait [#allocation14], 24704  }
  0x28   :  { %10419 = vsyncadd [#allocation14], 4294942592  ;;  %v6531_v0 = vld [vmem:[#allocation2 + $0x150] sm:$0xf]  ;;  %v9464_v1 = vld [vmem:[#allocation2 + $0x164] sm:$0xf0] }
  0x29   :  { %v6723_v2 = vld [vmem:[#allocation2 + $0x2d0] sm:$0xf]  ;;  %v6532_v3 = vor.u32 %v9464_v1, %v6531_v0  ;;  %v9512_v4 = vld [vmem:[#allocation2 + $0x2e4] sm:$0xf0]  ;;  %v6507_v11 = vld [vmem:[#allocation2 + $0x120] sm:$0xf] }
  0x2a   :  { %v6915_v5 = vld [vmem:[#allocation2 + $0x450] sm:$0xf]  ;;  %v9560_v6 = vld [vmem:[#allocation2 + $0x464] sm:$0xf0]  ;;  %v6724_v7 = vor.u32 %v9512_v4, %v6723_v2  ;;  %v9458_v13 = vld [vmem:[#allocation2 + $0x134] sm:$0xf0] }
  0x2b   :  { %v6916_v8 = vor.u32 %v9560_v6, %v6915_v5  ;;  %v7107_v9 = vld [vmem:[#allocation2 + $0x5d0] sm:$0xf]  ;;  %v9608_v10 = vld [vmem:[#allocation2 + $0x5e4] sm:$0xf0]  ;;  %2504 = vmatpush.bf16.msra.mxu0 %v6532_v3  ;;  %v6699_v14 = vld [vmem:[#allocation2 + $0x2a0] sm:$0xf]  ;;  %v6508_v16 = vor.u32 %v9458_v13, %v6507_v11 }
  0x2c   :  { %v7108_v12 = vor.u32 %v9608_v10, %v7107_v9  ;;  %v9506_v15 = vld [vmem:[#allocation2 + $0x2b4] sm:$0xf0]  ;;  %2517 = vmatpush.bf16.msra.mxu1 %v6724_v7  ;;  %v6891_v18 = vld [vmem:[#allocation2 + $0x420] sm:$0xf]  ;;  %v6483_v23 = vld [vmem:[#allocation2 + $0xf0] sm:$0xf] }
  0x2d   :  { %2530 = vmatpush.bf16.msra.mxu2 %v6916_v8  ;;  %v6700_v17 = vor.u32 %v9506_v15, %v6699_v14  ;;  %v9554_v19 = vld [vmem:[#allocation2 + $0x434] sm:$0xf0]  ;;  %v7083_v20 = vld [vmem:[#allocation2 + $0x5a0] sm:$0xf]  ;;  %v9452_v24 = vld [vmem:[#allocation2 + $0x104] sm:$0xf0] }
  0x2e   :  { %2543 = vmatpush.bf16.msra.mxu3 %v7108_v12  ;;  %v6892_v21 = vor.u32 %v9554_v19, %v6891_v18  ;;  %v9602_v22 = vld [vmem:[#allocation2 + $0x5b4] sm:$0xf0]  ;;  %v6675_v26 = vld [vmem:[#allocation2 + $0x270] sm:$0xf]  ;;  %v9500_v27 = vld [vmem:[#allocation2 + $0x284] sm:$0xf0]  ;;  %v6484_v29 = vor.u32 %v9452_v24, %v6483_v23 }
  0x2f   :  { %v7084_v25 = vor.u32 %v9602_v22, %v7083_v20  ;;  %v6867_v28 = vld [vmem:[#allocation2 + $0x3f0] sm:$0xf]  ;;  %2505 = vmatpush.bf16.msra.mxu0 %v6508_v16  ;;  %v9548_v30 = vld [vmem:[#allocation2 + $0x404] sm:$0xf0]  ;;  %v6676_v33 = vor.u32 %v9500_v27, %v6675_v26  ;;  %v6459_v35 = vld [vmem:[#allocation2 + $0xc0] sm:$0xf] }
  0x30   :  { %v7059_v31 = vld [vmem:[#allocation2 + $0x570] sm:$0xf]  ;;  %v9596_v32 = vld [vmem:[#allocation2 + $0x584] sm:$0xf0]  ;;  %2518 = vmatpush.bf16.msra.mxu1 %v6700_v17  ;;  %v6868_v34 = vor.u32 %v9548_v30, %v6867_v28  ;;  %v9446_v36 = vld [vmem:[#allocation2 + $0xd4] sm:$0xf0] }
  0x31   :  { %2531 = vmatpush.bf16.msra.mxu2 %v6892_v21  ;;  %v6651_v37 = vld [vmem:[#allocation2 + $0x240] sm:$0xf]  ;;  %v7060_v38 = vor.u32 %v9596_v32, %v7059_v31  ;;  %v9494_v39 = vld [vmem:[#allocation2 + $0x254] sm:$0xf0]  ;;  %v6460_v44 = vor.u32 %v9446_v36, %v6459_v35  ;;  %v6435_v47 = vld [vmem:[#allocation2 + $0x90] sm:$0xf] }
  0x32   :  { %2544 = vmatpush.bf16.msra.mxu3 %v7084_v25  ;;  %v6843_v40 = vld [vmem:[#allocation2 + $0x3c0] sm:$0xf]  ;;  %v9542_v41 = vld [vmem:[#allocation2 + $0x3d4] sm:$0xf0]  ;;  %v6652_v45 = vor.u32 %v9494_v39, %v6651_v37  ;;  %v9440_v48 = vld [vmem:[#allocation2 + $0xa4] sm:$0xf0] }
  0x33   :  { %v7035_v42 = vld [vmem:[#allocation2 + $0x540] sm:$0xf]  ;;  %v9590_v43 = vld [vmem:[#allocation2 + $0x554] sm:$0xf0]  ;;  %2506 = vmatpush.bf16.msra.mxu0 %v6484_v29  ;;  %v6844_v46 = vor.u32 %v9542_v41, %v6843_v40  ;;  %v6627_v49 = vld [vmem:[#allocation2 + $0x210] sm:$0xf]  ;;  %v6436_v56 = vor.u32 %v9440_v48, %v6435_v47 }
  0x34   :  { %2519 = vmatpush.bf16.msra.mxu1 %v6676_v33  ;;  %v7036_v50 = vor.u32 %v9590_v43, %v7035_v42  ;;  %v9488_v51 = vld [vmem:[#allocation2 + $0x224] sm:$0xf0]  ;;  %v6819_v52 = vld [vmem:[#allocation2 + $0x390] sm:$0xf]  ;;  %v6411_v59 = vld [vmem:[#allocation2 + $0x60] sm:$0xf] }
  0x35   :  { %2532 = vmatpush.bf16.msra.mxu2 %v6868_v34  ;;  %v9536_v53 = vld [vmem:[#allocation2 + $0x3a4] sm:$0xf0]  ;;  %v7011_v54 = vld [vmem:[#allocation2 + $0x510] sm:$0xf]  ;;  %v6628_v57 = vor.u32 %v9488_v51, %v6627_v49  ;;  %v9434_v60 = vld [vmem:[#allocation2 + $0x74] sm:$0xf0] }
  0x36   :  { %2545 = vmatpush.bf16.msra.mxu3 %v7060_v38  ;;  %v9584_v55 = vld [vmem:[#allocation2 + $0x524] sm:$0xf0]  ;;  %v6820_v58 = vor.u32 %v9536_v53, %v6819_v52  ;;  %v6603_v61 = vld [vmem:[#allocation2 + $0x1e0] sm:$0xf]  ;;  %v9482_v63 = vld [vmem:[#allocation2 + $0x1f4] sm:$0xf0]  ;;  %v6412_v4 = vor.u32 %v9434_v60, %v6411_v59 }
  0x37   :  { %2507 = vmatpush.bf16.msra.mxu0 %v6460_v44  ;;  %v7012_v62 = vor.u32 %v9584_v55, %v7011_v54  ;;  %v6795_v0 = vld [vmem:[#allocation2 + $0x360] sm:$0xf]  ;;  %v9530_v1 = vld [vmem:[#allocation2 + $0x374] sm:$0xf0]  ;;  %v6604_v5 = vor.u32 %v9482_v63, %v6603_v61  ;;  %v6387_v7 = vld [vmem:[#allocation2 + $0x30] sm:$0xf] }
  0x38   :  { %2520 = vmatpush.bf16.msra.mxu1 %v6652_v45  ;;  %v6987_v2 = vld [vmem:[#allocation2 + $0x4e0] sm:$0xf]  ;;  %v9578_v3 = vld [vmem:[#allocation2 + $0x4f4] sm:$0xf0]  ;;  %v6796_v6 = vor.u32 %v9530_v1, %v6795_v0  ;;  %v9428_v8 = vld [vmem:[#allocation2 + $0x44] sm:$0xf0] }
  0x39   :  { %2533 = vmatpush.bf16.msra.mxu2 %v6844_v46  ;;  %v6579_v9 = vld [vmem:[#allocation2 + $0x1b0] sm:$0xf]  ;;  %v6988_v10 = vor.u32 %v9578_v3, %v6987_v2  ;;  %v9476_v11 = vld [vmem:[#allocation2 + $0x1c4] sm:$0xf0]  ;;  %v6388_v16 = vor.u32 %v9428_v8, %v6387_v7  ;;  %v6363_v17 = vld [vmem:[#allocation2] sm:$0xf] }
  0x3a   :  { %2546 = vmatpush.bf16.msra.mxu3 %v7036_v50  ;;  %v6771_v12 = vld [vmem:[#allocation2 + $0x330] sm:$0xf]  ;;  %v9524_v13 = vld [vmem:[#allocation2 + $0x344] sm:$0xf0]  ;;  %v9422_v18 = vld [vmem:[#allocation2 + $0x14] sm:$0xf0]  ;;  %v6580_v19 = vor.u32 %v9476_v11, %v6579_v9 }
  0x3b   :  { %2508 = vmatpush.bf16.msra.mxu0 %v6436_v56  ;;  %v6963_v14 = vld [vmem:[#allocation2 + $0x4b0] sm:$0xf]  ;;  %v9572_v15 = vld [vmem:[#allocation2 + $0x4c4] sm:$0xf0]  ;;  %v6772_v20 = vor.u32 %v9524_v13, %v6771_v12  ;;  %v6555_v21 = vld [vmem:[#allocation2 + $0x180] sm:$0xf]  ;;  %v6364_v31 = vor.u32 %v9422_v18, %v6363_v17 }
  0x3c   :  { %2521 = vmatpush.bf16.msra.mxu1 %v6628_v57  ;;  %v9470_v22 = vld [vmem:[#allocation2 + $0x194] sm:$0xf0]  ;;  %v6747_v23 = vld [vmem:[#allocation2 + $0x300] sm:$0xf]  ;;  %v6964_v24 = vor.u32 %v9572_v15, %v6963_v14  ;;  %v7299_v28 = vld [vmem:[#allocation2 + $0x750] sm:$0xf] }
  0x3d   :  { %2534 = vmatpush.bf16.msra.mxu2 %v6820_v58  ;;  %v9518_v25 = vld [vmem:[#allocation2 + $0x314] sm:$0xf0]  ;;  %v6939_v26 = vld [vmem:[#allocation2 + $0x480] sm:$0xf]  ;;  %v9656_v29 = vld [vmem:[#allocation2 + $0x764] sm:$0xf0]  ;;  %v6556_v35 = vor.u32 %v9470_v22, %v6555_v21 }
  0x3e   :  { %2547 = vmatpush.bf16.msra.mxu3 %v7012_v62  ;;  %v9566_v27 = vld [vmem:[#allocation2 + $0x494] sm:$0xf0]  ;;  %v7491_v30 = vld [vmem:[#allocation2 + $0x8d0] sm:$0xf]  ;;  %v9704_v32 = vld [vmem:[#allocation2 + $0x8e4] sm:$0xf0]  ;;  %v6748_v36 = vor.u32 %v9518_v25, %v6747_v23  ;;  %v7300_v40 = vor.u32 %v9656_v29, %v7299_v28 }
  0x3f   :  { %2509 = vmatpush.bf16.msra.mxu0 %v6412_v4  ;;  %v7683_v33 = vld [vmem:[#allocation2 + $0xa50] sm:$0xf]  ;;  %v9752_v34 = vld [vmem:[#allocation2 + $0xa64] sm:$0xf0]  ;;  %v6940_v39 = vor.u32 %v9566_v27, %v6939_v26  ;;  %v7492_v41 = vor.u32 %v9704_v32, %v7491_v30  ;;  %v7275_v43 = vld [vmem:[#allocation2 + $0x720] sm:$0xf] }
  0x40   :  { %2522 = vmatpush.bf16.msra.mxu1 %v6604_v5  ;;  %v7875_v37 = vld [vmem:[#allocation2 + $0xbd0] sm:$0xf]  ;;  %v9800_v38 = vld [vmem:[#allocation2 + $0xbe4] sm:$0xf0]  ;;  %v7684_v42 = vor.u32 %v9752_v34, %v7683_v33  ;;  %v9650_v44 = vld [vmem:[#allocation2 + $0x734] sm:$0xf0] }
  0x41   :  { %2535 = vmatpush.bf16.msra.mxu2 %v6796_v6  ;;  %v7467_v45 = vld [vmem:[#allocation2 + $0x8a0] sm:$0xf]  ;;  %v7876_v46 = vor.u32 %v9800_v38, %v7875_v37  ;;  %v9698_v47 = vld [vmem:[#allocation2 + $0x8b4] sm:$0xf0]  ;;  %v7276_v52 = vor.u32 %v9650_v44, %v7275_v43  ;;  %v7251_v55 = vld [vmem:[#allocation2 + $0x6f0] sm:$0xf] }
  0x42   :  { %2548 = vmatpush.bf16.msra.mxu3 %v6988_v10  ;;  %v7659_v48 = vld [vmem:[#allocation2 + $0xa20] sm:$0xf]  ;;  %v9746_v49 = vld [vmem:[#allocation2 + $0xa34] sm:$0xf0]  ;;  %v7468_v53 = vor.u32 %v9698_v47, %v7467_v45  ;;  %v9644_v56 = vld [vmem:[#allocation2 + $0x704] sm:$0xf0] }
  0x43   :  { %2510 = vmatpush.bf16.msra.mxu0 %v6388_v16  ;;  %v7851_v50 = vld [vmem:[#allocation2 + $0xba0] sm:$0xf]  ;;  %v9794_v51 = vld [vmem:[#allocation2 + $0xbb4] sm:$0xf0]  ;;  %v7660_v54 = vor.u32 %v9746_v49, %v7659_v48  ;;  %v7443_v57 = vld [vmem:[#allocation2 + $0x870] sm:$0xf]  ;;  %v7252_v0 = vor.u32 %v9644_v56, %v7251_v55 }
  0x44   :  { %2523 = vmatpush.bf16.msra.mxu1 %v6580_v19  ;;  %v7852_v58 = vor.u32 %v9794_v51, %v7851_v50  ;;  %v9692_v59 = vld [vmem:[#allocation2 + $0x884] sm:$0xf0]  ;;  %v7635_v60 = vld [vmem:[#allocation2 + $0x9f0] sm:$0xf]  ;;  %v7227_v1 = vld [vmem:[#allocation2 + $0x6c0] sm:$0xf] }
  0x45   :  { %2536 = vmatpush.bf16.msra.mxu2 %v6772_v20  ;;  %v9740_v61 = vld [vmem:[#allocation2 + $0xa04] sm:$0xf0]  ;;  %v7827_v62 = vld [vmem:[#allocation2 + $0xb70] sm:$0xf]  ;;  %v167_v2 = vld [vmem:[%s11529_s0] sm:$0xff]  ;;  %v7444_v3 = vor.u32 %v9692_v59, %v7443_v57 }
  0x46   :  { %2549 = vmatpush.bf16.msra.mxu3 %v6964_v24  ;;  %v9788_v63 = vld [vmem:[#allocation2 + $0xb84] sm:$0xf0]  ;;  %v7636_v4 = vor.u32 %v9740_v61, %v7635_v60  ;;  %v9638_v5 = vld [vmem:[#allocation2 + $0x6d4] sm:$0xf0]  ;;  %v7419_v6 = vld [vmem:[#allocation2 + $0x840] sm:$0xf] }
  0x47   :  { %2511 = vmatpush.bf16.msra.mxu0 %v6364_v31  ;;  %567 = vst [vmem:[#allocation1] ss:$9 sm:$0xff] %v167_v2  ;;  %v7828_v7 = vor.u32 %v9788_v63, %v7827_v62  ;;  %v9686_v8 = vld [vmem:[#allocation2 + $0x854] sm:$0xf0]  ;;  %v7611_v9 = vld [vmem:[#allocation2 + $0x9c0] sm:$0xf]  ;;  %v7228_v13 = vor.u32 %v9638_v5, %v7227_v1 }
  0x48   :  { %2524 = vmatpush.bf16.msra.mxu1 %v6556_v35  ;;  %v9734_v10 = vld [vmem:[#allocation2 + $0x9d4] sm:$0xf0]  ;;  %v7803_v11 = vld [vmem:[#allocation2 + $0xb40] sm:$0xf]  ;;  %v7420_v14 = vor.u32 %v9686_v8, %v7419_v6  ;;  %v7203_v16 = vld [vmem:[#allocation2 + $0x690] sm:$0xf] }
  0x49   :  { %2537 = vmatpush.bf16.msra.mxu2 %v6748_v36  ;;  %v9782_v12 = vld [vmem:[#allocation2 + $0xb54] sm:$0xf0]  ;;  %v7612_v15 = vor.u32 %v9734_v10, %v7611_v9  ;;  %v9632_v17 = vld [vmem:[#allocation2 + $0x6a4] sm:$0xf0]  ;;  %v7395_v18 = vld [vmem:[#allocation2 + $0x810] sm:$0xf] }
  0x4a   :  { %2550 = vmatpush.bf16.msra.mxu3 %v6940_v39  ;;  %v7804_v19 = vor.u32 %v9782_v12, %v7803_v11  ;;  %v9680_v20 = vld [vmem:[#allocation2 + $0x824] sm:$0xf0]  ;;  %v7587_v21 = vld [vmem:[#allocation2 + $0x990] sm:$0xf]  ;;  %v7179_v25 = vld [vmem:[#allocation2 + $0x660] sm:$0xf]  ;;  %v7204_v26 = vor.u32 %v9632_v17, %v7203_v16 }
  0x4b   :  { %2556 = vmatpush.bf16.msrb.mxu0 %v7300_v40  ;;  %v9728_v22 = vld [vmem:[#allocation2 + $0x9a4] sm:$0xf0]  ;;  %v7779_v23 = vld [vmem:[#allocation2 + $0xb10] sm:$0xf]  ;;  %v7396_v30 = vor.u32 %v9680_v20, %v7395_v18  ;;  %v9626_v32 = vld [vmem:[#allocation2 + $0x674] sm:$0xf0] }
  0x4c   :  { %2569 = vmatpush.bf16.msrb.mxu1 %v7492_v41  ;;  %v9776_v24 = vld [vmem:[#allocation2 + $0xb24] sm:$0xf0]  ;;  %v7588_v31 = vor.u32 %v9728_v22, %v7587_v21  ;;  %v7371_v33 = vld [vmem:[#allocation2 + $0x7e0] sm:$0xf]  ;;  %v9674_v36 = vld [vmem:[#allocation2 + $0x7f4] sm:$0xf0]  ;;  %v7180_v41 = vor.u32 %v9626_v32, %v7179_v25 }
  0x4d   :  { %2582 = vmatpush.bf16.msrb.mxu2 %v7684_v42  ;;  %v7780_v35 = vor.u32 %v9776_v24, %v7779_v23  ;;  %v7563_v37 = vld [vmem:[#allocation2 + $0x960] sm:$0xf]  ;;  %v9722_v38 = vld [vmem:[#allocation2 + $0x974] sm:$0xf0]  ;;  %v7372_v42 = vor.u32 %v9674_v36, %v7371_v33  ;;  %v7155_v44 = vld [vmem:[#allocation2 + $0x630] sm:$0xf] }
  0x4e   :  { %2595 = vmatpush.bf16.msrb.mxu3 %v7876_v46  ;;  %v10525_v27 = vld [vmem:[#allocation1 + $0x12] sm:$0xff]  ;;  %v10527_v28 = vld [vmem:[#allocation1] sm:$0xff]  ;;  %v10531_v34 = vld [vmem:[#allocation1 + $0x9] sm:$0xff]  ;;  %v7564_v43 = vor.u32 %v9722_v38, %v7563_v37 }
  0x4f   :  { %2557 = vmatpush.bf16.msrb.mxu0 %v7276_v52  ;;  %v10529_v29 = vld [vmem:[#allocation1 + $0x1b] sm:$0xff]  ;;  %2538 = vmatmul.bf16.vlgmr.msra.gmra.mxu2 %v10525_v27  ;;  %v7755_v39 = vld [vmem:[#allocation2 + $0xae0] sm:$0xf]  ;;  %v9620_v45 = vld [vmem:[#allocation2 + $0x644] sm:$0xf0] }
  0x50   :  { %2570 = vmatpush.bf16.msrb.mxu1 %v7468_v53  ;;  %v9770_v40 = vld [vmem:[#allocation2 + $0xaf4] sm:$0xf0]  ;;  %2512 = vmatmul.bf16.vlgmr.msra.gmra.mxu0 %v10527_v28  ;;  %v7347_v46 = vld [vmem:[#allocation2 + $0x7b0] sm:$0xf]  ;;  %v9668_v48 = vld [vmem:[#allocation2 + $0x7c4] sm:$0xf0]  ;;  %v7156_v53 = vor.u32 %v9620_v45, %v7155_v44 }
  0x51   :  { %2583 = vmatpush.bf16.msrb.mxu2 %v7660_v54  ;;  %2551 = vmatmul.bf16.vlgmr.msra.gmra.mxu3 %v10529_v29  ;;  %v7756_v47 = vor.u32 %v9770_v40, %v7755_v39  ;;  %v7539_v49 = vld [vmem:[#allocation2 + $0x930] sm:$0xf]  ;;  %v9716_v50 = vld [vmem:[#allocation2 + $0x944] sm:$0xf0]  ;;  %v7131_v54 = vld [vmem:[#allocation2 + $0x600] sm:$0xf]  ;;  %v7348_v56 = vor.u32 %v9668_v48, %v7347_v46 }
  0x52   :  { %2596 = vmatpush.bf16.msrb.mxu3 %v7852_v58  ;;  %2525 = vmatmul.bf16.vlgmr.msra.gmra.mxu1 %v10531_v34  ;;  %v7731_v51 = vld [vmem:[#allocation2 + $0xab0] sm:$0xf]  ;;  %v9764_v52 = vld [vmem:[#allocation2 + $0xac4] sm:$0xf0]  ;;  %v9614_v55 = vld [vmem:[#allocation2 + $0x614] sm:$0xf0]  ;;  %v7540_v57 = vor.u32 %v9716_v50, %v7539_v49 }
  0x53   :  { %2558 = vmatpush.bf16.msrb.mxu0 %v7252_v0  ;;  %v7323_v58 = vld [vmem:[#allocation2 + $0x780] sm:$0xf]  ;;  %v9662_v59 = vld [vmem:[#allocation2 + $0x794] sm:$0xf0]  ;;  %v7732_v61 = vor.u32 %v9764_v52, %v7731_v51  ;;  %v9461_v1 = vld [vmem:[#allocation2 + $0x154] sm:$0xf] }
  0x54   :  { %2571 = vmatpush.bf16.msrb.mxu1 %v7444_v3  ;;  %v7515_v60 = vld [vmem:[#allocation2 + $0x900] sm:$0xf]  ;;  %v9710_v62 = vld [vmem:[#allocation2 + $0x914] sm:$0xf0]  ;;  %v6533_v2 = vld [vmem:[#allocation2 + $0x168] sm:$0xf0]  ;;  %v7324_v8 = vor.u32 %v9662_v59, %v7323_v58 }
  0x55   :  { %2584 = vmatpush.bf16.msrb.mxu2 %v7636_v4  ;;  %v7707_v63 = vld [vmem:[#allocation2 + $0xa80] sm:$0xf]  ;;  %v9758_v0 = vld [vmem:[#allocation2 + $0xa94] sm:$0xf0]  ;;  %v9509_v3 = vld [vmem:[#allocation2 + $0x2d4] sm:$0xf]  ;;  %v7132_v4 = vor.u32 %v9614_v55, %v7131_v54  ;;  %v7516_v9 = vor.u32 %v9710_v62, %v7515_v60 }
  0x56   :  { %2597 = vmatpush.bf16.msrb.mxu3 %v7828_v7  ;;  %v6725_v5 = vld [vmem:[#allocation2 + $0x2e8] sm:$0xf0]  ;;  %v9557_v6 = vld [vmem:[#allocation2 + $0x454] sm:$0xf]  ;;  %v7708_v12 = vor.u32 %v9758_v0, %v7707_v63  ;;  %v9455_v16 = vld [vmem:[#allocation2 + $0x124] sm:$0xf] }
  0x57   :  { %2559 = vmatpush.bf16.msrb.mxu0 %v7228_v13  ;;  %v6917_v7 = vld [vmem:[#allocation2 + $0x468] sm:$0xf0]  ;;  %v9605_v10 = vld [vmem:[#allocation2 + $0x5d4] sm:$0xf]  ;;  %v6536_v13 = vor.u32 %v9461_v1, %v6533_v2  ;;  %v6509_v17 = vld [vmem:[#allocation2 + $0x138] sm:$0xf0] }
  0x58   :  { %2572 = vmatpush.bf16.msrb.mxu1 %v7420_v14  ;;  %v7109_v11 = vld [vmem:[#allocation2 + $0x5e8] sm:$0xf0]  ;;  %v6728_v14 = vor.u32 %v9509_v3, %v6725_v5  ;;  %v9503_v18 = vld [vmem:[#allocation2 + $0x2a4] sm:$0xf]  ;;  %v6701_v20 = vld [vmem:[#allocation2 + $0x2b8] sm:$0xf0] }
  0x59   :  { %2585 = vmatpush.bf16.msrb.mxu2 %v7612_v15  ;;  %v6920_v15 = vor.u32 %v9557_v6, %v6917_v7  ;;  %v9551_v21 = vld [vmem:[#allocation2 + $0x424] sm:$0xf]  ;;  %v6893_v22 = vld [vmem:[#allocation2 + $0x438] sm:$0xf0]  ;;  %v10537_v25 = vld [vmem:[#allocation1 + $0x36] sm:$0xff]  ;;  %v6704_v33 = vor.u32 %v9503_v18, %v6701_v20 }
  0x5a   :  { %2598 = vmatpush.bf16.msrb.mxu3 %v7804_v19  ;;  %v7112_v19 = vor.u32 %v9605_v10, %v7109_v11  ;;  %v9599_v23 = vld [vmem:[#allocation2 + $0x5a4] sm:$0xf]  ;;  %v7085_v24 = vld [vmem:[#allocation2 + $0x5b8] sm:$0xf0]  ;;  %v6485_v36 = vld [vmem:[#allocation2 + $0x108] sm:$0xf0] }
  0x5b   :  { %2560 = vmatpush.bf16.msrb.mxu0 %v7204_v26  ;;  %v6512_v26 = vor.u32 %v9455_v16, %v6509_v17  ;;  %v10541_v32 = vld [vmem:[#allocation1 + $0x3f] sm:$0xff]  ;;  %v10543_v38 = vld [vmem:[#allocation1 + $0x2d] sm:$0xff]  ;;  %v7088_v39 = vor.u32 %v9599_v23, %v7085_v24 }
  0x5c   :  { %2573 = vmatpush.bf16.msrb.mxu1 %v7396_v30  ;;  %v9449_v30 = vld [vmem:[#allocation2 + $0xf4] sm:$0xf]  ;;  %v6677_v40 = vld [vmem:[#allocation2 + $0x288] sm:$0xf0]  ;;  %v9443_v48 = vld [vmem:[#allocation2 + $0xc4] sm:$0xf] }
  0x5d   :  { %2586 = vmatpush.bf16.msrb.mxu2 %v7588_v31  ;;  %v10539_v31 = vld [vmem:[#allocation1 + $0x24] sm:$0xff]  ;;  %v9497_v37 = vld [vmem:[#allocation2 + $0x274] sm:$0xf]  ;;  %v7061_v44 = vld [vmem:[#allocation2 + $0x588] sm:$0xf0]  ;;  %v6488_v45 = vor.u32 %v9449_v30, %v6485_v36 }
  0x5e   :  { %2599 = vmatpush.bf16.msrb.mxu3 %v7780_v35  ;;  %v6896_v35 = vor.u32 %v9551_v21, %v6893_v22  ;;  %v6680_v46 = vor.u32 %v9497_v37, %v6677_v40  ;;  %v6461_v49 = vld [vmem:[#allocation2 + $0xd8] sm:$0xf0]  ;;  %v9491_v50 = vld [vmem:[#allocation2 + $0x244] sm:$0xf]  ;;  %v9437_v60 = vld [vmem:[#allocation2 + $0x94] sm:$0xf] }
  0x5f   :  { %2561 = vmatpush.bf16.msrb.mxu0 %v7180_v41  ;;  %v9545_v41 = vld [vmem:[#allocation2 + $0x3f4] sm:$0xf]  ;;  %v6653_v52 = vld [vmem:[#allocation2 + $0x258] sm:$0xf0]  ;;  %v9587_v55 = vld [vmem:[#allocation2 + $0x544] sm:$0xf] }
  0x60   :  { %2574 = vmatpush.bf16.msrb.mxu1 %v7372_v42  ;;  %v6869_v42 = vld [vmem:[#allocation2 + $0x408] sm:$0xf0]  ;;  %v6845_v54 = vld [vmem:[#allocation2 + $0x3d8] sm:$0xf0]  ;;  %v6656_v58 = vor.u32 %v9491_v50, %v6653_v52  ;;  %v9485_v62 = vld [vmem:[#allocation2 + $0x214] sm:$0xf] }
  0x61   :  { %2587 = vmatpush.bf16.msrb.mxu2 %v7564_v43  ;;  %v9593_v43 = vld [vmem:[#allocation2 + $0x574] sm:$0xf]  ;;  %v6629_v0 = vld [vmem:[#allocation2 + $0x228] sm:$0xf0]  ;;  %v9479_v10 = vld [vmem:[#allocation2 + $0x1e4] sm:$0xf] }
  0x62   :  { %2600 = vmatpush.bf16.msrb.mxu3 %v7756_v47  ;;  %v6872_v47 = vor.u32 %v9545_v41, %v6869_v42  ;;  %v7064_v51 = vor.u32 %v9593_v43, %v7061_v44  ;;  %v9533_v1 = vld [vmem:[#allocation2 + $0x394] sm:$0xf]  ;;  %v6821_v2 = vld [vmem:[#allocation2 + $0x3a8] sm:$0xf0]  ;;  %v6632_v6 = vor.u32 %v9485_v62, %v6629_v0  ;;  %v6989_v16 = vld [vmem:[#allocation2 + $0x4f8] sm:$0xf0] }
  0x63   :  { %2562 = vmatpush.bf16.msrb.mxu0 %v7156_v53  ;;  %v9539_v53 = vld [vmem:[#allocation2 + $0x3c4] sm:$0xf]  ;;  %v9581_v3 = vld [vmem:[#allocation2 + $0x514] sm:$0xf]  ;;  %v6824_v7 = vor.u32 %v9533_v1, %v6821_v2  ;;  %v6389_v21 = vld [vmem:[#allocation2 + $0x48] sm:$0xf0] }
  0x64   :  { %2575 = vmatpush.bf16.msrb.mxu1 %v7348_v56  ;;  %v7037_v56 = vld [vmem:[#allocation2 + $0x558] sm:$0xf0]  ;;  %v6848_v59 = vor.u32 %v9539_v53, %v6845_v54  ;;  %v9425_v20 = vld [vmem:[#allocation2 + $0x34] sm:$0xf]  ;;  %v6581_v24 = vld [vmem:[#allocation2 + $0x1c8] sm:$0xf0] }
  0x65   :  { %2588 = vmatpush.bf16.msrb.mxu2 %v7540_v57  ;;  %v6464_v57 = vor.u32 %v9443_v48, %v6461_v49  ;;  %v7040_v63 = vor.u32 %v9587_v55, %v7037_v56  ;;  %v9473_v22 = vld [vmem:[#allocation2 + $0x1b4] sm:$0xf]  ;;  %v6773_v30 = vld [vmem:[#allocation2 + $0x348] sm:$0xf0]  ;;  %v9419_v36 = vld [vmem:[#allocation2 + $0x4] sm:$0xf]  ;;  %v6392_v37 = vor.u32 %v9425_v20, %v6389_v21 }
  0x66   :  { %2601 = vmatpush.bf16.msrb.mxu3 %v7732_v61  ;;  %v6437_v61 = vld [vmem:[#allocation2 + $0xa8] sm:$0xf0]  ;;  %v9467_v40 = vld [vmem:[#allocation2 + $0x184] sm:$0xf]  ;;  %v6557_v41 = vld [vmem:[#allocation2 + $0x198] sm:$0xf0]  ;;  %v6584_v42 = vor.u32 %v9473_v22, %v6581_v24 }
  0x67   :  { %2563 = vmatpush.bf16.msrb.mxu0 %v7132_v4  ;;  %v7013_v4 = vld [vmem:[#allocation2 + $0x528] sm:$0xf0]  ;;  %v6440_v5 = vor.u32 %v9437_v60, %v6437_v61  ;;  %v9515_v44 = vld [vmem:[#allocation2 + $0x304] sm:$0xf]  ;;  %v6941_v48 = vld [vmem:[#allocation2 + $0x498] sm:$0xf0]  ;;  %v6560_v56 = vor.u32 %v9467_v40, %v6557_v41 }
  0x68   :  { %2576 = vmatpush.bf16.msrb.mxu1 %v7324_v8  ;;  %v9431_v8 = vld [vmem:[#allocation2 + $0x64] sm:$0xf]  ;;  %v7016_v11 = vor.u32 %v9581_v3, %v7013_v4  ;;  %v9653_v49 = vld [vmem:[#allocation2 + $0x754] sm:$0xf]  ;;  %v7301_v50 = vld [vmem:[#allocation2 + $0x768] sm:$0xf0] }
  0x69   :  { %2589 = vmatpush.bf16.msrb.mxu2 %v7516_v9  ;;  %v6413_v9 = vld [vmem:[#allocation2 + $0x78] sm:$0xf0]  ;;  %v7493_v53 = vld [vmem:[#allocation2 + $0x8e8] sm:$0xf0]  ;;  %v9749_v54 = vld [vmem:[#allocation2 + $0xa54] sm:$0xf]  ;;  %v7304_v61 = vor.u32 %v9653_v49, %v7301_v50 }
  0x6a   :  { %2602 = vmatpush.bf16.msrb.mxu3 %v7708_v12  ;;  %2564 = vmatmul.bf16.vlgmr.msrb.gmra.mxu0 %v10539_v31  ;;  %v6605_v12 = vld [vmem:[#allocation2 + $0x1f8] sm:$0xf0]  ;;  %v6416_v17 = vor.u32 %v9431_v8, %v6413_v9  ;;  %v7685_v55 = vld [vmem:[#allocation2 + $0xa68] sm:$0xf0]  ;;  %v9647_v0 = vld [vmem:[#allocation2 + $0x724] sm:$0xf] }
  0x6b   :  { %2608 = vmatpush.bf16.msra.mxu0 %v6536_v13  ;;  %2577 = vmatmul.bf16.vlgmr.msrb.gmra.mxu1 %v10543_v38  ;;  %v9527_v13 = vld [vmem:[#allocation2 + $0x364] sm:$0xf]  ;;  %v6608_v18 = vor.u32 %v9479_v10, %v6605_v12  ;;  %v7277_v1 = vld [vmem:[#allocation2 + $0x738] sm:$0xf0]  ;;  %v9641_v12 = vld [vmem:[#allocation2 + $0x6f4] sm:$0xf] }
  0x6c   :  { %2621 = vmatpush.bf16.msra.mxu1 %v6728_v14  ;;  %2590 = vmatmul.bf16.vlgmr.msrb.gmra.mxu2 %v10537_v25  ;;  %v6797_v14 = vld [vmem:[#allocation2 + $0x378] sm:$0xf0]  ;;  %v9695_v2 = vld [vmem:[#allocation2 + $0x8a4] sm:$0xf]  ;;  %v7280_v9 = vor.u32 %v9647_v0, %v7277_v1  ;;  %v7829_v20 = vld [vmem:[#allocation2 + $0xb88] sm:$0xf0] }
  0x6d   :  { %2634 = vmatpush.bf16.msra.mxu2 %v6920_v15  ;;  %2603 = vmatmul.bf16.vlgmr.msrb.gmra.mxu3 %v10541_v32  ;;  %v9575_v15 = vld [vmem:[#allocation2 + $0x4e4] sm:$0xf]  ;;  %v7469_v4 = vld [vmem:[#allocation2 + $0x8b8] sm:$0xf0]  ;;  %v9725_v49 = vld [vmem:[#allocation2 + $0x994] sm:$0xf] }
  0x6e   :  { %2647 = vmatpush.bf16.msra.mxu3 %v7112_v19  ;;  %v6800_v19 = vor.u32 %v9527_v13, %v6797_v14  ;;  %v6992_v23 = vor.u32 %v9575_v15, %v6989_v16  ;;  %v7853_v8 = vld [vmem:[#allocation2 + $0xbb8] sm:$0xf0]  ;;  %v7472_v10 = vor.u32 %v9695_v2, %v7469_v4  ;;  %v7253_v13 = vld [vmem:[#allocation2 + $0x708] sm:$0xf0]  ;;  %v9689_v14 = vld [vmem:[#allocation2 + $0x874] sm:$0xf] }
  0x6f   :  { %2609 = vmatpush.bf16.msra.mxu0 %v6512_v26  ;;  %v9521_v26 = vld [vmem:[#allocation2 + $0x334] sm:$0xf]  ;;  %v7445_v16 = vld [vmem:[#allocation2 + $0x888] sm:$0xf0]  ;;  %v7256_v21 = vor.u32 %v9641_v12, %v7253_v13  ;;  %v9635_v24 = vld [vmem:[#allocation2 + $0x6c4] sm:$0xf] }
  0x70   :  { %2622 = vmatpush.bf16.msra.mxu1 %v6704_v33  ;;  %v9569_v33 = vld [vmem:[#allocation2 + $0x4b4] sm:$0xf]  ;;  %v6776_v43 = vor.u32 %v9521_v26, %v6773_v30  ;;  %v7448_v22 = vor.u32 %v9689_v14, %v7445_v16  ;;  %v7229_v26 = vld [vmem:[#allocation2 + $0x6d8] sm:$0xf0]  ;;  %v9683_v30 = vld [vmem:[#allocation2 + $0x844] sm:$0xf] }
  0x71   :  { %2635 = vmatpush.bf16.msra.mxu2 %v6896_v35  ;;  %v6965_v35 = vld [vmem:[#allocation2 + $0x4c8] sm:$0xf0]  ;;  %v7805_v40 = vld [vmem:[#allocation2 + $0xb58] sm:$0xf0]  ;;  %v7232_v41 = vor.u32 %v9635_v24, %v7229_v26  ;;  %v9617_v4 = vld [vmem:[#allocation2 + $0x634] sm:$0xf] }
  0x72   :  { %2648 = vmatpush.bf16.msra.mxu3 %v7088_v39  ;;  %v6365_v39 = vld [vmem:[#allocation2 + $0x18] sm:$0xf0]  ;;  %v7589_v50 = vld [vmem:[#allocation2 + $0x9a8] sm:$0xf0]  ;;  %v9611_v14 = vld [vmem:[#allocation2 + $0x604] sm:$0xf] }
  0x73   :  { %2610 = vmatpush.bf16.msra.mxu0 %v6488_v45  ;;  %v6749_v45 = vld [vmem:[#allocation2 + $0x318] sm:$0xf0]  ;;  %v6368_v52 = vor.u32 %v9419_v36, %v6365_v39  ;;  %v9731_v36 = vld [vmem:[#allocation2 + $0x9c4] sm:$0xf]  ;;  %v7733_v12 = vld [vmem:[#allocation2 + $0xac8] sm:$0xf0] }
  0x74   :  { %2623 = vmatpush.bf16.msra.mxu1 %v6680_v46  ;;  %v9563_v46 = vld [vmem:[#allocation2 + $0x484] sm:$0xf]  ;;  %v7757_v0 = vld [vmem:[#allocation2 + $0xaf8] sm:$0xf0]  ;;  %v6539_v26 = vld [vmem:[#allocation2 + $0x158] sm:$0xf] }
  0x75   :  { %2636 = vmatpush.bf16.msra.mxu2 %v6872_v47  ;;  %v6968_v47 = vor.u32 %v9569_v33, %v6965_v35  ;;  %v6944_v60 = vor.u32 %v9563_v46, %v6941_v48  ;;  %v7421_v35 = vld [vmem:[#allocation2 + $0x858] sm:$0xf0]  ;;  %v9779_v39 = vld [vmem:[#allocation2 + $0xb44] sm:$0xf]  ;;  %v9677_v46 = vld [vmem:[#allocation2 + $0x814] sm:$0xf] }
  0x76   :  { %2649 = vmatpush.bf16.msra.mxu3 %v7064_v51  ;;  %v9701_v51 = vld [vmem:[#allocation2 + $0x8d4] sm:$0xf]  ;;  %v7397_v48 = vld [vmem:[#allocation2 + $0x828] sm:$0xf0]  ;;  %v7709_v24 = vld [vmem:[#allocation2 + $0xa98] sm:$0xf0] }
  0x77   :  { %2611 = vmatpush.bf16.msra.mxu0 %v6464_v57  ;;  %v6752_v57 = vor.u32 %v9515_v44, %v6749_v45  ;;  %v7496_v62 = vor.u32 %v9701_v51, %v7493_v53  ;;  %v9629_v44 = vld [vmem:[#allocation2 + $0x694] sm:$0xf]  ;;  %v7205_v45 = vld [vmem:[#allocation2 + $0x6a8] sm:$0xf0] }
  0x78   :  { %2624 = vmatpush.bf16.msra.mxu1 %v6656_v58  ;;  %v9797_v58 = vld [vmem:[#allocation2 + $0xbd4] sm:$0xf]  ;;  %v7208_v53 = vor.u32 %v9629_v44, %v7205_v45 }
  0x79   :  { %2637 = vmatpush.bf16.msra.mxu2 %v6848_v59  ;;  %v7877_v59 = vld [vmem:[#allocation2 + $0xbe8] sm:$0xf0]  ;;  %v9773_v51 = vld [vmem:[#allocation2 + $0xb14] sm:$0xf] }
  0x7a   :  { %2650 = vmatpush.bf16.msra.mxu3 %v7040_v63  ;;  %v7688_v63 = vor.u32 %v9749_v54, %v7685_v55  ;;  %v7880_v3 = vor.u32 %v9797_v58, %v7877_v59  ;;  %v7400_v54 = vor.u32 %v9677_v46, %v7397_v48  ;;  %v7592_v55 = vor.u32 %v9725_v49, %v7589_v50  ;;  %v9671_v58 = vld [vmem:[#allocation2 + $0x7e4] sm:$0xf]  ;;  %v6515_v48 = vld [vmem:[#allocation2 + $0x128] sm:$0xf]  ;;  %v9459_v49 = vld [vmem:[#allocation2 + $0x13c] sm:$0xf0] }
  0x7b   :  { %2612 = vmatpush.bf16.msra.mxu0 %v6440_v5  ;;  %v9743_v5 = vld [vmem:[#allocation2 + $0xa24] sm:$0xf]  ;;  %v6707_v50 = vld [vmem:[#allocation2 + $0x2a8] sm:$0xf] }
  0x7c   :  { %2625 = vmatpush.bf16.msra.mxu1 %v6632_v6  ;;  %v7661_v6 = vld [vmem:[#allocation2 + $0xa38] sm:$0xf0] }
  0x7d   :  { %2638 = vmatpush.bf16.msra.mxu2 %v6824_v7  ;;  %v9791_v7 = vld [vmem:[#allocation2 + $0xba4] sm:$0xf] }
  0x7e   :  { %2651 = vmatpush.bf16.msra.mxu3 %v7016_v11  ;;  %v7664_v11 = vor.u32 %v9743_v5, %v7661_v6  ;;  %v7856_v15 = vor.u32 %v9791_v7, %v7853_v8  ;;  %v7157_v5 = vld [vmem:[#allocation2 + $0x648] sm:$0xf0]  ;;  %v9665_v6 = vld [vmem:[#allocation2 + $0x7b4] sm:$0xf] }
  0x7f   :  { %2613 = vmatpush.bf16.msra.mxu0 %v6416_v17  ;;  %v9737_v17 = vld [vmem:[#allocation2 + $0x9f4] sm:$0xf]  ;;  %v7349_v8 = vld [vmem:[#allocation2 + $0x7c8] sm:$0xf0]  ;;  %v7160_v13 = vor.u32 %v9617_v4, %v7157_v5  ;;  %v9597_v4 = vld [vmem:[#allocation2 + $0x58c] sm:$0xf0] }
  0x80   :  { %2626 = vmatpush.bf16.msra.mxu1 %v6608_v18  ;;  %v7637_v18 = vld [vmem:[#allocation2 + $0xa08] sm:$0xf0]  ;;  %v7352_v16 = vor.u32 %v9665_v6, %v7349_v8  ;;  %v6467_v8 = vld [vmem:[#allocation2 + $0xc8] sm:$0xf] }
  0x81   :  { %2639 = vmatpush.bf16.msra.mxu2 %v6800_v19  ;;  %v9785_v19 = vld [vmem:[#allocation2 + $0xb74] sm:$0xf] }
  0x82   :  { %2652 = vmatpush.bf16.msra.mxu3 %v6992_v23  ;;  %v7640_v23 = vor.u32 %v9737_v17, %v7637_v18  ;;  %v7832_v33 = vor.u32 %v9785_v19, %v7829_v20  ;;  %v9659_v18 = vld [vmem:[#allocation2 + $0x784] sm:$0xf]  ;;  %v7325_v19 = vld [vmem:[#allocation2 + $0x798] sm:$0xf0] }
  0x83   :  { %2614 = vmatpush.bf16.msra.mxu0 %v6392_v37  ;;  %v7613_v37 = vld [vmem:[#allocation2 + $0x9d8] sm:$0xf0]  ;;  %v9707_v20 = vld [vmem:[#allocation2 + $0x904] sm:$0xf] }
  0x84   :  { %2627 = vmatpush.bf16.msra.mxu1 %v6584_v42  ;;  %v7424_v42 = vor.u32 %v9683_v30, %v7421_v35  ;;  %v9465_v30 = vld [vmem:[#allocation2 + $0x16c] sm:$0xf0] }
  0x85   :  { %2640 = vmatpush.bf16.msra.mxu2 %v6776_v43  ;;  %v7616_v43 = vor.u32 %v9731_v36, %v7613_v37  ;;  %v9513_v36 = vld [vmem:[#allocation2 + $0x2ec] sm:$0xf0]  ;;  %v6923_v37 = vld [vmem:[#allocation2 + $0x458] sm:$0xf]  ;;  %v6540_v45 = vor.u32 %v9465_v30, %v6539_v26 }
  0x86   :  { %2653 = vmatpush.bf16.msra.mxu3 %v6968_v47  ;;  %v7808_v47 = vor.u32 %v9779_v39, %v7805_v40  ;;  %v9561_v39 = vld [vmem:[#allocation2 + $0x46c] sm:$0xf0]  ;;  %v7328_v40 = vor.u32 %v9659_v18, %v7325_v19  ;;  %v6635_v18 = vld [vmem:[#allocation2 + $0x218] sm:$0xf] }
  0x87   :  { %2615 = vmatpush.bf16.msra.mxu0 %v6368_v52  ;;  %v7781_v52 = vld [vmem:[#allocation2 + $0xb28] sm:$0xf0] }
  0x88   :  { %2628 = vmatpush.bf16.msra.mxu1 %v6560_v56  ;;  %v9623_v56 = vld [vmem:[#allocation2 + $0x664] sm:$0xf]  ;;  %v7784_v59 = vor.u32 %v9773_v51, %v7781_v52  ;;  %v9507_v52 = vld [vmem:[#allocation2 + $0x2bc] sm:$0xf0] }
  0x89   :  { %2641 = vmatpush.bf16.msra.mxu2 %v6752_v57  ;;  %v7181_v57 = vld [vmem:[#allocation2 + $0x678] sm:$0xf0] }
  0x8a   :  { %2654 = vmatpush.bf16.msra.mxu3 %v6944_v60  ;;  %2616 = vmatmul.bf16.vlgmr.msra.gmra.mxu0 %v10527_v28  ;;  %v7373_v60 = vld [vmem:[#allocation2 + $0x7f8] sm:$0xf0]  ;;  %v7184_v1 = vor.u32 %v9623_v56, %v7181_v57  ;;  %v9603_v56 = vld [vmem:[#allocation2 + $0x5bc] sm:$0xf0]  ;;  %v6516_v57 = vor.u32 %v9459_v49, %v6515_v48  ;;  %v6395_v48 = vld [vmem:[#allocation2 + $0x38] sm:$0xf] }
  0x8b   :  { %2660 = vmatpush.bf16.msrb.mxu0 %v7304_v61  ;;  %2629 = vmatmul.bf16.vlgmr.msra.gmra.mxu1 %v10531_v34  ;;  %v9719_v61 = vld [vmem:[#allocation2 + $0x964] sm:$0xf]  ;;  %v7376_v2 = vor.u32 %v9671_v58, %v7373_v60  ;;  %v6708_v58 = vor.u32 %v9507_v52, %v6707_v50  ;;  %v6491_v60 = vld [vmem:[#allocation2 + $0xf8] sm:$0xf]  ;;  %v9429_v49 = vld [vmem:[#allocation2 + $0x4c] sm:$0xf0] }
  0x8c   :  { %2673 = vmatpush.bf16.msrb.mxu1 %v7496_v62  ;;  %2642 = vmatmul.bf16.vlgmr.msra.gmra.mxu2 %v10525_v27  ;;  %v7565_v62 = vld [vmem:[#allocation2 + $0x978] sm:$0xf0]  ;;  %v6587_v50 = vld [vmem:[#allocation2 + $0x1b8] sm:$0xf]  ;;  %v9477_v52 = vld [vmem:[#allocation2 + $0x1cc] sm:$0xf0] }
  0x8d   :  { %2686 = vmatpush.bf16.msrb.mxu2 %v7688_v63  ;;  %2655 = vmatmul.bf16.vlgmr.msra.gmra.mxu3 %v10529_v29  ;;  %v9767_v63 = vld [vmem:[#allocation2 + $0xae4] sm:$0xf] }
  0x8e   :  { %2699 = vmatpush.bf16.msrb.mxu3 %v7880_v3  ;;  %v7568_v3 = vor.u32 %v9719_v61, %v7565_v62  ;;  %v7760_v7 = vor.u32 %v9767_v63, %v7757_v0  ;;  %v9453_v61 = vld [vmem:[#allocation2 + $0x10c] sm:$0xf0]  ;;  %v6683_v62 = vld [vmem:[#allocation2 + $0x278] sm:$0xf] }
  0x8f   :  { %2661 = vmatpush.bf16.msrb.mxu0 %v7280_v9  ;;  %v9713_v9 = vld [vmem:[#allocation2 + $0x934] sm:$0xf]  ;;  %v9501_v0 = vld [vmem:[#allocation2 + $0x28c] sm:$0xf0]  ;;  %v6492_v5 = vor.u32 %v9453_v61, %v6491_v60  ;;  %v6588_v60 = vor.u32 %v9477_v52, %v6587_v50  ;;  %v7427_v50 = vld [vmem:[#allocation2 + $0x848] sm:$0xf] }
  0x90   :  { %2674 = vmatpush.bf16.msrb.mxu1 %v7472_v10  ;;  %v7541_v10 = vld [vmem:[#allocation2 + $0x948] sm:$0xf0]  ;;  %v6684_v6 = vor.u32 %v9501_v0, %v6683_v62  ;;  %v6563_v62 = vld [vmem:[#allocation2 + $0x188] sm:$0xf] }
  0x91   :  { %2687 = vmatpush.bf16.msrb.mxu2 %v7664_v11  ;;  %v9761_v11 = vld [vmem:[#allocation2 + $0xab4] sm:$0xf]  ;;  %v7544_v17 = vor.u32 %v9713_v9, %v7541_v10  ;;  %v6659_v9 = vld [vmem:[#allocation2 + $0x248] sm:$0xf] }
  0x92   :  { %2700 = vmatpush.bf16.msrb.mxu3 %v7856_v15  ;;  %v7133_v15 = vld [vmem:[#allocation2 + $0x618] sm:$0xf0]  ;;  %v6755_v0 = vld [vmem:[#allocation2 + $0x308] sm:$0xf] }
  0x93   :  { %2662 = vmatpush.bf16.msrb.mxu0 %v7256_v21  ;;  %v7736_v21 = vor.u32 %v9761_v11, %v7733_v12  ;;  %v7136_v35 = vor.u32 %v9611_v14, %v7133_v15  ;;  %v9495_v11 = vld [vmem:[#allocation2 + $0x25c] sm:$0xf0]  ;;  %v6851_v12 = vld [vmem:[#allocation2 + $0x3c8] sm:$0xf] }
  0x94   :  { %2675 = vmatpush.bf16.msrb.mxu1 %v7448_v22  ;;  %v7517_v22 = vld [vmem:[#allocation2 + $0x918] sm:$0xf0]  ;;  %v7619_v52 = vld [vmem:[#allocation2 + $0x9c8] sm:$0xf] }
  0x95   :  { %2688 = vmatpush.bf16.msrb.mxu2 %v7640_v23  ;;  %v9755_v23 = vld [vmem:[#allocation2 + $0xa84] sm:$0xf] }
  0x96   :  { %2701 = vmatpush.bf16.msrb.mxu3 %v7832_v33  ;;  %v6731_v33 = vld [vmem:[#allocation2 + $0x2d8] sm:$0xf]  ;;  %v7712_v44 = vor.u32 %v9755_v23, %v7709_v24  ;;  %v9585_v24 = vld [vmem:[#allocation2 + $0x52c] sm:$0xf0] }
  0x97   :  { %2663 = vmatpush.bf16.msrb.mxu0 %v7232_v41  ;;  %v7520_v41 = vor.u32 %v9707_v20, %v7517_v22  ;;  %v6732_v46 = vor.u32 %v9513_v36, %v6731_v33  ;;  %v9489_v20 = vld [vmem:[#allocation2 + $0x22c] sm:$0xf0]  ;;  %v7019_v23 = vld [vmem:[#allocation2 + $0x518] sm:$0xf]  ;;  %v9435_v36 = vld [vmem:[#allocation2 + $0x7c] sm:$0xf0] }
  0x98   :  { %2676 = vmatpush.bf16.msrb.mxu1 %v7424_v42  ;;  %v7115_v42 = vld [vmem:[#allocation2 + $0x5d8] sm:$0xf]  ;;  %v9537_v22 = vld [vmem:[#allocation2 + $0x3ac] sm:$0xf0]  ;;  %v6636_v30 = vor.u32 %v9489_v20, %v6635_v18  ;;  %v7475_v18 = vld [vmem:[#allocation2 + $0x8a8] sm:$0xf] }
  0x99   :  { %2689 = vmatpush.bf16.msrb.mxu2 %v7616_v43  ;;  %v9609_v43 = vld [vmem:[#allocation2 + $0x5ec] sm:$0xf0]  ;;  %v9699_v20 = vld [vmem:[#allocation2 + $0x8bc] sm:$0xf0] }
  0x9a   :  { %2702 = vmatpush.bf16.msrb.mxu3 %v7808_v47  ;;  %v6924_v47 = vor.u32 %v9561_v39, %v6923_v37  ;;  %v7116_v51 = vor.u32 %v9609_v43, %v7115_v42  ;;  %v6611_v37 = vld [vmem:[#allocation2 + $0x1e8] sm:$0xf]  ;;  %v7020_v39 = vor.u32 %v9585_v24, %v7019_v23  ;;  %v9531_v42 = vld [vmem:[#allocation2 + $0x37c] sm:$0xf0] }
  0x9b   :  { %2664 = vmatpush.bf16.msrb.mxu0 %v7208_v53  ;;  %v6899_v53 = vld [vmem:[#allocation2 + $0x428] sm:$0xf]  ;;  %v9795_v24 = vld [vmem:[#allocation2 + $0xbbc] sm:$0xf0] }
  0x9c   :  { %2677 = vmatpush.bf16.msrb.mxu1 %v7400_v54  ;;  %v9555_v54 = vld [vmem:[#allocation2 + $0x43c] sm:$0xf0]  ;;  %v6995_v43 = vld [vmem:[#allocation2 + $0x4e8] sm:$0xf] }
  0x9d   :  { %2690 = vmatpush.bf16.msrb.mxu2 %v7592_v55  ;;  %v7091_v55 = vld [vmem:[#allocation2 + $0x5a8] sm:$0xf] }
  0x9e   :  { %2703 = vmatpush.bf16.msrb.mxu3 %v7784_v59  ;;  %v6900_v59 = vor.u32 %v9555_v54, %v6899_v53  ;;  %v7092_v63 = vor.u32 %v9603_v56, %v7091_v55  ;;  %v6779_v53 = vld [vmem:[#allocation2 + $0x338] sm:$0xf]  ;;  %v9525_v54 = vld [vmem:[#allocation2 + $0x34c] sm:$0xf0]  ;;  %v7859_v23 = vld [vmem:[#allocation2 + $0xba8] sm:$0xf] }
  0x9f   :  { %2665 = vmatpush.bf16.msrb.mxu0 %v7184_v1  ;;  %v6875_v1 = vld [vmem:[#allocation2 + $0x3f8] sm:$0xf]  ;;  %v9573_v56 = vld [vmem:[#allocation2 + $0x4cc] sm:$0xf0]  ;;  %v6780_v61 = vor.u32 %v9525_v54, %v6779_v53  ;;  %v9735_v53 = vld [vmem:[#allocation2 + $0x9dc] sm:$0xf0] }
  0xa0   :  { %2678 = vmatpush.bf16.msrb.mxu1 %v7376_v2  ;;  %v9549_v2 = vld [vmem:[#allocation2 + $0x40c] sm:$0xf0]  ;;  %v6971_v55 = vld [vmem:[#allocation2 + $0x4b8] sm:$0xf]  ;;  %v7811_v54 = vld [vmem:[#allocation2 + $0xb48] sm:$0xf] }
  0xa1   :  { %2691 = vmatpush.bf16.msrb.mxu2 %v7568_v3  ;;  %v7067_v3 = vld [vmem:[#allocation2 + $0x578] sm:$0xf] }
  0xa2   :  { %2704 = vmatpush.bf16.msrb.mxu3 %v7760_v7  ;;  %v6876_v7 = vor.u32 %v9549_v2, %v6875_v1  ;;  %v7068_v10 = vor.u32 %v9597_v4, %v7067_v3  ;;  %v6972_v1 = vor.u32 %v9573_v56, %v6971_v55  ;;  %v9519_v2 = vld [vmem:[#allocation2 + $0x31c] sm:$0xf0]  ;;  %v6947_v3 = vld [vmem:[#allocation2 + $0x488] sm:$0xf]  ;;  %v7211_v56 = vld [vmem:[#allocation2 + $0x698] sm:$0xf] }
  0xa3   :  { %2666 = vmatpush.bf16.msrb.mxu0 %v7160_v13  ;;  %v7043_v13 = vld [vmem:[#allocation2 + $0x548] sm:$0xf]  ;;  %v9567_v4 = vld [vmem:[#allocation2 + $0x49c] sm:$0xf0] }
  0xa4   :  { %2679 = vmatpush.bf16.msrb.mxu1 %v7352_v16  ;;  %v6443_v16 = vld [vmem:[#allocation2 + $0x98] sm:$0xf] }
  0xa5   :  { %2692 = vmatpush.bf16.msrb.mxu2 %v7544_v17  ;;  %v9441_v17 = vld [vmem:[#allocation2 + $0xac] sm:$0xf0] }
  0xa6   :  { %2705 = vmatpush.bf16.msrb.mxu3 %v7736_v21  ;;  %v6827_v21 = vld [vmem:[#allocation2 + $0x398] sm:$0xf]  ;;  %v6444_v26 = vor.u32 %v9441_v17, %v6443_v16  ;;  %v7283_v16 = vld [vmem:[#allocation2 + $0x728] sm:$0xf]  ;;  %v9651_v17 = vld [vmem:[#allocation2 + $0x73c] sm:$0xf0] }
  0xa7   :  { %2667 = vmatpush.bf16.msrb.mxu0 %v7136_v35  ;;  %v6828_v33 = vor.u32 %v9537_v22, %v6827_v21  ;;  %v6419_v35 = vld [vmem:[#allocation2 + $0x68] sm:$0xf]  ;;  %v9747_v22 = vld [vmem:[#allocation2 + $0xa3c] sm:$0xf0] }
  0xa8   :  { %2680 = vmatpush.bf16.msrb.mxu1 %v7328_v40  ;;  %v9483_v40 = vld [vmem:[#allocation2 + $0x1fc] sm:$0xf0]  ;;  %v7667_v21 = vld [vmem:[#allocation2 + $0xa28] sm:$0xf] }
  0xa9   :  { %2693 = vmatpush.bf16.msrb.mxu2 %v7520_v41  ;;  %v6803_v41 = vld [vmem:[#allocation2 + $0x368] sm:$0xf] }
  0xaa   :  { %2706 = vmatpush.bf16.msrb.mxu3 %v7712_v44  ;;  %2668 = vmatmul.bf16.vlgmr.msrb.gmra.mxu0 %v10539_v31  ;;  %v9543_v31 = vld [vmem:[#allocation2 + $0x3dc] sm:$0xf0] }
  0xab   :  { %2712 = vmatpush.bf16.msra.mxu0 %v6540_v45  ;;  %2681 = vmatmul.bf16.vlgmr.msrb.gmra.mxu1 %v10543_v38  ;;  %v6660_v38 = vor.u32 %v9495_v11, %v6659_v9  ;;  %v6852_v15 = vor.u32 %v9543_v31, %v6851_v12  ;;  %v9579_v44 = vld [vmem:[#allocation2 + $0x4fc] sm:$0xf0]  ;;  %v6420_v45 = vor.u32 %v9435_v36, %v6419_v35  ;;  %v7691_v9 = vld [vmem:[#allocation2 + $0xa58] sm:$0xf]  ;;  %v9645_v36 = vld [vmem:[#allocation2 + $0x70c] sm:$0xf0] }
  0xac   :  { %2725 = vmatpush.bf16.msra.mxu1 %v6732_v46  ;;  %2694 = vmatmul.bf16.vlgmr.msrb.gmra.mxu2 %v10537_v25  ;;  %v9447_v25 = vld [vmem:[#allocation2 + $0xdc] sm:$0xf0]  ;;  %v6612_v46 = vor.u32 %v9483_v40, %v6611_v37  ;;  %v6756_v12 = vor.u32 %v9519_v2, %v6755_v0  ;;  %v7883_v31 = vld [vmem:[#allocation2 + $0xbd8] sm:$0xf]  ;;  %v9693_v40 = vld [vmem:[#allocation2 + $0x88c] sm:$0xf0] }
  0xad   :  { %2738 = vmatpush.bf16.msra.mxu2 %v6924_v47  ;;  %2707 = vmatmul.bf16.vlgmr.msrb.gmra.mxu3 %v10541_v32  ;;  %v9591_v32 = vld [vmem:[#allocation2 + $0x55c] sm:$0xf0]  ;;  %v6468_v14 = vor.u32 %v9447_v25, %v6467_v8  ;;  %v6804_v47 = vor.u32 %v9531_v42, %v6803_v41  ;;  %v9705_v25 = vld [vmem:[#allocation2 + $0x8ec] sm:$0xf0]  ;;  %v7259_v35 = vld [vmem:[#allocation2 + $0x6f8] sm:$0xf] }
  0xae   :  { %2751 = vmatpush.bf16.msra.mxu3 %v7116_v51  ;;  %v7044_v19 = vor.u32 %v9591_v32, %v7043_v13  ;;  %v6996_v51 = vor.u32 %v9579_v44, %v6995_v43  ;;  %v9801_v13 = vld [vmem:[#allocation2 + $0xbec] sm:$0xf0]  ;;  %v6948_v32 = vor.u32 %v9567_v4, %v6947_v3  ;;  %v7451_v37 = vld [vmem:[#allocation2 + $0x878] sm:$0xf]  ;;  %v7187_v2 = vld [vmem:[#allocation2 + $0x668] sm:$0xf] }
  0xaf   :  { %2713 = vmatpush.bf16.msra.mxu0 %v6516_v57  ;;  %v6396_v57 = vor.u32 %v9429_v49, %v6395_v48  ;;  %v7643_v41 = vld [vmem:[#allocation2 + $0x9f8] sm:$0xf]  ;;  %v9741_v42 = vld [vmem:[#allocation2 + $0xa0c] sm:$0xf0]  ;;  %v7235_v48 = vld [vmem:[#allocation2 + $0x6c8] sm:$0xf] }
  0xb0   :  { %2726 = vmatpush.bf16.msra.mxu1 %v6708_v58  ;;  %v6371_v58 = vld [vmem:[#allocation2 + $0x8] sm:$0xf]  ;;  %v7835_v43 = vld [vmem:[#allocation2 + $0xb78] sm:$0xf]  ;;  %v9789_v44 = vld [vmem:[#allocation2 + $0xb8c] sm:$0xf0] }
  0xb1   :  { %2739 = vmatpush.bf16.msra.mxu2 %v6900_v59  ;;  %v9423_v59 = vld [vmem:[#allocation2 + $0x1c] sm:$0xf0]  ;;  %v9777_v0 = vld [vmem:[#allocation2 + $0xb2c] sm:$0xf0] }
  0xb2   :  { %2752 = vmatpush.bf16.msra.mxu3 %v7092_v63  ;;  %v9471_v63 = vld [vmem:[#allocation2 + $0x19c] sm:$0xf0]  ;;  %v6372_v8 = vor.u32 %v9423_v59, %v6371_v58  ;;  %v7403_v58 = vld [vmem:[#allocation2 + $0x818] sm:$0xf] }
  0xb3   :  { %2714 = vmatpush.bf16.msra.mxu0 %v6492_v5  ;;  %v7307_v5 = vld [vmem:[#allocation2 + $0x758] sm:$0xf]  ;;  %v6564_v11 = vor.u32 %v9471_v63, %v6563_v62  ;;  %v9639_v49 = vld [vmem:[#allocation2 + $0x6dc] sm:$0xf0]  ;;  %v9729_v62 = vld [vmem:[#allocation2 + $0x9ac] sm:$0xf0] }
  0xb4   :  { %2727 = vmatpush.bf16.msra.mxu1 %v6684_v6  ;;  %v9657_v6 = vld [vmem:[#allocation2 + $0x76c] sm:$0xf0]  ;;  %v7787_v63 = vld [vmem:[#allocation2 + $0xb18] sm:$0xf] }
  0xb5   :  { %2740 = vmatpush.bf16.msra.mxu2 %v6876_v7  ;;  %v7499_v7 = vld [vmem:[#allocation2 + $0x8d8] sm:$0xf] }
  0xb6   :  { %2753 = vmatpush.bf16.msra.mxu3 %v7068_v10  ;;  %v9753_v10 = vld [vmem:[#allocation2 + $0xa6c] sm:$0xf0] }
  0xb7   :  { %2715 = vmatpush.bf16.msra.mxu0 %v6468_v14  ;;  %v7308_v14 = vor.u32 %v9657_v6, %v7307_v5  ;;  %v9627_v5 = vld [vmem:[#allocation2 + $0x67c] sm:$0xf0]  ;;  %v7379_v6 = vld [vmem:[#allocation2 + $0x7e8] sm:$0xf] }
  0xb8   :  { %2728 = vmatpush.bf16.msra.mxu1 %v6660_v38  ;;  %v7500_v38 = vor.u32 %v9705_v25, %v7499_v7  ;;  %v9675_v7 = vld [vmem:[#allocation2 + $0x7fc] sm:$0xf0]  ;;  %v7571_v25 = vld [vmem:[#allocation2 + $0x968] sm:$0xf] }
  0xb9   :  { %2741 = vmatpush.bf16.msra.mxu2 %v6852_v15  ;;  %v7692_v15 = vor.u32 %v9753_v10, %v7691_v9  ;;  %v9723_v9 = vld [vmem:[#allocation2 + $0x97c] sm:$0xf0] }
  0xba   :  { %2754 = vmatpush.bf16.msra.mxu3 %v7044_v19  ;;  %v7884_v19 = vor.u32 %v9801_v13, %v7883_v31  ;;  %v10561_v10 = vld [vmem:[#allocation4] sm:$0x3f]  ;;  %v7188_v31 = vor.u32 %v9627_v5, %v7187_v2  ;;  %v7163_v13 = vld [vmem:[#allocation2 + $0x638] sm:$0xf]  ;;  %v9552_v2 = vld [vmem:[#allocation2 + $0x42c] sm:$0xf] }
  0xbb   :  { %2716 = vmatpush.bf16.msra.mxu0 %v6444_v26  ;;  %v7284_v26 = vor.u32 %v9651_v17, %v7283_v16  ;;  %v554_v16 = vperm.slane %v10561_v10, 0 }
  0xbc   :  { %2729 = vmatpush.bf16.msra.mxu1 %v6636_v30  ;;  %v7476_v30 = vor.u32 %v9699_v20, %v7475_v18  ;;  %v9669_v18 = vld [vmem:[#allocation2 + $0x7cc] sm:$0xf0] }
  0xbd   :  { %2742 = vmatpush.bf16.msra.mxu2 %v6828_v33  ;;  %v7668_v33 = vor.u32 %v9747_v22, %v7667_v21  ;;  %v9717_v20 = vld [vmem:[#allocation2 + $0x94c] sm:$0xf0]  ;;  %v7739_v21 = vld [vmem:[#allocation2 + $0xab8] sm:$0xf] }
  0xbe   :  { %2755 = vmatpush.bf16.msra.mxu3 %v7020_v39  ;;  %v7860_v39 = vor.u32 %v9795_v24, %v7859_v23  ;;  %v9765_v22 = vld [vmem:[#allocation2 + $0xacc] sm:$0xf0]  ;;  %v7139_v24 = vld [vmem:[#allocation2 + $0x608] sm:$0xf] }
  0xbf   :  { %2717 = vmatpush.bf16.msra.mxu0 %v6420_v45  ;;  %v7260_v45 = vor.u32 %v9645_v36, %v7259_v35  ;;  %v7331_v36 = vld [vmem:[#allocation2 + $0x788] sm:$0xf] }
  0xc0   :  { %2730 = vmatpush.bf16.msra.mxu1 %v6612_v46  ;;  %v7452_v46 = vor.u32 %v9693_v40, %v7451_v37  ;;  %v9663_v37 = vld [vmem:[#allocation2 + $0x79c] sm:$0xf0] }
  0xc1   :  { %2743 = vmatpush.bf16.msra.mxu2 %v6804_v47  ;;  %v7644_v47 = vor.u32 %v9741_v42, %v7643_v41  ;;  %v7740_v42 = vor.u32 %v9765_v22, %v7739_v21  ;;  %v10573_v22 = vld [vmem:[#allocation1 + $0x2d] sm:$0xff] }
  0xc2   :  { %2756 = vmatpush.bf16.msra.mxu3 %v6996_v51  ;;  %v7836_v51 = vor.u32 %v9789_v44, %v7835_v43  ;;  %v9711_v43 = vld [vmem:[#allocation2 + $0x91c] sm:$0xf0]  ;;  %v7715_v44 = vld [vmem:[#allocation2 + $0xa88] sm:$0xf] }
  0xc3   :  { %2718 = vmatpush.bf16.msra.mxu0 %v6396_v57  ;;  %v9633_v57 = vld [vmem:[#allocation2 + $0x6ac] sm:$0xf0] }
  0xc4   :  { %2731 = vmatpush.bf16.msra.mxu1 %v6588_v60  ;;  %v9681_v60 = vld [vmem:[#allocation2 + $0x82c] sm:$0xf0] }
  0xc5   :  { %2744 = vmatpush.bf16.msra.mxu2 %v6780_v61  ;;  %v7595_v61 = vld [vmem:[#allocation2 + $0x998] sm:$0xf]  ;;  %v7404_v3 = vor.u32 %v9681_v60, %v7403_v58 }
  0xc6   :  { %2757 = vmatpush.bf16.msra.mxu3 %v6972_v1  ;;  %v7212_v1 = vor.u32 %v9633_v57, %v7211_v56  ;;  %v7596_v4 = vor.u32 %v9729_v62, %v7595_v61  ;;  %v9456_v61 = vld [vmem:[#allocation2 + $0x12c] sm:$0xf]  ;;  %v6517_v62 = vld [vmem:[#allocation2 + $0x140] sm:$0xf0] }
  0xc7   :  { %2719 = vmatpush.bf16.msra.mxu0 %v6372_v8  ;;  %v7788_v8 = vor.u32 %v9777_v0, %v7787_v63  ;;  %v9504_v63 = vld [vmem:[#allocation2 + $0x2ac] sm:$0xf] }
  0xc8   :  { %2732 = vmatpush.bf16.msra.mxu1 %v6564_v11  ;;  %v7763_v11 = vld [vmem:[#allocation2 + $0xae8] sm:$0xf] }
  0xc9   :  { %2745 = vmatpush.bf16.msra.mxu2 %v6756_v12  ;;  %v9771_v12 = vld [vmem:[#allocation2 + $0xafc] sm:$0xf0] }
  0xca   :  { %2758 = vmatpush.bf16.msra.mxu3 %v6948_v32  ;;  %2720 = vmatmul.bf16.vlgmr.msra.gmra.mxu0 %v10527_v28  ;;  %v9783_v28 = vld [vmem:[#allocation2 + $0xb5c] sm:$0xf0]  ;;  %v7380_v32 = vor.u32 %v9675_v7, %v7379_v6  ;;  %v7764_v17 = vor.u32 %v9771_v12, %v7763_v11  ;;  %v9600_v6 = vld [vmem:[#allocation2 + $0x5ac] sm:$0xf]  ;;  %v7093_v7 = vld [vmem:[#allocation2 + $0x5c0] sm:$0xf0] }
  0xcb   :  { %2764 = vmatpush.bf16.msrb.mxu0 %v7308_v14  ;;  %2733 = vmatmul.bf16.vlgmr.msra.gmra.mxu1 %v10531_v34  ;;  %v7620_v34 = vor.u32 %v9735_v53, %v7619_v52  ;;  %v7812_v59 = vor.u32 %v9783_v28, %v7811_v54  ;;  %v7572_v14 = vor.u32 %v9723_v9, %v7571_v25  ;;  %v6925_v52 = vld [vmem:[#allocation2 + $0x470] sm:$0xf0]  ;;  %v9606_v28 = vld [vmem:[#allocation2 + $0x5dc] sm:$0xf] }
  0xcc   :  { %2777 = vmatpush.bf16.msrb.mxu1 %v7500_v38  ;;  %2746 = vmatmul.bf16.vlgmr.msra.gmra.mxu2 %v10525_v27  ;;  %v9687_v27 = vld [vmem:[#allocation2 + $0x85c] sm:$0xf0]  ;;  %v9621_v38 = vld [vmem:[#allocation2 + $0x64c] sm:$0xf0]  ;;  %v7332_v53 = vor.u32 %v9663_v37, %v7331_v36  ;;  %v6520_v25 = vor.u32 %v9456_v61, %v6517_v62  ;;  %v9450_v12 = vld [vmem:[#allocation2 + $0xfc] sm:$0xf] }
  0xcd   :  { %2790 = vmatpush.bf16.msrb.mxu2 %v7692_v15  ;;  %2759 = vmatmul.bf16.vlgmr.msra.gmra.mxu3 %v10529_v29  ;;  %v7236_v29 = vor.u32 %v9639_v49, %v7235_v48  ;;  %v7428_v55 = vor.u32 %v9687_v27, %v7427_v50  ;;  %v7355_v15 = vld [vmem:[#allocation2 + $0x7b8] sm:$0xf]  ;;  %v7164_v23 = vor.u32 %v9621_v38, %v7163_v13  ;;  %v9510_v48 = vld [vmem:[#allocation2 + $0x2dc] sm:$0xf]  ;;  %v6685_v38 = vld [vmem:[#allocation2 + $0x290] sm:$0xf0] }
  0xce   :  { %2803 = vmatpush.bf16.msrb.mxu3 %v7884_v19  ;;  %v7547_v19 = vld [vmem:[#allocation2 + $0x938] sm:$0xf]  ;;  %v9558_v27 = vld [vmem:[#allocation2 + $0x45c] sm:$0xf]  ;;  %v9492_v36 = vld [vmem:[#allocation2 + $0x24c] sm:$0xf] }
  0xcf   :  { %2765 = vmatpush.bf16.msrb.mxu0 %v7284_v26  ;;  %v9615_v26 = vld [vmem:[#allocation2 + $0x61c] sm:$0xf0]  ;;  %v7548_v35 = vor.u32 %v9717_v20, %v7547_v19  ;;  %v2526_v41 = vpop.f32.mrf.mxu1  ;;  %v6928_v60 = vor.u32 %v9558_v27, %v6925_v52  ;;  %v9498_v13 = vld [vmem:[#allocation2 + $0x27c] sm:$0xf]  ;;  %v7069_v20 = vld [vmem:[#allocation2 + $0x590] sm:$0xf0] }
  0xd0   :  { %2778 = vmatpush.bf16.msrb.mxu1 %v7476_v30  ;;  %v2513_v30 = vpop.f32.mrf.mxu0  ;;  %v7140_v50 = vor.u32 %v9615_v26, %v7139_v24  ;;  %v9594_v19 = vld [vmem:[#allocation2 + $0x57c] sm:$0xf]  ;;  %v6688_v26 = vor.u32 %v9498_v13, %v6685_v38  ;;  %v9480_v61 = vld [vmem:[#allocation2 + $0x1ec] sm:$0xf] }
  0xd1   :  { %2791 = vmatpush.bf16.msrb.mxu2 %v7668_v33  ;;  %v7356_v33 = vor.u32 %v9669_v18, %v7355_v15  ;;  %v2514_v40 = vadd.f32 %v2513_v30, %v554_v16  ;;  %v9546_v15 = vld [vmem:[#allocation2 + $0x3fc] sm:$0xf]  ;;  %v6877_v16 = vld [vmem:[#allocation2 + $0x410] sm:$0xf0]  ;;  %v7072_v37 = vor.u32 %v9594_v19, %v7069_v20 }
  0xd2   :  { %2804 = vmatpush.bf16.msrb.mxu3 %v7860_v39  ;;  %v7523_v39 = vld [vmem:[#allocation2 + $0x908] sm:$0xf]  ;;  %v10570_v18 = vld [vmem:[#allocation1 + $0x3f] sm:$0xff]  ;;  %v6880_v30 = vor.u32 %v9546_v15, %v6877_v16 }
  0xd3   :  { %2766 = vmatpush.bf16.msrb.mxu0 %v7260_v45  ;;  %v9759_v45 = vld [vmem:[#allocation2 + $0xa9c] sm:$0xf0]  ;;  %v2527_v49 = vadd.f32 %v2526_v41, %v2514_v40  ;;  %v7524_v54 = vor.u32 %v9711_v43, %v7523_v39  ;;  %v6661_v39 = vld [vmem:[#allocation2 + $0x260] sm:$0xf0]  ;;  %v9540_v40 = vld [vmem:[#allocation2 + $0x3cc] sm:$0xf] }
  0xd4   :  { %2779 = vmatpush.bf16.msrb.mxu1 %v7452_v46  ;;  %v9462_v46 = vld [vmem:[#allocation2 + $0x15c] sm:$0xf]  ;;  %v2552_v58 = vpop.f32.mrf.mxu3  ;;  %v6853_v41 = vld [vmem:[#allocation2 + $0x3e0] sm:$0xf0]  ;;  %v6589_v15 = vld [vmem:[#allocation2 + $0x1d0] sm:$0xf0] }
  0xd5   :  { %2792 = vmatpush.bf16.msrb.mxu2 %v7644_v47  ;;  %v6541_v47 = vld [vmem:[#allocation2 + $0x170] sm:$0xf0]  ;;  %v7045_v43 = vld [vmem:[#allocation2 + $0x560] sm:$0xf0]  ;;  %v9474_v13 = vld [vmem:[#allocation2 + $0x1bc] sm:$0xf] }
  0xd6   :  { %2805 = vmatpush.bf16.msrb.mxu3 %v7836_v51  ;;  %v6733_v51 = vld [vmem:[#allocation2 + $0x2f0] sm:$0xf0]  ;;  %v6544_v56 = vor.u32 %v9462_v46, %v6541_v47  ;;  %v6664_v46 = vor.u32 %v9492_v36, %v6661_v39  ;;  %v6856_v47 = vor.u32 %v9540_v40, %v6853_v41  ;;  %v9522_v16 = vld [vmem:[#allocation2 + $0x33c] sm:$0xf]  ;;  %v6565_v36 = vld [vmem:[#allocation2 + $0x1a0] sm:$0xf0] }
  0xd7   :  { %2767 = vmatpush.bf16.msrb.mxu0 %v7236_v29  ;;  %v7117_v29 = vld [vmem:[#allocation2 + $0x5f0] sm:$0xf0]  ;;  %v9570_v20 = vld [vmem:[#allocation2 + $0x4bc] sm:$0xf]  ;;  %v6757_v41 = vld [vmem:[#allocation2 + $0x320] sm:$0xf0] }
  0xd8   :  { %2780 = vmatpush.bf16.msrb.mxu1 %v7428_v55  ;;  %v2539_v55 = vpop.f32.mrf.mxu2  ;;  %v7120_v0 = vor.u32 %v9606_v28, %v7117_v29  ;;  %v2515_v5 = vpop.f32.mrf.mxu0  ;;  %v6829_v28 = vld [vmem:[#allocation2 + $0x3b0] sm:$0xf0]  ;;  %v9582_v29 = vld [vmem:[#allocation2 + $0x51c] sm:$0xf] }
  0xd9   :  { %2793 = vmatpush.bf16.msrb.mxu2 %v7620_v34  ;;  %v7716_v34 = vor.u32 %v9759_v45, %v7715_v44  ;;  %v2540_v57 = vadd.f32 %v2539_v55, %v2527_v49  ;;  %v6445_v49 = vld [vmem:[#allocation2 + $0xb0] sm:$0xf0]  ;;  %v9576_v5 = vld [vmem:[#allocation2 + $0x4ec] sm:$0xf] }
  0xda   :  { %2806 = vmatpush.bf16.msrb.mxu3 %v7812_v59  ;;  %v6736_v59 = vor.u32 %v9510_v48, %v6733_v51  ;;  %v9438_v48 = vld [vmem:[#allocation2 + $0x9c] sm:$0xf]  ;;  %v7021_v55 = vld [vmem:[#allocation2 + $0x530] sm:$0xf0] }
  0xdb   :  { %2768 = vmatpush.bf16.msrb.mxu0 %v7212_v1  ;;  %v6709_v1 = vld [vmem:[#allocation2 + $0x2c0] sm:$0xf0]  ;;  %v6781_v19 = vld [vmem:[#allocation2 + $0x350] sm:$0xf0] }
  0xdc   :  { %2781 = vmatpush.bf16.msrb.mxu1 %v7404_v3  ;;  %v6901_v3 = vld [vmem:[#allocation2 + $0x440] sm:$0xf0]  ;;  %v6712_v9 = vor.u32 %v9504_v63, %v6709_v1  ;;  %v2554_v24 = vpop.f32.mrf.mxu3  ;;  %v7024_v63 = vor.u32 %v9582_v29, %v7021_v55  ;;  %v9528_v1 = vld [vmem:[#allocation2 + $0x36c] sm:$0xf] }
  0xdd   :  { %2794 = vmatpush.bf16.msrb.mxu2 %v7596_v4  ;;  %v2553_v4 = vadd.f32 %v2552_v58, %v2540_v57  ;;  %v6904_v11 = vor.u32 %v9552_v2, %v6901_v3  ;;  %v6805_v2 = vld [vmem:[#allocation2 + $0x380] sm:$0xf0]  ;;  %v9420_v24 = vld [vmem:[#allocation2 + $0xc] sm:$0xf] }
  0xde   :  { %2807 = vmatpush.bf16.msrb.mxu3 %v7788_v8  ;;  %v2528_v8 = vpop.f32.mrf.mxu1 }
  0xdf   :  { %2769 = vmatpush.bf16.msrb.mxu0 %v7188_v31  ;;  %v6493_v31 = vld [vmem:[#allocation2 + $0x110] sm:$0xf0] }
  0xe0   :  { %2782 = vmatpush.bf16.msrb.mxu1 %v7380_v32  ;;  %v10564_v32 = vld [vmem:[#allocation1 + $0x36] sm:$0xff]  ;;  %v2541_v21 = vpop.f32.mrf.mxu2 }
  0xe1   :  { %2795 = vmatpush.bf16.msrb.mxu2 %v7572_v14  ;;  %v7096_v14 = vor.u32 %v9600_v6, %v7093_v7  ;;  %v6997_v6 = vld [vmem:[#allocation2 + $0x500] sm:$0xf0]  ;;  %v6973_v21 = vld [vmem:[#allocation2 + $0x4d0] sm:$0xf0] }
  0xe2   :  { %2808 = vmatpush.bf16.msrb.mxu3 %v7764_v17  ;;  %v10567_v17 = vld [vmem:[#allocation1 + $0x24] sm:$0xff]  ;;  %v7000_v38 = vor.u32 %v9576_v5, %v6997_v6  ;;  %v6976_v40 = vor.u32 %v9570_v20, %v6973_v21  ;;  %v7261_v5 = vld [vmem:[#allocation2 + $0x710] sm:$0xf0] }
  0xe3   :  { %2770 = vmatpush.bf16.msrb.mxu0 %v7164_v23  ;;  %v6496_v23 = vor.u32 %v9450_v12, %v6493_v31  ;;  %v9426_v12 = vld [vmem:[#allocation2 + $0x3c] sm:$0xf]  ;;  %v6397_v31 = vld [vmem:[#allocation2 + $0x50] sm:$0xf0] }
  0xe4   :  { %2783 = vmatpush.bf16.msrb.mxu1 %v7356_v33  ;;  %v9444_v33 = vld [vmem:[#allocation2 + $0xcc] sm:$0xf]  ;;  %v9690_v6 = vld [vmem:[#allocation2 + $0x87c] sm:$0xf] }
  0xe5   :  { %2796 = vmatpush.bf16.msrb.mxu2 %v7548_v35  ;;  %v6469_v35 = vld [vmem:[#allocation2 + $0xe0] sm:$0xf0] }
  0xe6   :  { %2809 = vmatpush.bf16.msrb.mxu3 %v7740_v42  ;;  %v9588_v42 = vld [vmem:[#allocation2 + $0x54c] sm:$0xf]  ;;  %v6472_v44 = vor.u32 %v9444_v33, %v6469_v35  ;;  %v6784_v33 = vor.u32 %v9522_v16, %v6781_v19  ;;  %v10587_v19 = vld [vmem:[#allocation1 + $0x9] sm:$0xff] }
  0xe7   :  { %2771 = vmatpush.bf16.msrb.mxu0 %v7140_v50  ;;  %v2565_v45 = vpop.f32.mrf.mxu0  ;;  %v9486_v50 = vld [vmem:[#allocation2 + $0x21c] sm:$0xf]  ;;  %v7048_v52 = vor.u32 %v9588_v42, %v7045_v43  ;;  %v9468_v35 = vld [vmem:[#allocation2 + $0x18c] sm:$0xf]  ;;  %v6949_v43 = vld [vmem:[#allocation2 + $0x4a0] sm:$0xf0] }
  0xe8   :  { %2784 = vmatpush.bf16.msrb.mxu1 %v7332_v53  ;;  %v2566_v51 = vadd.f32 %v2565_v45, %v2553_v4  ;;  %v2578_v27 = vpop.f32.mrf.mxu1  ;;  %v6637_v53 = vld [vmem:[#allocation2 + $0x230] sm:$0xf0]  ;;  %v9564_v42 = vld [vmem:[#allocation2 + $0x48c] sm:$0xf]  ;;  %v9654_v45 = vld [vmem:[#allocation2 + $0x75c] sm:$0xf] }
  0xe9   :  { %2797 = vmatpush.bf16.msrb.mxu2 %v7524_v54  ;;  %v9534_v54 = vld [vmem:[#allocation2 + $0x39c] sm:$0xf]  ;;  %v6640_v57 = vor.u32 %v9486_v50, %v6637_v53  ;;  %v9636_v16 = vld [vmem:[#allocation2 + $0x6cc] sm:$0xf] }
  0xea   :  { %2810 = vmatpush.bf16.msrb.mxu3 %v7716_v34  ;;  %2772 = vmatmul.bf16.vlgmr.msrb.gmra.mxu0 %v10567_v17  ;;  %v2579_v34 = vadd.f32 %v2578_v27, %v2566_v51  ;;  %v6832_v58 = vor.u32 %v9534_v54, %v6829_v28  ;;  %v9750_v50 = vld [vmem:[#allocation2 + $0xa5c] sm:$0xf]  ;;  %v7693_v51 = vld [vmem:[#allocation2 + $0xa70] sm:$0xf0]  ;;  %v6568_v27 = vor.u32 %v9468_v35, %v6565_v36  ;;  %v9732_v35 = vld [vmem:[#allocation2 + $0x9cc] sm:$0xf] }
  0xeb   :  { %2816 = vmatpush.bf16.msra.mxu0 %v6544_v56  ;;  %2785 = vmatmul.bf16.vlgmr.msrb.gmra.mxu1 %v10573_v22  ;;  %v6448_v56 = vor.u32 %v9438_v48, %v6445_v49  ;;  %v7501_v49 = vld [vmem:[#allocation2 + $0x8f0] sm:$0xf0]  ;;  %v9798_v53 = vld [vmem:[#allocation2 + $0xbdc] sm:$0xf]  ;;  %v6952_v28 = vor.u32 %v9564_v42, %v6949_v43  ;;  %v7621_v36 = vld [vmem:[#allocation2 + $0x9e0] sm:$0xf0] }
  0xec   :  { %2829 = vmatpush.bf16.msra.mxu1 %v6736_v59  ;;  %2798 = vmatmul.bf16.vlgmr.msrb.gmra.mxu2 %v10564_v32  ;;  %v9432_v59 = vld [vmem:[#allocation2 + $0x6c] sm:$0xf]  ;;  %v7885_v54 = vld [vmem:[#allocation2 + $0xbf0] sm:$0xf0]  ;;  %v7624_v43 = vor.u32 %v9732_v35, %v7621_v36  ;;  %v7333_v36 = vld [vmem:[#allocation2 + $0x7a0] sm:$0xf0] }
  0xed   :  { %2842 = vmatpush.bf16.msra.mxu2 %v6928_v60  ;;  %2811 = vmatmul.bf16.vlgmr.msrb.gmra.mxu3 %v10570_v18  ;;  %v6421_v60 = vld [vmem:[#allocation2 + $0x80] sm:$0xf0]  ;;  %v9660_v35 = vld [vmem:[#allocation2 + $0x78c] sm:$0xf] }
  0xee   :  { %2855 = vmatpush.bf16.msra.mxu3 %v7120_v0  ;;  %v6613_v0 = vld [vmem:[#allocation2 + $0x200] sm:$0xf0]  ;;  %v6424_v7 = vor.u32 %v9432_v59, %v6421_v60  ;;  %v7888_v59 = vor.u32 %v9798_v53, %v7885_v54 }
  0xef   :  { %2817 = vmatpush.bf16.msra.mxu0 %v6520_v25  ;;  %v2591_v62 = vpop.f32.mrf.mxu2  ;;  %v2567_v25 = vpop.f32.mrf.mxu0  ;;  %v7477_v60 = vld [vmem:[#allocation2 + $0x8c0] sm:$0xf0] }
  0xf0   :  { %2830 = vmatpush.bf16.msra.mxu1 %v6712_v9  ;;  %v2592_v3 = vadd.f32 %v2591_v62, %v2579_v34  ;;  %v2604_v4 = vpop.f32.mrf.mxu3  ;;  %v6616_v9 = vor.u32 %v9480_v61, %v6613_v0  ;;  %v7696_v34 = vor.u32 %v9750_v50, %v7693_v51  ;;  %v9744_v61 = vld [vmem:[#allocation2 + $0xa2c] sm:$0xf]  ;;  %v7669_v62 = vld [vmem:[#allocation2 + $0xa40] sm:$0xf0]  ;;  %v7453_v25 = vld [vmem:[#allocation2 + $0x890] sm:$0xf0] }
  0xf1   :  { %2843 = vmatpush.bf16.msra.mxu2 %v6904_v11  ;;  %v6808_v11 = vor.u32 %v9528_v1, %v6805_v2  ;;  %v7861_v0 = vld [vmem:[#allocation2 + $0xbc0] sm:$0xf0]  ;;  %v7456_v20 = vor.u32 %v9690_v6, %v7453_v25  ;;  %v9726_v50 = vld [vmem:[#allocation2 + $0x99c] sm:$0xf]  ;;  %v7597_v51 = vld [vmem:[#allocation2 + $0x9b0] sm:$0xf0] }
  0xf2   :  { %2856 = vmatpush.bf16.msra.mxu3 %v7096_v14  ;;  %v10576_v8 = vadd.f32 %v2604_v4, %v2592_v3  ;;  %v2580_v14 = vpop.f32.mrf.mxu1  ;;  %v7672_v3 = vor.u32 %v9744_v61, %v7669_v62  ;;  %v9642_v4 = vld [vmem:[#allocation2 + $0x6fc] sm:$0xf]  ;;  %v7573_v61 = vld [vmem:[#allocation2 + $0x980] sm:$0xf0]  ;;  %v7165_v25 = vld [vmem:[#allocation2 + $0x650] sm:$0xf0] }
  0xf3   :  { %2818 = vmatpush.bf16.msra.mxu0 %v6496_v23  ;;  %v6400_v23 = vor.u32 %v9426_v12, %v6397_v31  ;;  %v10578_v12 = vld [vmem:[#allocation1 + $0x12] sm:$0xff]  ;;  %v9786_v31 = vld [vmem:[#allocation2 + $0xb7c] sm:$0xf] }
  0xf4   :  { %2831 = vmatpush.bf16.msra.mxu1 %v6688_v26  ;;  %v6373_v26 = vld [vmem:[#allocation2 + $0x20] sm:$0xf0]  ;;  %v10581_v14 = vld [vmem:[#allocation1] sm:$0xff] }
  0xf5   :  { %2844 = vmatpush.bf16.msra.mxu2 %v6880_v30  ;;  %v6592_v30 = vor.u32 %v9474_v13, %v6589_v15  ;;  %v6376_v48 = vor.u32 %v9420_v24, %v6373_v26  ;;  %v7837_v13 = vld [vmem:[#allocation2 + $0xb90] sm:$0xf0]  ;;  %v7264_v15 = vor.u32 %v9642_v4, %v7261_v5  ;;  %v9684_v24 = vld [vmem:[#allocation2 + $0x84c] sm:$0xf]  ;;  %v555_v26 = vperm.slane %v10561_v10, 1 }
  0xf6   :  { %2857 = vmatpush.bf16.msra.mxu3 %v7072_v37  ;;  %v9516_v37 = vld [vmem:[#allocation2 + $0x30c] sm:$0xf] }
  0xf7   :  { %2819 = vmatpush.bf16.msra.mxu0 %v6472_v44  ;;  %v2593_v39 = vpop.f32.mrf.mxu2 }
  0xf8   :  { %2832 = vmatpush.bf16.msra.mxu1 %v6664_v46  ;;  %v2606_v44 = vpop.f32.mrf.mxu3  ;;  %v7309_v46 = vld [vmem:[#allocation2 + $0x770] sm:$0xf0]  ;;  %v7813_v39 = vld [vmem:[#allocation2 + $0xb60] sm:$0xf0] }
  0xf9   :  { %2845 = vmatpush.bf16.msra.mxu2 %v6856_v47  ;;  %v9702_v47 = vld [vmem:[#allocation2 + $0x8dc] sm:$0xf]  ;;  %v7312_v29 = vor.u32 %v9654_v45, %v7309_v46  ;;  %v7213_v45 = vld [vmem:[#allocation2 + $0x6b0] sm:$0xf0] }
  0xfa   :  { %2858 = vmatpush.bf16.msra.mxu3 %v7048_v52  ;;  %v6760_v52 = vor.u32 %v9516_v37, %v6757_v41  ;;  %v7504_v55 = vor.u32 %v9702_v47, %v7501_v49  ;;  %v9780_v37 = vld [vmem:[#allocation2 + $0xb4c] sm:$0xf]  ;;  %v9630_v44 = vld [vmem:[#allocation2 + $0x69c] sm:$0xf]  ;;  %v7405_v49 = vld [vmem:[#allocation2 + $0x830] sm:$0xf0] }
  0xfb   :  { %2820 = vmatpush.bf16.msra.mxu0 %v6448_v56  ;;  %v9648_v56 = vld [vmem:[#allocation2 + $0x72c] sm:$0xf]  ;;  %v9678_v46 = vld [vmem:[#allocation2 + $0x81c] sm:$0xf]  ;;  %v7816_v10 = vor.u32 %v9780_v37, %v7813_v39  ;;  %v7216_v54 = vor.u32 %v9630_v44, %v7213_v45  ;;  %v6547_v45 = vld [vmem:[#allocation2 + $0x160] sm:$0xf] }
  0xfc   :  { %2833 = vmatpush.bf16.msra.mxu1 %v6640_v57  ;;  %v7285_v57 = vld [vmem:[#allocation2 + $0x740] sm:$0xf0]  ;;  %v9708_v37 = vld [vmem:[#allocation2 + $0x90c] sm:$0xf] }
  0xfd   :  { %2846 = vmatpush.bf16.msra.mxu2 %v6832_v58  ;;  %v9696_v58 = vld [vmem:[#allocation2 + $0x8ac] sm:$0xf]  ;;  %v7288_v1 = vor.u32 %v9648_v56, %v7285_v57 }
  0xfe   :  { %2859 = vmatpush.bf16.msra.mxu3 %v7024_v63  ;;  %v9792_v63 = vld [vmem:[#allocation2 + $0xbac] sm:$0xf]  ;;  %v7480_v2 = vor.u32 %v9696_v58, %v7477_v60 }
  0xff   :  { %2821 = vmatpush.bf16.msra.mxu0 %v6424_v7  ;;  %v7864_v7 = vor.u32 %v9792_v63, %v7861_v0  ;;  %v9672_v56 = vld [vmem:[#allocation2 + $0x7ec] sm:$0xf] }
 0x100   :  { %2834 = vmatpush.bf16.msra.mxu1 %v6616_v9  ;;  %v9738_v9 = vld [vmem:[#allocation2 + $0x9fc] sm:$0xf]  ;;  %v9720_v60 = vld [vmem:[#allocation2 + $0x96c] sm:$0xf] }
 0x101   :  { %2847 = vmatpush.bf16.msra.mxu2 %v6808_v11  ;;  %v7645_v11 = vld [vmem:[#allocation2 + $0xa10] sm:$0xf0]  ;;  %v9768_v0 = vld [vmem:[#allocation2 + $0xaec] sm:$0xf]  ;;  %v7576_v6 = vor.u32 %v9720_v60, %v7573_v61  ;;  %v6907_v60 = vld [vmem:[#allocation2 + $0x430] sm:$0xf] }
 0x102   :  { %2860 = vmatpush.bf16.msra.mxu3 %v7000_v38  ;;  %v10584_v38 = vld [vmem:[#allocation1 + $0x1b] sm:$0xff]  ;;  %v7648_v21 = vor.u32 %v9738_v9, %v7645_v11  ;;  %v9666_v9 = vld [vmem:[#allocation2 + $0x7bc] sm:$0xf]  ;;  %v9556_v61 = vld [vmem:[#allocation2 + $0x444] sm:$0xf0] }
 0x103   :  { %2822 = vmatpush.bf16.msra.mxu0 %v6400_v23  ;;  %v7237_v23 = vld [vmem:[#allocation2 + $0x6e0] sm:$0xf0] }
 0x104   :  { %2835 = vmatpush.bf16.msra.mxu1 %v6592_v30  ;;  %v7840_v30 = vor.u32 %v9786_v31, %v7837_v13  ;;  %v7357_v13 = vld [vmem:[#allocation2 + $0x7d0] sm:$0xf0] }
 0x105   :  { %2848 = vmatpush.bf16.msra.mxu2 %v6784_v33  ;;  %v7429_v33 = vld [vmem:[#allocation2 + $0x860] sm:$0xf0] }
 0x106   :  { %2861 = vmatpush.bf16.msra.mxu3 %v6976_v40  ;;  %v7240_v40 = vor.u32 %v9636_v16, %v7237_v23  ;;  %v7432_v42 = vor.u32 %v9684_v24, %v7429_v33  ;;  %v7549_v16 = vld [vmem:[#allocation2 + $0x950] sm:$0xf0]  ;;  %v9612_v24 = vld [vmem:[#allocation2 + $0x60c] sm:$0xf] }
 0x107   :  { %2823 = vmatpush.bf16.msra.mxu0 %v6376_v48  ;;  %v2617_v41 = vpop.f32.mrf.mxu0 }
 0x108   :  { %2836 = vmatpush.bf16.msra.mxu1 %v6568_v27  ;;  %v2618_v47 = vadd.f32 %v2617_v41, %v555_v26  ;;  %v2630_v48 = vpop.f32.mrf.mxu1  ;;  %v9774_v27 = vld [vmem:[#allocation2 + $0xb1c] sm:$0xf]  ;;  %v7141_v26 = vld [vmem:[#allocation2 + $0x620] sm:$0xf0] }
 0x109   :  { %2849 = vmatpush.bf16.msra.mxu2 %v6760_v52  ;;  %v7789_v52 = vld [vmem:[#allocation2 + $0xb30] sm:$0xf0]  ;;  %v7525_v41 = vld [vmem:[#allocation2 + $0x920] sm:$0xf0] }
 0x10a   :  { %2862 = vmatpush.bf16.msra.mxu3 %v6952_v28  ;;  %2824 = vmatmul.bf16.vlgmr.msra.gmra.mxu0 %v10581_v14  ;;  %v2631_v53 = vadd.f32 %v2630_v48, %v2618_v47  ;;  %v7408_v28 = vor.u32 %v9678_v46, %v7405_v49  ;;  %v7792_v58 = vor.u32 %v9774_v27, %v7789_v52  ;;  %v9466_v46 = vld [vmem:[#allocation2 + $0x174] sm:$0xf0]  ;;  %v6739_v47 = vld [vmem:[#allocation2 + $0x2e0] sm:$0xf] }
 0x10b   :  { %2868 = vmatpush.bf16.msrb.mxu0 %v7312_v29  ;;  %2837 = vmatmul.bf16.vlgmr.msra.gmra.mxu1 %v10587_v19  ;;  %v7600_v29 = vor.u32 %v9726_v50, %v7597_v51  ;;  %v7144_v48 = vor.u32 %v9612_v24, %v7141_v26  ;;  %v6931_v49 = vld [vmem:[#allocation2 + $0x460] sm:$0xf]  ;;  %v9562_v50 = vld [vmem:[#allocation2 + $0x474] sm:$0xf0]  ;;  %v7336_v51 = vor.u32 %v9660_v35, %v7333_v36  ;;  %v9496_v26 = vld [vmem:[#allocation2 + $0x264] sm:$0xf0] }
 0x10c   :  { %2881 = vmatpush.bf16.msrb.mxu1 %v7504_v55  ;;  %2850 = vmatmul.bf16.vlgmr.msra.gmra.mxu2 %v10578_v12  ;;  %v9624_v55 = vld [vmem:[#allocation2 + $0x66c] sm:$0xf]  ;;  %v7528_v27 = vor.u32 %v9708_v37, %v7525_v41  ;;  %v7123_v52 = vld [vmem:[#allocation2 + $0x5e0] sm:$0xf] }
 0x10d   :  { %2894 = vmatpush.bf16.msrb.mxu2 %v7696_v34  ;;  %2863 = vmatmul.bf16.vlgmr.msra.gmra.mxu3 %v10584_v38  ;;  %v7189_v34 = vld [vmem:[#allocation2 + $0x680] sm:$0xf0]  ;;  %v6451_v41 = vld [vmem:[#allocation2 + $0xa0] sm:$0xf] }
 0x10e   :  { %2907 = vmatpush.bf16.msrb.mxu3 %v7888_v59  ;;  %v7381_v59 = vld [vmem:[#allocation2 + $0x800] sm:$0xf0] }
 0x10f   :  { %2869 = vmatpush.bf16.msrb.mxu0 %v7288_v1  ;;  %v2643_v57 = vpop.f32.mrf.mxu2  ;;  %v7765_v1 = vld [vmem:[#allocation2 + $0xb00] sm:$0xf0]  ;;  %v2619_v4 = vpop.f32.mrf.mxu0  ;;  %v7384_v5 = vor.u32 %v9672_v56, %v7381_v59  ;;  %v9460_v56 = vld [vmem:[#allocation2 + $0x144] sm:$0xf0] }
 0x110   :  { %2882 = vmatpush.bf16.msrb.mxu1 %v7480_v2  ;;  %v2644_v62 = vadd.f32 %v2643_v57, %v2631_v53  ;;  %v2656_v63 = vpop.f32.mrf.mxu3  ;;  %v7192_v2 = vor.u32 %v9624_v55, %v7189_v34  ;;  %v2632_v11 = vpop.f32.mrf.mxu1  ;;  %v7768_v31 = vor.u32 %v9768_v0, %v7765_v1  ;;  %v9610_v53 = vld [vmem:[#allocation2 + $0x5f4] sm:$0xf0]  ;;  %v6932_v55 = vor.u32 %v9562_v50, %v6931_v49  ;;  %v6523_v34 = vld [vmem:[#allocation2 + $0x130] sm:$0xf]  ;;  %v9508_v59 = vld [vmem:[#allocation2 + $0x2c4] sm:$0xf0] }
 0x111   :  { %2895 = vmatpush.bf16.msrb.mxu2 %v7672_v3  ;;  %v6715_v57 = vld [vmem:[#allocation2 + $0x2b0] sm:$0xf]  ;;  %v6524_v0 = vor.u32 %v9460_v56, %v6523_v34  ;;  %v6499_v4 = vld [vmem:[#allocation2 + $0x100] sm:$0xf]  ;;  %v9550_v11 = vld [vmem:[#allocation2 + $0x414] sm:$0xf0] }
 0x112   :  { %2908 = vmatpush.bf16.msrb.mxu3 %v7864_v7  ;;  %v10591_v3 = vadd.f32 %v2656_v63, %v2644_v62  ;;  %v9618_v7 = vld [vmem:[#allocation2 + $0x63c] sm:$0xf]  ;;  %v7099_v62 = vld [vmem:[#allocation2 + $0x5b0] sm:$0xf]  ;;  %v9604_v63 = vld [vmem:[#allocation2 + $0x5c4] sm:$0xf0]  ;;  %v6716_v1 = vor.u32 %v9508_v59, %v6715_v57 }
 0x113   :  { %2870 = vmatpush.bf16.msrb.mxu0 %v7264_v15  ;;  %v9714_v15 = vld [vmem:[#allocation2 + $0x93c] sm:$0xf]  ;;  %v7168_v23 = vor.u32 %v9618_v7, %v7165_v25  ;;  %v7100_v7 = vor.u32 %v9604_v63, %v7099_v62  ;;  %v9502_v25 = vld [vmem:[#allocation2 + $0x294] sm:$0xf0]  ;;  %v9484_v34 = vld [vmem:[#allocation2 + $0x204] sm:$0xf0] }
 0x114   :  { %2883 = vmatpush.bf16.msrb.mxu1 %v7456_v20  ;;  %v9762_v20 = vld [vmem:[#allocation2 + $0xabc] sm:$0xf]  ;;  %v7552_v33 = vor.u32 %v9714_v15, %v7549_v16  ;;  %v9586_v49 = vld [vmem:[#allocation2 + $0x534] sm:$0xf0]  ;;  %v6811_v56 = vld [vmem:[#allocation2 + $0x370] sm:$0xf] }
 0x115   :  { %2896 = vmatpush.bf16.msrb.mxu2 %v7648_v21  ;;  %v7741_v21 = vld [vmem:[#allocation2 + $0xad0] sm:$0xf0]  ;;  %v9532_v57 = vld [vmem:[#allocation2 + $0x384] sm:$0xf0]  ;;  %v6403_v62 = vld [vmem:[#allocation2 + $0x40] sm:$0xf] }
 0x116   :  { %2909 = vmatpush.bf16.msrb.mxu3 %v7840_v30  ;;  %v7360_v30 = vor.u32 %v9666_v9, %v7357_v13  ;;  %v6883_v9 = vld [vmem:[#allocation2 + $0x400] sm:$0xf]  ;;  %v9598_v13 = vld [vmem:[#allocation2 + $0x594] sm:$0xf0]  ;;  %v9580_v59 = vld [vmem:[#allocation2 + $0x504] sm:$0xf0] }
 0x117   :  { %2871 = vmatpush.bf16.msrb.mxu0 %v7240_v40  ;;  %v2645_v39 = vpop.f32.mrf.mxu2  ;;  %v7744_v40 = vor.u32 %v9762_v20, %v7741_v21  ;;  %v6884_v20 = vor.u32 %v9550_v11, %v6883_v9  ;;  %v6475_v21 = vld [vmem:[#allocation2 + $0xd0] sm:$0xf]  ;;  %v6787_v11 = vld [vmem:[#allocation2 + $0x340] sm:$0xf] }
 0x118   :  { %2884 = vmatpush.bf16.msrb.mxu1 %v7432_v42  ;;  %v9756_v42 = vld [vmem:[#allocation2 + $0xa8c] sm:$0xf]  ;;  %v2658_v44 = vpop.f32.mrf.mxu3 }
 0x119   :  { %2897 = vmatpush.bf16.msrb.mxu2 %v7624_v43  ;;  %v7717_v43 = vld [vmem:[#allocation2 + $0xaa0] sm:$0xf0] }
 0x11a   :  { %2910 = vmatpush.bf16.msrb.mxu3 %v7816_v10  ;;  %v9514_v10 = vld [vmem:[#allocation2 + $0x2f4] sm:$0xf0] }
 0x11b   :  { %2872 = vmatpush.bf16.msrb.mxu0 %v7216_v54  ;;  %v7720_v54 = vor.u32 %v9756_v42, %v7717_v43  ;;  %v9442_v42 = vld [vmem:[#allocation2 + $0xb4] sm:$0xf0]  ;;  %v6643_v43 = vld [vmem:[#allocation2 + $0x220] sm:$0xf] }
 0x11c   :  { %2885 = vmatpush.bf16.msrb.mxu1 %v7408_v28  ;;  %v6548_v28 = vor.u32 %v9466_v46, %v6547_v45  ;;  %v9490_v45 = vld [vmem:[#allocation2 + $0x234] sm:$0xf0]  ;;  %v6835_v46 = vld [vmem:[#allocation2 + $0x3a0] sm:$0xf]  ;;  %v6452_v50 = vor.u32 %v9442_v42, %v6451_v41 }
 0x11d   :  { %2898 = vmatpush.bf16.msrb.mxu2 %v7600_v29  ;;  %v6740_v29 = vor.u32 %v9514_v10, %v6739_v47  ;;  %v9538_v47 = vld [vmem:[#allocation2 + $0x3b4] sm:$0xf0]  ;;  %v7027_v10 = vld [vmem:[#allocation2 + $0x520] sm:$0xf] }
 0x11e   :  { %2911 = vmatpush.bf16.msrb.mxu3 %v7792_v58  ;;  %v7124_v58 = vor.u32 %v9610_v53, %v7123_v52  ;;  %v9436_v53 = vld [vmem:[#allocation2 + $0x84] sm:$0xf0]  ;;  %v7507_v41 = vld [vmem:[#allocation2 + $0x8e0] sm:$0xf] }
 0x11f   :  { %2873 = vmatpush.bf16.msrb.mxu0 %v7192_v2  ;;  %v6908_v2 = vor.u32 %v9556_v61, %v6907_v60 }
 0x120   :  { %2886 = vmatpush.bf16.msrb.mxu1 %v7384_v5  ;;  %v9454_v5 = vld [vmem:[#allocation2 + $0x114] sm:$0xf0] }
 0x121   :  { %2899 = vmatpush.bf16.msrb.mxu2 %v7576_v6  ;;  %v6691_v6 = vld [vmem:[#allocation2 + $0x280] sm:$0xf]  ;;  %v6500_v15 = vor.u32 %v9454_v5, %v6499_v4  ;;  %v9478_v5 = vld [vmem:[#allocation2 + $0x1d4] sm:$0xf0] }
 0x122   :  { %2912 = vmatpush.bf16.msrb.mxu3 %v7768_v31  ;;  %v7075_v31 = vld [vmem:[#allocation2 + $0x580] sm:$0xf]  ;;  %v6692_v16 = vor.u32 %v9502_v25, %v6691_v6 }
 0x123   :  { %2874 = vmatpush.bf16.msrb.mxu0 %v7168_v23  ;;  %v6667_v23 = vld [vmem:[#allocation2 + $0x250] sm:$0xf]  ;;  %v7076_v24 = vor.u32 %v9598_v13, %v7075_v31  ;;  %v6595_v4 = vld [vmem:[#allocation2 + $0x1c0] sm:$0xf]  ;;  %v9526_v31 = vld [vmem:[#allocation2 + $0x354] sm:$0xf0] }
 0x124   :  { %2887 = vmatpush.bf16.msrb.mxu1 %v7360_v30  ;;  %v6859_v30 = vld [vmem:[#allocation2 + $0x3d0] sm:$0xf]  ;;  %v6979_v13 = vld [vmem:[#allocation2 + $0x4c0] sm:$0xf] }
 0x125   :  { %2900 = vmatpush.bf16.msrb.mxu2 %v7552_v33  ;;  %v7051_v33 = vld [vmem:[#allocation2 + $0x550] sm:$0xf] }
 0x126   :  { %2913 = vmatpush.bf16.msrb.mxu3 %v7744_v40 }
 0x127   :  { %2875 = vmatpush.bf16.msrb.mxu0 %v7144_v48  ;;  %v2669_v36 = vpop.f32.mrf.mxu0 }
 0x128   :  { %2888 = vmatpush.bf16.msrb.mxu1 %v7336_v51  ;;  %v2670_v39 = vadd.f32 %v2669_v36, %v10591_v3  ;;  %v2682_v40 = vpop.f32.mrf.mxu1  ;;  %v6644_v51 = vor.u32 %v9490_v45, %v6643_v43  ;;  %v6427_v3 = vld [vmem:[#allocation2 + $0x70] sm:$0xf]  ;;  %v9706_v43 = vld [vmem:[#allocation2 + $0x8f4] sm:$0xf0] }
 0x129   :  { %2901 = vmatpush.bf16.msrb.mxu2 %v7528_v27  ;;  %v6836_v27 = vor.u32 %v9538_v47, %v6835_v46  ;;  %v6428_v61 = vor.u32 %v9436_v53, %v6427_v3  ;;  %v6955_v36 = vld [vmem:[#allocation2 + $0x490] sm:$0xf]  ;;  %v9754_v45 = vld [vmem:[#allocation2 + $0xa74] sm:$0xf0]  ;;  %v9652_v3 = vld [vmem:[#allocation2 + $0x744] sm:$0xf0] }
 0x12a   :  { %2914 = vmatpush.bf16.msrb.mxu3 %v7720_v54  ;;  %2876 = vmatmul.bf16.vlgmr.msrb.gmra.mxu0 %v10567_v17  ;;  %v9544_v17 = vld [vmem:[#allocation2 + $0x3e4] sm:$0xf0]  ;;  %v2683_v48 = vadd.f32 %v2682_v40, %v2670_v39  ;;  %v6619_v54 = vld [vmem:[#allocation2 + $0x1f0] sm:$0xf]  ;;  %v7315_v39 = vld [vmem:[#allocation2 + $0x760] sm:$0xf] }
 0x12b   :  { %2920 = vmatpush.bf16.msra.mxu0 %v6548_v28  ;;  %2889 = vmatmul.bf16.vlgmr.msrb.gmra.mxu1 %v10573_v22  ;;  %v6668_v22 = vor.u32 %v9496_v26, %v6667_v23  ;;  %v6860_v37 = vor.u32 %v9544_v17, %v6859_v30  ;;  %v7028_v28 = vor.u32 %v9586_v49, %v7027_v10  ;;  %v9472_v26 = vld [vmem:[#allocation2 + $0x1a4] sm:$0xf0]  ;;  %v6763_v30 = vld [vmem:[#allocation2 + $0x310] sm:$0xf]  ;;  %v9658_v40 = vld [vmem:[#allocation2 + $0x774] sm:$0xf0] }
 0x12c   :  { %2933 = vmatpush.bf16.msra.mxu1 %v6740_v29  ;;  %2902 = vmatmul.bf16.vlgmr.msrb.gmra.mxu2 %v10564_v32  ;;  %v9448_v32 = vld [vmem:[#allocation2 + $0xe4] sm:$0xf0]  ;;  %v6596_v23 = vor.u32 %v9478_v5, %v6595_v4  ;;  %v9802_v10 = vld [vmem:[#allocation2 + $0xbf4] sm:$0xf0]  ;;  %v7483_v53 = vld [vmem:[#allocation2 + $0x8b0] sm:$0xf] }
 0x12d   :  { %2946 = vmatpush.bf16.msra.mxu2 %v6932_v55  ;;  %2915 = vmatmul.bf16.vlgmr.msrb.gmra.mxu3 %v10570_v18  ;;  %v9592_v18 = vld [vmem:[#allocation2 + $0x564] sm:$0xf0]  ;;  %v6476_v35 = vor.u32 %v9448_v32, %v6475_v21  ;;  %v6379_v21 = vld [vmem:[#allocation2 + $0x10] sm:$0xf]  ;;  %v7843_v4 = vld [vmem:[#allocation2 + $0xb80] sm:$0xf] }
 0x12e   :  { %2959 = vmatpush.bf16.msra.mxu3 %v7124_v58  ;;  %v7052_v44 = vor.u32 %v9592_v18, %v7051_v33  ;;  %v7003_v58 = vld [vmem:[#allocation2 + $0x4f0] sm:$0xf]  ;;  %v9424_v32 = vld [vmem:[#allocation2 + $0x24] sm:$0xf0]  ;;  %v9790_v5 = vld [vmem:[#allocation2 + $0xb94] sm:$0xf0] }
 0x12f   :  { %2921 = vmatpush.bf16.msra.mxu0 %v6524_v0  ;;  %v2695_v52 = vpop.f32.mrf.mxu2  ;;  %v2671_v63 = vpop.f32.mrf.mxu0  ;;  %v6620_v0 = vor.u32 %v9484_v34, %v6619_v54  ;;  %v7004_v9 = vor.u32 %v9580_v59, %v7003_v58  ;;  %v6380_v42 = vor.u32 %v9424_v32, %v6379_v21  ;;  %v7867_v34 = vld [vmem:[#allocation2 + $0xbb0] sm:$0xf]  ;;  %v9784_v32 = vld [vmem:[#allocation2 + $0xb64] sm:$0xf0] }
 0x130   :  { %2934 = vmatpush.bf16.msra.mxu1 %v6716_v1  ;;  %v2696_v29 = vadd.f32 %v2695_v52, %v2683_v48  ;;  %v2708_v55 = vpop.f32.mrf.mxu3  ;;  %v6812_v1 = vor.u32 %v9532_v57, %v6811_v56  ;;  %v2684_v6 = vpop.f32.mrf.mxu1  ;;  %v7891_v48 = vld [vmem:[#allocation2 + $0xbe0] sm:$0xf]  ;;  %v7291_v52 = vld [vmem:[#allocation2 + $0x730] sm:$0xf]  ;;  %v9796_v56 = vld [vmem:[#allocation2 + $0xbc4] sm:$0xf0] }
 0x131   :  { %2947 = vmatpush.bf16.msra.mxu2 %v6908_v2  ;;  %v9430_v2 = vld [vmem:[#allocation2 + $0x54] sm:$0xf0]  ;;  %v7892_v54 = vor.u32 %v9802_v10, %v7891_v48  ;;  %v7292_v57 = vor.u32 %v9652_v3, %v7291_v52  ;;  %v7868_v63 = vor.u32 %v9796_v56, %v7867_v34  ;;  %v7819_v21 = vld [vmem:[#allocation2 + $0xb50] sm:$0xf] }
 0x132   :  { %2960 = vmatpush.bf16.msra.mxu3 %v7100_v7  ;;  %v2709_v60 = vadd.f32 %v2708_v55, %v2696_v29  ;;  %v3128_v7 = vmax.f32 %v10576_v8, 0.0  ;;  %v6571_v8 = vld [vmem:[#allocation2 + $0x190] sm:$0xf]  ;;  %v9748_v55 = vld [vmem:[#allocation2 + $0xa44] sm:$0xf0] }
 0x133   :  { %2922 = vmatpush.bf16.msra.mxu0 %v6500_v15  ;;  %v9574_v15 = vld [vmem:[#allocation2 + $0x4d4] sm:$0xf0]  ;;  %v6572_v46 = vor.u32 %v9472_v26, %v6571_v8  ;;  %v7675_v29 = vld [vmem:[#allocation2 + $0xa30] sm:$0xf]  ;;  %v7219_v26 = vld [vmem:[#allocation2 + $0x6a0] sm:$0xf] }
 0x134   :  { %2935 = vmatpush.bf16.msra.mxu1 %v6692_v16  ;;  %v3129_v25 = vmax.f32 %v2709_v60, 0.0  ;;  %v6980_v18 = vor.u32 %v9574_v15, %v6979_v13  ;;  %v7676_v59 = vor.u32 %v9748_v55, %v7675_v29  ;;  %v7267_v60 = vld [vmem:[#allocation2 + $0x700] sm:$0xf]  ;;  %v7844_v15 = vor.u32 %v9790_v5, %v7843_v4  ;;  %v7387_v48 = vld [vmem:[#allocation2 + $0x7f0] sm:$0xf] }
 0x135   :  { %2948 = vmatpush.bf16.msra.mxu2 %v6884_v20  ;;  %v6404_v20 = vor.u32 %v9430_v2, %v6403_v62  ;;  %v7459_v62 = vld [vmem:[#allocation2 + $0x880] sm:$0xf]  ;;  %v9742_v2 = vld [vmem:[#allocation2 + $0xa14] sm:$0xf0]  ;;  %v7147_v5 = vld [vmem:[#allocation2 + $0x610] sm:$0xf] }
 0x136   :  { %2961 = vmatpush.bf16.msra.mxu3 %v7076_v24  ;;  %vm10599_vm0 = vcmp.gt.f32.partialorder %v3129_v25, %v3128_v7  ;;  %v6788_v24 = vor.u32 %v9526_v31, %v6787_v11  ;;  %v9640_v11 = vld [vmem:[#allocation2 + $0x6e4] sm:$0xf0]  ;;  %v7435_v31 = vld [vmem:[#allocation2 + $0x850] sm:$0xf]  ;;  %v10611_v13 = vld [vmem:[#allocation4] sm:$0x3f] }
 0x137   :  { %2923 = vmatpush.bf16.msra.mxu0 %v6476_v35  ;;  %v2697_v17 = vpop.f32.mrf.mxu2  ;;  %v10605_v33 = vsel %vm10599_vm0, %v3129_v25, %v3128_v7  ;;  %v9520_v35 = vld [vmem:[#allocation2 + $0x324] sm:$0xf0]  ;;  %v7243_v7 = vld [vmem:[#allocation2 + $0x6d0] sm:$0xf] }
 0x138   :  { %2936 = vmatpush.bf16.msra.mxu1 %v6668_v22  ;;  %v9568_v22 = vld [vmem:[#allocation2 + $0x4a4] sm:$0xf0]  ;;  %v6764_v47 = vor.u32 %v9520_v35, %v6763_v30  ;;  %v9634_v30 = vld [vmem:[#allocation2 + $0x6b4] sm:$0xf0]  ;;  %v7411_v17 = vld [vmem:[#allocation2 + $0x820] sm:$0xf] }
 0x139   :  { %2949 = vmatpush.bf16.msra.mxu2 %v6860_v37  ;;  %v2710_v37 = vpop.f32.mrf.mxu3  ;;  %v6956_v49 = vor.u32 %v9568_v22, %v6955_v36  ;;  %v7820_v36 = vor.u32 %v9784_v32, %v7819_v21  ;;  %v9682_v22 = vld [vmem:[#allocation2 + $0x834] sm:$0xf0]  ;;  %v9463_v32 = vld [vmem:[#allocation2 + $0x164] sm:$0xf] }
 0x13a   :  { %2962 = vmatpush.bf16.msra.mxu3 %v7052_v44  ;;  %v7699_v44 = vld [vmem:[#allocation2 + $0xa60] sm:$0xf] }
 0x13b   :  { %2924 = vmatpush.bf16.msra.mxu0 %v6452_v50  ;;  %v7316_v50 = vor.u32 %v9658_v40, %v7315_v39  ;;  %v7603_v37 = vld [vmem:[#allocation2 + $0x9a0] sm:$0xf]  ;;  %v9730_v39 = vld [vmem:[#allocation2 + $0x9b4] sm:$0xf0] }
 0x13c   :  { %2937 = vmatpush.bf16.msra.mxu1 %v6644_v51  ;;  %v7508_v51 = vor.u32 %v9706_v43, %v7507_v41  ;;  %v7795_v40 = vld [vmem:[#allocation2 + $0xb20] sm:$0xf]  ;;  %v9778_v41 = vld [vmem:[#allocation2 + $0xb34] sm:$0xf0]  ;;  %v7220_v43 = vor.u32 %v9634_v30, %v7219_v26  ;;  %v9559_v26 = vld [vmem:[#allocation2 + $0x464] sm:$0xf] }
 0x13d   :  { %2950 = vmatpush.bf16.msra.mxu2 %v6836_v27  ;;  %v7700_v27 = vor.u32 %v9754_v45, %v7699_v44  ;;  %v7412_v44 = vor.u32 %v9682_v22, %v7411_v17  ;;  %v7604_v45 = vor.u32 %v9730_v39, %v7603_v37  ;;  %v6933_v30 = vld [vmem:[#allocation2 + $0x478] sm:$0xf0] }
 0x13e   :  { %2963 = vmatpush.bf16.msra.mxu3 %v7028_v28  ;;  %v9700_v28 = vld [vmem:[#allocation2 + $0x8c4] sm:$0xf0] }
 0x13f   :  { %2925 = vmatpush.bf16.msra.mxu0 %v6428_v61  ;;  %v7484_v58 = vor.u32 %v9700_v28, %v7483_v53  ;;  %v9646_v61 = vld [vmem:[#allocation2 + $0x714] sm:$0xf0]  ;;  %v7771_v53 = vld [vmem:[#allocation2 + $0xaf0] sm:$0xf] }
 0x140   :  { %2938 = vmatpush.bf16.msra.mxu1 %v6620_v0  ;;  %v9694_v0 = vld [vmem:[#allocation2 + $0x894] sm:$0xf0]  ;;  %v7268_v6 = vor.u32 %v9646_v61, %v7267_v60 }
 0x141   :  { %2951 = vmatpush.bf16.msra.mxu2 %v6812_v1  ;;  %v7651_v1 = vld [vmem:[#allocation2 + $0xa00] sm:$0xf]  ;;  %v7460_v25 = vor.u32 %v9694_v0, %v7459_v62  ;;  %v9670_v62 = vld [vmem:[#allocation2 + $0x7d4] sm:$0xf0] }
 0x142   :  { %2964 = vmatpush.bf16.msra.mxu3 %v7004_v9  ;;  %v7652_v9 = vor.u32 %v9742_v2, %v7651_v1  ;;  %v9718_v0 = vld [vmem:[#allocation2 + $0x954] sm:$0xf0]  ;;  %v7747_v1 = vld [vmem:[#allocation2 + $0xac0] sm:$0xf] }
 0x143   :  { %2926 = vmatpush.bf16.msra.mxu0 %v6404_v20  ;;  %v7627_v20 = vld [vmem:[#allocation2 + $0x9d0] sm:$0xf]  ;;  %v9766_v2 = vld [vmem:[#allocation2 + $0xad4] sm:$0xf0] }
 0x144   :  { %2939 = vmatpush.bf16.msra.mxu1 %v6596_v23  ;;  %v7244_v23 = vor.u32 %v9640_v11, %v7243_v7  ;;  %v9664_v11 = vld [vmem:[#allocation2 + $0x7a4] sm:$0xf0] }
 0x145   :  { %2952 = vmatpush.bf16.msra.mxu2 %v6788_v24 }
 0x146   :  { %2965 = vmatpush.bf16.msra.mxu3 %v6980_v18 }
 0x147   :  { %2927 = vmatpush.bf16.msra.mxu0 %v6380_v42 }
 0x148   :  { %2940 = vmatpush.bf16.msra.mxu1 %v6572_v46  ;;  %v2734_v35 = vpop.f32.mrf.mxu1  ;;  %v7195_v46 = vld [vmem:[#allocation2 + $0x670] sm:$0xf] }
 0x149   :  { %2953 = vmatpush.bf16.msra.mxu2 %v6764_v47  ;;  %v9628_v47 = vld [vmem:[#allocation2 + $0x684] sm:$0xf0] }
 0x14a   :  { %2966 = vmatpush.bf16.msra.mxu3 %v6956_v49  ;;  %2928 = vmatmul.bf16.vlgmr.msra.gmra.mxu0 %v10581_v14  ;;  %v9688_v14 = vld [vmem:[#allocation2 + $0x864] sm:$0xf0]  ;;  %v7796_v49 = vor.u32 %v9778_v41, %v7795_v40  ;;  %v7196_v28 = vor.u32 %v9628_v47, %v7195_v46  ;;  %v6936_v40 = vor.u32 %v9559_v26, %v6933_v30  ;;  %v9457_v41 = vld [vmem:[#allocation2 + $0x134] sm:$0xf]  ;;  %v6909_v47 = vld [vmem:[#allocation2 + $0x448] sm:$0xf0] }
 0x14b   :  { %2972 = vmatpush.bf16.msrb.mxu0 %v7316_v50  ;;  %2941 = vmatmul.bf16.vlgmr.msra.gmra.mxu1 %v10587_v19  ;;  %v2721_v19 = vpop.f32.mrf.mxu0  ;;  %v7436_v24 = vor.u32 %v9688_v14, %v7435_v31  ;;  %v9676_v50 = vld [vmem:[#allocation2 + $0x804] sm:$0xf0]  ;;  %v7531_v31 = vld [vmem:[#allocation2 + $0x910] sm:$0xf]  ;;  %v9553_v46 = vld [vmem:[#allocation2 + $0x434] sm:$0xf] }
 0x14c   :  { %2985 = vmatpush.bf16.msrb.mxu1 %v7508_v51  ;;  %2954 = vmatmul.bf16.vlgmr.msra.gmra.mxu2 %v10578_v12  ;;  %v556_v12 = vperm.slane %v10611_v13, 2  ;;  %v7579_v51 = vld [vmem:[#allocation2 + $0x970] sm:$0xf]  ;;  %v7388_v34 = vor.u32 %v9676_v50, %v7387_v48  ;;  %v9712_v14 = vld [vmem:[#allocation2 + $0x924] sm:$0xf0] }
 0x14d   :  { %2998 = vmatpush.bf16.msrb.mxu2 %v7700_v27  ;;  %2967 = vmatmul.bf16.vlgmr.msra.gmra.mxu3 %v10584_v38  ;;  %v9736_v38 = vld [vmem:[#allocation2 + $0x9e4] sm:$0xf0]  ;;  %v9601_v48 = vld [vmem:[#allocation2 + $0x5b4] sm:$0xf]  ;;  %v9583_v30 = vld [vmem:[#allocation2 + $0x524] sm:$0xf] }
 0x14e   :  { %3011 = vmatpush.bf16.msrb.mxu3 %v7892_v54  ;;  %v7628_v8 = vor.u32 %v9736_v38, %v7627_v20  ;;  %v2722_v18 = vadd.f32 %v2721_v19, %v556_v12  ;;  %v9724_v27 = vld [vmem:[#allocation2 + $0x984] sm:$0xf0]  ;;  %v7723_v20 = vld [vmem:[#allocation2 + $0xa90] sm:$0xf]  ;;  %v9511_v19 = vld [vmem:[#allocation2 + $0x2e4] sm:$0xf] }
 0x14f   :  { %2973 = vmatpush.bf16.msrb.mxu0 %v7292_v57  ;;  %v2747_v10 = vpop.f32.mrf.mxu2  ;;  %v9772_v54 = vld [vmem:[#allocation2 + $0xb04] sm:$0xf0]  ;;  %v7580_v56 = vor.u32 %v9724_v27, %v7579_v51  ;;  %v7171_v57 = vld [vmem:[#allocation2 + $0x640] sm:$0xf]  ;;  %v6912_v51 = vor.u32 %v9553_v46, %v6909_v47  ;;  %v9451_v27 = vld [vmem:[#allocation2 + $0x104] sm:$0xf] }
 0x150   :  { %2986 = vmatpush.bf16.msrb.mxu1 %v7484_v58  ;;  %v2735_v42 = vadd.f32 %v2734_v35, %v2722_v18  ;;  %v2760_v3 = vpop.f32.mrf.mxu3  ;;  %v9622_v58 = vld [vmem:[#allocation2 + $0x654] sm:$0xf0]  ;;  %v2736_v60 = vpop.f32.mrf.mxu1  ;;  %v7772_v61 = vor.u32 %v9772_v54, %v7771_v53  ;;  %v9760_v38 = vld [vmem:[#allocation2 + $0xaa4] sm:$0xf0]  ;;  %v7532_v18 = vor.u32 %v9712_v14, %v7531_v31  ;;  %v9607_v35 = vld [vmem:[#allocation2 + $0x5e4] sm:$0xf] }
 0x151   :  { %2999 = vmatpush.bf16.msrb.mxu2 %v7676_v59  ;;  %v7363_v59 = vld [vmem:[#allocation2 + $0x7c0] sm:$0xf]  ;;  %v7172_v4 = vor.u32 %v9622_v58, %v7171_v57  ;;  %v7724_v22 = vor.u32 %v9760_v38, %v7723_v20  ;;  %v10616_v53 = vld [vmem:[#allocation1 + $0x36] sm:$0xff]  ;;  %v10622_v57 = vld [vmem:[#allocation1 + $0x3f] sm:$0xff] }
 0x152   :  { %3012 = vmatpush.bf16.msrb.mxu3 %v7868_v63  ;;  %v2748_v52 = vadd.f32 %v2747_v10, %v2735_v42  ;;  %v7555_v63 = vld [vmem:[#allocation2 + $0x940] sm:$0xf]  ;;  %v7364_v7 = vor.u32 %v9670_v62, %v7363_v59  ;;  %v6525_v42 = vld [vmem:[#allocation2 + $0x148] sm:$0xf0]  ;;  %v9595_v58 = vld [vmem:[#allocation2 + $0x584] sm:$0xf] }
 0x153   :  { %2974 = vmatpush.bf16.msrb.mxu0 %v7268_v6  ;;  %v2723_v55 = vpop.f32.mrf.mxu0  ;;  %v9616_v6 = vld [vmem:[#allocation2 + $0x624] sm:$0xf0]  ;;  %v7101_v10 = vld [vmem:[#allocation2 + $0x5c8] sm:$0xf0]  ;;  %v7077_v59 = vld [vmem:[#allocation2 + $0x598] sm:$0xf0] }
 0x154   :  { %2987 = vmatpush.bf16.msrb.mxu1 %v7460_v25  ;;  %v10614_v29 = vadd.f32 %v2760_v3, %v2748_v52  ;;  %v7556_v25 = vor.u32 %v9718_v0, %v7555_v63  ;;  %v6501_v52 = vld [vmem:[#allocation2 + $0x118] sm:$0xf0]  ;;  %v9499_v3 = vld [vmem:[#allocation2 + $0x284] sm:$0xf]  ;;  %v7104_v54 = vor.u32 %v9601_v48, %v7101_v10  ;;  %v9445_v0 = vld [vmem:[#allocation2 + $0xd4] sm:$0xf] }
 0x155   :  { %3000 = vmatpush.bf16.msrb.mxu2 %v7652_v9  ;;  %v7339_v9 = vld [vmem:[#allocation2 + $0x790] sm:$0xf]  ;;  %v9547_v55 = vld [vmem:[#allocation2 + $0x404] sm:$0xf]  ;;  %v9577_v46 = vld [vmem:[#allocation2 + $0x4f4] sm:$0xf] }
 0x156   :  { %3013 = vmatpush.bf16.msrb.mxu3 %v7844_v15  ;;  %v7748_v15 = vor.u32 %v9766_v2, %v7747_v1  ;;  %v7340_v17 = vor.u32 %v9664_v11, %v7339_v9  ;;  %v10625_v60 = vld [vmem:[#allocation1 + $0x2d] sm:$0xff]  ;;  %v9493_v2 = vld [vmem:[#allocation2 + $0x254] sm:$0xf] }
 0x157   :  { %2975 = vmatpush.bf16.msrb.mxu0 %v7244_v23  ;;  %v2749_v12 = vpop.f32.mrf.mxu2  ;;  %v6549_v23 = vld [vmem:[#allocation2 + $0x178] sm:$0xf0]  ;;  %v6477_v1 = vld [vmem:[#allocation2 + $0xe8] sm:$0xf0]  ;;  %v9439_v38 = vld [vmem:[#allocation2 + $0xa4] sm:$0xf] }
 0x158   :  { %2988 = vmatpush.bf16.msrb.mxu1 %v7436_v24  ;;  %v2762_v21 = vpop.f32.mrf.mxu3  ;;  %v7148_v24 = vor.u32 %v9616_v6, %v7147_v5  ;;  %v6552_v37 = vor.u32 %v9463_v32, %v6549_v23  ;;  %v6669_v5 = vld [vmem:[#allocation2 + $0x268] sm:$0xf0]  ;;  %v9541_v6 = vld [vmem:[#allocation2 + $0x3d4] sm:$0xf]  ;;  %v6480_v11 = vor.u32 %v9445_v0, %v6477_v1  ;;  %v9487_v32 = vld [vmem:[#allocation2 + $0x224] sm:$0xf] }
 0x159   :  { %3001 = vmatpush.bf16.msrb.mxu2 %v7628_v8  ;;  %v6741_v8 = vld [vmem:[#allocation2 + $0x2f8] sm:$0xf0]  ;;  %v7053_v9 = vld [vmem:[#allocation2 + $0x568] sm:$0xf0]  ;;  %v6672_v12 = vor.u32 %v9493_v2, %v6669_v5 }
 0x15a   :  { %3014 = vmatpush.bf16.msrb.mxu3 %v7820_v36  ;;  %v7125_v36 = vld [vmem:[#allocation2 + $0x5f8] sm:$0xf0]  ;;  %v6744_v39 = vor.u32 %v9511_v19, %v6741_v8  ;;  %v7005_v47 = vld [vmem:[#allocation2 + $0x508] sm:$0xf0] }
 0x15b   :  { %2976 = vmatpush.bf16.msrb.mxu0 %v7220_v43  ;;  %v9505_v43 = vld [vmem:[#allocation2 + $0x2b4] sm:$0xf]  ;;  %v6453_v21 = vld [vmem:[#allocation2 + $0xb8] sm:$0xf0]  ;;  %v6381_v5 = vld [vmem:[#allocation2 + $0x28] sm:$0xf0] }
 0x15c   :  { %2989 = vmatpush.bf16.msrb.mxu1 %v7412_v44  ;;  %v7128_v44 = vor.u32 %v9607_v35, %v7125_v36  ;;  %v6645_v19 = vld [vmem:[#allocation2 + $0x238] sm:$0xf0] }
 0x15d   :  { %3002 = vmatpush.bf16.msrb.mxu2 %v7604_v45  ;;  %v6717_v45 = vld [vmem:[#allocation2 + $0x2c8] sm:$0xf0]  ;;  %v6837_v8 = vld [vmem:[#allocation2 + $0x3b8] sm:$0xf0]  ;;  %v6648_v35 = vor.u32 %v9487_v32, %v6645_v19  ;;  %v9655_v32 = vld [vmem:[#allocation2 + $0x764] sm:$0xf] }
 0x15e   :  { %3015 = vmatpush.bf16.msrb.mxu3 %v7796_v49  ;;  %v6528_v49 = vor.u32 %v9457_v41, %v6525_v42  ;;  %v6720_v50 = vor.u32 %v9505_v43, %v6717_v45  ;;  %v6621_v43 = vld [vmem:[#allocation2 + $0x208] sm:$0xf0]  ;;  %v6981_v0 = vld [vmem:[#allocation2 + $0x4d8] sm:$0xf0]  ;;  %v9703_v19 = vld [vmem:[#allocation2 + $0x8e4] sm:$0xf] }
 0x15f   :  { %2977 = vmatpush.bf16.msrb.mxu0 %v7196_v28  ;;  %v6693_v28 = vld [vmem:[#allocation2 + $0x298] sm:$0xf0]  ;;  %v6813_v45 = vld [vmem:[#allocation2 + $0x388] sm:$0xf0] }
 0x160   :  { %2990 = vmatpush.bf16.msrb.mxu1 %v7388_v34  ;;  %v6885_v34 = vld [vmem:[#allocation2 + $0x418] sm:$0xf0]  ;;  %v6696_v62 = vor.u32 %v9499_v3, %v6693_v28  ;;  %v9475_v3 = vld [vmem:[#allocation2 + $0x1c4] sm:$0xf] }
 0x161   :  { %3003 = vmatpush.bf16.msrb.mxu2 %v7580_v56  ;;  %v10619_v56 = vld [vmem:[#allocation1 + $0x24] sm:$0xff]  ;;  %v6888_v63 = vor.u32 %v9547_v55, %v6885_v34  ;;  %v7008_v34 = vor.u32 %v9577_v46, %v7005_v47  ;;  %v9793_v46 = vld [vmem:[#allocation2 + $0xbb4] sm:$0xf]  ;;  %v7869_v47 = vld [vmem:[#allocation2 + $0xbc8] sm:$0xf0] }
 0x162   :  { %3016 = vmatpush.bf16.msrb.mxu3 %v7772_v61  ;;  %v6504_v61 = vor.u32 %v9451_v27, %v6501_v52  ;;  %v6405_v52 = vld [vmem:[#allocation2 + $0x58] sm:$0xf0] }
 0x163   :  { %2978 = vmatpush.bf16.msrb.mxu0 %v7172_v4  ;;  %v7080_v4 = vor.u32 %v9595_v58, %v7077_v59  ;;  %v9523_v58 = vld [vmem:[#allocation2 + $0x344] sm:$0xf]  ;;  %v6789_v59 = vld [vmem:[#allocation2 + $0x358] sm:$0xf0] }
 0x164   :  { %2991 = vmatpush.bf16.msrb.mxu1 %v7364_v7  ;;  %v6861_v7 = vld [vmem:[#allocation2 + $0x3e8] sm:$0xf0] }
 0x165   :  { %3004 = vmatpush.bf16.msrb.mxu2 %v7556_v25  ;;  %v9589_v25 = vld [vmem:[#allocation2 + $0x554] sm:$0xf] }
 0x166   :  { %3017 = vmatpush.bf16.msrb.mxu3 %v7748_v15  ;;  %v6864_v15 = vor.u32 %v9541_v6, %v6861_v7  ;;  %v7056_v23 = vor.u32 %v9589_v25, %v7053_v9  ;;  %v9469_v6 = vld [vmem:[#allocation2 + $0x194] sm:$0xf]  ;;  %v6792_v25 = vor.u32 %v9523_v58, %v6789_v59  ;;  %v6573_v9 = vld [vmem:[#allocation2 + $0x1a8] sm:$0xf0]  ;;  %v7845_v58 = vld [vmem:[#allocation2 + $0xb98] sm:$0xf0] }
 0x167   :  { %2979 = vmatpush.bf16.msrb.mxu0 %v7148_v24  ;;  %v2773_v31 = vpop.f32.mrf.mxu0  ;;  %v9535_v24 = vld [vmem:[#allocation2 + $0x3a4] sm:$0xf]  ;;  %v10191_v59 = vld [vmem:[#allocation1] sm:$0xff] }
 0x168   :  { %2992 = vmatpush.bf16.msrb.mxu1 %v7340_v17  ;;  %v2774_v14 = vadd.f32 %v2773_v31, %v10614_v29  ;;  %v2786_v20 = vpop.f32.mrf.mxu1  ;;  %v7029_v17 = vld [vmem:[#allocation2 + $0x538] sm:$0xf0]  ;;  %v6840_v36 = vor.u32 %v9535_v24, %v6837_v8  ;;  %v9433_v29 = vld [vmem:[#allocation2 + $0x74] sm:$0xf] }
 0x169   :  { %3005 = vmatpush.bf16.msrb.mxu2 %v7532_v18  ;;  %v6456_v18 = vor.u32 %v9439_v38, %v6453_v21  ;;  %v6957_v38 = vld [vmem:[#allocation2 + $0x4a8] sm:$0xf0]  ;;  %v7509_v8 = vld [vmem:[#allocation2 + $0x8f8] sm:$0xf0] }
 0x16a   :  { %3018 = vmatpush.bf16.msrb.mxu3 %v7724_v22  ;;  %2980 = vmatmul.bf16.vlgmr.msrb.gmra.mxu0 %v10619_v56  ;;  %v2787_v26 = vadd.f32 %v2786_v20, %v2774_v14  ;;  %v6765_v14 = vld [vmem:[#allocation2 + $0x328] sm:$0xf0]  ;;  %v9565_v20 = vld [vmem:[#allocation2 + $0x494] sm:$0xf] }
 0x16b   :  { %3024 = vmatpush.bf16.msra.mxu0 %v6552_v37  ;;  %2993 = vmatmul.bf16.vlgmr.msrb.gmra.mxu1 %v10625_v60  ;;  %v6429_v37 = vld [vmem:[#allocation2 + $0x88] sm:$0xf0] }
 0x16c   :  { %3037 = vmatpush.bf16.msra.mxu1 %v6744_v39  ;;  %3006 = vmatmul.bf16.vlgmr.msrb.gmra.mxu2 %v10616_v53  ;;  %v9481_v39 = vld [vmem:[#allocation2 + $0x1f4] sm:$0xf]  ;;  %v6432_v10 = vor.u32 %v9433_v29, %v6429_v37  ;;  %v7512_v29 = vor.u32 %v9703_v19, %v7509_v8  ;;  %v9631_v19 = vld [vmem:[#allocation2 + $0x6a4] sm:$0xf] }
 0x16d   :  { %3050 = vmatpush.bf16.msra.mxu2 %v6936_v40  ;;  %3019 = vmatmul.bf16.vlgmr.msrb.gmra.mxu3 %v10622_v57  ;;  %v7032_v40 = vor.u32 %v9583_v30, %v7029_v17  ;;  %v7701_v30 = vld [vmem:[#allocation2 + $0xa78] sm:$0xf0]  ;;  %v6576_v17 = vor.u32 %v9469_v6, %v6573_v9  ;;  %v7245_v6 = vld [vmem:[#allocation2 + $0x6e8] sm:$0xf0]  ;;  %v9679_v8 = vld [vmem:[#allocation2 + $0x824] sm:$0xf] }
 0x16e   :  { %3063 = vmatpush.bf16.msra.mxu3 %v7128_v44  ;;  %v9529_v44 = vld [vmem:[#allocation2 + $0x374] sm:$0xf] }
 0x16f   :  { %3025 = vmatpush.bf16.msra.mxu0 %v6528_v49  ;;  %v2799_v22 = vpop.f32.mrf.mxu2  ;;  %v9427_v49 = vld [vmem:[#allocation2 + $0x44] sm:$0xf]  ;;  %v6816_v27 = vor.u32 %v9529_v44, %v6813_v45  ;;  %v9745_v44 = vld [vmem:[#allocation2 + $0xa34] sm:$0xf]  ;;  %v7677_v45 = vld [vmem:[#allocation2 + $0xa48] sm:$0xf0] }
 0x170   :  { %3038 = vmatpush.bf16.msra.mxu1 %v6720_v50  ;;  %v2800_v41 = vadd.f32 %v2799_v22, %v2787_v26  ;;  %v2812_v42 = vpop.f32.mrf.mxu3  ;;  %v2775_v50 = vpop.f32.mrf.mxu0  ;;  %v6408_v2 = vor.u32 %v9427_v49, %v6405_v52  ;;  %v9751_v26 = vld [vmem:[#allocation2 + $0xa64] sm:$0xf]  ;;  %v7680_v49 = vor.u32 %v9745_v44, %v7677_v45  ;;  %v7872_v52 = vor.u32 %v9793_v46, %v7869_v47  ;;  %v7389_v46 = vld [vmem:[#allocation2 + $0x808] sm:$0xf0]  ;;  %v9721_v47 = vld [vmem:[#allocation2 + $0x974] sm:$0xf] }
 0x171   :  { %3051 = vmatpush.bf16.msra.mxu2 %v6912_v51  ;;  %v6624_v51 = vor.u32 %v9481_v39, %v6621_v43  ;;  %v2788_v28 = vpop.f32.mrf.mxu1  ;;  %v7704_v37 = vor.u32 %v9751_v26, %v7701_v30  ;;  %v9649_v39 = vld [vmem:[#allocation2 + $0x734] sm:$0xf]  ;;  %v7485_v43 = vld [vmem:[#allocation2 + $0x8c8] sm:$0xf0]  ;;  %v9643_v50 = vld [vmem:[#allocation2 + $0x704] sm:$0xf] }
 0x172   :  { %3064 = vmatpush.bf16.msra.mxu3 %v7104_v54  ;;  %v2813_v48 = vadd.f32 %v2812_v42, %v2800_v41  ;;  %v6597_v54 = vld [vmem:[#allocation2 + $0x1d8] sm:$0xf0]  ;;  %v9697_v41 = vld [vmem:[#allocation2 + $0x8b4] sm:$0xf]  ;;  %v9739_v28 = vld [vmem:[#allocation2 + $0xa04] sm:$0xf] }
 0x173   :  { %3026 = vmatpush.bf16.msra.mxu0 %v6504_v61  ;;  %v10437_v61 = vmov 0   ;;  %v6600_v16 = vor.u32 %v9475_v3, %v6597_v54  ;;  %v10190_v3 = vld [vmem:[#allocation1 + $0x12] sm:$0xff]  ;;  %v7461_v54 = vld [vmem:[#allocation2 + $0x898] sm:$0xf0] }
 0x174   :  { %3039 = vmatpush.bf16.msra.mxu1 %v6696_v62  ;;  %v3130_v55 = vmax.f32 %v2813_v48, 0.0  ;;  %v10631_v62 = vsel %vm10599_vm0, 1, %v10437_v61  ;;  %v10192_v61 = vld [vmem:[#allocation1 + $0x1b] sm:$0xff] }
 0x175   :  { %3052 = vmatpush.bf16.msra.mxu2 %v6888_v63  ;;  %v9571_v63 = vld [vmem:[#allocation2 + $0x4c4] sm:$0xf] }
 0x176   :  { %3065 = vmatpush.bf16.msra.mxu3 %v7080_v4  ;;  %vm10634_vm1 = vcmp.gt.f32.partialorder %v3130_v55, %v10605_v33  ;;  %v9421_v4 = vld [vmem:[#allocation2 + $0x14] sm:$0xf] }
 0x177   :  { %3027 = vmatpush.bf16.msra.mxu0 %v6480_v11  ;;  %v3139_v7 = vsel %vm10634_vm1, 2, %v10631_v62  ;;  %v9517_v11 = vld [vmem:[#allocation2 + $0x314] sm:$0xf]  ;;  %v2801_v31 = vpop.f32.mrf.mxu2  ;;  %v6384_v24 = vor.u32 %v9421_v4, %v6381_v5 }
 0x178   :  { %3040 = vmatpush.bf16.msra.mxu1 %v6672_v12  ;;  %v10644_v12 = vsel %vm10634_vm1, %v3130_v55, %v10605_v33  ;;  %v2814_v21 = vpop.f32.mrf.mxu3  ;;  %v9799_v33 = vld [vmem:[#allocation2 + $0xbe4] sm:$0xf]  ;;  %v7653_v55 = vld [vmem:[#allocation2 + $0xa18] sm:$0xf0]  ;;  %v9733_v31 = vld [vmem:[#allocation2 + $0x9d4] sm:$0xf] }
 0x179   :  { %3053 = vmatpush.bf16.msra.mxu2 %v6864_v15  ;;  %v6984_v15 = vor.u32 %v9571_v63, %v6981_v0  ;;  %v10193_v0 = vld [vmem:[#allocation1 + $0x9] sm:$0xff]  ;;  %v7656_v5 = vor.u32 %v9739_v28, %v7653_v55 }
 0x17a   :  { %3066 = vmatpush.bf16.msra.mxu3 %v7056_v23  ;;  %v7317_v23 = vld [vmem:[#allocation2 + $0x778] sm:$0xf0]  ;;  %v9619_v55 = vld [vmem:[#allocation2 + $0x644] sm:$0xf] }
 0x17b   :  { %3028 = vmatpush.bf16.msra.mxu0 %v6456_v18  ;;  %v6768_v18 = vor.u32 %v9517_v11, %v6765_v14  ;;  %v7320_v22 = vor.u32 %v9655_v32, %v7317_v23  ;;  %v7437_v11 = vld [vmem:[#allocation2 + $0x868] sm:$0xf0]  ;;  %v9781_v14 = vld [vmem:[#allocation2 + $0xb54] sm:$0xf] }
 0x17c   :  { %3041 = vmatpush.bf16.msra.mxu1 %v6648_v35  ;;  %v7893_v35 = vld [vmem:[#allocation2 + $0xbf8] sm:$0xf0] }
 0x17d   :  { %3054 = vmatpush.bf16.msra.mxu2 %v6840_v36  ;;  %v6960_v36 = vor.u32 %v9565_v20, %v6957_v38  ;;  %v7896_v42 = vor.u32 %v9799_v33, %v7893_v35  ;;  %v7821_v20 = vld [vmem:[#allocation2 + $0xb68] sm:$0xf0]  ;;  %v9727_v33 = vld [vmem:[#allocation2 + $0x9a4] sm:$0xf]  ;;  %v7605_v35 = vld [vmem:[#allocation2 + $0x9b8] sm:$0xf0] }
 0x17e   :  { %3067 = vmatpush.bf16.msra.mxu3 %v7032_v40  ;;  %v7293_v40 = vld [vmem:[#allocation2 + $0x748] sm:$0xf0] }
 0x17f   :  { %3029 = vmatpush.bf16.msra.mxu0 %v6432_v10  ;;  %v7296_v48 = vor.u32 %v9649_v39, %v7293_v40  ;;  %v7488_v10 = vor.u32 %v9697_v41, %v7485_v43  ;;  %v7608_v40 = vor.u32 %v9727_v33, %v7605_v35  ;;  %v9625_v41 = vld [vmem:[#allocation2 + $0x674] sm:$0xf] }
 0x180   :  { %3042 = vmatpush.bf16.msra.mxu1 %v6624_v51  ;;  %v7269_v51 = vld [vmem:[#allocation2 + $0x718] sm:$0xf0]  ;;  %v9673_v43 = vld [vmem:[#allocation2 + $0x7f4] sm:$0xf] }
 0x181   :  { %3055 = vmatpush.bf16.msra.mxu2 %v6816_v27  ;;  %v9691_v27 = vld [vmem:[#allocation2 + $0x884] sm:$0xf]  ;;  %v7272_v63 = vor.u32 %v9643_v50, %v7269_v51  ;;  %v9769_v50 = vld [vmem:[#allocation2 + $0xaf4] sm:$0xf]  ;;  %v7773_v51 = vld [vmem:[#allocation2 + $0xb08] sm:$0xf0] }
 0x182   :  { %3068 = vmatpush.bf16.msra.mxu3 %v7008_v34  ;;  %v9787_v34 = vld [vmem:[#allocation2 + $0xb84] sm:$0xf]  ;;  %v7464_v4 = vor.u32 %v9691_v27, %v7461_v54  ;;  %v7392_v54 = vor.u32 %v9673_v43, %v7389_v46 }
 0x183   :  { %3030 = vmatpush.bf16.msra.mxu0 %v6408_v2  ;;  %v9637_v2 = vld [vmem:[#allocation2 + $0x6d4] sm:$0xf]  ;;  %v7848_v9 = vor.u32 %v9787_v34, %v7845_v58  ;;  %v7173_v34 = vld [vmem:[#allocation2 + $0x658] sm:$0xf0]  ;;  %v9667_v58 = vld [vmem:[#allocation2 + $0x7c4] sm:$0xf] }
 0x184   :  { %3043 = vmatpush.bf16.msra.mxu1 %v6600_v16  ;;  %v9685_v16 = vld [vmem:[#allocation2 + $0x854] sm:$0xf]  ;;  %v7248_v38 = vor.u32 %v9637_v2, %v7245_v6  ;;  %v7557_v2 = vld [vmem:[#allocation2 + $0x958] sm:$0xf0]  ;;  %v7176_v6 = vor.u32 %v9619_v55, %v7173_v34 }
 0x185   :  { %3056 = vmatpush.bf16.msra.mxu2 %v6792_v25  ;;  %v557_v25 = vperm.slane %v10611_v13, 3  ;;  %v7440_v32 = vor.u32 %v9685_v16, %v7437_v11  ;;  %v7149_v11 = vld [vmem:[#allocation2 + $0x628] sm:$0xf0]  ;;  %v9810_v55 = vld [vmem:[#allocation6 + $0x38] sm:$0xff] }
 0x186   :  { %3069 = vmatpush.bf16.msra.mxu3 %v6984_v15  ;;  %v7629_v15 = vld [vmem:[#allocation2 + $0x9e8] sm:$0xf0] }
 0x187   :  { %3031 = vmatpush.bf16.msra.mxu0 %v6384_v24  ;;  %v2825_v21 = vpop.f32.mrf.mxu0  ;;  %v7632_v23 = vor.u32 %v9733_v31, %v7629_v15  ;;  %v7221_v24 = vld [vmem:[#allocation2 + $0x6b8] sm:$0xf0]  ;;  %v9661_v31 = vld [vmem:[#allocation2 + $0x794] sm:$0xf] }
 0x188   :  { %3044 = vmatpush.bf16.msra.mxu1 %v6576_v17  ;;  %v2826_v26 = vadd.f32 %v2825_v21, %v557_v25  ;;  %v2838_v30 = vpop.f32.mrf.mxu1  ;;  %v7824_v17 = vor.u32 %v9781_v14, %v7821_v20  ;;  %v7341_v20 = vld [vmem:[#allocation2 + $0x7a8] sm:$0xf0] }
 0x189   :  { %3057 = vmatpush.bf16.msra.mxu2 %v6768_v18  ;;  %v7413_v18 = vld [vmem:[#allocation2 + $0x838] sm:$0xf0]  ;;  %v7533_v21 = vld [vmem:[#allocation2 + $0x928] sm:$0xf0] }
 0x18a   :  { %3070 = vmatpush.bf16.msra.mxu3 %v6960_v36  ;;  %3032 = vmatmul.bf16.vlgmr.msra.gmra.mxu0 %v10191_v59  ;;  %v9775_v36 = vld [vmem:[#allocation2 + $0xb24] sm:$0xf]  ;;  %v7416_v39 = vor.u32 %v9679_v8, %v7413_v18  ;;  %v7344_v8 = vor.u32 %v9661_v31, %v7341_v20 }
 0x18b   :  { %3076 = vmatpush.bf16.msrb.mxu0 %v7320_v22  ;;  %3045 = vmatmul.bf16.vlgmr.msra.gmra.mxu1 %v10193_v0  ;;  %v7797_v22 = vld [vmem:[#allocation2 + $0xb38] sm:$0xf0]  ;;  %v9715_v0 = vld [vmem:[#allocation2 + $0x944] sm:$0xf] }
 0x18c   :  { %3089 = vmatpush.bf16.msrb.mxu1 %v7512_v29  ;;  %3058 = vmatmul.bf16.vlgmr.msra.gmra.mxu2 %v10190_v3  ;;  %v2839_v29 = vadd.f32 %v2838_v30, %v2826_v26  ;;  %v7800_v45 = vor.u32 %v9775_v36, %v7797_v22  ;;  %v7560_v25 = vor.u32 %v9715_v0, %v7557_v2 }
 0x18d   :  { %3102 = vmatpush.bf16.msrb.mxu2 %v7704_v37  ;;  %3071 = vmatmul.bf16.vlgmr.msra.gmra.mxu3 %v10192_v61  ;;  %v7224_v37 = vor.u32 %v9631_v19, %v7221_v24  ;;  %v7776_v61 = vor.u32 %v9769_v50, %v7773_v51  ;;  %v7725_v19 = vld [vmem:[#allocation2 + $0xaa8] sm:$0xf0] }
 0x18e   :  { %3115 = vmatpush.bf16.msrb.mxu3 %v7896_v42  ;;  %v7197_v42 = vld [vmem:[#allocation2 + $0x688] sm:$0xf0] }
 0x18f   :  { %3077 = vmatpush.bf16.msrb.mxu0 %v7296_v48  ;;  %v2851_v44 = vpop.f32.mrf.mxu2  ;;  %v7581_v48 = vld [vmem:[#allocation2 + $0x988] sm:$0xf0]  ;;  %v7200_v27 = vor.u32 %v9625_v41, %v7197_v42  ;;  %v2827_v3 = vpop.f32.mrf.mxu0  ;;  %v558_v42 = vperm.slane %v10611_v13, 4 }
 0x190   :  { %3090 = vmatpush.bf16.msrb.mxu1 %v7488_v10  ;;  %v2852_v10 = vadd.f32 %v2851_v44, %v2839_v29  ;;  %v7584_v28 = vor.u32 %v9721_v47, %v7581_v48  ;;  %v2840_v59 = vpop.f32.mrf.mxu1 }
 0x191   :  { %3103 = vmatpush.bf16.msrb.mxu2 %v7680_v49  ;;  %v2864_v49 = vpop.f32.mrf.mxu3 }
 0x192   :  { %3116 = vmatpush.bf16.msrb.mxu3 %v7872_v52  ;;  %v2865_v52 = vadd.f32 %v2864_v49, %v2852_v10 }
 0x193   :  { %3078 = vmatpush.bf16.msrb.mxu0 %v7272_v63  ;;  %v7365_v63 = vld [vmem:[#allocation2 + $0x7d8] sm:$0xf0] }
 0x194   :  { %3091 = vmatpush.bf16.msrb.mxu1 %v7464_v4  ;;  %v9763_v4 = vld [vmem:[#allocation2 + $0xac4] sm:$0xf]  ;;  %v7368_v16 = vor.u32 %v9667_v58, %v7365_v63  ;;  %v9809_v63 = vld [vmem:[#allocation6 + $0x30] sm:$0xff] }
 0x195   :  { %3104 = vmatpush.bf16.msrb.mxu2 %v7656_v5  ;;  %v7749_v5 = vld [vmem:[#allocation2 + $0xad8] sm:$0xf0] }
 0x196   :  { %3117 = vmatpush.bf16.msrb.mxu3 %v7848_v9  ;;  %v9613_v9 = vld [vmem:[#allocation2 + $0x614] sm:$0xf]  ;;  %v7752_v14 = vor.u32 %v9763_v4, %v7749_v5 }
 0x197   :  { %3079 = vmatpush.bf16.msrb.mxu0 %v7248_v38  ;;  %v2853_v15 = vpop.f32.mrf.mxu2  ;;  %v9709_v38 = vld [vmem:[#allocation2 + $0x914] sm:$0xf]  ;;  %v7152_v24 = vor.u32 %v9613_v9, %v7149_v11  ;;  %v9806_v9 = vld [vmem:[#allocation6 + $0x18] sm:$0xff] }
 0x198   :  { %3092 = vmatpush.bf16.msrb.mxu1 %v7440_v32  ;;  %v7536_v26 = vor.u32 %v9709_v38, %v7533_v21  ;;  %v9808_v5 = vld [vmem:[#allocation6 + $0x28] sm:$0xff]  ;;  %v9805_v15 = vld [vmem:[#allocation6 + $0x10] sm:$0xff] }
 0x199   :  { %3105 = vmatpush.bf16.msrb.mxu2 %v7632_v23  ;;  %v2866_v32 = vpop.f32.mrf.mxu3  ;;  %v9757_v23 = vld [vmem:[#allocation2 + $0xa94] sm:$0xf] }
 0x19a   :  { %3118 = vmatpush.bf16.msrb.mxu3 %v7824_v17  ;;  %v7728_v30 = vor.u32 %v9757_v23, %v7725_v19  ;;  %v9804_v38 = vld [vmem:[#allocation6 + $0x8] sm:$0xff]  ;;  %v9803_v23 = vld [vmem:[#allocation6] sm:$0xff]  ;;  %v559_v19 = vperm.slane %v10611_v13, 5 }
 0x19b   :  { %3080 = vmatpush.bf16.msrb.mxu0 %v7224_v37  ;;  %v9815_v13 = vld [vmem:[#allocation9 + $0x20] sm:$0xff] }
 0x19c   :  { %3093 = vmatpush.bf16.msrb.mxu1 %v7416_v39 }
 0x19d   :  { %3106 = vmatpush.bf16.msrb.mxu2 %v7608_v40 }
 0x19e   :  { %3119 = vmatpush.bf16.msrb.mxu3 %v7800_v45 }
 0x19f   :  { %3081 = vmatpush.bf16.msrb.mxu0 %v7200_v27 }
 0x1a0   :  { %3094 = vmatpush.bf16.msrb.mxu1 %v7392_v54 }
 0x1a1   :  { %3107 = vmatpush.bf16.msrb.mxu2 %v7584_v28 }
 0x1a2   :  { %3120 = vmatpush.bf16.msrb.mxu3 %v7776_v61 }
 0x1a3   :  { %3082 = vmatpush.bf16.msrb.mxu0 %v7176_v6 }
 0x1a4   :  { %3095 = vmatpush.bf16.msrb.mxu1 %v7368_v16 }
 0x1a5   :  { %3108 = vmatpush.bf16.msrb.mxu2 %v7560_v25  ;;  %v9807_v25 = vld [vmem:[#allocation6 + $0x20] sm:$0xff] }
 0x1a6   :  { %3121 = vmatpush.bf16.msrb.mxu3 %v7752_v14 }
 0x1a7   :  { %3083 = vmatpush.bf16.msrb.mxu0 %v7152_v24  ;;  %v2877_v17 = vpop.f32.mrf.mxu0 }
 0x1a8   :  { %3096 = vmatpush.bf16.msrb.mxu1 %v7344_v8  ;;  %v2878_v18 = vadd.f32 %v2877_v17, %v2865_v52  ;;  %v2890_v33 = vpop.f32.mrf.mxu1  ;;  %v9817_v17 = vld [vmem:[#allocation9 + $0x30] sm:$0xff] }
 0x1a9   :  { %3109 = vmatpush.bf16.msrb.mxu2 %v7536_v26  ;;  %v9818_v26 = vld [vmem:[#allocation9 + $0x38] sm:$0xff] }
 0x1aa   :  { %3122 = vmatpush.bf16.msrb.mxu3 %v7728_v30  ;;  %3084 = vmatmul.bf16.vlgmr.msrb.gmra.mxu0 %v10619_v56  ;;  %v2891_v35 = vadd.f32 %v2890_v33, %v2878_v18  ;;  %v8048_v18 = vld [vmem:[#allocation12 + $0xa8] sm:$0xf]  ;;  %v9841_v33 = vld [vmem:[#allocation12 + $0xb0] sm:$0xf0] }
 0x1ab   :  { %3097 = vmatmul.bf16.vlgmr.msrb.gmra.mxu1 %v10625_v60  ;;  %3218 = vmatpush.bf16.msra.mxu0 %v9810_v55 }
 0x1ac   :  { %3110 = vmatmul.bf16.vlgmr.msrb.gmra.mxu2 %v10616_v53  ;;  %3301 = vmatpush.bf16.msra.mxu1 %v9818_v26  ;;  %v8038_v26 = vld [vmem:[#allocation12 + $0x9c] sm:$0xf0] }
 0x1ad   :  { %3123 = vmatmul.bf16.vlgmr.msrb.gmra.mxu3 %v10622_v57 }
 0x1af   :  { %v2903_v36 = vpop.f32.mrf.mxu2  ;;  %v2879_v39 = vpop.f32.mrf.mxu0  ;;  %3219 = vmatpush.bf16.msra.mxu0 %v9809_v63  ;;  %v9832_v63 = vld [vmem:[#allocation12 + $0x68] sm:$0xf0] }
 0x1b0   :  { %v2904_v22 = vadd.f32 %v2903_v36, %v2891_v35  ;;  %v2916_v29 = vpop.f32.mrf.mxu3  ;;  %v2892_v40 = vpop.f32.mrf.mxu1  ;;  %v8049_v35 = vor.u32 %v9841_v33, %v8048_v18  ;;  %v8036_v36 = vld [vmem:[#allocation12 + $0x90] sm:$0xf]  ;;  %3302 = vmatpush.bf16.msra.mxu1 %v9817_v17  ;;  %v9839_v18 = vld [vmem:[#allocation12 + $0xa0] sm:$0xf0] }
 0x1b2   :  { %v2917_v37 = vadd.f32 %v2916_v29, %v2904_v22  ;;  %v9838_v22 = vld [vmem:[#allocation12 + $0x98] sm:$0xf0]  ;;  %3479 = vmatpush.bf16.msra.mxu2 %v8049_v35 }
 0x1b3   :  { %3220 = vmatpush.bf16.msra.mxu0 %v9808_v5  ;;  %v8037_v39 = vor.u32 %v9838_v22, %v8036_v36  ;;  %v8026_v36 = vld [vmem:[#allocation12 + $0x84] sm:$0xf0]  ;;  %v8032_v22 = vld [vmem:[#allocation12 + $0x80] sm:$0xf] }
 0x1b4   :  { %v3131_v41 = vmax.f32 %v2917_v37, 0.0  ;;  %v9816_v37 = vld [vmem:[#allocation9 + $0x28] sm:$0xff] }
 0x1b5   :  { %3303 = vmatpush.bf16.msra.mxu1 %v9816_v37  ;;  %v10175_v37 = vld [vmem:[#allocation7] ss:$0 sm:$0xff] }
 0x1b6   :  { %vm3140_vm2 = vcmp.gt.f32.partialorder %v3131_v41, %v10644_v12  ;;  %3480 = vmatpush.bf16.msra.mxu2 %v8037_v39 }
 0x1b7   :  { %v10656_v53 = vsel %vm3140_vm2, 3, %v3139_v7  ;;  %v2905_v56 = vpop.f32.mrf.mxu2  ;;  %v3141_v57 = vsel %vm3140_vm2, %v3131_v41, %v10644_v12  ;;  %3221 = vmatpush.bf16.msra.mxu0 %v9807_v25 }
 0x1b8   :  { %v2918_v60 = vpop.f32.mrf.mxu3 }
 0x1b9   :  { %3304 = vmatpush.bf16.msra.mxu1 %v9815_v13  ;;  %v9831_v13 = vld [vmem:[#allocation12 + $0x64] sm:$0xf] }
 0x1bb   :  { %3222 = vmatpush.bf16.msra.mxu0 %v9806_v9  ;;  %v7976_v9 = vld [vmem:[#allocation12 + $0x18] sm:$0xf] }
 0x1bf   :  { %3223 = vmatpush.bf16.msra.mxu0 %v9805_v15  ;;  %v7964_v15 = vld [vmem:[#allocation12] sm:$0xf] }
 0x1c3   :  { %3224 = vmatpush.bf16.msra.mxu0 %v9804_v38  ;;  %v9840_v38 = vld [vmem:[#allocation12 + $0xac] sm:$0xf] }
 0x1c7   :  { %v2929_v43 = vpop.f32.mrf.mxu0  ;;  %3225 = vmatpush.bf16.msra.mxu0 %v9803_v23 }
 0x1c8   :  { %v2930_v44 = vadd.f32 %v2929_v43, %v558_v42  ;;  %v2942_v45 = vpop.f32.mrf.mxu1  ;;  %v9813_v43 = vld [vmem:[#allocation9 + $0x10] sm:$0xff] }
 0x1ca   :  { %v2943_v46 = vadd.f32 %v2942_v45, %v2930_v44 }
 0x1cf   :  { %v2955_v47 = vpop.f32.mrf.mxu2  ;;  %v2931_v50 = vpop.f32.mrf.mxu0 }
 0x1d0   :  { %v2956_v48 = vadd.f32 %v2955_v47, %v2943_v46  ;;  %v2968_v10 = vpop.f32.mrf.mxu3  ;;  %v2944_v1 = vpop.f32.mrf.mxu1 }
 0x1d2   :  { %v2969_v49 = vadd.f32 %v2968_v10, %v2956_v48  ;;  %v9812_v10 = vld [vmem:[#allocation9 + $0x8] sm:$0xff] }
 0x1d7   :  { %v2957_v51 = vpop.f32.mrf.mxu2 }
 0x1d8   :  { %v2970_v62 = vpop.f32.mrf.mxu3  ;;  %v9811_v51 = vld [vmem:[#allocation9] sm:$0xff] }
 0x1e7   :  { %v2981_v7 = vpop.f32.mrf.mxu0 }
 0x1e8   :  { %v2982_v27 = vadd.f32 %v2981_v7, %v2969_v49  ;;  %v2994_v52 = vpop.f32.mrf.mxu1 }
 0x1ea   :  { %v2995_v3 = vadd.f32 %v2994_v52, %v2982_v27 }
 0x1ef   :  { %v3007_v12 = vpop.f32.mrf.mxu2  ;;  %v2983_v58 = vpop.f32.mrf.mxu0 }
 0x1f0   :  { %v3008_v54 = vadd.f32 %v3007_v12, %v2995_v3  ;;  %v3020_v28 = vpop.f32.mrf.mxu3  ;;  %v2996_v59 = vpop.f32.mrf.mxu1  ;;  %v10438_v12 = vmov 0.0   ;;  %v9835_v58 = vld [vmem:[#allocation12 + $0x80] sm:$0xf0] }
 0x1f2   :  { %v3021_v34 = vadd.f32 %v3020_v28, %v3008_v54 }
 0x1f4   :  { %v3132_v61 = vmax.f32 %v3021_v34, 0.0  ;;  %v8024_v34 = vld [vmem:[#allocation12 + $0x78] sm:$0xf] }
 0x1f5   :  { %v8025_v59 = vor.u32 %v9835_v58, %v8024_v34  ;;  %v9825_v34 = vld [vmem:[#allocation12 + $0x34] sm:$0xf]  ;;  %v7990_v58 = vld [vmem:[#allocation12 + $0x3c] sm:$0xf0] }
 0x1f6   :  { %vm10660_vm3 = vcmp.gt.f32.partialorder %v3132_v61, %v3141_v57 }
 0x1f7   :  { %v3145_v2 = vsel %vm10660_vm3, 4, %v10656_v53  ;;  %v3009_v4 = vpop.f32.mrf.mxu2  ;;  %v3144_v6 = vsel %vm10660_vm3, %v3132_v61, %v3141_v57  ;;  %v9814_v57 = vld [vmem:[#allocation9 + $0x18] sm:$0xff]  ;;  %3481 = vmatpush.bf16.msra.mxu2 %v8025_v59  ;;  %v8012_v61 = vld [vmem:[#allocation12 + $0x60] sm:$0xf] }
 0x1f8   :  { %v3022_v16 = vpop.f32.mrf.mxu3  ;;  %3305 = vmatpush.bf16.msra.mxu1 %v9814_v57  ;;  %v8013_v0 = vor.u32 %v9832_v63, %v8012_v61  ;;  %v9829_v4 = vld [vmem:[#allocation12 + $0x50] sm:$0xf0]  ;;  %v8020_v57 = vld [vmem:[#allocation12 + $0x68] sm:$0xf]  ;;  %v7996_v63 = vld [vmem:[#allocation12 + $0x38] sm:$0xf] }
 0x1f9   :  { %v9826_v16 = vld [vmem:[#allocation12 + $0x38] sm:$0xf0] }
 0x1fb   :  { %3482 = vmatpush.bf16.msra.mxu2 %v8013_v0 }
 0x1fc   :  { %3306 = vmatpush.bf16.msra.mxu1 %v9813_v43  ;;  %v9864_v43 = vld [vmem:[#allocation12 + $0x16c] sm:$0xf] }
 0x200   :  { %3307 = vmatpush.bf16.msra.mxu1 %v9812_v10  ;;  %v8002_v10 = vld [vmem:[#allocation12 + $0x54] sm:$0xf0] }
 0x204   :  { %3308 = vmatpush.bf16.msra.mxu1 %v9811_v51 }
 0x207   :  { %v3033_v11 = vpop.f32.mrf.mxu0 }
 0x208   :  { %v3046_v31 = vpop.f32.mrf.mxu1  ;;  %v3034_v30 = vadd.f32 %v3033_v11, %v559_v19  ;;  %3519 = vmatpush.bf16.msrb.mxu1 %v8049_v35  ;;  %v9823_v11 = vld [vmem:[#allocation12 + $0x20] sm:$0xf0]  ;;  %v9842_v19 = vld [vmem:[#allocation12 + $0xb8] sm:$0xf0] }
 0x209   :  { %v9834_v35 = vld [vmem:[#allocation12 + $0x7c] sm:$0xf] }
 0x20a   :  { %v3047_v29 = vadd.f32 %v3046_v31, %v3034_v30  ;;  %v7977_v31 = vor.u32 %v9823_v11, %v7976_v9  ;;  %v8044_v30 = vld [vmem:[#allocation12 + $0x98] sm:$0xf]  ;;  %v7984_v11 = vld [vmem:[#allocation12 + $0x20] sm:$0xf] }
 0x20b   :  { %v10703_v33 = vor.u32 %v9839_v18, %v8044_v30  ;;  %v8105_v30 = vld [vmem:[#allocation12 + $0x114] sm:$0xf0]  ;;  %v8151_v18 = vld [vmem:[#allocation12 + $0x168] sm:$0xf] }
 0x20c   :  { %3520 = vmatpush.bf16.msrb.mxu1 %v8037_v39  ;;  %v8029_v39 = vor.u32 %v9834_v35, %v8026_v36  ;;  %v9865_v35 = vld [vmem:[#allocation12 + $0x170] sm:$0xf0] }
 0x20f   :  { %v3059_v14 = vpop.f32.mrf.mxu2  ;;  %v3035_v21 = vpop.f32.mrf.mxu0 }
 0x210   :  { %v3072_v20 = vpop.f32.mrf.mxu3  ;;  %v3048_v32 = vpop.f32.mrf.mxu1  ;;  %v3060_v40 = vadd.f32 %v3059_v14, %v3047_v29  ;;  %3521 = vmatpush.bf16.msrb.mxu1 %v8025_v59  ;;  %v9820_v14 = vld [vmem:[#allocation12 + $0x8] sm:$0xf0]  ;;  %v8050_v21 = vld [vmem:[#allocation12 + $0xb4] sm:$0xf0] }
 0x211   :  { %v8056_v32 = vld [vmem:[#allocation12 + $0xb0] sm:$0xf]  ;;  %v8053_v23 = vor.u32 %v9840_v38, %v8050_v21  ;;  %v9836_v29 = vld [vmem:[#allocation12 + $0x88] sm:$0xf0]  ;;  %v9819_v21 = vld [vmem:[#allocation12 + $0x4] sm:$0xf] }
 0x212   :  { %v3073_v41 = vadd.f32 %v3072_v20, %v3060_v40  ;;  %v7965_v20 = vor.u32 %v9820_v14, %v7964_v15  ;;  %v10706_v40 = vor.u32 %v9836_v29, %v8032_v22  ;;  %v9855_v15 = vld [vmem:[#allocation12 + $0x124] sm:$0xf]  ;;  %v8117_v14 = vld [vmem:[#allocation12 + $0x12c] sm:$0xf0]  ;;  %v9849_v29 = vld [vmem:[#allocation12 + $0xf4] sm:$0xf] }
 0x213   :  { %3492 = vmatpush.bf16.msra.mxu3 %v8053_v23 }
 0x214   :  { %3522 = vmatpush.bf16.msrb.mxu1 %v8013_v0  ;;  %v9827_v0 = vld [vmem:[#allocation12 + $0x40] sm:$0xf0] }
 0x217   :  { %v3061_v24 = vpop.f32.mrf.mxu2 }
 0x218   :  { %v3074_v8 = vpop.f32.mrf.mxu3  ;;  %v10700_v24 = vor.u32 %v9842_v19, %v8056_v32  ;;  %v7966_v32 = vld [vmem:[#allocation12 + $0xc] sm:$0xf0]  ;;  %v7972_v19 = vld [vmem:[#allocation12 + $0x8] sm:$0xf] }
 0x219   :  { %v9837_v8 = vld [vmem:[#allocation12 + $0x94] sm:$0xf] }
 0x21a   :  { %v8041_v17 = vor.u32 %v9837_v8, %v8038_v26  ;;  %3505 = vmatpush.bf16.msrb.mxu0 %v10700_v24  ;;  %v9821_v8 = vld [vmem:[#allocation12 + $0x10] sm:$0xf0]  ;;  %v9852_v26 = vld [vmem:[#allocation12 + $0x10c] sm:$0xf] }
 0x21b   :  { %v10733_v36 = vor.u32 %v9821_v8, %v7972_v19  ;;  %v10736_v22 = vor.u32 %v9852_v26, %v8105_v30  ;;  %v9851_v19 = vld [vmem:[#allocation12 + $0x100] sm:$0xf0]  ;;  %v8079_v8 = vld [vmem:[#allocation12 + $0xd8] sm:$0xf]  ;;  %v8087_v30 = vld [vmem:[#allocation12 + $0xe0] sm:$0xf] }
 0x21c   :  { %3493 = vmatpush.bf16.msra.mxu3 %v8041_v17  ;;  %v9847_v26 = vld [vmem:[#allocation12 + $0xe0] sm:$0xf0] }
 0x21e   :  { %3506 = vmatpush.bf16.msrb.mxu0 %v10703_v33 }
 0x220   :  { %3494 = vmatpush.bf16.msra.mxu3 %v8029_v39 }
 0x222   :  { %3507 = vmatpush.bf16.msrb.mxu0 %v10706_v40 }
 0x227   :  { %v3085_v56 = vpop.f32.mrf.mxu0 }
 0x228   :  { %v3098_v60 = vpop.f32.mrf.mxu1  ;;  %v3086_v42 = vadd.f32 %v3085_v56, %v3073_v41  ;;  %v8014_v41 = vld [vmem:[#allocation12 + $0x6c] sm:$0xf0] }
 0x22a   :  { %v3099_v44 = vadd.f32 %v3098_v60, %v3086_v42  ;;  %v9833_v60 = vld [vmem:[#allocation12 + $0x70] sm:$0xf0] }
 0x22f   :  { %v3111_v45 = vpop.f32.mrf.mxu2  ;;  %v3087_v48 = vpop.f32.mrf.mxu0 }
 0x230   :  { %v3112_v46 = vadd.f32 %v3111_v45, %v3099_v44  ;;  %v3124_v47 = vpop.f32.mrf.mxu3  ;;  %v3100_v49 = vpop.f32.mrf.mxu1  ;;  %v8153_v44 = vld [vmem:[#allocation12 + $0x174] sm:$0xf0]  ;;  %v8017_v45 = vor.u32 %v9831_v13, %v8014_v41  ;;  %v9828_v48 = vld [vmem:[#allocation12 + $0x4c] sm:$0xf]  ;;  %v8139_v41 = vld [vmem:[#allocation12 + $0x150] sm:$0xf] }
 0x231   :  { %v10711_v49 = vor.u32 %v9864_v43, %v8153_v44  ;;  %v8081_v43 = vld [vmem:[#allocation12 + $0xe4] sm:$0xf0] }
 0x232   :  { %v3125_v50 = vadd.f32 %v3124_v47, %v3112_v46  ;;  %v10709_v47 = vor.u32 %v9833_v60, %v8020_v57  ;;  %3495 = vmatpush.bf16.msra.mxu3 %v8017_v45  ;;  %v10439_v57 = vmov 1.0|1.0  }
 0x234   :  { %v3133_v1 = vmax.f32 %v3125_v50, 0.0  ;;  %v8008_v50 = vld [vmem:[#allocation12 + $0x50] sm:$0xf]  ;;  %3508 = vmatpush.bf16.msrb.mxu0 %v10709_v47 }
 0x236   :  { %vm3146_vm4 = vcmp.gt.f32.partialorder %v3133_v1, %v3144_v6 }
 0x237   :  { %v3147_v62 = vsel %vm3146_vm4, %v3133_v1, %v3144_v6  ;;  %v10674_v7 = vsel %vm3146_vm4, 5, %v3145_v2  ;;  %v3113_v27 = vpop.f32.mrf.mxu2  ;;  %v8000_v2 = vld [vmem:[#allocation12 + $0x48] sm:$0xf]  ;;  %v7988_v6 = vld [vmem:[#allocation12 + $0x30] sm:$0xf] }
 0x238   :  { %v3149_v52 = vpack.c.bf16 %v3147_v62, %v3147_v62  ;;  %vm4105_vm5 = vcmp.eq.s32.totalorder %v10674_v7, 3  ;;  %vm4613_vm6 = vcmp.eq.s32.totalorder %v10674_v7, 5  ;;  %v3126_v3 = vpop.f32.mrf.mxu3  ;;  %vm3851_vm7 = vcmp.eq.s32.totalorder %v10674_v7, 2  ;;  %v9830_v1 = vld [vmem:[#allocation12 + $0x58] sm:$0xf0] }
 0x239   :  { %v10682_v54 = vsel %vm4105_vm5, 1.0, %v10438_v12  ;;  %v10687_v53 = vsel %vm3851_vm7, 1.0, %v10438_v12  ;;  %vm4359_vm8 = vcmp.eq.s32.totalorder %v10674_v7, 4  ;;  %v10693_v28 = vsel %vm4613_vm6, 1.0, %v10438_v12  ;;  %v9861_v62 = vld [vmem:[#allocation12 + $0x154] sm:$0xf]  ;;  %vm10915_vm13 = vmpackc.low %vm3851_vm7, %vm3851_vm7 }
 0x23a   :  { %3226 = vmatmul.bf16.vlgmr.msra.gmra.mxu0 %v3149_v52  ;;  %v10698_v55 = vsel %vm4359_vm8, 1.0, %v10438_v12  ;;  %v8001_v5 = vor.u32 %v9829_v4, %v8000_v2  ;;  %v7989_v25 = vor.u32 %v9826_v16, %v7988_v6  ;;  %v8141_v27 = vld [vmem:[#allocation12 + $0x15c] sm:$0xf0]  ;;  %v8005_v52 = vor.u32 %v9828_v48, %v8002_v10  ;;  %v9858_v2 = vld [vmem:[#allocation12 + $0x13c] sm:$0xf]  ;;  %vm11089_vm14 = vmpackc.low %vm4105_vm5, %vm4105_vm5 }
 0x23b   :  { %v10714_v3 = vor.u32 %v9830_v1, %v8008_v50  ;;  %v10717_v61 = vor.u32 %v9861_v62, %v8141_v27  ;;  %v8129_v4 = vld [vmem:[#allocation12 + $0x144] sm:$0xf0]  ;;  %v10720_v6 = vor.u32 %v9827_v0, %v7996_v63  ;;  %v9822_v16 = vld [vmem:[#allocation12 + $0x1c] sm:$0xf]  ;;  %vm3346_vm9 = vcmp.eq.s32.totalorder %v10674_v7, 0  ;;  %vm11148_vm15 = vmpackc.low %vm4359_vm8, %vm4359_vm8 }
 0x23c   :  { %3523 = vmatpush.bf16.msrb.mxu1 %v8001_v5  ;;  %3483 = vmatpush.bf16.msra.mxu2 %v8001_v5  ;;  %v7993_v5 = vor.u32 %v9825_v34, %v7990_v58  ;;  %v10723_v9 = vor.u32 %v9858_v2, %v8129_v4  ;;  %vm10743_vm10 = vmpackc.low %vm3346_vm9, %vm3346_vm9  ;;  %v9843_v10 = vld [vmem:[#allocation12 + $0xc4] sm:$0xf]  ;;  %v8069_v50 = vld [vmem:[#allocation12 + $0xcc] sm:$0xf0]  ;;  %vm3597_vm11 = vcmp.eq.s32.totalorder %v10674_v7, 1 }
 0x23d   :  { %3496 = vmatpush.bf16.msra.mxu3 %v8005_v52  ;;  %3509 = vmatpush.bf16.msrb.mxu0 %v10714_v3  ;;  %v8159_v1 = vld [vmem:[#allocation12 + $0x170] sm:$0xf]  ;;  %v8115_v62 = vld [vmem:[#allocation12 + $0x120] sm:$0xf]  ;;  %v9856_v27 = vld [vmem:[#allocation12 + $0x128] sm:$0xf0] }
 0x23e   :  { %v8147_v58 = vld [vmem:[#allocation12 + $0x158] sm:$0xf]  ;;  %v8103_v63 = vld [vmem:[#allocation12 + $0x108] sm:$0xf]  ;;  %v9853_v0 = vld [vmem:[#allocation12 + $0x110] sm:$0xf0] }
 0x23f   :  { %v8135_v4 = vld [vmem:[#allocation12 + $0x140] sm:$0xf]  ;;  %vm10874_vm12 = vmpackc.low %vm3597_vm11, %vm3597_vm11 }
 0x240   :  { %3524 = vmatpush.bf16.msrb.mxu1 %v7989_v25  ;;  %3484 = vmatpush.bf16.msra.mxu2 %v7989_v25  ;;  %v7978_v25 = vld [vmem:[#allocation12 + $0x24] sm:$0xf0]  ;;  %vm11333_vm7 = vmpackc.low %vm4613_vm6, %vm4613_vm6 }
 0x241   :  { %3497 = vmatpush.bf16.msra.mxu3 %v7993_v5  ;;  %3510 = vmatpush.bf16.msrb.mxu0 %v10720_v6 }
 0x244   :  { %3525 = vmatpush.bf16.msrb.mxu1 %v7977_v31  ;;  %3485 = vmatpush.bf16.msra.mxu2 %v7977_v31  ;;  %v9824_v31 = vld [vmem:[#allocation12 + $0x28] sm:$0xf0] }
 0x245   :  { %v10726_v38 = vor.u32 %v9824_v31, %v7984_v11  ;;  %v8123_v31 = vld [vmem:[#allocation12 + $0x128] sm:$0xf] }
 0x247   :  { %3511 = vmatpush.bf16.msrb.mxu0 %v10726_v38 }
 0x248   :  { %3526 = vmatpush.bf16.msrb.mxu1 %v7965_v20  ;;  %3486 = vmatpush.bf16.msra.mxu2 %v7965_v20  ;;  %v7981_v20 = vor.u32 %v9822_v16, %v7978_v25  ;;  %v8091_v16 = vld [vmem:[#allocation12 + $0xf0] sm:$0xf]  ;;  %v9850_v25 = vld [vmem:[#allocation12 + $0xf8] sm:$0xf0] }
 0x24a   :  { %3498 = vmatpush.bf16.msra.mxu3 %v7981_v20 }
 0x24b   :  { %3512 = vmatpush.bf16.msrb.mxu0 %v10733_v36 }
 0x24c   :  { %3532 = vmatpush.bf16.msrb.mxu2 %v8053_v23  ;;  %v10729_v23 = vor.u32 %v9855_v15, %v8117_v14  ;;  %v9857_v15 = vld [vmem:[#allocation12 + $0x130] sm:$0xf0] }
 0x24d   :  { %v10791_v14 = vor.u32 %v9857_v15, %v8123_v31  ;;  %v9871_v15 = vld [vmem:[#allocation12 + $0x1a0] sm:$0xf0] }
 0x250   :  { %3533 = vmatpush.bf16.msrb.mxu2 %v8041_v17  ;;  %v7969_v17 = vor.u32 %v9819_v21, %v7966_v32  ;;  %v8099_v32 = vld [vmem:[#allocation12 + $0xf8] sm:$0xf] }
 0x252   :  { %3499 = vmatpush.bf16.msra.mxu3 %v7969_v17 }
 0x254   :  { %3534 = vmatpush.bf16.msrb.mxu2 %v8029_v39  ;;  %v10738_v39 = vor.u32 %v9865_v35, %v8151_v18  ;;  %v8067_v18 = vld [vmem:[#allocation12 + $0xc0] sm:$0xf]  ;;  %v9844_v35 = vld [vmem:[#allocation12 + $0xc8] sm:$0xf0] }
 0x256   :  { %3545 = vmatpush.bf16.msrb.mxu3 %v10700_v24  ;;  %3730 = vmatpush.bf16.msra.mxu0 %v10738_v39 }
 0x258   :  { %3535 = vmatpush.bf16.msrb.mxu2 %v8017_v45  ;;  %v8127_v45 = vld [vmem:[#allocation12 + $0x138] sm:$0xf] }
 0x25a   :  { %3546 = vmatpush.bf16.msrb.mxu3 %v10703_v33  ;;  %v10772_v33 = vor.u32 %v9856_v27, %v8115_v62  ;;  %v9889_v62 = vld [vmem:[#allocation12 + $0x230] sm:$0xf0] }
 0x25c   :  { %3536 = vmatpush.bf16.msrb.mxu2 %v8005_v52  ;;  %v10766_v52 = vor.u32 %v9843_v10, %v8069_v50  ;;  %v8064_v10 = vsel %vm3597_vm11, 1.0, %v10438_v12 }
 0x25e   :  { %3547 = vmatpush.bf16.msrb.mxu3 %v10706_v40  ;;  %v10780_v40 = vor.u32 %v9853_v0, %v8103_v63 }
 0x260   :  { %3537 = vmatpush.bf16.msrb.mxu2 %v7993_v5  ;;  %v9860_v5 = vld [vmem:[#allocation12 + $0x148] sm:$0xf0] }
 0x261   :  { %v10784_v11 = vor.u32 %v9860_v5, %v8135_v4  ;;  %v8242_v5 = vld [vmem:[#allocation12 + $0x210] sm:$0xf] }
 0x262   :  { %3548 = vmatpush.bf16.msrb.mxu3 %v10709_v47  ;;  %v10787_v47 = vor.u32 %v9850_v25, %v8091_v16  ;;  %v9886_v16 = vld [vmem:[#allocation12 + $0x218] sm:$0xf0] }
 0x264   :  { %3538 = vmatpush.bf16.msrb.mxu2 %v7981_v20  ;;  %v8111_v20 = vld [vmem:[#allocation12 + $0x110] sm:$0xf] }
 0x266   :  { %3549 = vmatpush.bf16.msrb.mxu3 %v10714_v3  ;;  %v9854_v3 = vld [vmem:[#allocation12 + $0x118] sm:$0xf0] }
 0x267   :  { %v10796_v21 = vor.u32 %v9854_v3, %v8111_v20  ;;  %v8170_v20 = vld [vmem:[#allocation12 + $0x180] sm:$0xf]  ;;  %v9888_v3 = vld [vmem:[#allocation12 + $0x22c] sm:$0xf] }
 0x268   :  { %3539 = vmatpush.bf16.msrb.mxu2 %v7969_v17  ;;  %v10803_v17 = vor.u32 %v9847_v26, %v8079_v8 }
 0x26a   :  { %3550 = vmatpush.bf16.msrb.mxu3 %v10720_v6  ;;  %v10800_v6 = vor.u32 %v9851_v19, %v8099_v32  ;;  %v9890_v32 = vld [vmem:[#allocation12 + $0x238] sm:$0xf0]  ;;  %v9912_v19 = vld [vmem:[#allocation12 + $0x2ec] sm:$0xf] }
 0x26e   :  { %3551 = vmatpush.bf16.msrb.mxu3 %v10726_v38  ;;  %v9848_v38 = vld [vmem:[#allocation12 + $0xe8] sm:$0xf0] }
 0x272   :  { %3552 = vmatpush.bf16.msrb.mxu3 %v10733_v36  ;;  %v10808_v36 = vor.u32 %v9844_v35, %v8067_v18  ;;  %v8250_v18 = vld [vmem:[#allocation12 + $0x218] sm:$0xf]  ;;  %v9909_v35 = vld [vmem:[#allocation12 + $0x2d4] sm:$0xf] }
 0x2b7   :  { %v3227_v56 = vpop.f32.mrf.mxu0 }
 0x2b8   :  { %v3228_v42 = vadd.f32 %v10175_v37, %v3227_v56  ;;  %v8093_v37 = vld [vmem:[#allocation12 + $0xfc] sm:$0xf0]  ;;  %v9862_v56 = vld [vmem:[#allocation12 + $0x158] sm:$0xf0] }
 0x2b9   :  { %v10752_v60 = vor.u32 %v9849_v29, %v8093_v37  ;;  %v10756_v44 = vor.u32 %v9862_v56, %v8139_v41  ;;  %v10805_v29 = vor.u32 %v9848_v38, %v8087_v30  ;;  %v8075_v37 = vld [vmem:[#allocation12 + $0xc8] sm:$0xf]  ;;  %v9845_v41 = vld [vmem:[#allocation12 + $0xd0] sm:$0xf0]  ;;  %v8244_v38 = vld [vmem:[#allocation12 + $0x21c] sm:$0xf0] }
 0x2ba   :  { %v3231_v46 = vmax.f32 %v3228_v42, 0.0  ;;  %v9846_v42 = vld [vmem:[#allocation12 + $0xdc] sm:$0xf]  ;;  %v10811_v56 = vor.u32 %v9845_v41, %v8075_v37  ;;  %v9885_v30 = vld [vmem:[#allocation12 + $0x214] sm:$0xf] }
 0x2bb   :  { %v10759_v48 = vor.u32 %v9846_v42, %v8081_v43  ;;  %3731 = vmatpush.bf16.msra.mxu0 %v10756_v44  ;;  %v10176_v42 = vld [vmem:[#allocation10] ss:$0 sm:$0xff]  ;;  %v10919_v37 = vor.u32 %v9885_v30, %v8244_v38  ;;  %v8287_v38 = vld [vmem:[#allocation12 + $0x264] sm:$0xf0] }
 0x2bc   :  { %v3232_v51 = vpack.c.bf16 %v3231_v46, %v3231_v46  ;;  %v9859_v46 = vld [vmem:[#allocation12 + $0x140] sm:$0xf0]  ;;  %v9894_v30 = vld [vmem:[#allocation12 + $0x25c] sm:$0xf] }
 0x2bd   :  { %v10763_v24 = vor.u32 %v9859_v46, %v8127_v45  ;;  %v7961_v46 = vsel %vm3346_vm9, 1.0, %v10438_v12 }
 0x2be   :  { %3309 = vmatmul.bf16.vlgmr.msra.gmra.mxu1 %v3232_v51  ;;  %v9866_v51 = vld [vmem:[#allocation12 + $0x178] sm:$0xf0] }
 0x2bf   :  { %v3229_v59 = vpop.f32.mrf.mxu0  ;;  %3743 = vmatpush.bf16.msra.mxu1 %v10711_v49  ;;  %v10769_v34 = vor.u32 %v9866_v51, %v8159_v1  ;;  %3732 = vmatpush.bf16.msra.mxu0 %v10763_v24  ;;  %v8254_v51 = vld [vmem:[#allocation12 + $0x228] sm:$0xf] }
 0x2c0   :  { %v9863_v59 = vld [vmem:[#allocation12 + $0x160] sm:$0xf0]  ;;  %v10836_v12 = vor.u32 %v9889_v62, %v8254_v51  ;;  %v8220_v62 = vld [vmem:[#allocation12 + $0x1ec] sm:$0xf0] }
 0x2c1   :  { %v10777_v2 = vor.u32 %v9863_v59, %v8147_v58  ;;  %v9879_v51 = vld [vmem:[#allocation12 + $0x1e4] sm:$0xf] }
 0x2c3   :  { %3744 = vmatpush.bf16.msra.mxu1 %v10717_v61  ;;  %3733 = vmatpush.bf16.msra.mxu0 %v10772_v33 }
 0x2c7   :  { %3745 = vmatpush.bf16.msra.mxu1 %v10723_v9  ;;  %3734 = vmatpush.bf16.msra.mxu0 %v10780_v40 }
 0x2cb   :  { %3746 = vmatpush.bf16.msra.mxu1 %v10729_v23  ;;  %3735 = vmatpush.bf16.msra.mxu0 %v10787_v47 }
 0x2ce   :  { %8059 = vmatmul.msk.bf16.vlgmr.msrb.gmra.mxu1 %vm10743_vm10, %v10439_v57 }
 0x2cf   :  { %3747 = vmatpush.bf16.msra.mxu1 %v10736_v22  ;;  %3736 = vmatpush.bf16.msra.mxu0 %v10803_v17 }
 0x2d3   :  { %3748 = vmatpush.bf16.msra.mxu1 %v10752_v60  ;;  %3737 = vmatpush.bf16.msra.mxu0 %v10808_v36 }
 0x2d7   :  { %3749 = vmatpush.bf16.msra.mxu1 %v10759_v48 }
 0x2db   :  { %3750 = vmatpush.bf16.msra.mxu1 %v10766_v52 }
 0x2df   :  { %3796 = vmatpush.bf16.msrb.mxu1 %v10769_v34 }
 0x2e3   :  { %3797 = vmatpush.bf16.msrb.mxu1 %v10777_v2 }
 0x2e7   :  { %3798 = vmatpush.bf16.msrb.mxu1 %v10784_v11 }
 0x2eb   :  { %3799 = vmatpush.bf16.msrb.mxu1 %v10791_v14 }
 0x2ef   :  { %3800 = vmatpush.bf16.msrb.mxu1 %v10796_v21 }
 0x2f3   :  { %3801 = vmatpush.bf16.msrb.mxu1 %v10800_v6 }
 0x2f7   :  { %3802 = vmatpush.bf16.msrb.mxu1 %v10805_v29 }
 0x2fb   :  { %3803 = vmatpush.bf16.msrb.mxu1 %v10811_v56 }
 0x33b   :  { %v3310_v43 = vpop.f32.mrf.mxu1 }
 0x33c   :  { %v3311_v45 = vadd.f32 %v10176_v42, %v3310_v43  ;;  %v8238_v42 = vld [vmem:[#allocation12 + $0x200] sm:$0xf]  ;;  %v9884_v43 = vld [vmem:[#allocation12 + $0x208] sm:$0xf0] }
 0x33e   :  { %v3349_v50 = vmul.f32 %v7961_v46, %v3311_v45  ;;  %v3600_v1 = vmul.f32 %v8064_v10, %v3311_v45  ;;  %v10823_v27 = vmul.f32 %v10687_v53, %v3311_v45  ;;  %v10826_v58 = vmul.f32 %v10682_v54, %v3311_v45  ;;  %v8335_v46 = vld [vmem:[#allocation12 + $0x2c4] sm:$0xf0] }
 0x33f   :  { %v10829_v59 = vmul.f32 %v10698_v55, %v3311_v45  ;;  %v10832_v63 = vmul.f32 %v10693_v28, %v3311_v45  ;;  %v10843_v53 = vor.u32 %v9886_v16, %v8242_v5  ;;  %v8230_v28 = vld [vmem:[#allocation12 + $0x1f8] sm:$0xf]  ;;  %v9883_v55 = vld [vmem:[#allocation12 + $0x200] sm:$0xf0]  ;;  %v9906_v45 = vld [vmem:[#allocation12 + $0x2bc] sm:$0xf]  ;;  %v10949_v16 = vor.u32 %v9879_v51, %v8220_v62 }
 0x340   :  { %v3350_v0 = vpack.c.bf16 %v3349_v50, %v3349_v50  ;;  %v10834_v4 = vpack.c.bf16 %v3600_v1, %v3600_v1  ;;  %v10849_v25 = vor.u32 %v9883_v55, %v8230_v28  ;;  %v10943_v50 = vor.u32 %v9884_v43, %v8238_v42  ;;  %v8323_v5 = vld [vmem:[#allocation12 + $0x2ac] sm:$0xf0]  ;;  %v9876_v28 = vld [vmem:[#allocation12 + $0x1cc] sm:$0xf]  ;;  %v8208_v55 = vld [vmem:[#allocation12 + $0x1d4] sm:$0xf0] }
 0x341   :  { %v10945_v1 = vor.u32 %v9906_v45, %v8335_v46  ;;  %v9891_v42 = vld [vmem:[#allocation12 + $0x244] sm:$0xf]  ;;  %v8275_v43 = vld [vmem:[#allocation12 + $0x24c] sm:$0xf0]  ;;  %v8357_v45 = vld [vmem:[#allocation12 + $0x2e8] sm:$0xf] }
 0x342   :  { %3487 = vmatmul.bf16.vlgmr.msra.gmra.mxu2 %v3350_v0  ;;  %3500 = vmatmul.bf16.vlgmr.msra.gmra.mxu3 %v3350_v0  ;;  %v9913_v46 = vld [vmem:[#allocation12 + $0x2f0] sm:$0xf0]  ;;  %v8365_v51 = vld [vmem:[#allocation12 + $0x2f0] sm:$0xf]  ;;  %v9914_v62 = vld [vmem:[#allocation12 + $0x2f8] sm:$0xf0] }
 0x343   :  { %3513 = vmatmul.bf16.vlgmr.msrb.gmra.mxu0 %v3350_v0  ;;  %3751 = vmatmul.bf16.vlgmr.msra.gmra.mxu1 %v10834_v4  ;;  %v3312_v54 = vpop.f32.mrf.mxu1  ;;  %v8226_v0 = vld [vmem:[#allocation12 + $0x1e8] sm:$0xf] }
 0x344   :  { %3756 = vmatpush.bf16.msra.mxu2 %v10769_v34  ;;  %3770 = vmatpush.bf16.msra.mxu3 %v10738_v39  ;;  %v8218_v34 = vld [vmem:[#allocation12 + $0x1e0] sm:$0xf]  ;;  %v9880_v39 = vld [vmem:[#allocation12 + $0x1e8] sm:$0xf0] }
 0x345   :  { %3783 = vmatpush.bf16.msrb.mxu0 %v10711_v49  ;;  %4024 = vmatpush.bf16.msra.mxu1 %v10836_v12  ;;  %v10857_v49 = vor.u32 %v9880_v39, %v8218_v34  ;;  %v8214_v34 = vld [vmem:[#allocation12 + $0x1d0] sm:$0xf]  ;;  %v9878_v39 = vld [vmem:[#allocation12 + $0x1d8] sm:$0xf0] }
 0x348   :  { %3757 = vmatpush.bf16.msra.mxu2 %v10777_v2  ;;  %3771 = vmatpush.bf16.msra.mxu3 %v10756_v44  ;;  %v8206_v44 = vld [vmem:[#allocation12 + $0x1c8] sm:$0xf] }
 0x349   :  { %3784 = vmatpush.bf16.msrb.mxu0 %v10717_v61  ;;  %4025 = vmatpush.bf16.msra.mxu1 %v10843_v53  ;;  %v9877_v61 = vld [vmem:[#allocation12 + $0x1d0] sm:$0xf0] }
 0x34a   :  { %v10863_v2 = vor.u32 %v9877_v61, %v8206_v44  ;;  %v9900_v44 = vld [vmem:[#allocation12 + $0x28c] sm:$0xf]  ;;  %v8311_v61 = vld [vmem:[#allocation12 + $0x294] sm:$0xf0] }
 0x34b   :  { %v10851_v31 = vpop.f32.mrf.mxu1 }
 0x34c   :  { %3758 = vmatpush.bf16.msra.mxu2 %v10784_v11  ;;  %3772 = vmatpush.bf16.msra.mxu3 %v10763_v24  ;;  %v9874_v24 = vld [vmem:[#allocation12 + $0x1b8] sm:$0xf0]  ;;  %v8182_v11 = vld [vmem:[#allocation12 + $0x198] sm:$0xf]  ;;  %vm3558_vm0 = vcmp.gt.f32.partialorder %v10851_v31, 0.5 }
 0x34d   :  { %3785 = vmatpush.bf16.msrb.mxu0 %v10723_v9  ;;  %4026 = vmatpush.bf16.msra.mxu1 %v10849_v25  ;;  %v10963_v9 = vor.u32 %v9878_v39, %v8214_v34  ;;  %v9911_v34 = vld [vmem:[#allocation12 + $0x2e0] sm:$0xf0]  ;;  %v3855_v39 = vpack.c.bf16 %v10823_v27, %v10823_v27  ;;  %v8420_v31 = vld [vmem:[#allocation12 + $0x350] sm:$0xf] }
 0x350   :  { %3759 = vmatpush.bf16.msra.mxu2 %v10791_v14  ;;  %3773 = vmatpush.bf16.msra.mxu3 %v10772_v33  ;;  %v10892_v14 = vor.u32 %v9871_v15, %v8182_v11  ;;  %v8202_v11 = vld [vmem:[#allocation12 + $0x1b8] sm:$0xf]  ;;  %v9875_v15 = vld [vmem:[#allocation12 + $0x1c0] sm:$0xf0] }
 0x351   :  { %3786 = vmatpush.bf16.msrb.mxu0 %v10729_v23  ;;  %4027 = vmatpush.bf16.msra.mxu1 %v10857_v49  ;;  %v8194_v23 = vld [vmem:[#allocation12 + $0x1b0] sm:$0xf] }
 0x352   :  { %8061 = vmatmul.msk.bf16.vlgmr.msrb.gmra.mxu2 %vm10743_vm10, %v10439_v57  ;;  %8063 = vmatmul.msk.bf16.vlgmr.msrb.gmra.mxu3 %vm10743_vm10, %v10439_v57  ;;  %v10886_v13 = vor.u32 %v9874_v24, %v8194_v23  ;;  %v10965_v23 = vor.u32 %v9900_v44, %v8311_v61  ;;  %v9873_v24 = vld [vmem:[#allocation12 + $0x1b4] sm:$0xf] }
 0x353   :  { %3738 = vmatmul.bf16.vlgmr.msra.gmra.mxu0 %v10834_v4  ;;  %8166 = vmatmul.msk.bf16.vlgmr.msrb.gmra.mxu1 %vm10874_vm12, %v10439_v57  ;;  %v3530_v33 = vpop.f32.mrf.mxu1 }
 0x354   :  { %3760 = vmatpush.bf16.msra.mxu2 %v10796_v21  ;;  %3774 = vmatpush.bf16.msra.mxu3 %v10780_v40  ;;  %v9868_v40 = vld [vmem:[#allocation12 + $0x188] sm:$0xf0]  ;;  %v8262_v21 = vld [vmem:[#allocation12 + $0x230] sm:$0xf]  ;;  %v8196_v33 = vld [vmem:[#allocation12 + $0x1bc] sm:$0xf0] }
 0x355   :  { %3787 = vmatpush.bf16.msrb.mxu0 %v10736_v22  ;;  %4028 = vmatpush.bf16.msra.mxu1 %v10863_v2  ;;  %v8256_v22 = vld [vmem:[#allocation12 + $0x234] sm:$0xf0]  ;;  %v10902_v8 = vor.u32 %v9890_v32, %v8262_v21  ;;  %v9870_v21 = vld [vmem:[#allocation12 + $0x19c] sm:$0xf]  ;;  %v8184_v32 = vld [vmem:[#allocation12 + $0x1a4] sm:$0xf0] }
 0x358   :  { %3761 = vmatpush.bf16.msra.mxu2 %v10800_v6  ;;  %3775 = vmatpush.bf16.msra.mxu3 %v10787_v47  ;;  %v8359_v6 = vld [vmem:[#allocation12 + $0x2f4] sm:$0xf0]  ;;  %v10900_v47 = vor.u32 %v9888_v3, %v8256_v22  ;;  %v10973_v3 = vor.u32 %v9875_v15, %v8202_v11  ;;  %v8321_v11 = vld [vmem:[#allocation12 + $0x2a0] sm:$0xf]  ;;  %v9904_v15 = vld [vmem:[#allocation12 + $0x2a8] sm:$0xf0] }
 0x359   :  { %3788 = vmatpush.bf16.msrb.mxu0 %v10752_v60  ;;  %4029 = vmatpush.bf16.msra.mxu1 %v10886_v13  ;;  %v10898_v60 = vor.u32 %v9868_v40, %v8170_v20  ;;  %v10904_v26 = vor.u32 %v9912_v19, %v8359_v6  ;;  %v9897_v20 = vld [vmem:[#allocation12 + $0x274] sm:$0xf]  ;;  %v8299_v40 = vld [vmem:[#allocation12 + $0x27c] sm:$0xf0]  ;;  %v9872_v6 = vld [vmem:[#allocation12 + $0x1a8] sm:$0xf0] }
 0x35a   :  { %v10975_v22 = vor.u32 %v9897_v20, %v8299_v40  ;;  %v8190_v19 = vld [vmem:[#allocation12 + $0x1a0] sm:$0xf]  ;;  %v8329_v20 = vld [vmem:[#allocation12 + $0x2a8] sm:$0xf]  ;;  %v9905_v40 = vld [vmem:[#allocation12 + $0x2b0] sm:$0xf0] }
 0x35c   :  { %3762 = vmatpush.bf16.msra.mxu2 %v10805_v29  ;;  %3776 = vmatpush.bf16.msra.mxu3 %v10803_v17  ;;  %v9887_v17 = vld [vmem:[#allocation12 + $0x220] sm:$0xf0] }
 0x35d   :  { %3789 = vmatpush.bf16.msrb.mxu0 %v10759_v48  ;;  %4030 = vmatpush.bf16.msra.mxu1 %v10892_v14  ;;  %v8347_v48 = vld [vmem:[#allocation12 + $0x2dc] sm:$0xf0] }
 0x35e   :  { %v10925_v41 = vor.u32 %v9909_v35, %v8347_v48  ;;  %v9867_v35 = vld [vmem:[#allocation12 + $0x184] sm:$0xf]  ;;  %v8172_v48 = vld [vmem:[#allocation12 + $0x18c] sm:$0xf0] }
 0x360   :  { %3763 = vmatpush.bf16.msra.mxu2 %v10811_v56  ;;  %3777 = vmatpush.bf16.msra.mxu3 %v10808_v36  ;;  %v9882_v36 = vld [vmem:[#allocation12 + $0x1fc] sm:$0xf]  ;;  %v8232_v56 = vld [vmem:[#allocation12 + $0x204] sm:$0xf0] }
 0x361   :  { %3790 = vmatpush.bf16.msrb.mxu0 %v10766_v52  ;;  %4031 = vmatpush.bf16.msra.mxu1 %v10898_v60  ;;  %v10923_v52 = vor.u32 %v9887_v17, %v8250_v18  ;;  %v10939_v10 = vor.u32 %v9882_v36, %v8232_v56  ;;  %v10983_v18 = vor.u32 %v9872_v6, %v8190_v19  ;;  %v8178_v36 = vld [vmem:[#allocation12 + $0x188] sm:$0xf]  ;;  %v9869_v56 = vld [vmem:[#allocation12 + $0x190] sm:$0xf0]  ;;  %v8317_v19 = vld [vmem:[#allocation12 + $0x290] sm:$0xf] }
 0x362   :  { %v10985_v17 = vor.u32 %v9894_v30, %v8287_v38  ;;  %v9902_v6 = vld [vmem:[#allocation12 + $0x298] sm:$0xf0]  ;;  %v8297_v30 = vld [vmem:[#allocation12 + $0x270] sm:$0xf] }
 0x363   :  { %3764 = vmatmul.bf16.vlgmr.msra.gmra.mxu2 %v10834_v4  ;;  %8162 = vmatmul.msk.bf16.vlgmr.msra.gmra.mxu3 %vm10874_vm12, %v10439_v57  ;;  %v9881_v4 = vld [vmem:[#allocation12 + $0x1f0] sm:$0xf0]  ;;  %v9898_v38 = vld [vmem:[#allocation12 + $0x278] sm:$0xf0] }
 0x364   :  { %3984 = vmatpush.bf16.msrb.mxu2 %v10836_v12  ;;  %3997 = vmatpush.bf16.msrb.mxu3 %v10900_v47  ;;  %v9903_v12 = vld [vmem:[#allocation12 + $0x2a4] sm:$0xf]  ;;  %v10953_v54 = vor.u32 %v9881_v4, %v8226_v0  ;;  %v10993_v0 = vor.u32 %v9869_v56, %v8178_v36  ;;  %v10995_v4 = vor.u32 %v9891_v42, %v8275_v43  ;;  %v8285_v36 = vld [vmem:[#allocation12 + $0x258] sm:$0xf]  ;;  %v8293_v42 = vld [vmem:[#allocation12 + $0x260] sm:$0xf] }
 0x365   :  { %4010 = vmatpush.bf16.msra.mxu0 %v10902_v8  ;;  %4251 = vmatpush.bf16.msrb.mxu1 %v10904_v26  ;;  %v9895_v56 = vld [vmem:[#allocation12 + $0x260] sm:$0xf0]  ;;  %v9896_v43 = vld [vmem:[#allocation12 + $0x268] sm:$0xf0] }
 0x366   :  { %8164 = vmatmul.msk.bf16.vlgmr.msrb.gmra.mxu0 %vm10874_vm12, %v10439_v57  ;;  %8265 = vmatmul.msk.bf16.vlgmr.msra.gmra.mxu1 %vm10915_vm13, %v10439_v57 }
 0x368   :  { %3985 = vmatpush.bf16.msrb.mxu2 %v10843_v53  ;;  %3998 = vmatpush.bf16.msrb.mxu3 %v10919_v37  ;;  %v10955_v53 = vor.u32 %v9903_v12, %v8323_v5  ;;  %v10997_v12 = vor.u32 %v9913_v46, %v8357_v45  ;;  %v10999_v5 = vor.u32 %v9914_v62, %v8365_v51  ;;  %v8273_v45 = vld [vmem:[#allocation12 + $0x240] sm:$0xf]  ;;  %v9892_v46 = vld [vmem:[#allocation12 + $0x248] sm:$0xf0]  ;;  %v8281_v51 = vld [vmem:[#allocation12 + $0x248] sm:$0xf] }
 0x369   :  { %4011 = vmatpush.bf16.msra.mxu0 %v10923_v52  ;;  %4252 = vmatpush.bf16.msrb.mxu1 %v10925_v41  ;;  %v9893_v62 = vld [vmem:[#allocation12 + $0x250] sm:$0xf0] }
 0x36c   :  { %3986 = vmatpush.bf16.msrb.mxu2 %v10849_v25  ;;  %3999 = vmatpush.bf16.msrb.mxu3 %v10939_v10  ;;  %v10959_v25 = vor.u32 %v9876_v28, %v8208_v55  ;;  %v9910_v28 = vld [vmem:[#allocation12 + $0x2d8] sm:$0xf0]  ;;  %v8353_v55 = vld [vmem:[#allocation12 + $0x2d8] sm:$0xf] }
 0x36d   :  { %4012 = vmatpush.bf16.msra.mxu0 %v10943_v50  ;;  %4253 = vmatpush.bf16.msrb.mxu1 %v10945_v1  ;;  %v11017_v61 = vor.u32 %v9911_v34, %v8353_v55  ;;  %v8448_v34 = vld [vmem:[#allocation12 + $0x390] sm:$0xf] }
 0x370   :  { %3987 = vmatpush.bf16.msrb.mxu2 %v10857_v49  ;;  %4000 = vmatpush.bf16.msrb.mxu3 %v10949_v16  ;;  %v10969_v49 = vor.u32 %v9873_v24, %v8196_v33  ;;  %v8333_v24 = vld [vmem:[#allocation12 + $0x2b8] sm:$0xf]  ;;  %v9908_v33 = vld [vmem:[#allocation12 + $0x2c8] sm:$0xf0] }
 0x371   :  { %4013 = vmatpush.bf16.msra.mxu0 %v10953_v54  ;;  %4254 = vmatpush.bf16.msrb.mxu1 %v10955_v53 }
 0x374   :  { %3988 = vmatpush.bf16.msrb.mxu2 %v10863_v2  ;;  %4001 = vmatpush.bf16.msrb.mxu3 %v10959_v25  ;;  %v10979_v2 = vor.u32 %v9870_v21, %v8184_v32  ;;  %v8309_v21 = vld [vmem:[#allocation12 + $0x288] sm:$0xf]  ;;  %v9901_v32 = vld [vmem:[#allocation12 + $0x290] sm:$0xf0] }
 0x375   :  { %4014 = vmatpush.bf16.msra.mxu0 %v10963_v9  ;;  %4255 = vmatpush.bf16.msrb.mxu1 %v10965_v23 }
 0x378   :  { %3989 = vmatpush.bf16.msrb.mxu2 %v10886_v13  ;;  %4002 = vmatpush.bf16.msrb.mxu3 %v10969_v49  ;;  %v10989_v13 = vor.u32 %v9867_v35, %v8172_v48  ;;  %v8305_v35 = vld [vmem:[#allocation12 + $0x278] sm:$0xf]  ;;  %v9899_v48 = vld [vmem:[#allocation12 + $0x280] sm:$0xf0] }
 0x379   :  { %4015 = vmatpush.bf16.msra.mxu0 %v10973_v3  ;;  %4256 = vmatpush.bf16.msrb.mxu1 %v10975_v22 }
 0x37c   :  { %3990 = vmatpush.bf16.msrb.mxu2 %v10892_v14  ;;  %4003 = vmatpush.bf16.msrb.mxu3 %v10979_v2  ;;  %v8345_v14 = vld [vmem:[#allocation12 + $0x2d0] sm:$0xf] }
 0x37d   :  { %4016 = vmatpush.bf16.msra.mxu0 %v10983_v18  ;;  %4257 = vmatpush.bf16.msrb.mxu1 %v10985_v17  ;;  %v11015_v44 = vor.u32 %v9910_v28, %v8345_v14  ;;  %v8460_v14 = vld [vmem:[#allocation12 + $0x3a8] sm:$0xf]  ;;  %v11066_v28 = vor.u32 %v9893_v62, %v8281_v51  ;;  %v9927_v51 = vld [vmem:[#allocation12 + $0x364] sm:$0xf]  ;;  %v8426_v62 = vld [vmem:[#allocation12 + $0x36c] sm:$0xf0] }
 0x380   :  { %3991 = vmatpush.bf16.msrb.mxu2 %v10898_v60  ;;  %4004 = vmatpush.bf16.msrb.mxu3 %v10989_v13  ;;  %v11013_v60 = vpack.c.bf16 %v10826_v58, %v10826_v58 }
 0x381   :  { %4017 = vmatpush.bf16.msra.mxu0 %v10993_v0  ;;  %4258 = vmatpush.bf16.msrb.mxu1 %v10995_v4 }
 0x383   :  { %3992 = vmatmul.bf16.vlgmr.msrb.gmra.mxu2 %v3855_v39  ;;  %4005 = vmatmul.bf16.vlgmr.msrb.gmra.mxu3 %v3855_v39 }
 0x384   :  { %4037 = vmatpush.bf16.msra.mxu2 %v10900_v47  ;;  %4050 = vmatpush.bf16.msra.mxu3 %v10902_v8  ;;  %v9907_v47 = vld [vmem:[#allocation12 + $0x2c0] sm:$0xf0]  ;;  %v8341_v8 = vld [vmem:[#allocation12 + $0x2c0] sm:$0xf] }
 0x385   :  { %4238 = vmatpush.bf16.msrb.mxu0 %v10997_v12  ;;  %4304 = vmatpush.bf16.msra.mxu1 %v10999_v5  ;;  %v11024_v27 = vor.u32 %v9907_v47, %v8333_v24  ;;  %v11026_v58 = vor.u32 %v9908_v33, %v8341_v8  ;;  %v8400_v24 = vld [vmem:[#allocation12 + $0x330] sm:$0xf]  ;;  %v9922_v47 = vld [vmem:[#allocation12 + $0x338] sm:$0xf0]  ;;  %v8388_v8 = vld [vmem:[#allocation12 + $0x318] sm:$0xf] }
 0x386   :  { %4018 = vmatmul.bf16.vlgmr.msra.gmra.mxu0 %v3855_v39  ;;  %4259 = vmatmul.bf16.vlgmr.msrb.gmra.mxu1 %v11013_v60  ;;  %v9919_v33 = vld [vmem:[#allocation12 + $0x320] sm:$0xf0] }
 0x388   :  { %4038 = vmatpush.bf16.msra.mxu2 %v10919_v37  ;;  %4051 = vmatpush.bf16.msra.mxu3 %v10923_v52  ;;  %v11032_v37 = vor.u32 %v9904_v15, %v8321_v11  ;;  %v11034_v52 = vor.u32 %v9905_v40, %v8329_v20  ;;  %v9936_v11 = vld [vmem:[#allocation12 + $0x3ac] sm:$0xf]  ;;  %v8468_v15 = vld [vmem:[#allocation12 + $0x3b0] sm:$0xf]  ;;  %v9938_v20 = vld [vmem:[#allocation12 + $0x3b8] sm:$0xf0] }
 0x389   :  { %4239 = vmatpush.bf16.msrb.mxu0 %v11015_v44  ;;  %4305 = vmatpush.bf16.msra.mxu1 %v11017_v61  ;;  %v9960_v40 = vld [vmem:[#allocation12 + $0x46c] sm:$0xf] }
 0x38c   :  { %4039 = vmatpush.bf16.msra.mxu2 %v10939_v10  ;;  %4052 = vmatpush.bf16.msra.mxu3 %v10943_v50  ;;  %v11040_v10 = vor.u32 %v9901_v32, %v8309_v21  ;;  %v11042_v50 = vor.u32 %v9902_v6, %v8317_v19  ;;  %v11135_v21 = vor.u32 %v9938_v20, %v8468_v15  ;;  %v9933_v19 = vld [vmem:[#allocation12 + $0x394] sm:$0xf]  ;;  %v8450_v6 = vld [vmem:[#allocation12 + $0x39c] sm:$0xf0] }
 0x38d   :  { %4240 = vmatpush.bf16.msrb.mxu0 %v11024_v27  ;;  %4306 = vmatpush.bf16.msra.mxu1 %v11026_v58  ;;  %v9945_v15 = vld [vmem:[#allocation12 + $0x3f4] sm:$0xf] }
 0x390   :  { %4040 = vmatpush.bf16.msra.mxu2 %v10949_v16  ;;  %4053 = vmatpush.bf16.msra.mxu3 %v10953_v54  ;;  %v11048_v16 = vor.u32 %v9898_v38, %v8297_v30  ;;  %v11050_v54 = vor.u32 %v9899_v48, %v8305_v35  ;;  %v9957_v30 = vld [vmem:[#allocation12 + $0x454] sm:$0xf]  ;;  %v11152_v35 = vor.u32 %v9933_v19, %v8450_v6 }
 0x391   :  { %4241 = vmatpush.bf16.msrb.mxu0 %v11032_v37  ;;  %4307 = vmatpush.bf16.msra.mxu1 %v11034_v52 }
 0x394   :  { %4041 = vmatpush.bf16.msra.mxu2 %v10959_v25  ;;  %4054 = vmatpush.bf16.msra.mxu3 %v10963_v9  ;;  %v11056_v25 = vor.u32 %v9895_v56, %v8285_v36  ;;  %v11058_v9 = vor.u32 %v9896_v43, %v8293_v42  ;;  %v8444_v36 = vld [vmem:[#allocation12 + $0x380] sm:$0xf]  ;;  %v9932_v56 = vld [vmem:[#allocation12 + $0x388] sm:$0xf0]  ;;  %v9954_v42 = vld [vmem:[#allocation12 + $0x43c] sm:$0xf] }
 0x395   :  { %4242 = vmatpush.bf16.msrb.mxu0 %v11040_v10  ;;  %4308 = vmatpush.bf16.msra.mxu1 %v11042_v50  ;;  %v8541_v43 = vld [vmem:[#allocation12 + $0x444] sm:$0xf0] }
 0x398   :  { %4042 = vmatpush.bf16.msra.mxu2 %v10969_v49  ;;  %4055 = vmatpush.bf16.msra.mxu3 %v10973_v3  ;;  %v9937_v49 = vld [vmem:[#allocation12 + $0x3b0] sm:$0xf0]  ;;  %v11064_v3 = vor.u32 %v9892_v46, %v8273_v45  ;;  %v11180_v45 = vor.u32 %v9932_v56, %v8444_v36  ;;  %v11182_v46 = vor.u32 %v9954_v42, %v8541_v43 }
 0x399   :  { %4243 = vmatpush.bf16.msrb.mxu0 %v11048_v16  ;;  %4309 = vmatpush.bf16.msra.mxu1 %v11050_v54  ;;  %v11068_v55 = vor.u32 %v9937_v49, %v8460_v14  ;;  %v8432_v14 = vld [vmem:[#allocation12 + $0x368] sm:$0xf]  ;;  %v9929_v49 = vld [vmem:[#allocation12 + $0x370] sm:$0xf0] }
 0x39c   :  { %4043 = vmatpush.bf16.msra.mxu2 %v10979_v2  ;;  %4056 = vmatpush.bf16.msra.mxu3 %v10983_v18  ;;  %v9934_v2 = vld [vmem:[#allocation12 + $0x398] sm:$0xf0] }
 0x39d   :  { %4244 = vmatpush.bf16.msrb.mxu0 %v11056_v25  ;;  %4310 = vmatpush.bf16.msra.mxu1 %v11058_v9  ;;  %v11078_v18 = vor.u32 %v9934_v2, %v8448_v34  ;;  %v9924_v34 = vld [vmem:[#allocation12 + $0x34c] sm:$0xf]  ;;  %v11191_v2 = vor.u32 %v9929_v49, %v8432_v14  ;;  %v8384_v14 = vld [vmem:[#allocation12 + $0x308] sm:$0xf]  ;;  %v9939_v49 = vld [vmem:[#allocation12 + $0x3c4] sm:$0xf] }
 0x3a0   :  { %4044 = vmatpush.bf16.msra.mxu2 %v10989_v13  ;;  %4057 = vmatpush.bf16.msra.mxu3 %v10993_v0  ;;  %v9931_v0 = vld [vmem:[#allocation12 + $0x380] sm:$0xf0] }
 0x3a1   :  { %4245 = vmatpush.bf16.msrb.mxu0 %v11064_v3  ;;  %4311 = vmatpush.bf16.msra.mxu1 %v11066_v28 }
 0x3a3   :  { %8267 = vmatmul.msk.bf16.vlgmr.msra.gmra.mxu2 %vm10915_vm13, %v10439_v57  ;;  %8269 = vmatmul.msk.bf16.vlgmr.msra.gmra.mxu3 %vm10915_vm13, %v10439_v57 }
 0x3a4   :  { %4264 = vmatpush.bf16.msrb.mxu2 %v10999_v5  ;;  %4278 = vmatpush.bf16.msrb.mxu3 %v10997_v12  ;;  %v8424_v12 = vld [vmem:[#allocation12 + $0x360] sm:$0xf]  ;;  %v9928_v5 = vld [vmem:[#allocation12 + $0x368] sm:$0xf0] }
 0x3a5   :  { %4291 = vmatpush.bf16.msra.mxu0 %v10904_v26  ;;  %4532 = vmatpush.bf16.msrb.mxu1 %v11068_v55  ;;  %v8436_v26 = vld [vmem:[#allocation12 + $0x378] sm:$0xf]  ;;  %v11107_v39 = vor.u32 %v9928_v5, %v8424_v12  ;;  %v9926_v12 = vld [vmem:[#allocation12 + $0x358] sm:$0xf0]  ;;  %v9948_v5 = vld [vmem:[#allocation12 + $0x40c] sm:$0xf] }
 0x3a6   :  { %4246 = vmatmul.bf16.vlgmr.msrb.gmra.mxu0 %v11013_v60  ;;  %8372 = vmatmul.msk.bf16.vlgmr.msra.gmra.mxu1 %vm11089_vm14, %v10439_v57  ;;  %v11101_v29 = vor.u32 %v9931_v0, %v8436_v26  ;;  %v8414_v0 = vld [vmem:[#allocation12 + $0x354] sm:$0xf0] }
 0x3a8   :  { %4265 = vmatpush.bf16.msrb.mxu2 %v11017_v61  ;;  %4279 = vmatpush.bf16.msrb.mxu3 %v11015_v44  ;;  %v8412_v61 = vld [vmem:[#allocation12 + $0x348] sm:$0xf]  ;;  %v9925_v44 = vld [vmem:[#allocation12 + $0x350] sm:$0xf0] }
 0x3a9   :  { %4292 = vmatpush.bf16.msra.mxu0 %v10925_v41  ;;  %4533 = vmatpush.bf16.msrb.mxu1 %v11078_v18  ;;  %v11113_v41 = vor.u32 %v9925_v44, %v8412_v61  ;;  %v8517_v61 = vld [vmem:[#allocation12 + $0x414] sm:$0xf0]  ;;  %v11201_v44 = vor.u32 %v9924_v34, %v8414_v0  ;;  %v8571_v0 = vld [vmem:[#allocation12 + $0x470] sm:$0xf] }
 0x3ac   :  { %4266 = vmatpush.bf16.msrb.mxu2 %v11026_v58  ;;  %4280 = vmatpush.bf16.msrb.mxu3 %v11024_v27  ;;  %v8376_v27 = vld [vmem:[#allocation12 + $0x300] sm:$0xf]  ;;  %v9916_v58 = vld [vmem:[#allocation12 + $0x308] sm:$0xf0] }
 0x3ad   :  { %4293 = vmatpush.bf16.msra.mxu0 %v10945_v1  ;;  %4534 = vmatpush.bf16.msrb.mxu1 %v11101_v29  ;;  %v11119_v1 = vor.u32 %v9922_v47, %v8400_v24 }
 0x3b0   :  { %4267 = vmatpush.bf16.msrb.mxu2 %v11034_v52  ;;  %4281 = vmatpush.bf16.msrb.mxu3 %v11032_v37  ;;  %v8565_v37 = vld [vmem:[#allocation12 + $0x474] sm:$0xf0] }
 0x3b1   :  { %4294 = vmatpush.bf16.msra.mxu0 %v10955_v53  ;;  %4535 = vmatpush.bf16.msrb.mxu1 %v11107_v39  ;;  %v11125_v53 = vor.u32 %v9919_v33, %v8388_v8  ;;  %v11137_v32 = vor.u32 %v9960_v40, %v8565_v37  ;;  %v11205_v8 = vor.u32 %v9926_v12, %v8420_v31  ;;  %v9962_v31 = vld [vmem:[#allocation12 + $0x478] sm:$0xf0] }
 0x3b2   :  { %v11207_v33 = vor.u32 %v9948_v5, %v8517_v61 }
 0x3b4   :  { %4268 = vmatpush.bf16.msrb.mxu2 %v11042_v50  ;;  %4282 = vmatpush.bf16.msrb.mxu3 %v11040_v10  ;;  %v8456_v10 = vld [vmem:[#allocation12 + $0x398] sm:$0xf]  ;;  %v9935_v50 = vld [vmem:[#allocation12 + $0x3a0] sm:$0xf0] }
 0x3b5   :  { %4295 = vmatpush.bf16.msra.mxu0 %v10965_v23  ;;  %4536 = vmatpush.bf16.msrb.mxu1 %v11113_v41  ;;  %v8462_v23 = vld [vmem:[#allocation12 + $0x3b4] sm:$0xf0] }
 0x3b6   :  { %v11133_v52 = vor.u32 %v9936_v11, %v8462_v23  ;;  %v8408_v11 = vld [vmem:[#allocation12 + $0x338] sm:$0xf]  ;;  %v9923_v23 = vld [vmem:[#allocation12 + $0x340] sm:$0xf0] }
 0x3b7   :  { %v11215_v40 = vor.u32 %v9923_v23, %v8408_v11  ;;  %v8551_v11 = vld [vmem:[#allocation12 + $0x450] sm:$0xf] }
 0x3b8   :  { %4269 = vmatpush.bf16.msrb.mxu2 %v11050_v54  ;;  %4283 = vmatpush.bf16.msrb.mxu3 %v11048_v16  ;;  %v9930_v16 = vld [vmem:[#allocation12 + $0x37c] sm:$0xf]  ;;  %v8438_v54 = vld [vmem:[#allocation12 + $0x384] sm:$0xf0] }
 0x3b9   :  { %4296 = vmatpush.bf16.msra.mxu0 %v10975_v22  ;;  %4537 = vmatpush.bf16.msrb.mxu1 %v11119_v1  ;;  %v11131_v22 = vor.u32 %v9916_v58, %v8376_v27  ;;  %v9921_v27 = vld [vmem:[#allocation12 + $0x334] sm:$0xf]  ;;  %v8402_v58 = vld [vmem:[#allocation12 + $0x33c] sm:$0xf0] }
 0x3ba   :  { %v11211_v20 = vor.u32 %v9921_v27, %v8402_v58 }
 0x3bc   :  { %4270 = vmatpush.bf16.msrb.mxu2 %v11058_v9  ;;  %4284 = vmatpush.bf16.msrb.mxu3 %v11056_v25 }
 0x3bd   :  { %4297 = vmatpush.bf16.msra.mxu0 %v10985_v17  ;;  %4538 = vmatpush.bf16.msrb.mxu1 %v11125_v53  ;;  %v8553_v17 = vld [vmem:[#allocation12 + $0x45c] sm:$0xf0] }
 0x3be   :  { %v11158_v48 = vor.u32 %v9957_v30, %v8553_v17  ;;  %v8396_v30 = vld [vmem:[#allocation12 + $0x320] sm:$0xf]  ;;  %v9920_v17 = vld [vmem:[#allocation12 + $0x328] sm:$0xf0] }
 0x3bf   :  { %v11229_v42 = vor.u32 %v9920_v17, %v8396_v30  ;;  %v9956_v30 = vld [vmem:[#allocation12 + $0x448] sm:$0xf0] }
 0x3c0   :  { %4271 = vmatpush.bf16.msrb.mxu2 %v11066_v28  ;;  %4285 = vmatpush.bf16.msrb.mxu3 %v11064_v3  ;;  %v11174_v25 = vpop.f32.mrf.mxu0  ;;  %v11176_v9 = vpop.f32.mrf.mxu1  ;;  %v9951_v3 = vld [vmem:[#allocation12 + $0x424] sm:$0xf]  ;;  %v8529_v28 = vld [vmem:[#allocation12 + $0x42c] sm:$0xf0] }
 0x3c1   :  { %4298 = vmatpush.bf16.msra.mxu0 %v10995_v4  ;;  %4539 = vmatpush.bf16.msrb.mxu1 %v11131_v22  ;;  %v11156_v4 = vor.u32 %v9935_v50, %v8456_v10  ;;  %v9918_v10 = vld [vmem:[#allocation12 + $0x31c] sm:$0xf]  ;;  %v8390_v50 = vld [vmem:[#allocation12 + $0x324] sm:$0xf0] }
 0x3c3   :  { %4272 = vmatmul.bf16.vlgmr.msrb.gmra.mxu2 %v11013_v60  ;;  %8368 = vmatmul.msk.bf16.vlgmr.msrb.gmra.mxu3 %vm11089_vm14, %v10439_v57  ;;  %v11172_v60 = vor.u32 %v9930_v16, %v8438_v54  ;;  %v9942_v16 = vld [vmem:[#allocation12 + $0x3dc] sm:$0xf]  ;;  %v11221_v54 = vor.u32 %v9918_v10, %v8390_v50  ;;  %v8539_v50 = vld [vmem:[#allocation12 + $0x438] sm:$0xf] }
 0x3c4   :  { %4492 = vmatpush.bf16.msra.mxu2 %v11068_v55  ;;  %4505 = vmatpush.bf16.msra.mxu3 %v11133_v52  ;;  %v11187_v55 = vor.u32 %v9927_v51, %v8426_v62  ;;  %v9915_v51 = vld [vmem:[#allocation12 + $0x304] sm:$0xf]  ;;  %v8378_v62 = vld [vmem:[#allocation12 + $0x30c] sm:$0xf0] }
 0x3c5   :  { %4518 = vmatpush.bf16.msrb.mxu0 %v11135_v21  ;;  %4759 = vmatpush.bf16.msra.mxu1 %v11137_v32  ;;  %v3488_v13 = vpop.f32.mrf.mxu2  ;;  %v11195_v26 = vpop.f32.mrf.mxu3  ;;  %v11235_v34 = vor.u32 %v9915_v51, %v8378_v62  ;;  %v9952_v51 = vld [vmem:[#allocation12 + $0x428] sm:$0xf0]  ;;  %v8535_v62 = vld [vmem:[#allocation12 + $0x428] sm:$0xf] }
 0x3c6   :  { %8370 = vmatmul.msk.bf16.vlgmr.msra.gmra.mxu0 %vm11089_vm14, %v10439_v57  ;;  %8471 = vmatmul.msk.bf16.vlgmr.msrb.gmra.mxu1 %vm11148_vm15, %v10439_v57 }
 0x3c8   :  { %4493 = vmatpush.bf16.msra.mxu2 %v11078_v18  ;;  %4506 = vmatpush.bf16.msra.mxu3 %v11152_v35  ;;  %v11193_v18 = vor.u32 %v9951_v3, %v8529_v28  ;;  %v3516_v24 = vpop.f32.mrf.mxu0  ;;  %v3754_v47 = vpop.f32.mrf.mxu1  ;;  %v8481_v3 = vld [vmem:[#allocation12 + $0x3cc] sm:$0xf0]  ;;  %v8563_v28 = vld [vmem:[#allocation12 + $0x468] sm:$0xf] }
 0x3c9   :  { %4519 = vmatpush.bf16.msrb.mxu0 %v11156_v4  ;;  %4760 = vmatpush.bf16.msra.mxu1 %v11158_v48  ;;  %v11241_v5 = vor.u32 %v9939_v49, %v8481_v3  ;;  %v11245_v47 = vor.u32 %v9962_v31, %v8571_v0  ;;  %v8515_v3 = vld [vmem:[#allocation12 + $0x408] sm:$0xf]  ;;  %v9950_v0 = vld [vmem:[#allocation12 + $0x418] sm:$0xf0] }
 0x3cc   :  { %4494 = vmatpush.bf16.msra.mxu2 %v11101_v29  ;;  %4507 = vmatpush.bf16.msra.mxu3 %v11172_v60  ;;  %v11197_v29 = vsel %vm3558_vm0, %v3488_v13, -inf  ;;  %v9961_v13 = vld [vmem:[#allocation12 + $0x470] sm:$0xf0] }
 0x3cd   :  { %4520 = vmatpush.bf16.msrb.mxu0 %v11180_v45  ;;  %4761 = vmatpush.bf16.msra.mxu1 %v11182_v46  ;;  %v3490_v19 = vpop.f32.mrf.mxu2  ;;  %v3503_v6 = vpop.f32.mrf.mxu3 }
 0x3ce   :  { %v8559_v19 = vld [vmem:[#allocation12 + $0x458] sm:$0xf]  ;;  %v9959_v6 = vld [vmem:[#allocation12 + $0x460] sm:$0xf0] }
 0x3cf   :  { %v11269_v10 = vor.u32 %v9959_v6, %v8559_v19 }
 0x3d0   :  { %4495 = vmatpush.bf16.msra.mxu2 %v11107_v39  ;;  %4508 = vmatpush.bf16.msra.mxu3 %v11187_v55  ;;  %v8505_v39 = vld [vmem:[#allocation12 + $0x3fc] sm:$0xf0]  ;;  %v11223_v36 = vpop.f32.mrf.mxu0  ;;  %v11225_v56 = vpop.f32.mrf.mxu1 }
 0x3d1   :  { %4521 = vmatpush.bf16.msrb.mxu0 %v11191_v2  ;;  %4762 = vmatpush.bf16.msra.mxu1 %v11193_v18  ;;  %v11217_v37 = vor.u32 %v9945_v15, %v8505_v39  ;;  %v9958_v39 = vld [vmem:[#allocation12 + $0x458] sm:$0xf0]  ;;  %vm3811_vm4 = vcmp.gt.f32.partialorder %v11225_v56, 0.5 }
 0x3d4   :  { %4496 = vmatpush.bf16.msra.mxu2 %v11113_v41  ;;  %4509 = vmatpush.bf16.msra.mxu3 %v11201_v44  ;;  %v8493_v41 = vld [vmem:[#allocation12 + $0x3e4] sm:$0xf0] }
 0x3d5   :  { %4522 = vmatpush.bf16.msrb.mxu0 %v11205_v8  ;;  %4763 = vmatpush.bf16.msra.mxu1 %v11207_v33  ;;  %v11231_v43 = vor.u32 %v9942_v16, %v8493_v41  ;;  %v3541_v61 = vpop.f32.mrf.mxu2  ;;  %v3554_v24 = vpop.f32.mrf.mxu3  ;;  %v8527_v41 = vld [vmem:[#allocation12 + $0x420] sm:$0xf] }
 0x3d6   :  { %vm3559_vm1 = vcmp.gt.f32.partialorder %v3541_v61, 0.5  ;;  %vm3560_vm2 = vcmp.gt.f32.partialorder %v3554_v24, 0.5 }
 0x3d7   :  { %v11248_v27 = vsel %vm3559_vm1, %v11195_v26, -inf  ;;  %v11251_v58 = vsel %vm3560_vm2, %v11174_v25, -inf  ;;  %v4363_v25 = vpack.c.bf16 %v10829_v59, %v10829_v59  ;;  %v11267_v26 = vor.u32 %v9958_v39, %v8551_v11  ;;  %v8503_v11 = vld [vmem:[#allocation12 + $0x3f0] sm:$0xf]  ;;  %v9947_v39 = vld [vmem:[#allocation12 + $0x400] sm:$0xf0] }
 0x3d8   :  { %4497 = vmatpush.bf16.msra.mxu2 %v11119_v1  ;;  %4510 = vmatpush.bf16.msra.mxu3 %v11211_v20  ;;  %v9917_v1 = vld [vmem:[#allocation12 + $0x310] sm:$0xf0]  ;;  %v3741_v23 = vpop.f32.mrf.mxu0  ;;  %v3807_v15 = vpop.f32.mrf.mxu1 }
 0x3d9   :  { %4523 = vmatpush.bf16.msrb.mxu0 %v11215_v40  ;;  %4764 = vmatpush.bf16.msra.mxu1 %v11217_v37  ;;  %v11239_v12 = vor.u32 %v9917_v1, %v8384_v14  ;;  %v9953_v14 = vld [vmem:[#allocation12 + $0x430] sm:$0xf0]  ;;  %v9946_v23 = vld [vmem:[#allocation12 + $0x3f8] sm:$0xf0] }
 0x3da   :  { %v11288_v49 = vor.u32 %v9953_v14, %v8535_v62  ;;  %v8487_v62 = vld [vmem:[#allocation12 + $0x3c8] sm:$0xf]  ;;  %v9941_v14 = vld [vmem:[#allocation12 + $0x3d0] sm:$0xf0] }
 0x3dc   :  { %4498 = vmatpush.bf16.msra.mxu2 %v11125_v53  ;;  %4511 = vmatpush.bf16.msra.mxu3 %v11221_v54  ;;  %v11243_v53 = vor.u32 %v9961_v13, %v8563_v28  ;;  %v9949_v28 = vld [vmem:[#allocation12 + $0x410] sm:$0xf0] }
 0x3dd   :  { %4524 = vmatpush.bf16.msrb.mxu0 %v11229_v42  ;;  %4765 = vmatpush.bf16.msra.mxu1 %v11231_v43  ;;  %v3543_v59 = vpop.f32.mrf.mxu2  ;;  %v3556_v17 = vpop.f32.mrf.mxu3  ;;  %v11300_v31 = vor.u32 %v9949_v28, %v8515_v3  ;;  %v9061_v3 = vld [vmem:[#allocation13 + $0x3c0] sm:$0xf] }
 0x3de   :  { %v8499_v59 = vld [vmem:[#allocation12 + $0x3e0] sm:$0xf]  ;;  %v9944_v17 = vld [vmem:[#allocation12 + $0x3e8] sm:$0xf0] }
 0x3df   :  { %v10087_v28 = vld [vmem:[#allocation13 + $0x3dc] sm:$0xf0] }
 0x3e0   :  { %4499 = vmatpush.bf16.msra.mxu2 %v11131_v22  ;;  %4512 = vmatpush.bf16.msra.mxu3 %v11235_v34  ;;  %v11265_v22 = vpack.c.bf16 %v10832_v63, %v10832_v63 }
 0x3e1   :  { %4525 = vmatpush.bf16.msrb.mxu0 %v11239_v12  ;;  %4766 = vmatpush.bf16.msra.mxu1 %v11241_v5 }
 0x3e3   :  { %4500 = vmatmul.bf16.vlgmr.msra.gmra.mxu2 %v4363_v25  ;;  %4513 = vmatmul.bf16.vlgmr.msra.gmra.mxu3 %v4363_v25  ;;  %v3792_v1 = vpop.f32.mrf.mxu0 }
 0x3e4   :  { %4545 = vmatpush.bf16.msrb.mxu2 %v11133_v52  ;;  %4558 = vmatpush.bf16.msrb.mxu3 %v11135_v21  ;;  %v9955_v52 = vld [vmem:[#allocation12 + $0x440] sm:$0xf0]  ;;  %v8547_v21 = vld [vmem:[#allocation12 + $0x440] sm:$0xf]  ;;  %vm3810_vm3 = vcmp.gt.f32.partialorder %v3792_v1, 0.5 }
 0x3e5   :  { %4746 = vmatpush.bf16.msra.mxu0 %v11243_v53  ;;  %4812 = vmatpush.bf16.msrb.mxu1 %v11245_v47  ;;  %v11276_v63 = vor.u32 %v9955_v52, %v8539_v50  ;;  %v11278_v16 = vor.u32 %v9956_v30, %v8547_v21  ;;  %v11291_v13 = vsel %vm3810_vm3, %v11176_v9, -inf  ;;  %v8504_v50 = vor.u32 %v9946_v23, %v8503_v11  ;;  %v8491_v21 = vld [vmem:[#allocation12 + $0x3d8] sm:$0xf]  ;;  %v9943_v30 = vld [vmem:[#allocation12 + $0x3e0] sm:$0xf0] }
 0x3e6   :  { %4526 = vmatmul.bf16.vlgmr.msrb.gmra.mxu0 %v4363_v25  ;;  %4767 = vmatmul.bf16.vlgmr.msra.gmra.mxu1 %v11265_v22  ;;  %v3765_v9 = vpop.f32.mrf.mxu2  ;;  %v3779_v24 = vpop.f32.mrf.mxu3  ;;  %v9317_v11 = vld [vmem:[#allocation13 + $0x5c0] sm:$0xf] }
 0x3e7   :  { %v11304_v15 = vsel %vm3811_vm4, %v3765_v9, -inf  ;;  %vm3809_vm5 = vcmp.gt.f32.partialorder %v3779_v24, 0.5  ;;  %v10151_v23 = vld [vmem:[#allocation13 + $0x5dc] sm:$0xf0] }
 0x3e8   :  { %4546 = vmatpush.bf16.msrb.mxu2 %v11152_v35  ;;  %4559 = vmatpush.bf16.msrb.mxu3 %v11156_v4  ;;  %v11282_v35 = vpop.f32.mrf.mxu1  ;;  %v11286_v4 = vor.u32 %v9952_v51, %v8527_v41  ;;  %v3812_v56 = vsel %vm3809_vm5, %v11223_v36, -inf  ;;  %v8479_v41 = vld [vmem:[#allocation12 + $0x3c0] sm:$0xf]  ;;  %v9940_v51 = vld [vmem:[#allocation12 + $0x3c8] sm:$0xf0] }
 0x3e9   :  { %4747 = vmatpush.bf16.msra.mxu0 %v11267_v26  ;;  %4813 = vmatpush.bf16.msrb.mxu1 %v11269_v10  ;;  %v3815_v19 = vmax.f32 %v11197_v29, %v3812_v56  ;;  %v8500_v29 = vor.u32 %v9944_v17, %v8499_v59  ;;  %v8480_v1 = vor.u32 %v9940_v51, %v8479_v41  ;;  %vm4063_vm6 = vcmp.gt.f32.partialorder %v11282_v35, 0.5  ;;  %v8805_v56 = vld [vmem:[#allocation13 + $0x1c0] sm:$0xf] }
 0x3ea   :  { %v9285_v59 = vld [vmem:[#allocation13 + $0x580] sm:$0xf] }
 0x3eb   :  { %v3794_v6 = vpop.f32.mrf.mxu0 }
 0x3ec   :  { %4547 = vmatpush.bf16.msrb.mxu2 %v11172_v60  ;;  %4560 = vmatpush.bf16.msrb.mxu3 %v11180_v45  ;;  %v8523_v60 = vld [vmem:[#allocation12 + $0x410] sm:$0xf]  ;;  %v3816_v45 = vmax.f32 %v11248_v27, %v11291_v13  ;;  %v9062_v13 = vor.u32 %v10087_v28, %v9061_v3  ;;  %v10019_v6 = vld [vmem:[#allocation13 + $0x1c4] sm:$0xf] }
 0x3ed   :  { %4748 = vmatpush.bf16.msra.mxu0 %v11276_v63  ;;  %4814 = vmatpush.bf16.msrb.mxu1 %v11278_v16  ;;  %v11302_v61 = vor.u32 %v9950_v0, %v8523_v60 }
 0x3ee   :  { %v3781_v36 = vpop.f32.mrf.mxu3 }
 0x3f0   :  { %4548 = vmatpush.bf16.msrb.mxu2 %v11187_v55  ;;  %4561 = vmatpush.bf16.msrb.mxu3 %v11191_v2  ;;  %v8511_v55 = vld [vmem:[#allocation12 + $0x3f8] sm:$0xf]  ;;  %v3817_v2 = vmax.f32 %v11251_v58, %v11304_v15  ;;  %v4035_v25 = vpop.f32.mrf.mxu1 }
 0x3f1   :  { %4749 = vmatpush.bf16.msra.mxu0 %v11286_v4  ;;  %4815 = vmatpush.bf16.msrb.mxu1 %v11288_v49  ;;  %v8512_v52 = vor.u32 %v9947_v39, %v8511_v55 }
 0x3f4   :  { %4549 = vmatpush.bf16.msrb.mxu2 %v11201_v44  ;;  %4562 = vmatpush.bf16.msrb.mxu3 %v11205_v8  ;;  %v8492_v44 = vor.u32 %v9943_v30, %v8491_v21  ;;  %v3767_v8 = vpop.f32.mrf.mxu2  ;;  %v8997_v21 = vld [vmem:[#allocation13 + $0x340] sm:$0xf] }
 0x3f5   :  { %4750 = vmatpush.bf16.msra.mxu0 %v11300_v31  ;;  %4816 = vmatpush.bf16.msrb.mxu1 %v11302_v61  ;;  %v10071_v30 = vld [vmem:[#allocation13 + $0x35c] sm:$0xf0] }
 0x3f6   :  { %v8998_v17 = vor.u32 %v10071_v30, %v8997_v21  ;;  %v10015_v8 = vld [vmem:[#allocation13 + $0x19c] sm:$0xf0] }
 0x3f7   :  { %v10111_v21 = vld [vmem:[#allocation13 + $0x49c] sm:$0xf0] }
 0x3f8   :  { %4550 = vmatpush.bf16.msrb.mxu2 %v11211_v20  ;;  %4563 = vmatpush.bf16.msrb.mxu3 %v11215_v40  ;;  %v8488_v20 = vor.u32 %v9941_v14, %v8487_v62  ;;  %v10011_v14 = vld [vmem:[#allocation13 + $0x184] sm:$0xf] }
 0x3f9   :  { %4751 = vmatpush.bf16.msra.mxu0 %v8504_v50  ;;  %4817 = vmatpush.bf16.msrb.mxu1 %v8512_v52 }
 0x3fc   :  { %4551 = vmatpush.bf16.msrb.mxu2 %v11221_v54  ;;  %4564 = vmatpush.bf16.msrb.mxu3 %v11229_v42 }
 0x3fd   :  { %4752 = vmatpush.bf16.msra.mxu0 %v8492_v44  ;;  %4818 = vmatpush.bf16.msrb.mxu1 %v8500_v29 }
 0x400   :  { %4552 = vmatpush.bf16.msrb.mxu2 %v11235_v34  ;;  %4565 = vmatpush.bf16.msrb.mxu3 %v11239_v12 }
 0x401   :  { %4753 = vmatpush.bf16.msra.mxu0 %v8480_v1  ;;  %4819 = vmatpush.bf16.msrb.mxu1 %v8488_v20 }
 0x403   :  { %8473 = vmatmul.msk.bf16.vlgmr.msrb.gmra.mxu2 %vm11148_vm15, %v10439_v57  ;;  %8475 = vmatmul.msk.bf16.vlgmr.msrb.gmra.mxu3 %vm11148_vm15, %v10439_v57  ;;  %v4019_v7 = vpop.f32.mrf.mxu0 }
 0x404   :  { %4772 = vmatpush.bf16.msra.mxu2 %v11245_v47  ;;  %4786 = vmatpush.bf16.msra.mxu3 %v11243_v53 }
 0x405   :  { %4799 = vmatpush.bf16.msrb.mxu0 %v11137_v32  ;;  %8578 = vmatmul.msk.bf16.vlgmr.msrb.gmra.mxu1 %vm11333_vm7, %v10439_v57  ;;  %v4260_v32 = vpop.f32.mrf.mxu1 }
 0x406   :  { %4754 = vmatmul.bf16.vlgmr.msra.gmra.mxu0 %v11265_v22  ;;  %v3993_v38 = vpop.f32.mrf.mxu2  ;;  %v4006_v54 = vpop.f32.mrf.mxu3 }
 0x407   :  { %v4066_v42 = vsel %vm4063_vm6, %v3993_v38, -inf  ;;  %v10135_v38 = vld [vmem:[#allocation13 + $0x55c] sm:$0xf0] }
 0x408   :  { %4773 = vmatpush.bf16.msra.mxu2 %v11269_v10  ;;  %4787 = vmatpush.bf16.msra.mxu3 %v11267_v26 }
 0x409   :  { %4800 = vmatpush.bf16.msrb.mxu0 %v11158_v48  ;;  %v11350_v48 = vmax.f32 %v3815_v19, %v4066_v42  ;;  %v10023_v19 = vld [vmem:[#allocation13 + $0x1dc] sm:$0xf0] }
 0x40a   :  { %v8806_v25 = vor.u32 %v10023_v19, %v8805_v56  ;;  %v8679_v56 = vld [vmem:[#allocation13 + $0xe0] sm:$0xf0] }
 0x40b   :  { %v4021_v34 = vpop.f32.mrf.mxu0 }
 0x40c   :  { %4774 = vmatpush.bf16.msra.mxu2 %v11278_v16  ;;  %4788 = vmatpush.bf16.msra.mxu3 %v11276_v63  ;;  %v8741_v34 = vld [vmem:[#allocation13 + $0x140] sm:$0xf] }
 0x40d   :  { %4801 = vmatpush.bf16.msrb.mxu0 %v11182_v46  ;;  %v4262_v12 = vpop.f32.mrf.mxu1 }
 0x40e   :  { %v3995_v46 = vpop.f32.mrf.mxu2  ;;  %v4008_v53 = vpop.f32.mrf.mxu3  ;;  %v10007_v12 = vld [vmem:[#allocation13 + $0x15c] sm:$0xf0] }
 0x40f   :  { %v10003_v46 = vld [vmem:[#allocation13 + $0x144] sm:$0xf]  ;;  %v8742_v53 = vor.u32 %v10007_v12, %v8741_v34 }
 0x410   :  { %4775 = vmatpush.bf16.msra.mxu2 %v11288_v49  ;;  %4789 = vmatpush.bf16.msra.mxu3 %v11286_v4 }
 0x411   :  { %4802 = vmatpush.bf16.msrb.mxu0 %v11193_v18 }
 0x414   :  { %4776 = vmatpush.bf16.msra.mxu2 %v11302_v61  ;;  %4790 = vmatpush.bf16.msra.mxu3 %v11300_v31  ;;  %v10079_v31 = vld [vmem:[#allocation13 + $0x39c] sm:$0xf0] }
 0x415   :  { %4803 = vmatpush.bf16.msrb.mxu0 %v11207_v33 }
 0x418   :  { %4777 = vmatpush.bf16.msra.mxu2 %v8512_v52  ;;  %4791 = vmatpush.bf16.msra.mxu3 %v8504_v50  ;;  %v8807_v50 = vld [vmem:[#allocation13 + $0x1e0] sm:$0xf0] }
 0x419   :  { %4804 = vmatpush.bf16.msrb.mxu0 %v11217_v37  ;;  %v8810_v52 = vor.u32 %v10019_v6, %v8807_v50  ;;  %v8869_v6 = vld [vmem:[#allocation13 + $0x240] sm:$0xf] }
 0x41b   :  { %6052 = vmatpush.bf16.msra.mxu1 %v8810_v52  ;;  %v9157_v52 = vld [vmem:[#allocation13 + $0x480] sm:$0xf] }
 0x41c   :  { %4778 = vmatpush.bf16.msra.mxu2 %v8500_v29  ;;  %4792 = vmatpush.bf16.msra.mxu3 %v8492_v44  ;;  %v10143_v44 = vld [vmem:[#allocation13 + $0x59c] sm:$0xf0]  ;;  %v9158_v30 = vor.u32 %v10111_v21, %v9157_v52  ;;  %v10075_v52 = vld [vmem:[#allocation13 + $0x384] sm:$0xf] }
 0x41d   :  { %4805 = vmatpush.bf16.msrb.mxu0 %v11231_v43  ;;  %v8773_v29 = vld [vmem:[#allocation13 + $0x180] sm:$0xf]  ;;  %v9286_v51 = vor.u32 %v10143_v44, %v9285_v59  ;;  %v9979_v44 = vld [vmem:[#allocation13 + $0x84] sm:$0xf] }
 0x41e   :  { %v8774_v62 = vor.u32 %v10015_v8, %v8773_v29  ;;  %v8645_v59 = vld [vmem:[#allocation13 + $0x80] sm:$0xf]  ;;  %v9031_v21 = vld [vmem:[#allocation13 + $0x3a0] sm:$0xf0] }
 0x420   :  { %4779 = vmatpush.bf16.msra.mxu2 %v8488_v20  ;;  %4793 = vmatpush.bf16.msra.mxu3 %v8480_v1  ;;  %v8775_v1 = vld [vmem:[#allocation13 + $0x1a0] sm:$0xf0]  ;;  %v8965_v20 = vld [vmem:[#allocation13 + $0x300] sm:$0xf] }
 0x421   :  { %4806 = vmatpush.bf16.msrb.mxu0 %v11241_v5  ;;  %v8778_v40 = vor.u32 %v10011_v14, %v8775_v1  ;;  %v10031_v14 = vld [vmem:[#allocation13 + $0x21c] sm:$0xf0] }
 0x423   :  { %4780 = vmatmul.bf16.vlgmr.msra.gmra.mxu2 %v11265_v22  ;;  %8574 = vmatmul.msk.bf16.vlgmr.msra.gmra.mxu3 %vm11333_vm7, %v10439_v57  ;;  %v4247_v18 = vpop.f32.mrf.mxu0  ;;  %v4313_v33 = vpop.f32.mrf.mxu1 }
 0x424   :  { %8576 = vmatmul.msk.bf16.vlgmr.msrb.gmra.mxu0 %vm11333_vm7, %v10439_v57  ;;  %vm4319_vm11 = vcmp.gt.f32.partialorder %v4313_v33, 0.5  ;;  %6026 = vmatpush.bf16.msrb.mxu3 %v9062_v13  ;;  %v8933_v33 = vld [vmem:[#allocation13 + $0x2c0] sm:$0xf] }
 0x425   :  { %6013 = vmatpush.bf16.msrb.mxu2 %v8806_v25  ;;  %6053 = vmatpush.bf16.msra.mxu1 %v8778_v40  ;;  %v8901_v13 = vld [vmem:[#allocation13 + $0x280] sm:$0xf] }
 0x426   :  { %v4046_v37 = vpop.f32.mrf.mxu2  ;;  %v4059_v47 = vpop.f32.mrf.mxu3  ;;  %v10039_v25 = vld [vmem:[#allocation13 + $0x25c] sm:$0xf0] }
 0x427   :  { %vm4064_vm8 = vcmp.gt.f32.partialorder %v4046_v37, 0.5  ;;  %vm4065_vm9 = vcmp.gt.f32.partialorder %v4059_v47, 0.5  ;;  %v10055_v37 = vld [vmem:[#allocation13 + $0x2dc] sm:$0xf0]  ;;  %v8870_v50 = vor.u32 %v10039_v25, %v8869_v6  ;;  %v8781_v6 = vld [vmem:[#allocation13 + $0x188] sm:$0xf] }
 0x428   :  { %v4067_v43 = vsel %vm4064_vm8, %v4006_v54, -inf  ;;  %v4068_v26 = vsel %vm4065_vm9, %v4019_v7, -inf  ;;  %v10063_v7 = vld [vmem:[#allocation13 + $0x31c] sm:$0xf0]  ;;  %vm6339_vm9 = vcmask 1041408  }
 0x429   :  { %v11368_v5 = vmax.f32 %v3816_v45, %v4067_v43  ;;  %v11373_v22 = vmax.f32 %v3817_v2, %v4068_v26  ;;  %v9029_v45 = vld [vmem:[#allocation13 + $0x380] sm:$0xf]  ;;  %v9318_v2 = vor.u32 %v10151_v23, %v9317_v11  ;;  %6014 = vmatpush.bf16.msrb.mxu2 %v8774_v62  ;;  %v8966_v54 = vor.u32 %v10063_v7, %v8965_v20  ;;  %v10147_v7 = vld [vmem:[#allocation13 + $0x5c4] sm:$0xf] }
 0x42a   :  { %v9030_v24 = vor.u32 %v10079_v31, %v9029_v45  ;;  %v9221_v43 = vld [vmem:[#allocation13 + $0x500] sm:$0xf] }
 0x42b   :  { %v4249_v10 = vpop.f32.mrf.mxu0  ;;  %v4315_v57 = vpop.f32.mrf.mxu1  ;;  %6039 = vmatpush.bf16.msra.mxu0 %v9318_v2  ;;  %v10127_v26 = vld [vmem:[#allocation13 + $0x51c] sm:$0xf0] }
 0x42c   :  { %6027 = vmatpush.bf16.msrb.mxu3 %v9030_v24  ;;  %v8709_v10 = vld [vmem:[#allocation13 + $0x100] sm:$0xf]  ;;  %v8934_v57 = vor.u32 %v10055_v37, %v8933_v33  ;;  %v9222_v3 = vor.u32 %v10127_v26, %v9221_v43 }
 0x42d   :  { %6015 = vmatpush.bf16.msrb.mxu2 %v8742_v53  ;;  %v9189_v45 = vld [vmem:[#allocation13 + $0x4c0] sm:$0xf]  ;;  %v8615_v53 = vld [vmem:[#allocation13 + $0x60] sm:$0xf0] }
 0x42e   :  { %v4048_v63 = vpop.f32.mrf.mxu2  ;;  %v4061_v16 = vpop.f32.mrf.mxu3  ;;  %v10119_v31 = vld [vmem:[#allocation13 + $0x4dc] sm:$0xf0] }
 0x42f   :  { %6040 = vmatpush.bf16.msra.mxu0 %v9286_v51  ;;  %v9999_v63 = vld [vmem:[#allocation13 + $0x11c] sm:$0xf0]  ;;  %v9995_v16 = vld [vmem:[#allocation13 + $0x104] sm:$0xf]  ;;  %v9190_v11 = vor.u32 %v10119_v31, %v9189_v45 }
 0x430   :  { %6028 = vmatpush.bf16.msrb.mxu3 %v8998_v17  ;;  %v8710_v28 = vor.u32 %v9999_v63, %v8709_v10  ;;  %v8677_v23 = vld [vmem:[#allocation13 + $0xc0] sm:$0xf]  ;;  %v10139_v63 = vld [vmem:[#allocation13 + $0x584] sm:$0xf] }
 0x431   :  { %v9983_v17 = vld [vmem:[#allocation13 + $0x9c] sm:$0xf0] }
 0x432   :  { %6016 = vmatpush.bf16.msrb.mxu2 %v8710_v28  ;;  %v8837_v62 = vld [vmem:[#allocation13 + $0x200] sm:$0xf] }
 0x433   :  { %v8838_v1 = vor.u32 %v10031_v14, %v8837_v62  ;;  %v9125_v20 = vld [vmem:[#allocation13 + $0x440] sm:$0xf]  ;;  %v9223_v14 = vld [vmem:[#allocation13 + $0x520] sm:$0xf0] }
 0x434   :  { %6029 = vmatpush.bf16.msrb.mxu3 %v8966_v54  ;;  %v10103_v40 = vld [vmem:[#allocation13 + $0x45c] sm:$0xf0] }
 0x435   :  { %v8613_v54 = vld [vmem:[#allocation13 + $0x40] sm:$0xf] }
 0x436   :  { %v9093_v43 = vld [vmem:[#allocation13 + $0x400] sm:$0xf] }
 0x437   :  { %v10095_v26 = vld [vmem:[#allocation13 + $0x41c] sm:$0xf0] }
 0x438   :  { %6030 = vmatpush.bf16.msrb.mxu3 %v8934_v57  ;;  %v9094_v57 = vor.u32 %v10095_v26, %v9093_v43  ;;  %v8967_v26 = vld [vmem:[#allocation13 + $0x320] sm:$0xf0] }
 0x443   :  { %v4300_v35 = vpop.f32.mrf.mxu0  ;;  %v11375_v4 = vpop.f32.mrf.mxu1 }
 0x444   :  { %vm4318_vm10 = vcmp.gt.f32.partialorder %v4300_v35, 0.5  ;;  %v8711_v35 = vld [vmem:[#allocation13 + $0x120] sm:$0xf0]  ;;  %vm4571_vm13 = vcmp.gt.f32.partialorder %v11375_v4, 0.5  ;;  %v8581_v4 = vld [vmem:[#allocation13] sm:$0xf] }
 0x445   :  { %v11377_v49 = vsel %vm4318_vm10, %v4260_v32, -inf  ;;  %v9253_v32 = vld [vmem:[#allocation13 + $0x540] sm:$0xf]  ;;  %vm6341_vm10 = vcmask 1045508  }
 0x446   :  { %v4324_v27 = vmax.f32 %v11368_v5, %v11377_v49  ;;  %v4273_v58 = vpop.f32.mrf.mxu2  ;;  %v4287_v60 = vpop.f32.mrf.mxu3  ;;  %v9254_v42 = vor.u32 %v10135_v38, %v9253_v32  ;;  %v9126_v32 = vor.u32 %v10103_v40, %v9125_v20  ;;  %v9319_v38 = vld [vmem:[#allocation13 + $0x5e0] sm:$0xf0]  ;;  %v10008_v20 = vld [vmem:[#allocation13 + $0x164] sm:$0xf0] }
 0x447   :  { %v11381_v0 = vsel %vm4319_vm11, %v4273_v58, -inf  ;;  %vm4317_vm12 = vcmp.gt.f32.partialorder %v4287_v60, 0.5  ;;  %v10047_v58 = vld [vmem:[#allocation13 + $0x29c] sm:$0xf0]  ;;  %v8714_v60 = vor.u32 %v9995_v16, %v8711_v35  ;;  %v9322_v34 = vor.u32 %v10147_v7, %v9319_v38  ;;  %v9287_v16 = vld [vmem:[#allocation13 + $0x5a0] sm:$0xf0] }
 0x448   :  { %v4325_v61 = vmax.f32 %v11373_v22, %v11381_v0  ;;  %v11385_v9 = vsel %vm4317_vm12, %v4247_v18, -inf  ;;  %v8743_v18 = vld [vmem:[#allocation13 + $0x160] sm:$0xf0]  ;;  %6041 = vmatpush.bf16.msra.mxu0 %v9254_v42  ;;  %v8902_v24 = vor.u32 %v10047_v58, %v8901_v13  ;;  %v9975_v42 = vld [vmem:[#allocation13 + $0x5c] sm:$0xf0]  ;;  %v9290_v28 = vor.u32 %v10139_v63, %v9287_v16 }
 0x449   :  { %v4323_v15 = vmax.f32 %v11350_v48, %v11385_v9  ;;  %v8746_v47 = vor.u32 %v10003_v46, %v8743_v18  ;;  %v8614_v12 = vor.u32 %v9975_v42, %v8613_v54  ;;  %v9971_v46 = vld [vmem:[#allocation13 + $0x44] sm:$0xf]  ;;  %v9967_v13 = vld [vmem:[#allocation13 + $0x1c] sm:$0xf0]  ;;  %v9005_v38 = vld [vmem:[#allocation13 + $0x348] sm:$0xf] }
 0x44a   :  { %6031 = vmatpush.bf16.msrb.mxu3 %v8902_v24  ;;  %v8618_v37 = vor.u32 %v9971_v46, %v8615_v53  ;;  %v9963_v58 = vld [vmem:[#allocation13 + $0x4] sm:$0xf]  ;;  %v8582_v45 = vor.u32 %v9967_v13, %v8581_v4  ;;  %v8813_v24 = vld [vmem:[#allocation13 + $0x1c8] sm:$0xf]  ;;  %v10148_v22 = vld [vmem:[#allocation13 + $0x5cc] sm:$0xf] }
 0x44b   :  { %v4302_v55 = vpop.f32.mrf.mxu0  ;;  %v4543_v39 = vpop.f32.mrf.mxu1  ;;  %6054 = vmatpush.bf16.msra.mxu1 %v8746_v47  ;;  %v9063_v9 = vld [vmem:[#allocation13 + $0x3e0] sm:$0xf0]  ;;  %v10072_v42 = vld [vmem:[#allocation13 + $0x364] sm:$0xf0]  ;;  %v9327_v0 = vld [vmem:[#allocation13 + $0x5e8] sm:$0xf0] }
 0x44c   :  { %6042 = vmatpush.bf16.msra.mxu0 %v9222_v3  ;;  %v9991_v55 = vld [vmem:[#allocation13 + $0xdc] sm:$0xf0]  ;;  %v9987_v39 = vld [vmem:[#allocation13 + $0xc4] sm:$0xf]  ;;  %v9006_v53 = vor.u32 %v10072_v42, %v9005_v38  ;;  %v10064_v63 = vld [vmem:[#allocation13 + $0x324] sm:$0xf0] }
 0x44d   :  { %v8678_v2 = vor.u32 %v9991_v55, %v8677_v23  ;;  %v8682_v19 = vor.u32 %v9987_v39, %v8679_v56  ;;  %v10083_v23 = vld [vmem:[#allocation13 + $0x3c4] sm:$0xf]  ;;  %v10088_v55 = vld [vmem:[#allocation13 + $0x3e4] sm:$0xf0]  ;;  %vm6343_vm11 = vcmask 1043456  }
 0x44e   :  { %v4275_v36 = vpop.f32.mrf.mxu2  ;;  %v4289_v41 = vpop.f32.mrf.mxu3  ;;  %6032 = vmatpush.bf16.msrb.mxu3 %v8870_v50  ;;  %v9066_v39 = vor.u32 %v10083_v23, %v9063_v9  ;;  %v10131_v56 = vld [vmem:[#allocation13 + $0x544] sm:$0xf]  ;;  %v10016_v50 = vld [vmem:[#allocation13 + $0x1a4] sm:$0xf0] }
 0x44f   :  { %6055 = vmatpush.bf16.msra.mxu1 %v8714_v60  ;;  %6017 = vmatpush.bf16.msrb.mxu2 %v8678_v2  ;;  %v8646_v36 = vor.u32 %v9983_v17, %v8645_v59  ;;  %v8647_v41 = vld [vmem:[#allocation13 + $0xa0] sm:$0xf0]  ;;  %v8782_v17 = vor.u32 %v10016_v50, %v8781_v6  ;;  %v8685_v13 = vld [vmem:[#allocation13 + $0xc8] sm:$0xf] }
 0x450   :  { %6043 = vmatpush.bf16.msra.mxu0 %v9190_v11  ;;  %v8650_v51 = vor.u32 %v9979_v44, %v8647_v41  ;;  %v8583_v60 = vld [vmem:[#allocation13 + $0x20] sm:$0xf0]  ;;  %v10024_v11 = vld [vmem:[#allocation13 + $0x1e4] sm:$0xf0]  ;;  %v9034_v44 = vor.u32 %v10075_v52, %v9031_v21 }
 0x451   :  { %v8586_v31 = vor.u32 %v9963_v58, %v8583_v60  ;;  %v8814_v48 = vor.u32 %v10024_v11, %v8813_v24  ;;  %v10080_v41 = vld [vmem:[#allocation13 + $0x3a4] sm:$0xf0]  ;;  %v10067_v7 = vld [vmem:[#allocation13 + $0x344] sm:$0xf] }
 0x452   :  { %6033 = vmatpush.bf16.msrb.mxu3 %v8838_v1  ;;  %v8749_v1 = vld [vmem:[#allocation13 + $0x148] sm:$0xf]  ;;  %v10107_v16 = vld [vmem:[#allocation13 + $0x484] sm:$0xf] }
 0x453   :  { %6056 = vmatpush.bf16.msra.mxu1 %v8682_v19  ;;  %6018 = vmatpush.bf16.msrb.mxu2 %v8646_v36  ;;  %v9255_v19 = vld [vmem:[#allocation13 + $0x560] sm:$0xf0]  ;;  %v9037_v36 = vld [vmem:[#allocation13 + $0x388] sm:$0xf]  ;;  %v8750_v54 = vor.u32 %v10008_v20, %v8749_v1 }
 0x454   :  { %6044 = vmatpush.bf16.msra.mxu0 %v9158_v30  ;;  %v9258_v25 = vor.u32 %v10131_v56, %v9255_v19  ;;  %v9038_v62 = vor.u32 %v10080_v41, %v9037_v36  ;;  %v9159_v4 = vld [vmem:[#allocation13 + $0x4a0] sm:$0xf0]  ;;  %v9992_v58 = vld [vmem:[#allocation13 + $0xe4] sm:$0xf0] }
 0x455   :  { %v9162_v60 = vor.u32 %v10107_v16, %v9159_v4  ;;  %v8935_v24 = vld [vmem:[#allocation13 + $0x2e0] sm:$0xf0]  ;;  %v8941_v11 = vld [vmem:[#allocation13 + $0x2c8] sm:$0xf] }
 0x456   :  { %6078 = vmatpush.bf16.msra.mxu3 %v9322_v34  ;;  %v10115_v34 = vld [vmem:[#allocation13 + $0x4c4] sm:$0xf]  ;;  %v9984_v56 = vld [vmem:[#allocation13 + $0xa4] sm:$0xf0] }
 0x457   :  { %6057 = vmatpush.bf16.msra.mxu1 %v8650_v51  ;;  %6019 = vmatpush.bf16.msrb.mxu2 %v8614_v12  ;;  %v10123_v51 = vld [vmem:[#allocation13 + $0x504] sm:$0xf]  ;;  %v8909_v50 = vld [vmem:[#allocation13 + $0x288] sm:$0xf] }
 0x458   :  { %6045 = vmatpush.bf16.msra.mxu0 %v9126_v32  ;;  %v9226_v40 = vor.u32 %v10123_v51, %v9223_v14  ;;  %v8999_v32 = vld [vmem:[#allocation13 + $0x360] sm:$0xf0]  ;;  %v8621_v51 = vld [vmem:[#allocation13 + $0x48] sm:$0xf] }
 0x459   :  { %v9191_v12 = vld [vmem:[#allocation13 + $0x4e0] sm:$0xf0]  ;;  %v9002_v46 = vor.u32 %v10067_v7, %v8999_v32  ;;  %v10040_v38 = vld [vmem:[#allocation13 + $0x264] sm:$0xf0] }
 0x45a   :  { %6079 = vmatpush.bf16.msra.mxu3 %v9290_v28  ;;  %v9194_v43 = vor.u32 %v10115_v34, %v9191_v12  ;;  %v10043_v6 = vld [vmem:[#allocation13 + $0x284] sm:$0xf]  ;;  %v8589_v34 = vld [vmem:[#allocation13 + $0x8] sm:$0xf] }
 0x45b   :  { %6058 = vmatpush.bf16.msra.mxu1 %v8618_v37  ;;  %6020 = vmatpush.bf16.msrb.mxu2 %v8582_v45  ;;  %v10000_v37 = vld [vmem:[#allocation13 + $0x124] sm:$0xf0]  ;;  %v8686_v45 = vor.u32 %v9992_v58, %v8685_v13  ;;  %v9095_v36 = vld [vmem:[#allocation13 + $0x420] sm:$0xf0]  ;;  %v10020_v13 = vld [vmem:[#allocation13 + $0x1cc] sm:$0xf] }
 0x45c   :  { %6046 = vmatpush.bf16.msra.mxu0 %v9094_v57  ;;  %v8973_v57 = vld [vmem:[#allocation13 + $0x308] sm:$0xf]  ;;  %v10035_v1 = vld [vmem:[#allocation13 + $0x244] sm:$0xf]  ;;  %v8815_v58 = vld [vmem:[#allocation13 + $0x1e8] sm:$0xf0] }
 0x45d   :  { %v8974_v28 = vor.u32 %v10064_v63, %v8973_v57  ;;  %v8871_v20 = vld [vmem:[#allocation13 + $0x260] sm:$0xf0]  ;;  %v9968_v12 = vld [vmem:[#allocation13 + $0x24] sm:$0xf0] }
 0x45e   :  { %6080 = vmatpush.bf16.msra.mxu3 %v9258_v25  ;;  %v8903_v25 = vld [vmem:[#allocation13 + $0x2a0] sm:$0xf0]  ;;  %v8874_v32 = vor.u32 %v10035_v1, %v8871_v20  ;;  %v10032_v57 = vld [vmem:[#allocation13 + $0x224] sm:$0xf0] }
 0x45f   :  { %6059 = vmatpush.bf16.msra.mxu1 %v8586_v31  ;;  %6065 = vmatpush.bf16.msra.mxu2 %v9066_v39  ;;  %v10051_v31 = vld [vmem:[#allocation13 + $0x2c4] sm:$0xf]  ;;  %v8906_v21 = vor.u32 %v10043_v6, %v8903_v25  ;;  %v10004_v25 = vld [vmem:[#allocation13 + $0x14c] sm:$0xf] }
 0x460   :  { %6091 = vmatpush.bf16.msrb.mxu0 %v8814_v48  ;;  %v8938_v23 = vor.u32 %v10051_v31, %v8935_v24  ;;  %v10056_v48 = vld [vmem:[#allocation13 + $0x2e4] sm:$0xf0]  ;;  %v8818_v24 = vor.u32 %v10020_v13, %v8815_v58  ;;  %v10124_v13 = vld [vmem:[#allocation13 + $0x50c] sm:$0xf] }
 0x461   :  { %v8942_v9 = vor.u32 %v10056_v48, %v8941_v11  ;;  %v10012_v11 = vld [vmem:[#allocation13 + $0x18c] sm:$0xf] }
 0x462   :  { %6081 = vmatpush.bf16.msra.mxu3 %v9226_v40  ;;  %v8877_v40 = vld [vmem:[#allocation13 + $0x248] sm:$0xf]  ;;  %v10084_v48 = vld [vmem:[#allocation13 + $0x3cc] sm:$0xf] }
 0x463   :  { %v11389_v29 = vpop.f32.mrf.mxu0  ;;  %v11391_v8 = vpop.f32.mrf.mxu1  ;;  %6066 = vmatpush.bf16.msra.mxu2 %v9034_v44  ;;  %v10091_v44 = vld [vmem:[#allocation13 + $0x404] sm:$0xf]  ;;  %v8878_v42 = vor.u32 %v10040_v38, %v8877_v40  ;;  %v9996_v40 = vld [vmem:[#allocation13 + $0x10c] sm:$0xf] }
 0x464   :  { %6092 = vmatpush.bf16.msrb.mxu0 %v8782_v17  ;;  %v9098_v41 = vor.u32 %v10091_v44, %v9095_v36  ;;  %v9293_v36 = vld [vmem:[#allocation13 + $0x588] sm:$0xf]  ;;  %v8719_v38 = vld [vmem:[#allocation13 + $0x128] sm:$0xf0] }
 0x465   :  { %v9231_v58 = vld [vmem:[#allocation13 + $0x528] sm:$0xf0] }
 0x466   :  { %v4501_v18 = vpop.f32.mrf.mxu2  ;;  %v11394_v33 = vpop.f32.mrf.mxu3  ;;  %6082 = vmatpush.bf16.msra.mxu3 %v9194_v43  ;;  %v8845_v43 = vld [vmem:[#allocation13 + $0x208] sm:$0xf] }
 0x467   :  { %v4574_v47 = vsel %vm4571_vm13, %v4501_v18, -inf  ;;  %v8717_v18 = vld [vmem:[#allocation13 + $0x108] sm:$0xf]  ;;  %6067 = vmatpush.bf16.msra.mxu2 %v9002_v46  ;;  %v8846_v63 = vor.u32 %v10032_v57, %v8845_v43  ;;  %v8687_v57 = vld [vmem:[#allocation13 + $0xe8] sm:$0xf0] }
 0x468   :  { %v11399_v10 = vmax.f32 %v4323_v15, %v4574_v47  ;;  %v9069_v15 = vld [vmem:[#allocation13 + $0x3c8] sm:$0xf]  ;;  %v10059_v47 = vld [vmem:[#allocation13 + $0x304] sm:$0xf]  ;;  %6093 = vmatpush.bf16.msrb.mxu0 %v8750_v54 }
 0x469   :  { %v9070_v2 = vor.u32 %v10088_v55, %v9069_v15  ;;  %v10099_v15 = vld [vmem:[#allocation13 + $0x444] sm:$0xf] }
 0x46a   :  { %6083 = vmatpush.bf16.msra.mxu3 %v9162_v60  ;;  %v9127_v55 = vld [vmem:[#allocation13 + $0x460] sm:$0xf0] }
 0x46b   :  { %v4529_v35 = vpop.f32.mrf.mxu0  ;;  %v4770_v3 = vpop.f32.mrf.mxu1  ;;  %6104 = vmatpush.bf16.msrb.mxu1 %v9070_v2  ;;  %v9130_v39 = vor.u32 %v10099_v15, %v9127_v55  ;;  %v8653_v2 = vld [vmem:[#allocation13 + $0x88] sm:$0xf] }
 0x46c   :  { %v8718_v35 = vor.u32 %v10000_v37, %v8717_v18  ;;  %v8970_v3 = vor.u32 %v10059_v47, %v8967_v26  ;;  %v8654_v19 = vor.u32 %v9984_v56, %v8653_v2  ;;  %v10027_v37 = vld [vmem:[#allocation13 + $0x204] sm:$0xf]  ;;  %v9325_v15 = vld [vmem:[#allocation13 + $0x5c8] sm:$0xf] }
 0x46d   :  { %v8839_v47 = vld [vmem:[#allocation13 + $0x220] sm:$0xf0]  ;;  %v10152_v55 = vld [vmem:[#allocation13 + $0x5e4] sm:$0xf0] }
 0x46e   :  { %v4503_v30 = vpop.f32.mrf.mxu2  ;;  %v4516_v59 = vpop.f32.mrf.mxu3  ;;  %6094 = vmatpush.bf16.msrb.mxu0 %v8718_v35  ;;  %6068 = vmatpush.bf16.msra.mxu2 %v8970_v3  ;;  %v8842_v26 = vor.u32 %v10027_v37, %v8839_v47  ;;  %v9326_v44 = vor.u32 %v10152_v55, %v9325_v15  ;;  %v9263_v37 = vld [vmem:[#allocation13 + $0x568] sm:$0xf0]  ;;  %v8722_v47 = vor.u32 %v9996_v40, %v8719_v38  ;;  %v9133_v40 = vld [vmem:[#allocation13 + $0x448] sm:$0xf] }
 0x46f   :  { %6105 = vmatpush.bf16.msrb.mxu1 %v9038_v62  ;;  %v10048_v30 = vld [vmem:[#allocation13 + $0x2a4] sm:$0xf0]  ;;  %6084 = vmatpush.bf16.msra.mxu3 %v9130_v39  ;;  %v9135_v38 = vld [vmem:[#allocation13 + $0x468] sm:$0xf0] }
 0x470   :  { %v8910_v17 = vor.u32 %v10048_v30, %v8909_v50  ;;  %v9976_v62 = vld [vmem:[#allocation13 + $0x64] sm:$0xf0]  ;;  %v8751_v50 = vld [vmem:[#allocation13 + $0x168] sm:$0xf0] }
 0x471   :  { %v8622_v14 = vor.u32 %v9976_v62, %v8621_v51  ;;  %v10076_v30 = vld [vmem:[#allocation13 + $0x38c] sm:$0xf]  ;;  %v8754_v1 = vor.u32 %v10004_v25, %v8751_v50 }
 0x472   :  { %6095 = vmatpush.bf16.msrb.mxu0 %v8686_v45  ;;  %6069 = vmatpush.bf16.msra.mxu2 %v8938_v23  ;;  %v8783_v23 = vld [vmem:[#allocation13 + $0x1a8] sm:$0xf0] }
 0x473   :  { %6106 = vmatpush.bf16.msrb.mxu1 %v9006_v53  ;;  %6085 = vmatpush.bf16.msra.mxu3 %v9098_v41  ;;  %v8590_v53 = vor.u32 %v9968_v12, %v8589_v34  ;;  %v10144_v41 = vld [vmem:[#allocation13 + $0x5a4] sm:$0xf0]  ;;  %v10140_v62 = vld [vmem:[#allocation13 + $0x58c] sm:$0xf] }
 0x474   :  { %v9294_v34 = vor.u32 %v10144_v41, %v9293_v36  ;;  %v10108_v25 = vld [vmem:[#allocation13 + $0x48c] sm:$0xf] }
 0x475   :  { %v9167_v50 = vld [vmem:[#allocation13 + $0x4a8] sm:$0xf0] }
 0x476   :  { %6096 = vmatpush.bf16.msrb.mxu0 %v8654_v19  ;;  %6070 = vmatpush.bf16.msra.mxu2 %v8906_v21  ;;  %v8786_v19 = vor.u32 %v10012_v11, %v8783_v23  ;;  %v10052_v11 = vld [vmem:[#allocation13 + $0x2cc] sm:$0xf] }
 0x477   :  { %6107 = vmatpush.bf16.msrb.mxu1 %v8974_v28  ;;  %v8943_v23 = vld [vmem:[#allocation13 + $0x2e8] sm:$0xf0] }
 0x478   :  { %v8946_v55 = vor.u32 %v10052_v11, %v8943_v23  ;;  %v10036_v36 = vld [vmem:[#allocation13 + $0x24c] sm:$0xf]  ;;  %v9013_v11 = vld [vmem:[#allocation13 + $0x350] sm:$0xf] }
 0x479   :  { %v8879_v41 = vld [vmem:[#allocation13 + $0x268] sm:$0xf0]  ;;  %v10073_v23 = vld [vmem:[#allocation13 + $0x36c] sm:$0xf0] }
 0x47a   :  { %6097 = vmatpush.bf16.msrb.mxu0 %v8622_v14  ;;  %6071 = vmatpush.bf16.msra.mxu2 %v8874_v32  ;;  %v9295_v14 = vld [vmem:[#allocation13 + $0x5a8] sm:$0xf0] }
 0x47b   :  { %6108 = vmatpush.bf16.msrb.mxu1 %v8942_v9  ;;  %v9071_v9 = vld [vmem:[#allocation13 + $0x3e8] sm:$0xf0]  ;;  %v9298_v12 = vor.u32 %v10140_v62, %v9295_v14  ;;  %v9170_v14 = vor.u32 %v10108_v25, %v9167_v50  ;;  %v8757_v25 = vld [vmem:[#allocation13 + $0x150] sm:$0xf] }
 0x47c   :  { %v9074_v6 = vor.u32 %v10084_v48, %v9071_v9  ;;  %v10120_v48 = vld [vmem:[#allocation13 + $0x4e4] sm:$0xf0]  ;;  %v10116_v9 = vld [vmem:[#allocation13 + $0x4cc] sm:$0xf]  ;;  %v10009_v50 = vld [vmem:[#allocation13 + $0x16c] sm:$0xf0] }
 0x47e   :  { %6098 = vmatpush.bf16.msrb.mxu0 %v8590_v53  ;;  %6072 = vmatpush.bf16.msra.mxu2 %v8842_v26  ;;  %v10136_v53 = vld [vmem:[#allocation13 + $0x564] sm:$0xf0]  ;;  %v9988_v26 = vld [vmem:[#allocation13 + $0xcc] sm:$0xf] }
 0x47f   :  { %6109 = vmatpush.bf16.msrb.mxu1 %v8910_v17 }
 0x482   :  { %v11403_v59 = vpop.f32.mrf.mxu1 }
 0x483   :  { %v11401_v52 = vpop.f32.mrf.mxu0  ;;  %6110 = vmatpush.bf16.msrb.mxu1 %v8878_v42  ;;  %vm4827_vm1 = vcmp.gt.f32.partialorder %v11403_v59, 0.5  ;;  %v9039_v59 = vld [vmem:[#allocation13 + $0x3a8] sm:$0xf0] }
 0x484   :  { %v9042_v20 = vor.u32 %v10076_v30, %v9039_v59  ;;  %v9007_v42 = vld [vmem:[#allocation13 + $0x368] sm:$0xf0] }
 0x486   :  { %v4554_v7 = vpop.f32.mrf.mxu2  ;;  %v4567_v54 = vpop.f32.mrf.mxu3 }
 0x487   :  { %6111 = vmatpush.bf16.msrb.mxu1 %v8846_v63  ;;  %vm4572_vm14 = vcmp.gt.f32.partialorder %v4554_v7, 0.5  ;;  %vm4573_vm15 = vcmp.gt.f32.partialorder %v4567_v54, 0.5  ;;  %v10068_v54 = vld [vmem:[#allocation13 + $0x34c] sm:$0xf] }
 0x488   :  { %v4575_v35 = vsel %vm4572_vm14, %v11394_v33, -inf  ;;  %v4576_v60 = vsel %vm4573_vm15, %v11389_v29, -inf  ;;  %v9010_v43 = vor.u32 %v10068_v54, %v9007_v42  ;;  %v10060_v63 = vld [vmem:[#allocation13 + $0x30c] sm:$0xf]  ;;  %v8882_v42 = vor.u32 %v10036_v36, %v8879_v41  ;;  %v8949_v36 = vld [vmem:[#allocation13 + $0x2d0] sm:$0xf] }
 0x489   :  { %v4578_v28 = vmax.f32 %v4324_v27, %v4575_v35  ;;  %v4579_v33 = vmax.f32 %v4325_v61, %v4576_v60  ;;  %v8690_v60 = vor.u32 %v9988_v26, %v8687_v57  ;;  %v10096_v26 = vld [vmem:[#allocation13 + $0x424] sm:$0xf0]  ;;  %v9333_v57 = vld [vmem:[#allocation13 + $0x5d0] sm:$0xf] }
 0x48a   :  { %v4823_v18 = vpop.f32.mrf.mxu1  ;;  %v10057_v41 = vld [vmem:[#allocation13 + $0x2ec] sm:$0xf0] }
 0x48b   :  { %v4757_v46 = vpop.f32.mrf.mxu0  ;;  %v10132_v18 = vld [vmem:[#allocation13 + $0x54c] sm:$0xf] }
 0x48c   :  { %v9261_v46 = vld [vmem:[#allocation13 + $0x548] sm:$0xf]  ;;  %v9266_v35 = vor.u32 %v10132_v18, %v9263_v37  ;;  %v10081_v18 = vld [vmem:[#allocation13 + $0x3ac] sm:$0xf0] }
 0x48d   :  { %v9101_v37 = vld [vmem:[#allocation13 + $0x408] sm:$0xf] }
 0x48e   :  { %v4556_v16 = vpop.f32.mrf.mxu2  ;;  %v4569_v4 = vpop.f32.mrf.mxu3 }
 0x48f   :  { %v8975_v16 = vld [vmem:[#allocation13 + $0x328] sm:$0xf0]  ;;  %v9262_v4 = vor.u32 %v10136_v53, %v9261_v46  ;;  %v9045_v53 = vld [vmem:[#allocation13 + $0x390] sm:$0xf] }
 0x4a1   :  { %v4808_v3 = vpop.f32.mrf.mxu0 }
 0x4a2   :  { %vm4826_vm0 = vcmp.gt.f32.partialorder %v4808_v3, 0.5  ;;  %v9229_v3 = vld [vmem:[#allocation13 + $0x508] sm:$0xf] }
 0x4a3   :  { %v4829_v45 = vsel %vm4826_vm0, %v11391_v8, -inf }
 0x4a4   :  { %v4832_v31 = vmax.f32 %v4578_v28, %v4829_v45  ;;  %v10128_v28 = vld [vmem:[#allocation13 + $0x524] sm:$0xf0]  ;;  %v8978_v45 = vor.u32 %v10060_v63, %v8975_v16  ;;  %v10153_v63 = vld [vmem:[#allocation13 + $0x5ec] sm:$0xf0]  ;;  %v10092_v16 = vld [vmem:[#allocation13 + $0x40c] sm:$0xf] }
 0x4a6   :  { %vm4835_vm2 = vcmp.gt.f32.partialorder %v4832_v31, -inf  ;;  %v11415_v5 = vpack.c.bf16 %v4832_v31, %v4832_v31  ;;  %v4781_v49 = vpop.f32.mrf.mxu2  ;;  %v4795_v27 = vpop.f32.mrf.mxu3  ;;  %v9980_v31 = vld [vmem:[#allocation13 + $0x8c] sm:$0xf] }
 0x4a7   :  { %vm11417_vm3 = vmpackc.low %vm4835_vm2, %vm4835_vm2  ;;  %v4830_v8 = vsel %vm4827_vm1, %v4781_v49, -inf  ;;  %vm4825_vm4 = vcmp.gt.f32.partialorder %v4795_v27, 0.5  ;;  %v9234_v49 = vor.u32 %v10124_v13, %v9231_v58  ;;  %v9197_v27 = vld [vmem:[#allocation13 + $0x4c8] sm:$0xf]  ;;  %v10021_v13 = vld [vmem:[#allocation13 + $0x1d4] sm:$0xf] }
 0x4a8   :  { %v4833_v39 = vmax.f32 %v4579_v33, %v4830_v8  ;;  %v4828_v2 = vsel %vm4825_vm4, %v11401_v52, -inf  ;;  %9352 = vmatmul.msk.bf16.vlgmr.msrb.gmra.mxu3 %vm11417_vm3, %v11415_v5  ;;  %v9230_v33 = vor.u32 %v10128_v28, %v9229_v3  ;;  %v9199_v8 = vld [vmem:[#allocation13 + $0x4e8] sm:$0xf0]  ;;  %v10025_v28 = vld [vmem:[#allocation13 + $0x1ec] sm:$0xf0] }
 0x4a9   :  { %v4831_v61 = vmax.f32 %v11399_v10, %v4828_v2  ;;  %6130 = vmatpush.bf16.msrb.mxu3 %v8818_v24  ;;  %v4810_v56 = vpop.f32.mrf.mxu0  ;;  %v9330_v10 = vor.u32 %v10148_v22, %v9327_v0  ;;  %v8655_v24 = vld [vmem:[#allocation13 + $0xa8] sm:$0xf0]  ;;  %v8823_v58 = vld [vmem:[#allocation13 + $0x1f0] sm:$0xf0] }
 0x4aa   :  { %vm4836_vm5 = vcmp.gt.f32.partialorder %v4833_v39, -inf  ;;  %v11426_v21 = vpack.c.bf16 %v4833_v39, %v4833_v39  ;;  %v8658_v15 = vor.u32 %v9980_v31, %v8655_v24  ;;  %v9972_v39 = vld [vmem:[#allocation13 + $0x4c] sm:$0xf]  ;;  %v9202_v56 = vor.u32 %v10116_v9, %v9199_v8  ;;  %v8789_v9 = vld [vmem:[#allocation13 + $0x190] sm:$0xf] }
 0x4ab   :  { %vm11428_vm7 = vmpackc.low %vm4836_vm5, %vm4836_vm5  ;;  %vm4834_vm6 = vcmp.gt.f32.partialorder %v4831_v61, -inf  ;;  %v11432_v17 = vpack.c.bf16 %v4831_v61, %v4831_v61  ;;  %v8623_v2 = vld [vmem:[#allocation13 + $0x68] sm:$0xf0]  ;;  %v9198_v61 = vor.u32 %v10120_v48, %v9197_v27  ;;  %v9102_v31 = vor.u32 %v10096_v26, %v9101_v37  ;;  %v9301_v27 = vld [vmem:[#allocation13 + $0x590] sm:$0xf] }
 0x4ac   :  { %vm11434_vm8 = vmpackc.low %vm4834_vm6, %vm4834_vm6  ;;  %9355 = vmatmul.msk.bf16.vlgmr.msra.gmra.mxu0 %vm11428_vm7, %v11426_v21  ;;  %v10044_v22 = vld [vmem:[#allocation13 + $0x28c] sm:$0xf]  ;;  %v8626_v30 = vor.u32 %v9972_v39, %v8623_v2  ;;  %v10145_v48 = vld [vmem:[#allocation13 + $0x5ac] sm:$0xf0]  ;;  %v9014_v39 = vor.u32 %v10073_v23, %v9013_v11 }
 0x4ad   :  { %6131 = vmatpush.bf16.msrb.mxu3 %v8786_v19  ;;  %6143 = vmatpush.bf16.msra.mxu0 %v9074_v6  ;;  %v8911_v0 = vld [vmem:[#allocation13 + $0x2a8] sm:$0xf0]  ;;  %v9165_v19 = vld [vmem:[#allocation13 + $0x488] sm:$0xf]  ;;  %v10017_v8 = vld [vmem:[#allocation13 + $0x1ac] sm:$0xf0]  ;;  %v9302_v2 = vor.u32 %v10145_v48, %v9301_v27 }
 0x4ae   :  { %9349 = vmatmul.msk.bf16.vlgmr.msrb.gmra.mxu2 %vm11434_vm8, %v11432_v17  ;;  %9358 = vmatmul.msk.bf16.vlgmr.msra.gmra.mxu1 %vm11434_vm8, %v11432_v17  ;;  %v4783_v7 = vpop.f32.mrf.mxu2  ;;  %v4797_v32 = vpop.f32.mrf.mxu3  ;;  %v10112_v6 = vld [vmem:[#allocation13 + $0x4a4] sm:$0xf0]  ;;  %v8914_v59 = vor.u32 %v10044_v22, %v8911_v0  ;;  %v8981_v22 = vld [vmem:[#allocation13 + $0x310] sm:$0xf]  ;;  %v9989_v26 = vld [vmem:[#allocation13 + $0xd4] sm:$0xf] }
 0x4af   :  { %6117 = vmatpush.bf16.msrb.mxu2 %v9326_v44  ;;  %6156 = vmatpush.bf16.msra.mxu1 %v9330_v10  ;;  %v9964_v44 = vld [vmem:[#allocation13 + $0xc] sm:$0xf]  ;;  %v9166_v62 = vor.u32 %v10112_v6, %v9165_v19  ;;  %v10104_v7 = vld [vmem:[#allocation13 + $0x464] sm:$0xf0]  ;;  %v10065_v0 = vld [vmem:[#allocation13 + $0x32c] sm:$0xf0] }
 0x4b0   :  { %v8591_v10 = vld [vmem:[#allocation13 + $0x28] sm:$0xf0]  ;;  %v9269_v19 = vld [vmem:[#allocation13 + $0x550] sm:$0xf] }
 0x4b1   :  { %6132 = vmatpush.bf16.msrb.mxu3 %v8754_v1  ;;  %6144 = vmatpush.bf16.msra.mxu0 %v9042_v20  ;;  %v9077_v1 = vld [vmem:[#allocation13 + $0x3d0] sm:$0xf]  ;;  %v10100_v32 = vld [vmem:[#allocation13 + $0x44c] sm:$0xf]  ;;  %v8594_v54 = vor.u32 %v9964_v44, %v8591_v10  ;;  %v8982_v44 = vor.u32 %v10065_v0, %v8981_v22  ;;  %v9973_v22 = vld [vmem:[#allocation13 + $0x54] sm:$0xf] }
 0x4b2   :  { %v10089_v20 = vld [vmem:[#allocation13 + $0x3ec] sm:$0xf0]  ;;  %v8631_v0 = vld [vmem:[#allocation13 + $0x70] sm:$0xf0] }
 0x4b3   :  { %6118 = vmatpush.bf16.msrb.mxu2 %v9294_v34  ;;  %6157 = vmatpush.bf16.msra.mxu1 %v9298_v12  ;;  %v10028_v34 = vld [vmem:[#allocation13 + $0x20c] sm:$0xf]  ;;  %v9078_v46 = vor.u32 %v10089_v20, %v9077_v1  ;;  %v10137_v6 = vld [vmem:[#allocation13 + $0x56c] sm:$0xf0] }
 0x4b4   :  { %v8847_v12 = vld [vmem:[#allocation13 + $0x228] sm:$0xf0]  ;;  %v9270_v10 = vor.u32 %v10137_v6, %v9269_v19  ;;  %v9237_v1 = vld [vmem:[#allocation13 + $0x510] sm:$0xf] }
 0x4b5   :  { %6133 = vmatpush.bf16.msrb.mxu3 %v8722_v47  ;;  %6145 = vmatpush.bf16.msra.mxu0 %v9010_v43  ;;  %v9134_v47 = vor.u32 %v10104_v7, %v9133_v40  ;;  %v9138_v43 = vor.u32 %v10100_v32, %v9135_v38  ;;  %v8850_v3 = vor.u32 %v10028_v34, %v8847_v12  ;;  %v10129_v20 = vld [vmem:[#allocation13 + $0x52c] sm:$0xf0]  ;;  %v9997_v32 = vld [vmem:[#allocation13 + $0x114] sm:$0xf] }
 0x4b6   :  { %v8725_v40 = vld [vmem:[#allocation13 + $0x110] sm:$0xf]  ;;  %v8727_v38 = vld [vmem:[#allocation13 + $0x130] sm:$0xf0] }
 0x4b7   :  { %6119 = vmatpush.bf16.msrb.mxu2 %v9262_v4  ;;  %6158 = vmatpush.bf16.msra.mxu1 %v9266_v35  ;;  %v9103_v4 = vld [vmem:[#allocation13 + $0x428] sm:$0xf0]  ;;  %v8821_v35 = vld [vmem:[#allocation13 + $0x1d0] sm:$0xf] }
 0x4b8   :  { %9364 = vmatmul.msk.bf16.vlgmr.msra.gmra.mxu3 %vm11428_vm7, %v11426_v21  ;;  %v9106_v24 = vor.u32 %v10092_v16, %v9103_v4  ;;  %v10001_v7 = vld [vmem:[#allocation13 + $0x12c] sm:$0xf0] }
 0x4b9   :  { %6134 = vmatpush.bf16.msrb.mxu3 %v8690_v60  ;;  %6146 = vmatpush.bf16.msra.mxu0 %v8978_v45  ;;  %v9046_v60 = vor.u32 %v10081_v18, %v9045_v53  ;;  %v9334_v45 = vor.u32 %v10153_v63, %v9333_v57  ;;  %v8917_v34 = vld [vmem:[#allocation13 + $0x290] sm:$0xf]  ;;  %v8730_v53 = vor.u32 %v9997_v32, %v8727_v38  ;;  %v8695_v57 = vld [vmem:[#allocation13 + $0xf0] sm:$0xf0]  ;;  %v9085_v38 = vld [vmem:[#allocation13 + $0x3d8] sm:$0xf] }
 0x4ba   :  { %v10049_v12 = vld [vmem:[#allocation13 + $0x2ac] sm:$0xf0] }
 0x4bb   :  { %6120 = vmatpush.bf16.msrb.mxu2 %v9230_v33  ;;  %6159 = vmatpush.bf16.msra.mxu1 %v9234_v49  ;;  %v8822_v33 = vor.u32 %v10025_v28, %v8821_v35  ;;  %v8826_v49 = vor.u32 %v10021_v13, %v8823_v58  ;;  %v9205_v18 = vld [vmem:[#allocation13 + $0x4d0] sm:$0xf]  ;;  %v8918_v63 = vor.u32 %v10049_v12, %v8917_v34 }
 0x4bc   :  { %9367 = vmatmul.msk.bf16.vlgmr.msrb.gmra.mxu0 %vm11434_vm8, %v11432_v17  ;;  %v10121_v37 = vld [vmem:[#allocation13 + $0x4ec] sm:$0xf0]  ;;  %v8698_v28 = vor.u32 %v9989_v26, %v8695_v57  ;;  %v10077_v26 = vld [vmem:[#allocation13 + $0x394] sm:$0xf] }
 0x4bd   :  { %6135 = vmatpush.bf16.msrb.mxu3 %v8658_v15  ;;  %6147 = vmatpush.bf16.msra.mxu0 %v8946_v55  ;;  %v10013_v15 = vld [vmem:[#allocation13 + $0x194] sm:$0xf]  ;;  %v9206_v16 = vor.u32 %v10121_v37, %v9205_v18  ;;  %v8885_v4 = vld [vmem:[#allocation13 + $0x250] sm:$0xf]  ;;  %v8797_v37 = vld [vmem:[#allocation13 + $0x198] sm:$0xf] }
 0x4be   :  { %9361 = vmatmul.msk.bf16.vlgmr.msra.gmra.mxu2 %vm11417_vm3, %v11415_v5  ;;  %9370 = vmatmul.msk.bf16.vlgmr.msrb.gmra.mxu1 %vm11417_vm3, %v11415_v5  ;;  %v8791_v55 = vld [vmem:[#allocation13 + $0x1b0] sm:$0xf0]  ;;  %v10041_v35 = vld [vmem:[#allocation13 + $0x26c] sm:$0xf0] }
 0x4bf   :  { %6121 = vmatpush.bf16.msrb.mxu2 %v9198_v61  ;;  %6160 = vmatpush.bf16.msra.mxu1 %v9202_v56  ;;  %v8790_v61 = vor.u32 %v10017_v8, %v8789_v9  ;;  %v8794_v56 = vor.u32 %v10013_v15, %v8791_v55  ;;  %v9173_v13 = vld [vmem:[#allocation13 + $0x490] sm:$0xf]  ;;  %v8886_v11 = vor.u32 %v10041_v35, %v8885_v4  ;;  %v10149_v15 = vld [vmem:[#allocation13 + $0x5d4] sm:$0xf] }
 0x4c0   :  { %v10113_v58 = vld [vmem:[#allocation13 + $0x4ac] sm:$0xf0]  ;;  %v9335_v55 = vld [vmem:[#allocation13 + $0x5f0] sm:$0xf0] }
 0x4c1   :  { %6136 = vmatpush.bf16.msrb.mxu3 %v8626_v30  ;;  %6148 = vmatpush.bf16.msra.mxu0 %v8914_v59  ;;  %v10005_v30 = vld [vmem:[#allocation13 + $0x154] sm:$0xf]  ;;  %v8853_v23 = vld [vmem:[#allocation13 + $0x210] sm:$0xf]  ;;  %v9338_v19 = vor.u32 %v10149_v15, %v9335_v55  ;;  %v10002_v55 = vld [vmem:[#allocation13 + $0x134] sm:$0xf0] }
 0x4c2   :  { %v8759_v59 = vld [vmem:[#allocation13 + $0x170] sm:$0xf0]  ;;  %v9141_v27 = vld [vmem:[#allocation13 + $0x450] sm:$0xf] }
 0x4c3   :  { %6122 = vmatpush.bf16.msrb.mxu2 %v9166_v62  ;;  %6161 = vmatpush.bf16.msra.mxu1 %v9170_v14  ;;  %v8758_v62 = vor.u32 %v10009_v50, %v8757_v25  ;;  %v8762_v14 = vor.u32 %v10005_v30, %v8759_v59  ;;  %v10105_v48 = vld [vmem:[#allocation13 + $0x46c] sm:$0xf0]  ;;  %v10141_v50 = vld [vmem:[#allocation13 + $0x594] sm:$0xf]  ;;  %v8634_v59 = vor.u32 %v9973_v22, %v8631_v0  ;;  %v8989_v22 = vld [vmem:[#allocation13 + $0x318] sm:$0xf] }
 0x4c4   :  { %v9109_v6 = vld [vmem:[#allocation13 + $0x410] sm:$0xf]  ;;  %v9271_v18 = vld [vmem:[#allocation13 + $0x570] sm:$0xf0]  ;;  %v10066_v0 = vld [vmem:[#allocation13 + $0x334] sm:$0xf0] }
 0x4c5   :  { %6137 = vmatpush.bf16.msrb.mxu3 %v8594_v54  ;;  %6149 = vmatpush.bf16.msra.mxu0 %v8882_v42  ;;  %v8950_v54 = vor.u32 %v10057_v41, %v8949_v36  ;;  %v9238_v42 = vor.u32 %v10129_v20, %v9237_v1  ;;  %v10097_v25 = vld [vmem:[#allocation13 + $0x42c] sm:$0xf0]  ;;  %v9965_v41 = vld [vmem:[#allocation13 + $0x14] sm:$0xf]  ;;  %v10026_v1 = vld [vmem:[#allocation13 + $0x1f4] sm:$0xf0] }
 0x4c6   :  { %v9969_v36 = vld [vmem:[#allocation13 + $0x2c] sm:$0xf0]  ;;  %v10085_v20 = vld [vmem:[#allocation13 + $0x3d4] sm:$0xf] }
 0x4c7   :  { %6123 = vmatpush.bf16.msrb.mxu2 %v9134_v47  ;;  %6162 = vmatpush.bf16.msra.mxu1 %v9138_v43  ;;  %v8693_v47 = vld [vmem:[#allocation13 + $0xd0] sm:$0xf]  ;;  %v9047_v57 = vld [vmem:[#allocation13 + $0x3b0] sm:$0xf0] }
 0x4c8   :  { %9376 = vmatmul.msk.bf16.vlgmr.msrb.gmra.mxu3 %vm11434_vm8, %v11432_v17  ;;  %v9993_v43 = vld [vmem:[#allocation13 + $0xec] sm:$0xf0] }
 0x4c9   :  { %6182 = vmatpush.bf16.msra.mxu3 %v9078_v46  ;;  %6150 = vmatpush.bf16.msra.mxu0 %v8850_v3  ;;  %v8726_v46 = vor.u32 %v10001_v7, %v8725_v40  ;;  %v8694_v3 = vor.u32 %v9993_v43, %v8693_v47  ;;  %v9079_v40 = vld [vmem:[#allocation13 + $0x3f0] sm:$0xf0]  ;;  %v9110_v7 = vor.u32 %v10097_v25, %v9109_v6  ;;  %v10018_v43 = vld [vmem:[#allocation13 + $0x1b4] sm:$0xf0] }
 0x4ca   :  { %v8798_v35 = vor.u32 %v10018_v43, %v8797_v37  ;;  %v10109_v6 = vld [vmem:[#allocation13 + $0x494] sm:$0xf]  ;;  %v8637_v43 = vld [vmem:[#allocation13 + $0x58] sm:$0xf] }
 0x4cb   :  { %6124 = vmatpush.bf16.msrb.mxu2 %v9102_v31  ;;  %6163 = vmatpush.bf16.msra.mxu1 %v9106_v24  ;;  %v9981_v31 = vld [vmem:[#allocation13 + $0x94] sm:$0xf] }
 0x4cc   :  { %9379 = vmatmul.msk.bf16.vlgmr.msra.gmra.mxu0 %vm11417_vm3, %v11415_v5  ;;  %v8663_v24 = vld [vmem:[#allocation13 + $0xb0] sm:$0xf0] }
 0x4cd   :  { %6183 = vmatpush.bf16.msra.mxu3 %v9046_v60  ;;  %6195 = vmatpush.bf16.msrb.mxu0 %v9334_v45  ;;  %v8661_v60 = vld [vmem:[#allocation13 + $0x90] sm:$0xf]  ;;  %v8666_v8 = vor.u32 %v9981_v31, %v8663_v24  ;;  %v10069_v31 = vld [vmem:[#allocation13 + $0x354] sm:$0xf] }
 0x4ce   :  { %9373 = vmatmul.msk.bf16.vlgmr.msrb.gmra.mxu2 %vm11428_vm7, %v11426_v21  ;;  %9382 = vmatmul.msk.bf16.vlgmr.msra.gmra.mxu1 %vm11428_vm7, %v11426_v21  ;;  %v9985_v45 = vld [vmem:[#allocation13 + $0xac] sm:$0xf0]  ;;  %v9015_v24 = vld [vmem:[#allocation13 + $0x370] sm:$0xf0] }
 0x4cf   :  { %6169 = vmatpush.bf16.msra.mxu2 %v8822_v33  ;;  %6208 = vmatpush.bf16.msrb.mxu1 %v8826_v49  ;;  %v9174_v33 = vor.u32 %v10113_v58, %v9173_v13  ;;  %v10033_v49 = vld [vmem:[#allocation13 + $0x22c] sm:$0xf0]  ;;  %v8662_v9 = vor.u32 %v9985_v45, %v8661_v60  ;;  %v9239_v13 = vld [vmem:[#allocation13 + $0x530] sm:$0xf0]  ;;  %v8765_v58 = vld [vmem:[#allocation13 + $0x158] sm:$0xf] }
 0x4d0   :  { %v10010_v45 = vld [vmem:[#allocation13 + $0x174] sm:$0xf0]  ;;  %v9175_v25 = vld [vmem:[#allocation13 + $0x4b0] sm:$0xf0] }
 0x4d1   :  { %6184 = vmatpush.bf16.msra.mxu3 %v9014_v39  ;;  %6196 = vmatpush.bf16.msrb.mxu0 %v9302_v2  ;;  %v8629_v39 = vld [vmem:[#allocation13 + $0x50] sm:$0xf] }
 0x4d2   :  { %v9977_v2 = vld [vmem:[#allocation13 + $0x6c] sm:$0xf0] }
 0x4d3   :  { %6170 = vmatpush.bf16.msra.mxu2 %v8790_v61  ;;  %6209 = vmatpush.bf16.msrb.mxu1 %v8794_v56  ;;  %v8854_v61 = vor.u32 %v10033_v49, %v8853_v23  ;;  %v9142_v56 = vor.u32 %v10105_v48, %v9141_v27  ;;  %v8630_v30 = vor.u32 %v9977_v2, %v8629_v39  ;;  %v10074_v23 = vld [vmem:[#allocation13 + $0x374] sm:$0xf0]  ;;  %v10117_v48 = vld [vmem:[#allocation13 + $0x4d4] sm:$0xf] }
 0x4d4   :  { %v8766_v49 = vor.u32 %v10010_v45, %v8765_v58  ;;  %v9018_v27 = vor.u32 %v10069_v31, %v9015_v24  ;;  %v10061_v39 = vld [vmem:[#allocation13 + $0x314] sm:$0xf]  ;;  %v8605_v45 = vld [vmem:[#allocation13 + $0x18] sm:$0xf]  ;;  %v10014_v24 = vld [vmem:[#allocation13 + $0x19c] sm:$0xf] }
 0x4d5   :  { %6185 = vmatpush.bf16.msra.mxu3 %v8982_v44  ;;  %6197 = vmatpush.bf16.msrb.mxu0 %v9270_v10  ;;  %v9303_v44 = vld [vmem:[#allocation13 + $0x5b0] sm:$0xf0]  ;;  %v8597_v10 = vld [vmem:[#allocation13 + $0x10] sm:$0xf]  ;;  %v9970_v31 = vld [vmem:[#allocation13 + $0x34] sm:$0xf0] }
 0x4d6   :  { %v9306_v32 = vor.u32 %v10141_v50, %v9303_v44  ;;  %v8983_v2 = vld [vmem:[#allocation13 + $0x330] sm:$0xf0]  ;;  %v8701_v50 = vld [vmem:[#allocation13 + $0xd8] sm:$0xf] }
 0x4d7   :  { %6171 = vmatpush.bf16.msra.mxu2 %v8758_v62  ;;  %6210 = vmatpush.bf16.msrb.mxu1 %v8762_v14  ;;  %v8599_v62 = vld [vmem:[#allocation13 + $0x30] sm:$0xf0]  ;;  %v8829_v14 = vld [vmem:[#allocation13 + $0x1d8] sm:$0xf] }
 0x4d8   :  { %v8602_v34 = vor.u32 %v9965_v41, %v8599_v62  ;;  %v8830_v12 = vor.u32 %v10026_v1, %v8829_v14  ;;  %v10053_v44 = vld [vmem:[#allocation13 + $0x2d4] sm:$0xf]  ;;  %v10058_v41 = vld [vmem:[#allocation13 + $0x2f4] sm:$0xf0]  ;;  %v9178_v62 = vor.u32 %v10109_v6, %v9175_v25 }
 0x4d9   :  { %6186 = vmatpush.bf16.msra.mxu3 %v8950_v54  ;;  %6198 = vmatpush.bf16.msrb.mxu0 %v9238_v42  ;;  %v10090_v54 = vld [vmem:[#allocation13 + $0x3f4] sm:$0xf0]  ;;  %v8598_v42 = vor.u32 %v9969_v36, %v8597_v10  ;;  %v8951_v10 = vld [vmem:[#allocation13 + $0x2f0] sm:$0xf0] }
 0x4da   :  { %v9086_v47 = vor.u32 %v10090_v54, %v9085_v38  ;;  %v8957_v36 = vld [vmem:[#allocation13 + $0x2d8] sm:$0xf]  ;;  %v8954_v1 = vor.u32 %v10053_v44, %v8951_v10  ;;  %v10045_v54 = vld [vmem:[#allocation13 + $0x294] sm:$0xf]  ;;  %v9055_v10 = vld [vmem:[#allocation13 + $0x3b8] sm:$0xf0] }
 0x4db   :  { %6172 = vmatpush.bf16.msra.mxu2 %v8726_v46  ;;  %6211 = vmatpush.bf16.msrb.mxu1 %v8730_v53  ;;  %v9082_v46 = vor.u32 %v10085_v20, %v9079_v40  ;;  %v10133_v53 = vld [vmem:[#allocation13 + $0x554] sm:$0xf]  ;;  %v9986_v38 = vld [vmem:[#allocation13 + $0xb4] sm:$0xf0] }
 0x4dc   :  { %v9274_v4 = vor.u32 %v10133_v53, %v9271_v18  ;;  %v10101_v20 = vld [vmem:[#allocation13 + $0x454] sm:$0xf] }
 0x4dd   :  { %6187 = vmatpush.bf16.msra.mxu3 %v8918_v63  ;;  %6199 = vmatpush.bf16.msrb.mxu0 %v9206_v16  ;;  %v9053_v63 = vld [vmem:[#allocation13 + $0x398] sm:$0xf]  ;;  %v9143_v40 = vld [vmem:[#allocation13 + $0x470] sm:$0xf0] }
 0x4de   :  { %v10082_v16 = vld [vmem:[#allocation13 + $0x3b4] sm:$0xf0]  ;;  %v10093_v53 = vld [vmem:[#allocation13 + $0x414] sm:$0xf] }
 0x4df   :  { %6173 = vmatpush.bf16.msra.mxu2 %v8694_v3  ;;  %6212 = vmatpush.bf16.msrb.mxu1 %v8698_v28  ;;  %v9050_v3 = vor.u32 %v10077_v26, %v9047_v57  ;;  %v10125_v28 = vld [vmem:[#allocation13 + $0x514] sm:$0xf]  ;;  %v9054_v60 = vor.u32 %v10082_v16, %v9053_v63  ;;  %v9978_v26 = vld [vmem:[#allocation13 + $0x74] sm:$0xf0]  ;;  %v10022_v63 = vld [vmem:[#allocation13 + $0x1dc] sm:$0xf] }
 0x4e0   :  { %v8831_v16 = vld [vmem:[#allocation13 + $0x1f8] sm:$0xf0]  ;;  %v8638_v58 = vor.u32 %v9978_v26, %v8637_v43 }
 0x4e1   :  { %6188 = vmatpush.bf16.msra.mxu3 %v8886_v11  ;;  %6200 = vmatpush.bf16.msrb.mxu0 %v9174_v33  ;;  %v9021_v11 = vld [vmem:[#allocation13 + $0x358] sm:$0xf]  ;;  %v9242_v33 = vor.u32 %v10125_v28, %v9239_v13  ;;  %v9990_v43 = vld [vmem:[#allocation13 + $0xdc] sm:$0xf] }
 0x4e2   :  { %v9022_v15 = vor.u32 %v10074_v23, %v9021_v11  ;;  %v10042_v28 = vld [vmem:[#allocation13 + $0x274] sm:$0xf0]  ;;  %v8703_v26 = vld [vmem:[#allocation13 + $0xf8] sm:$0xf0] }
 0x4e3   :  { %6174 = vmatpush.bf16.msra.mxu2 %v8662_v9  ;;  %6213 = vmatpush.bf16.msrb.mxu1 %v8666_v8  ;;  %v9207_v9 = vld [vmem:[#allocation13 + $0x4f0] sm:$0xf0]  ;;  %v8733_v8 = vld [vmem:[#allocation13 + $0x118] sm:$0xf] }
 0x4e5   :  { %6189 = vmatpush.bf16.msra.mxu3 %v8854_v61  ;;  %6201 = vmatpush.bf16.msrb.mxu0 %v9142_v56  ;;  %v9210_v61 = vor.u32 %v10117_v48, %v9207_v9  ;;  %v8734_v56 = vor.u32 %v10002_v55, %v8733_v8  ;;  %v8861_v48 = vld [vmem:[#allocation13 + $0x218] sm:$0xf]  ;;  %v10086_v8 = vld [vmem:[#allocation13 + $0x3dc] sm:$0xf] }
 0x4e6   :  { %v10034_v9 = vld [vmem:[#allocation13 + $0x234] sm:$0xf0] }
 0x4e7   :  { %6175 = vmatpush.bf16.msra.mxu2 %v8630_v30  ;;  %6214 = vmatpush.bf16.msrb.mxu1 %v8634_v59  ;;  %v8990_v30 = vor.u32 %v10066_v0, %v8989_v22  ;;  %v9994_v59 = vld [vmem:[#allocation13 + $0xf4] sm:$0xf0]  ;;  %v10150_v0 = vld [vmem:[#allocation13 + $0x5dc] sm:$0xf] }
 0x4e8   :  { %9388 = vmatmul.msk.bf16.vlgmr.msra.gmra.mxu3 %vm11417_vm3, %v11415_v5  ;;  %v8702_v14 = vor.u32 %v9994_v59, %v8701_v50  ;;  %v9341_v55 = vld [vmem:[#allocation13 + $0x5d8] sm:$0xf]  ;;  %v10006_v50 = vld [vmem:[#allocation13 + $0x15c] sm:$0xf] }
 0x4e9   :  { %6234 = vmatpush.bf16.msrb.mxu3 %v9338_v19  ;;  %6202 = vmatpush.bf16.msrb.mxu0 %v9110_v7  ;;  %v8986_v19 = vor.u32 %v10061_v39, %v8983_v2  ;;  %v8669_v7 = vld [vmem:[#allocation13 + $0x98] sm:$0xf]  ;;  %v8606_v2 = vor.u32 %v9970_v31, %v8605_v45  ;;  %v10078_v59 = vld [vmem:[#allocation13 + $0x39c] sm:$0xf] }
 0x4ea   :  { %v8670_v18 = vor.u32 %v9986_v38, %v8669_v7  ;;  %v10154_v39 = vld [vmem:[#allocation13 + $0x5f4] sm:$0xf0]  ;;  %v9998_v7 = vld [vmem:[#allocation13 + $0x11c] sm:$0xf] }
 0x4eb   :  { %6176 = vmatpush.bf16.msra.mxu2 %v8598_v42  ;;  %6215 = vmatpush.bf16.msrb.mxu1 %v8602_v34  ;;  %v8919_v42 = vld [vmem:[#allocation13 + $0x2b0] sm:$0xf0]  ;;  %v8925_v34 = vld [vmem:[#allocation13 + $0x298] sm:$0xf]  ;;  %v9342_v25 = vor.u32 %v10154_v39, %v9341_v55  ;;  %v10070_v38 = vld [vmem:[#allocation13 + $0x35c] sm:$0xf] }
 0x4ec   :  { %9391 = vmatmul.msk.bf16.vlgmr.msrb.gmra.mxu0 %vm11428_vm7, %v11426_v21  ;;  %v8922_v37 = vor.u32 %v10045_v54, %v8919_v42  ;;  %v9023_v42 = vld [vmem:[#allocation13 + $0x378] sm:$0xf0] }
 0x4ed   :  { %6235 = vmatpush.bf16.msrb.mxu3 %v9306_v32  ;;  %6247 = vmatpush.bf16.msra.mxu0 %v8830_v12  ;;  %v8958_v32 = vor.u32 %v10058_v41, %v8957_v36  ;;  %v10050_v12 = vld [vmem:[#allocation13 + $0x2b4] sm:$0xf0]  ;;  %v9982_v45 = vld [vmem:[#allocation13 + $0x9c] sm:$0xf] }
 0x4ee   :  { %9385 = vmatmul.msk.bf16.vlgmr.msra.gmra.mxu2 %vm11434_vm8, %v11432_v17  ;;  %9394 = vmatmul.msk.bf16.vlgmr.msrb.gmra.mxu1 %vm11434_vm8, %v11432_v17  ;;  %v8926_v57 = vor.u32 %v10050_v12, %v8925_v34  ;;  %v9309_v36 = vld [vmem:[#allocation13 + $0x598] sm:$0xf]  ;;  %v8671_v31 = vld [vmem:[#allocation13 + $0xb8] sm:$0xf0] }
 0x4ef   :  { %6221 = vmatpush.bf16.msrb.mxu2 %v9082_v46  ;;  %6260 = vmatpush.bf16.msra.mxu1 %v9086_v47  ;;  %v9146_v46 = vor.u32 %v10101_v20, %v9143_v40  ;;  %v9111_v47 = vld [vmem:[#allocation13 + $0x430] sm:$0xf0]  ;;  %v10146_v41 = vld [vmem:[#allocation13 + $0x5b4] sm:$0xf0]  ;;  %v9058_v20 = vor.u32 %v10078_v59, %v9055_v10  ;;  %v9974_v55 = vld [vmem:[#allocation13 + $0x5c] sm:$0xf] }
 0x4f0   :  { %v9114_v13 = vor.u32 %v10093_v53, %v9111_v47  ;;  %v9310_v40 = vor.u32 %v10146_v41, %v9309_v36  ;;  %v9277_v34 = vld [vmem:[#allocation13 + $0x558] sm:$0xf]  ;;  %v9279_v53 = vld [vmem:[#allocation13 + $0x578] sm:$0xf0] }
 0x4f1   :  { %6236 = vmatpush.bf16.msrb.mxu3 %v9274_v4  ;;  %6248 = vmatpush.bf16.msra.mxu0 %v8798_v35  ;;  %v10037_v4 = vld [vmem:[#allocation13 + $0x254] sm:$0xf]  ;;  %v10138_v12 = vld [vmem:[#allocation13 + $0x574] sm:$0xf0]  ;;  %v8639_v39 = vld [vmem:[#allocation13 + $0x78] sm:$0xf0] }
 0x4f2   :  { %v8887_v35 = vld [vmem:[#allocation13 + $0x270] sm:$0xf0]  ;;  %v9278_v47 = vor.u32 %v10138_v12, %v9277_v34  ;;  %v9966_v59 = vld [vmem:[#allocation13 + $0x1c] sm:$0xf]  ;;  %v9117_v34 = vld [vmem:[#allocation13 + $0x418] sm:$0xf] }
 0x4f3   :  { %6222 = vmatpush.bf16.msrb.mxu2 %v9050_v3  ;;  %6261 = vmatpush.bf16.msra.mxu1 %v9054_v60  ;;  %v8893_v3 = vld [vmem:[#allocation13 + $0x258] sm:$0xf]  ;;  %v8834_v60 = vor.u32 %v10022_v63, %v8831_v16  ;;  %v8890_v11 = vor.u32 %v10037_v4, %v8887_v35  ;;  %v8991_v16 = vld [vmem:[#allocation13 + $0x338] sm:$0xf0] }
 0x4f4   :  { %v8894_v23 = vor.u32 %v10042_v28, %v8893_v3  ;;  %v9245_v4 = vld [vmem:[#allocation13 + $0x518] sm:$0xf]  ;;  %v10126_v3 = vld [vmem:[#allocation13 + $0x51c] sm:$0xf] }
 0x4f5   :  { %6237 = vmatpush.bf16.msrb.mxu3 %v9242_v33  ;;  %6249 = vmatpush.bf16.msra.mxu0 %v8766_v49  ;;  %v8799_v33 = vld [vmem:[#allocation13 + $0x1b8] sm:$0xf0]  ;;  %v10029_v49 = vld [vmem:[#allocation13 + $0x214] sm:$0xf]  ;;  %v10130_v35 = vld [vmem:[#allocation13 + $0x534] sm:$0xf0] }
 0x4f6   :  { %v8802_v22 = vor.u32 %v10014_v24, %v8799_v33  ;;  %v9247_v28 = vld [vmem:[#allocation13 + $0x538] sm:$0xf0]  ;;  %v9213_v33 = vld [vmem:[#allocation13 + $0x4d8] sm:$0xf] }
 0x4f7   :  { %6223 = vmatpush.bf16.msrb.mxu2 %v9018_v27  ;;  %6262 = vmatpush.bf16.msra.mxu1 %v9022_v15  ;;  %v8855_v27 = vld [vmem:[#allocation13 + $0x230] sm:$0xf0]  ;;  %v9087_v15 = vld [vmem:[#allocation13 + $0x3f8] sm:$0xf0]  ;;  %v10098_v12 = vld [vmem:[#allocation13 + $0x434] sm:$0xf0] }
 0x4f8   :  { %v9090_v6 = vor.u32 %v10086_v8, %v9087_v15  ;;  %v10054_v24 = vld [vmem:[#allocation13 + $0x2dc] sm:$0xf] }
 0x4f9   :  { %6238 = vmatpush.bf16.msrb.mxu3 %v9210_v61  ;;  %6250 = vmatpush.bf16.msra.mxu0 %v8734_v56  ;;  %v9343_v61 = vld [vmem:[#allocation13 + $0x5f8] sm:$0xf0]  ;;  %v8858_v56 = vor.u32 %v10029_v49, %v8855_v27  ;;  %v10122_v49 = vld [vmem:[#allocation13 + $0x4f4] sm:$0xf0] }
 0x4fa   :  { %v9346_v44 = vor.u32 %v10150_v0, %v9343_v61  ;;  %v10118_v27 = vld [vmem:[#allocation13 + $0x4dc] sm:$0xf]  ;;  %v9214_v15 = vor.u32 %v10122_v49, %v9213_v33  ;;  %v9181_v61 = vld [vmem:[#allocation13 + $0x498] sm:$0xf] }
 0x4fb   :  { %6224 = vmatpush.bf16.msrb.mxu2 %v8986_v19  ;;  %6263 = vmatpush.bf16.msra.mxu1 %v8990_v30  ;;  %v8862_v19 = vor.u32 %v10034_v9, %v8861_v48  ;;  %v8767_v30 = vld [vmem:[#allocation13 + $0x178] sm:$0xf0]  ;;  %v8674_v9 = vor.u32 %v9982_v45, %v8671_v31 }
 0x4fc   :  { %v9215_v48 = vld [vmem:[#allocation13 + $0x4f8] sm:$0xf0] }
 0x4fd   :  { %6239 = vmatpush.bf16.msrb.mxu3 %v9178_v62  ;;  %6251 = vmatpush.bf16.msra.mxu0 %v8702_v14  ;;  %v10142_v62 = vld [vmem:[#allocation13 + $0x59c] sm:$0xf] }
 0x4fe   :  { %v9311_v14 = vld [vmem:[#allocation13 + $0x5b8] sm:$0xf0] }
 0x4ff   :  { %6225 = vmatpush.bf16.msrb.mxu2 %v8954_v1  ;;  %6264 = vmatpush.bf16.msra.mxu1 %v8958_v32  ;;  %v8770_v1 = vor.u32 %v10006_v50, %v8767_v30  ;;  %v8735_v32 = vld [vmem:[#allocation13 + $0x138] sm:$0xf0]  ;;  %v9314_v54 = vor.u32 %v10142_v62, %v9311_v14  ;;  %v9149_v62 = vld [vmem:[#allocation13 + $0x458] sm:$0xf] }
 0x500   :  { %v8927_v0 = vld [vmem:[#allocation13 + $0x2b8] sm:$0xf0]  ;;  %v10106_v14 = vld [vmem:[#allocation13 + $0x474] sm:$0xf0] }
 0x501   :  { %6240 = vmatpush.bf16.msrb.mxu3 %v9146_v46  ;;  %6252 = vmatpush.bf16.msra.mxu0 %v8670_v18  ;;  %v10134_v46 = vld [vmem:[#allocation13 + $0x55c] sm:$0xf]  ;;  %v8738_v18 = vor.u32 %v9998_v7, %v8735_v32  ;;  %v9150_v32 = vor.u32 %v10106_v14, %v9149_v62 }
 0x502   :  { %v9282_v63 = vor.u32 %v10134_v46, %v9279_v53  ;;  %v10038_v10 = vld [vmem:[#allocation13 + $0x25c] sm:$0xf] }
 0x503   :  { %6226 = vmatpush.bf16.msrb.mxu2 %v8922_v37  ;;  %6265 = vmatpush.bf16.msra.mxu1 %v8926_v57  ;;  %v9026_v37 = vor.u32 %v10070_v38, %v9023_v42  ;;  %v10062_v57 = vld [vmem:[#allocation13 + $0x31c] sm:$0xf] }
 0x504   :  { %v8895_v41 = vld [vmem:[#allocation13 + $0x278] sm:$0xf0] }
 0x505   :  { %6241 = vmatpush.bf16.msrb.mxu3 %v9114_v13  ;;  %6253 = vmatpush.bf16.msra.mxu0 %v8638_v58  ;;  %v8706_v13 = vor.u32 %v9990_v43, %v8703_v26  ;;  %v8994_v58 = vor.u32 %v10062_v57, %v8991_v16  ;;  %v8898_v7 = vor.u32 %v10038_v10, %v8895_v41  ;;  %v10030_v38 = vld [vmem:[#allocation13 + $0x21c] sm:$0xf] }
 0x506   :  { %v8863_v42 = vld [vmem:[#allocation13 + $0x238] sm:$0xf0] }
 0x507   :  { %6227 = vmatpush.bf16.msrb.mxu2 %v8890_v11  ;;  %6266 = vmatpush.bf16.msra.mxu1 %v8894_v23  ;;  %v9250_v11 = vor.u32 %v10126_v3, %v9247_v28  ;;  %v8959_v23 = vld [vmem:[#allocation13 + $0x2f8] sm:$0xf0] }
 0x508   :  { %9400 = vmatmul.msk.bf16.vlgmr.msrb.gmra.mxu3 %vm11428_vm7, %v11426_v21  ;;  %v8962_v8 = vor.u32 %v10054_v24, %v8959_v23  ;;  %v10094_v46 = vld [vmem:[#allocation13 + $0x41c] sm:$0xf] }
 0x509   :  { %6286 = vmatpush.bf16.msra.mxu3 %v8834_v60  ;;  %6254 = vmatpush.bf16.msra.mxu0 %v8606_v2  ;;  %v9246_v60 = vor.u32 %v10130_v35, %v9245_v4  ;;  %v10046_v2 = vld [vmem:[#allocation13 + $0x29c] sm:$0xf] }
 0x50a   :  { %v8930_v50 = vor.u32 %v10046_v2, %v8927_v0  ;;  %v9119_v53 = vld [vmem:[#allocation13 + $0x438] sm:$0xf0] }
 0x50b   :  { %6228 = vmatpush.bf16.msrb.mxu2 %v8858_v56  ;;  %6267 = vmatpush.bf16.msra.mxu1 %v8862_v19  ;;  %v10114_v56 = vld [vmem:[#allocation13 + $0x4b4] sm:$0xf0]  ;;  %v10110_v19 = vld [vmem:[#allocation13 + $0x49c] sm:$0xf] }
 0x50c   :  { %9403 = vmatmul.msk.bf16.vlgmr.msra.gmra.mxu0 %vm11434_vm8, %v11432_v17  ;;  %v9182_v30 = vor.u32 %v10114_v56, %v9181_v61 }
 0x50d   :  { %6287 = vmatpush.bf16.msra.mxu3 %v8802_v22  ;;  %6299 = vmatpush.bf16.msrb.mxu0 %v9090_v6  ;;  %v9218_v22 = vor.u32 %v10118_v27, %v9215_v48  ;;  %v9183_v6 = vld [vmem:[#allocation13 + $0x4b8] sm:$0xf0] }
 0x50e   :  { %9397 = vmatmul.msk.bf16.vlgmr.msrb.gmra.mxu2 %vm11417_vm3, %v11415_v5  ;;  %9406 = vmatmul.msk.bf16.vlgmr.msra.gmra.mxu1 %vm11417_vm3, %v11415_v5  ;;  %v9186_v36 = vor.u32 %v10110_v19, %v9183_v6 }
 0x50f   :  { %6273 = vmatpush.bf16.msra.mxu2 %v9342_v25  ;;  %6312 = vmatpush.bf16.msrb.mxu1 %v9346_v44  ;;  %v8642_v25 = vor.u32 %v9974_v55, %v8639_v39  ;;  %v8607_v44 = vld [vmem:[#allocation13 + $0x38] sm:$0xf0] }
 0x511   :  { %6288 = vmatpush.bf16.msra.mxu3 %v8770_v1  ;;  %6300 = vmatpush.bf16.msrb.mxu0 %v9058_v20  ;;  %v10102_v1 = vld [vmem:[#allocation13 + $0x45c] sm:$0xf] }
 0x512   :  { %v9151_v20 = vld [vmem:[#allocation13 + $0x478] sm:$0xf0] }
 0x513   :  { %6274 = vmatpush.bf16.msra.mxu2 %v9310_v40  ;;  %6313 = vmatpush.bf16.msrb.mxu1 %v9314_v54  ;;  %v8610_v40 = vor.u32 %v9966_v59, %v8607_v44  ;;  %v9154_v54 = vor.u32 %v10102_v1, %v9151_v20 }
 0x515   :  { %6289 = vmatpush.bf16.msra.mxu3 %v8738_v18  ;;  %6301 = vmatpush.bf16.msrb.mxu0 %v9026_v37  ;;  %v8866_v18 = vor.u32 %v10030_v38, %v8863_v42  ;;  %v9118_v37 = vor.u32 %v10098_v12, %v9117_v34 }
 0x517   :  { %6275 = vmatpush.bf16.msra.mxu2 %v9278_v47  ;;  %6314 = vmatpush.bf16.msrb.mxu1 %v9282_v63  ;;  %v9122_v47 = vor.u32 %v10094_v46, %v9119_v53 }
 0x519   :  { %6290 = vmatpush.bf16.msra.mxu3 %v8706_v13  ;;  %6302 = vmatpush.bf16.msrb.mxu0 %v8994_v58 }
 0x51b   :  { %6276 = vmatpush.bf16.msra.mxu2 %v9246_v60  ;;  %6315 = vmatpush.bf16.msrb.mxu1 %v9250_v11 }
 0x51d   :  { %6291 = vmatpush.bf16.msra.mxu3 %v8674_v9  ;;  %6303 = vmatpush.bf16.msrb.mxu0 %v8962_v8 }
 0x51f   :  { %6277 = vmatpush.bf16.msra.mxu2 %v9214_v15  ;;  %6316 = vmatpush.bf16.msrb.mxu1 %v9218_v22 }
 0x521   :  { %6292 = vmatpush.bf16.msra.mxu3 %v8642_v25  ;;  %6304 = vmatpush.bf16.msrb.mxu0 %v8930_v50 }
 0x523   :  { %6278 = vmatpush.bf16.msra.mxu2 %v9182_v30  ;;  %6317 = vmatpush.bf16.msrb.mxu1 %v9186_v36 }
 0x525   :  { %6293 = vmatpush.bf16.msra.mxu3 %v8610_v40  ;;  %6305 = vmatpush.bf16.msrb.mxu0 %v8898_v7 }
 0x527   :  { %6279 = vmatpush.bf16.msra.mxu2 %v9150_v32  ;;  %6318 = vmatpush.bf16.msrb.mxu1 %v9154_v54 }
 0x528   :  { %9412 = vmatmul.msk.bf16.vlgmr.msra.gmra.mxu3 %vm11434_vm8, %v11432_v17 }
 0x529   :  { %6306 = vmatpush.bf16.msrb.mxu0 %v8866_v18  ;;  %v6048_v43 = vpop.f32.mrf.mxu0 }
 0x52b   :  { %6280 = vmatpush.bf16.msra.mxu2 %v9118_v37  ;;  %6319 = vmatpush.bf16.msrb.mxu1 %v9122_v47  ;;  %v6035_v26 = vpop.f32.mrf.mxu3  ;;  %v6061_v57 = vpop.f32.mrf.mxu1 }
 0x52c   :  { %9415 = vmatmul.msk.bf16.vlgmr.msrb.gmra.mxu0 %vm11417_vm3, %v11415_v5  ;;  %v11507_v5 = vld [vmem:[#allocation15] sm:$0xff] }
 0x52d   :  { %v5038_v52 = vperm.slane %v11507_v5, 1  ;;  %v5037_v45 = vperm.slane %v11507_v5, 0  ;;  %v5039_v31 = vperm.slane %v11507_v5, 2  ;;  %v5040_v24 = vperm.slane %v11507_v5, 3 }
 0x52e   :  { %9409 = vmatmul.msk.bf16.vlgmr.msra.gmra.mxu2 %vm11428_vm7, %v11426_v21  ;;  %9418 = vmatmul.msk.bf16.vlgmr.msrb.gmra.mxu1 %vm11428_vm7, %v11426_v21  ;;  %v5041_v20 = vperm.slane %v11507_v5, 4 }
 0x52f   :  { %v6062_v21 = vadd.f32 %v6061_v57, %v5038_v52 }
 0x531   :  { %v6022_v51 = vpop.f32.mrf.mxu2  ;;  %v6050_v17 = vpop.f32.mrf.mxu0 }
 0x532   :  { %v6023_v27 = vadd.f32 %v6022_v51, %v5037_v45  ;;  %v5042_v51 = vperm.slane %v11507_v5, 5 }
 0x533   :  { %v6037_v63 = vpop.f32.mrf.mxu3  ;;  %v6063_v16 = vpop.f32.mrf.mxu1 }
 0x534   :  { %v6036_v39 = vadd.f32 %v6035_v26, %v6023_v27  ;;  %v5043_v63 = vperm.slane %v11507_v5, 6  ;;  %v5044_v16 = vperm.slane %v11507_v5, 7 }
 0x536   :  { %v6049_v25 = vadd.f32 %v6048_v43, %v6036_v39 }
 0x539   :  { %v6024_v4 = vpop.f32.mrf.mxu2  ;;  %v6100_v35 = vpop.f32.mrf.mxu0 }
 0x53a   :  { %v6101_v48 = vadd.f32 %v6100_v35, %v5039_v31 }
 0x53b   :  { %v6087_v3 = vpop.f32.mrf.mxu3  ;;  %v6113_v29 = vpop.f32.mrf.mxu1 }
 0x53c   :  { %v6114_v2 = vadd.f32 %v6113_v29, %v6101_v48 }
 0x541   :  { %v6074_v28 = vpop.f32.mrf.mxu2  ;;  %v6102_v13 = vpop.f32.mrf.mxu0 }
 0x542   :  { %v6075_v23 = vadd.f32 %v6074_v28, %v6062_v21 }
 0x543   :  { %v6089_v58 = vpop.f32.mrf.mxu3  ;;  %v6115_v60 = vpop.f32.mrf.mxu1 }
 0x544   :  { %v6088_v15 = vadd.f32 %v6087_v3, %v6075_v23 }
 0x546   :  { %v6333_v61 = vrot.slane %v6088_v15, 6 }
 0x548   :  { %v6340_v44 = vsel %vm6339_vm9, %v6049_v25, %v6333_v61 }
 0x549   :  { %v6076_v11 = vpop.f32.mrf.mxu2  ;;  %v6152_v33 = vpop.f32.mrf.mxu0 }
 0x54b   :  { %v6139_v49 = vpop.f32.mrf.mxu3  ;;  %v6165_v8 = vpop.f32.mrf.mxu1 }
 0x54c   :  { %v6140_v9 = vadd.f32 %v6139_v49, %v5040_v24 }
 0x54e   :  { %v6153_v55 = vadd.f32 %v6152_v33, %v6140_v9 }
 0x550   :  { %v6166_v22 = vadd.f32 %v6165_v8, %v6153_v55 }
 0x551   :  { %v6126_v0 = vpop.f32.mrf.mxu2  ;;  %v6154_v19 = vpop.f32.mrf.mxu0 }
 0x552   :  { %v6127_v56 = vadd.f32 %v6126_v0, %v6114_v2  ;;  %v6335_v50 = vrot.slane %v6166_v22, 2 }
 0x553   :  { %v6141_v6 = vpop.f32.mrf.mxu3  ;;  %v6167_v59 = vpop.f32.mrf.mxu1 }
 0x554   :  { %v6334_v30 = vrot.slane %v6127_v56, 4 }
 0x556   :  { %v6342_v10 = vsel %vm6341_vm10, %v6334_v30, %v6335_v50 }
 0x557   :  { %v6344_v36 = vsel %vm6343_vm11, %v6340_v44, %v6342_v10 }
 0x558   :  { %6350 = vst [vmem:[%s11539_s10] sm:$0xff] %v6344_v36 }
 0x559   :  { %v6128_v41 = vpop.f32.mrf.mxu2 }
 0x569   :  { %v6204_v62 = vpop.f32.mrf.mxu0 }
 0x56b   :  { %v6191_v14 = vpop.f32.mrf.mxu3  ;;  %v6217_v1 = vpop.f32.mrf.mxu1 }
 0x56c   :  { %v6218_v17 = vadd.f32 %v6217_v1, %v5042_v51 }
 0x571   :  { %v6178_v40 = vpop.f32.mrf.mxu2  ;;  %v6206_v32 = vpop.f32.mrf.mxu0 }
 0x572   :  { %v6179_v7 = vadd.f32 %v6178_v40, %v5041_v20 }
 0x573   :  { %v6193_v38 = vpop.f32.mrf.mxu3  ;;  %v6219_v54 = vpop.f32.mrf.mxu1 }
 0x574   :  { %v6192_v42 = vadd.f32 %v6191_v14, %v6179_v7 }
 0x576   :  { %v6205_v34 = vadd.f32 %v6204_v62, %v6192_v42 }
 0x579   :  { %v6180_v12 = vpop.f32.mrf.mxu2 }
 0x589   :  { %v6256_v46 = vpop.f32.mrf.mxu0 }
 0x58a   :  { %v6257_v3 = vadd.f32 %v6256_v46, %v5043_v63 }
 0x58b   :  { %v6243_v53 = vpop.f32.mrf.mxu3  ;;  %v6269_v18 = vpop.f32.mrf.mxu1 }
 0x58c   :  { %v6270_v52 = vadd.f32 %v6269_v18, %v6257_v3 }
 0x591   :  { %v6230_v37 = vpop.f32.mrf.mxu2  ;;  %v6258_v47 = vpop.f32.mrf.mxu0 }
 0x592   :  { %v6231_v4 = vadd.f32 %v6230_v37, %v6218_v17 }
 0x593   :  { %v6245_v43 = vpop.f32.mrf.mxu3  ;;  %v6271_v26 = vpop.f32.mrf.mxu1 }
 0x594   :  { %v6244_v58 = vadd.f32 %v6243_v53, %v6231_v4 }
 0x596   :  { %v6336_v31 = vrot.slane %v6244_v58, 6 }
 0x598   :  { %v6345_v5 = vsel %vm6339_vm9, %v6205_v34, %v6336_v31 }
 0x599   :  { %v6232_v57 = vpop.f32.mrf.mxu2 }
 0x5a9   :  { %v6308_v35 = vpop.f32.mrf.mxu0 }
 0x5ab   :  { %v6295_v29 = vpop.f32.mrf.mxu3  ;;  %v6321_v28 = vpop.f32.mrf.mxu1 }
 0x5ac   :  { %v6296_v13 = vadd.f32 %v6295_v29, %v5044_v16 }
 0x5ae   :  { %v6309_v60 = vadd.f32 %v6308_v35, %v6296_v13 }
 0x5b0   :  { %v6322_v21 = vadd.f32 %v6321_v28, %v6309_v60 }
 0x5b1   :  { %v6282_v45 = vpop.f32.mrf.mxu2  ;;  %v6310_v11 = vpop.f32.mrf.mxu0 }
 0x5b2   :  { %v6283_v24 = vadd.f32 %v6282_v45, %v6270_v52  ;;  %v6338_v23 = vrot.slane %v6322_v21, 2 }
 0x5b3   :  { %v6297_v49 = vpop.f32.mrf.mxu3  ;;  %v6323_v27 = vpop.f32.mrf.mxu1 }
 0x5b4   :  { %v6337_v33 = vrot.slane %v6283_v24, 4 }
 0x5b6   :  { %v6346_v48 = vsel %vm6341_vm10, %v6337_v33, %v6338_v23 }
 0x5b7   :  { %v6347_v9 = vsel %vm6343_vm11, %v6345_v5, %v6346_v48 }
 0x5b8   :  { %6351 = vst [vmem:[%s11539_s10 + $0x8] sm:$0xff] %v6347_v9 }
 0x5b9   :  { %v6284_v8 = vpop.f32.mrf.mxu2 }
 0x5ba   :  { %6356 = vsyncpa [#allocation3], 1 }
 0x5bb   :  { %6357 = vsyncpa [#allocation5], 1 }
 0x5bc   :  { %6358 = vsyncpa [#allocation8], 1 }
 0x5bd   :  { %6359 = vsyncpa [#allocation11], 1 }
 0x5be   :  { %6360 = vsyncpa [#allocation14], 1 }

</bundles_post_ra>
